<compile_context>
chip_gen: v6e
topology: v6e:2x2x1
jax: 0.10.0
libtpu: 0.0.40
codegen_flags: <defaults>
</compile_context>

<pallas_src>
import jax
import jax.numpy as jnp
from jax.experimental import pallas as pl
from jax.experimental.pallas import tpu as pltpu

C_IN = 128     # conv1 in_channels
L_IN = 1024    # fc1 in_features (== conv sequence length)
D_OUT = 768    # fc1 out_features
CH_CHUNK = 32  # channel-reduce chunk (bounds VMEM temps at larger batch tiles)


def dim_mapper_kernel(x_ref, wconv_ref, wfc_ref, bfc_ref, out_ref):
    # x_ref:     (TN, 128, 1024) f32  batch tile (pipelined)
    # wconv_ref: (1, 128)        f32  Conv1d weight, k=1 dim squeezed (resident)
    # wfc_ref:   (1024, 768)     f32  Linear weight, pre-transposed once (resident)
    # bfc_ref:   (1, 768)        f32  fc bias with conv bias folded in (resident)
    # out_ref:   (TN, 768)       f32
    tn = x_ref.shape[0]
    wc = wconv_ref[...]                                    # (1, 128)

    # Conv1d(kernel_size=1) == per-position channel contraction.  Keep it on the
    # VPU (mul) + XLU (sublane reduce); chunk channels so the elementwise product
    # never materializes as one (TN, 128, 1024) f32 temp in VMEM.
    z = jnp.zeros((tn, L_IN), jnp.float32)
    for c0 in range(0, C_IN, CH_CHUNK):
        xs = x_ref[:, c0:c0 + CH_CHUNK, :]                 # (TN, CH_CHUNK, 1024)
        ws = wc[:, c0:c0 + CH_CHUNK]                       # (1, CH_CHUNK)
        z = z + jnp.sum(xs * ws[:, :, None], axis=1)       # (TN, 1024)

    # Linear: (TN, 1024) @ (1024, 768) on the MXU; conv bias already folded in.
    y = jnp.dot(z, wfc_ref[...], preferred_element_type=jnp.float32)
    out_ref[...] = y + bfc_ref[...]


def prepare_params(w_conv, b_conv, w_fc, b_fc):
    """One-time parameter prep (outside the per-call hot path).

    w_conv: (1, 128, 1)  b_conv: (1,)  w_fc: (768, 1024)  b_fc: (768,)
    Returns kernel-ready params: (1, 128), (1024, 768), (1, 768).
    """
    wconv2d = w_conv.reshape(1, C_IN).astype(jnp.float32)
    wfc_t = jnp.asarray(w_fc, jnp.float32).T                       # (1024, 768)
    # Exact fold of the conv bias into the FC bias:
    #   (z + b_conv) @ Wfc^T + b_fc == z @ Wfc^T + (b_conv * Wfc.sum(axis=1) + b_fc)
    b_eff = (b_conv.reshape(()) * jnp.sum(w_fc, axis=1) + b_fc).reshape(1, D_OUT)
    return wconv2d, wfc_t, b_eff.astype(jnp.float32)


def _choose_tile(n, tile_n):
    """Batch tile: full batch for tiny N; otherwise a multiple of 8 giving >=2
    grid steps (so the 'parallel' axis actually shards across v7x's 2 TCs)."""
    if n <= 8:
        return n
    half = -(-n // 2)                 # ceil(N / 2)
    half8 = -(-half // 8) * 8         # rounded up to a multiple of 8
    return max(8, min(tile_n, half8))


def dim_mapper(x, wconv2d, wfc_t, b_eff, *, tile_n=16):
    """x: (N, 128, 1024) f32.  Returns (N, 1, 768) f32 (PyTorch semantics)."""
    N = x.shape[0]
    assert x.shape == (N, C_IN, L_IN)

    tn = _choose_tile(N, tile_n)
    grid = (pl.cdiv(N, tn),)          # ragged last block handled by Pallas (no jnp.pad)

    def call(const_kw):
        return pl.pallas_call(
            dim_mapper_kernel,
            out_shape=jax.ShapeDtypeStruct((N, D_OUT), jnp.float32),
            grid=grid,
            in_specs=[
                pl.BlockSpec((tn, C_IN, L_IN), lambda i: (i, 0, 0)),        # x: tiled over batch
                pl.BlockSpec((1, C_IN), lambda i: (0, 0), **const_kw),      # conv weight: resident
                pl.BlockSpec((L_IN, D_OUT), lambda i: (0, 0), **const_kw),  # fc weight: resident
                pl.BlockSpec((1, D_OUT), lambda i: (0, 0), **const_kw),     # fused bias: resident
            ],
            out_specs=pl.BlockSpec((tn, D_OUT), lambda i: (i, 0)),
            compiler_params=pltpu.CompilerParams(
                dimension_semantics=("parallel",),        # megacore-shard batch on v7x
                vmem_limit_bytes=48 * 1024 * 1024,        # safe on v7x (64 MiB), lifts v5e default
            ),
        )(x, wconv2d, wfc_t, b_eff)

    try:
        # Constants are never re-fetched -> single-buffer them to reclaim VMEM.
        out = call({"pipeline_mode": pl.Buffered(1)})
    except Exception:
        # Fallback if this JAX build rejects pipeline_mode / Buffered(1).
        out = call({})

    return out.reshape(N, 1, D_OUT)


def reference(x, w_conv, b_conv, w_fc, b_fc):
    # Pure-JAX reference mimicking the PyTorch forward exactly.
    z = jnp.einsum('ncl,c->nl', x, w_conv[0, :, 0]) + b_conv[0]   # (N, 1024)
    y = z @ w_fc.T + b_fc                                         # (N, 768)
    return y[:, None, :]                                          # (N, 1, 768)


if __name__ == "__main__":
    key = jax.random.PRNGKey(0)
    k_x, k_x2, k_wc, k_bc, k_wf, k_bf = jax.random.split(key, 6)

    # Deterministic parameter init (PyTorch-style uniform bounds, fixed seeds).
    conv_bound = 1.0 / (C_IN ** 0.5)
    w_conv = jax.random.uniform(k_wc, (1, C_IN, 1), jnp.float32,
                                -conv_bound, conv_bound)
    b_conv = jax.random.uniform(k_bc, (1,), jnp.float32,
                                -conv_bound, conv_bound)

    fc_bound = 1.0 / (L_IN ** 0.5)
    w_fc = jax.random.uniform(k_wf, (D_OUT, L_IN), jnp.float32,
                              -fc_bound, fc_bound)
    b_fc = jax.random.uniform(k_bf, (D_OUT,), jnp.float32,
                              -fc_bound, fc_bound)

    # One-time parameter prep (not in the per-call hot path).
    wconv2d, wfc_t, b_eff = prepare_params(w_conv, b_conv, w_fc, b_fc)
    wconv2d, wfc_t, b_eff = jax.block_until_ready((wconv2d, wfc_t, b_eff))

    # Case 1: small batch (single grid step, block == full batch dim).
    N1 = 2
    x1 = jax.random.normal(k_x, (N1, C_IN, L_IN), dtype=jnp.float32)
    out1 = jax.block_until_ready(dim_mapper(x1, wconv2d, wfc_t, b_eff))
    ref1 = reference(x1, w_conv, b_conv, w_fc, b_fc)
    assert out1.shape == (N1, 1, D_OUT), out1.shape
    assert jnp.allclose(out1, ref1, rtol=1e-3, atol=2e-2), (
        float(jnp.max(jnp.abs(out1 - ref1))))

    # Case 2: larger batch exercising the multi-step grid + ragged last block
    # (no jnp.pad: rows 20..31 of the final block are OOB, stores masked).
    N2 = 20
    x2 = jax.random.normal(k_x2, (N2, C_IN, L_IN), dtype=jnp.float32)
    out2 = jax.block_until_ready(dim_mapper(x2, wconv2d, wfc_t, b_eff))
    ref2 = reference(x2, w_conv, b_conv, w_fc, b_fc)
    assert out2.shape == (N2, 1, D_OUT), out2.shape
    assert jnp.allclose(out2, ref2, rtol=1e-3, atol=2e-2), (
        float(jnp.max(jnp.abs(out2 - ref2))))

    print("KERNEL_OK")
</pallas_src>

<mosaic_0001>
module attributes {stable_mosaic.version = 11 : i64} {
  func.func @dim_mapper_kernel(%arg0: i32, %arg1: memref<2x128x1024xf32, #tpu.memory_space<vmem>>, %arg2: memref<1x128xf32, #tpu.memory_space<vmem>>, %arg3: memref<1024x768xf32, #tpu.memory_space<vmem>>, %arg4: memref<1x768xf32, #tpu.memory_space<vmem>>, %arg5: memref<2x768xf32, #tpu.memory_space<vmem>>) attributes {dimension_semantics = [#tpu.dimension_semantics<parallel>], iteration_bounds = array<i64: 1>, scalar_prefetch = 0 : i64, scratch_operands = 0 : i64, tpu.core_type = #tpu.core_type<tc>, window_params = [{transform_indices = @transform_0, window_bounds = array<i64: 2, 128, 1024>}, {pipeline_mode = #tpu.pipeline_mode<synchronous>, transform_indices = @transform_1, window_bounds = array<i64: 1, 128>}, {pipeline_mode = #tpu.pipeline_mode<synchronous>, transform_indices = @transform_2, window_bounds = array<i64: 1024, 768>}, {pipeline_mode = #tpu.pipeline_mode<synchronous>, transform_indices = @transform_3, window_bounds = array<i64: 1, 768>}, {transform_indices = @transform_4, window_bounds = array<i64: 2, 768>}]} {
    %c0 = arith.constant 0 : index
    %c0_0 = arith.constant 0 : index
    %0 = vector.load %arg2[%c0, %c0_0] : memref<1x128xf32, #tpu.memory_space<vmem>>, vector<1x128xf32>
    %cst = arith.constant 0.000000e+00 : f32
    %1 = vector.broadcast %cst : f32 to vector<2x1024xf32>
    %c0_1 = arith.constant 0 : index
    %c0_2 = arith.constant 0 : index
    %c0_3 = arith.constant 0 : index
    %2 = vector.load %arg1[%c0_1, %c0_2, %c0_3] : memref<2x128x1024xf32, #tpu.memory_space<vmem>>, vector<2x32x1024xf32>
    %3 = vector.extract_strided_slice %0 {offsets = [0, 0], sizes = [1, 32], strides = [1, 1]} : vector<1x128xf32> to vector<1x32xf32>
    %4 = vector.shape_cast %3 : vector<1x32xf32> to vector<1x32x1xf32>
    %5 = vector.broadcast %4 : vector<1x32x1xf32> to vector<2x32x1024xf32>
    %6 = arith.mulf %2, %5 : vector<2x32x1024xf32>
    %cst_4 = arith.constant dense<0.000000e+00> : vector<2x1024xf32>
    %7 = vector.multi_reduction <add>, %6, %cst_4 [1] : vector<2x32x1024xf32> to vector<2x1024xf32>
    %8 = arith.addf %1, %7 : vector<2x1024xf32>
    %c0_5 = arith.constant 0 : index
    %c32 = arith.constant 32 : index
    %c0_6 = arith.constant 0 : index
    %9 = vector.load %arg1[%c0_5, %c32, %c0_6] : memref<2x128x1024xf32, #tpu.memory_space<vmem>>, vector<2x32x1024xf32>
    %10 = vector.extract_strided_slice %0 {offsets = [0, 32], sizes = [1, 32], strides = [1, 1]} : vector<1x128xf32> to vector<1x32xf32>
    %11 = vector.shape_cast %10 : vector<1x32xf32> to vector<1x32x1xf32>
    %12 = vector.broadcast %11 : vector<1x32x1xf32> to vector<2x32x1024xf32>
    %13 = arith.mulf %9, %12 : vector<2x32x1024xf32>
    %cst_7 = arith.constant dense<0.000000e+00> : vector<2x1024xf32>
    %14 = vector.multi_reduction <add>, %13, %cst_7 [1] : vector<2x32x1024xf32> to vector<2x1024xf32>
    %15 = arith.addf %8, %14 : vector<2x1024xf32>
    %c0_8 = arith.constant 0 : index
    %c64 = arith.constant 64 : index
    %c0_9 = arith.constant 0 : index
    %16 = vector.load %arg1[%c0_8, %c64, %c0_9] : memref<2x128x1024xf32, #tpu.memory_space<vmem>>, vector<2x32x1024xf32>
    %17 = vector.extract_strided_slice %0 {offsets = [0, 64], sizes = [1, 32], strides = [1, 1]} : vector<1x128xf32> to vector<1x32xf32>
    %18 = vector.shape_cast %17 : vector<1x32xf32> to vector<1x32x1xf32>
    %19 = vector.broadcast %18 : vector<1x32x1xf32> to vector<2x32x1024xf32>
    %20 = arith.mulf %16, %19 : vector<2x32x1024xf32>
    %cst_10 = arith.constant dense<0.000000e+00> : vector<2x1024xf32>
    %21 = vector.multi_reduction <add>, %20, %cst_10 [1] : vector<2x32x1024xf32> to vector<2x1024xf32>
    %22 = arith.addf %15, %21 : vector<2x1024xf32>
    %c0_11 = arith.constant 0 : index
    %c96 = arith.constant 96 : index
    %c0_12 = arith.constant 0 : index
    %23 = vector.load %arg1[%c0_11, %c96, %c0_12] : memref<2x128x1024xf32, #tpu.memory_space<vmem>>, vector<2x32x1024xf32>
    %24 = vector.extract_strided_slice %0 {offsets = [0, 96], sizes = [1, 32], strides = [1, 1]} : vector<1x128xf32> to vector<1x32xf32>
    %25 = vector.shape_cast %24 : vector<1x32xf32> to vector<1x32x1xf32>
    %26 = vector.broadcast %25 : vector<1x32x1xf32> to vector<2x32x1024xf32>
    %27 = arith.mulf %23, %26 : vector<2x32x1024xf32>
    %cst_13 = arith.constant dense<0.000000e+00> : vector<2x1024xf32>
    %28 = vector.multi_reduction <add>, %27, %cst_13 [1] : vector<2x32x1024xf32> to vector<2x1024xf32>
    %29 = arith.addf %22, %28 : vector<2x1024xf32>
    %c0_14 = arith.constant 0 : index
    %c0_15 = arith.constant 0 : index
    %30 = vector.load %arg3[%c0_14, %c0_15] : memref<1024x768xf32, #tpu.memory_space<vmem>>, vector<1024x768xf32>
    %cst_16 = arith.constant dense<0.000000e+00> : vector<2x768xf32>
    %31 = tpu.matmul %29, %30, %cst_16 {dimension_numbers = #tpu.dot_dimension_numbers<[1], [0], [0], [1], [0, 0, 1, 1], [], []>} : vector<2x1024xf32>, vector<1024x768xf32>, vector<2x768xf32> -> vector<2x768xf32>
    %c0_17 = arith.constant 0 : index
    %c0_18 = arith.constant 0 : index
    %32 = vector.load %arg4[%c0_17, %c0_18] : memref<1x768xf32, #tpu.memory_space<vmem>>, vector<1x768xf32>
    %33 = vector.broadcast %32 : vector<1x768xf32> to vector<2x768xf32>
    %34 = arith.addf %31, %33 : vector<2x768xf32>
    %c0_19 = arith.constant 0 : index
    %c0_20 = arith.constant 0 : index
    %35 = vector.load %arg5[%c0_19, %c0_20] : memref<2x768xf32, #tpu.memory_space<vmem>>, vector<2x768xf32>
    tpu.vector_store %arg5[%c0_19, %c0_20], %34 {strides = array<i32>} : memref<2x768xf32, #tpu.memory_space<vmem>>, vector<2x768xf32>,
    return
  }
  func.func @transform_0(%arg0: i32) -> (i32, i32, i32) {
    %c0_i32 = arith.constant 0 : i32
    %c0_i32_0 = arith.constant 0 : i32
    %c0_i32_1 = arith.constant 0 : i32
    return %arg0, %c0_i32, %c0_i32_0 : i32, i32, i32
  }
  func.func @transform_1(%arg0: i32) -> (i32, i32) {
    %c0_i32 = arith.constant 0 : i32
    %c0_i32_0 = arith.constant 0 : i32
    %c0_i32_1 = arith.constant 0 : i32
    return %c0_i32, %c0_i32_0 : i32, i32
  }
  func.func @transform_2(%arg0: i32) -> (i32, i32) {
    %c0_i32 = arith.constant 0 : i32
    %c0_i32_0 = arith.constant 0 : i32
    %c0_i32_1 = arith.constant 0 : i32
    return %c0_i32, %c0_i32_0 : i32, i32
  }
  func.func @transform_3(%arg0: i32) -> (i32, i32) {
    %c0_i32 = arith.constant 0 : i32
    %c0_i32_0 = arith.constant 0 : i32
    %c0_i32_1 = arith.constant 0 : i32
    return %c0_i32, %c0_i32_0 : i32, i32
  }
  func.func @transform_4(%arg0: i32) -> (i32, i32) {
    %c0_i32 = arith.constant 0 : i32
    %c0_i32_0 = arith.constant 0 : i32
    return %arg0, %c0_i32 : i32, i32
  }
}

module attributes {stable_mosaic.version = 11 : i64} {
  func.func @dim_mapper_kernel(%arg0: i32, %arg1: memref<2x128x1024xf32, #tpu.memory_space<vmem>>, %arg2: memref<1x128xf32, #tpu.memory_space<vmem>>, %arg3: memref<1024x768xf32, #tpu.memory_space<vmem>>, %arg4: memref<1x768xf32, #tpu.memory_space<vmem>>, %arg5: memref<2x768xf32, #tpu.memory_space<vmem>>) attributes {dimension_semantics = [#tpu.dimension_semantics<parallel>], iteration_bounds = array<i64: 1>, scalar_prefetch = 0 : i64, scratch_operands = 0 : i64, tpu.core_type = #tpu.core_type<tc>, window_params = [{transform_indices = @transform_0, window_bounds = array<i64: 2, 128, 1024>}, {pipeline_mode = #tpu.pipeline_mode<synchronous>, transform_indices = @transform_1, window_bounds = array<i64: 1, 128>}, {pipeline_mode = #tpu.pipeline_mode<synchronous>, transform_indices = @transform_2, window_bounds = array<i64: 1024, 768>}, {pipeline_mode = #tpu.pipeline_mode<synchronous>, transform_indices = @transform_3, window_bounds = array<i64: 1, 768>}, {transform_indices = @transform_4, window_bounds = array<i64: 2, 768>}]} {
    %c0 = arith.constant 0 : index
    %c0_0 = arith.constant 0 : index
    %0 = vector.load %arg2[%c0, %c0_0] : memref<1x128xf32, #tpu.memory_space<vmem>>, vector<1x128xf32>
    %cst = arith.constant 0.000000e+00 : f32
    %1 = vector.broadcast %cst : f32 to vector<2x1024xf32>
    %c0_1 = arith.constant 0 : index
    %c0_2 = arith.constant 0 : index
    %c0_3 = arith.constant 0 : index
    %2 = vector.load %arg1[%c0_1, %c0_2, %c0_3] : memref<2x128x1024xf32, #tpu.memory_space<vmem>>, vector<2x32x1024xf32>
    %3 = vector.extract_strided_slice %0 {offsets = [0, 0], sizes = [1, 32], strides = [1, 1]} : vector<1x128xf32> to vector<1x32xf32>
    %4 = vector.shape_cast %3 : vector<1x32xf32> to vector<1x32x1xf32>
    %5 = vector.broadcast %4 : vector<1x32x1xf32> to vector<2x32x1024xf32>
    %6 = arith.mulf %2, %5 : vector<2x32x1024xf32>
    %cst_4 = arith.constant dense<0.000000e+00> : vector<2x1024xf32>
    %7 = vector.multi_reduction <add>, %6, %cst_4 [1] : vector<2x32x1024xf32> to vector<2x1024xf32>
    %8 = arith.addf %1, %7 : vector<2x1024xf32>
    %c0_5 = arith.constant 0 : index
    %c32 = arith.constant 32 : index
    %c0_6 = arith.constant 0 : index
    %9 = vector.load %arg1[%c0_5, %c32, %c0_6] : memref<2x128x1024xf32, #tpu.memory_space<vmem>>, vector<2x32x1024xf32>
    %10 = vector.extract_strided_slice %0 {offsets = [0, 32], sizes = [1, 32], strides = [1, 1]} : vector<1x128xf32> to vector<1x32xf32>
    %11 = vector.shape_cast %10 : vector<1x32xf32> to vector<1x32x1xf32>
    %12 = vector.broadcast %11 : vector<1x32x1xf32> to vector<2x32x1024xf32>
    %13 = arith.mulf %9, %12 : vector<2x32x1024xf32>
    %cst_7 = arith.constant dense<0.000000e+00> : vector<2x1024xf32>
    %14 = vector.multi_reduction <add>, %13, %cst_7 [1] : vector<2x32x1024xf32> to vector<2x1024xf32>
    %15 = arith.addf %8, %14 : vector<2x1024xf32>
    %c0_8 = arith.constant 0 : index
    %c64 = arith.constant 64 : index
    %c0_9 = arith.constant 0 : index
    %16 = vector.load %arg1[%c0_8, %c64, %c0_9] : memref<2x128x1024xf32, #tpu.memory_space<vmem>>, vector<2x32x1024xf32>
    %17 = vector.extract_strided_slice %0 {offsets = [0, 64], sizes = [1, 32], strides = [1, 1]} : vector<1x128xf32> to vector<1x32xf32>
    %18 = vector.shape_cast %17 : vector<1x32xf32> to vector<1x32x1xf32>
    %19 = vector.broadcast %18 : vector<1x32x1xf32> to vector<2x32x1024xf32>
    %20 = arith.mulf %16, %19 : vector<2x32x1024xf32>
    %cst_10 = arith.constant dense<0.000000e+00> : vector<2x1024xf32>
    %21 = vector.multi_reduction <add>, %20, %cst_10 [1] : vector<2x32x1024xf32> to vector<2x1024xf32>
    %22 = arith.addf %15, %21 : vector<2x1024xf32>
    %c0_11 = arith.constant 0 : index
    %c96 = arith.constant 96 : index
    %c0_12 = arith.constant 0 : index
    %23 = vector.load %arg1[%c0_11, %c96, %c0_12] : memref<2x128x1024xf32, #tpu.memory_space<vmem>>, vector<2x32x1024xf32>
    %24 = vector.extract_strided_slice %0 {offsets = [0, 96], sizes = [1, 32], strides = [1, 1]} : vector<1x128xf32> to vector<1x32xf32>
    %25 = vector.shape_cast %24 : vector<1x32xf32> to vector<1x32x1xf32>
    %26 = vector.broadcast %25 : vector<1x32x1xf32> to vector<2x32x1024xf32>
    %27 = arith.mulf %23, %26 : vector<2x32x1024xf32>
    %cst_13 = arith.constant dense<0.000000e+00> : vector<2x1024xf32>
    %28 = vector.multi_reduction <add>, %27, %cst_13 [1] : vector<2x32x1024xf32> to vector<2x1024xf32>
    %29 = arith.addf %22, %28 : vector<2x1024xf32>
    %c0_14 = arith.constant 0 : index
    %c0_15 = arith.constant 0 : index
    %30 = vector.load %arg3[%c0_14, %c0_15] : memref<1024x768xf32, #tpu.memory_space<vmem>>, vector<1024x768xf32>
    %cst_16 = arith.constant dense<0.000000e+00> : vector<2x768xf32>
    %31 = tpu.matmul %29, %30, %cst_16 {dimension_numbers = #tpu.dot_dimension_numbers<[1], [0], [0], [1], [0, 0, 1, 1], [], []>} : vector<2x1024xf32>, vector<1024x768xf32>, vector<2x768xf32> -> vector<2x768xf32>
    %c0_17 = arith.constant 0 : index
    %c0_18 = arith.constant 0 : index
    %32 = vector.load %arg4[%c0_17, %c0_18] : memref<1x768xf32, #tpu.memory_space<vmem>>, vector<1x768xf32>
    %33 = vector.broadcast %32 : vector<1x768xf32> to vector<2x768xf32>
    %34 = arith.addf %31, %33 : vector<2x768xf32>
    %c0_19 = arith.constant 0 : index
    %c0_20 = arith.constant 0 : index
    %35 = vector.load %arg5[%c0_19, %c0_20] : memref<2x768xf32, #tpu.memory_space<vmem>>, vector<2x768xf32>
    tpu.vector_store %arg5[%c0_19, %c0_20], %34 {strides = array<i32>} : memref<2x768xf32, #tpu.memory_space<vmem>>, vector<2x768xf32>,
    return
  }
  func.func @transform_0(%arg0: i32) -> (i32, i32, i32) {
    %c0_i32 = arith.constant 0 : i32
    %c0_i32_0 = arith.constant 0 : i32
    %c0_i32_1 = arith.constant 0 : i32
    return %arg0, %c0_i32, %c0_i32_0 : i32, i32, i32
  }
  func.func @transform_1(%arg0: i32) -> (i32, i32) {
    %c0_i32 = arith.constant 0 : i32
    %c0_i32_0 = arith.constant 0 : i32
    %c0_i32_1 = arith.constant 0 : i32
    return %c0_i32, %c0_i32_0 : i32, i32
  }
  func.func @transform_2(%arg0: i32) -> (i32, i32) {
    %c0_i32 = arith.constant 0 : i32
    %c0_i32_0 = arith.constant 0 : i32
    %c0_i32_1 = arith.constant 0 : i32
    return %c0_i32, %c0_i32_0 : i32, i32
  }
  func.func @transform_3(%arg0: i32) -> (i32, i32) {
    %c0_i32 = arith.constant 0 : i32
    %c0_i32_0 = arith.constant 0 : i32
    %c0_i32_1 = arith.constant 0 : i32
    return %c0_i32, %c0_i32_0 : i32, i32
  }
  func.func @transform_4(%arg0: i32) -> (i32, i32) {
    %c0_i32 = arith.constant 0 : i32
    %c0_i32_0 = arith.constant 0 : i32
    return %arg0, %c0_i32 : i32, i32
  }
}

</mosaic_0001>

<bundles_post_ra>
// kernel: tpu_custom_call.1
= control target key start
LH: loop header
LB: loop body
LE: loop exit
PB: predicated region body
PF: predicated region fallthrough
CT: control target
= control target key end

     0   :  { %9 = vsyncpa [#allocation3], 0  ;;  %s3657_s0 = inlined_call_operand.hbm [shape: f32[2,128,1024], index: 0, kind: input, shape index: {}]   ;;  %s3658_s1 = inlined_call_operand.hbm [shape: f32[1,128], index: 1, kind: input, shape index: {}]   ;;  %s3659_s2 = inlined_call_operand.hbm [shape: f32[1024,768], index: 2, kind: input, shape index: {}]   ;;  %s3660_s3 = inlined_call_operand.hbm [shape: f32[1,768], index: 3, kind: input, shape index: {}]   ;;  %s3661_s4 = inlined_call_operand.hbm [shape: f32[2,768], index: 4, kind: output, shape index: {}]  }
   0x1   :  { %10 = vsyncpa [#allocation6], 0 }
   0x2   :  { %11 = vsyncpa [#allocation9], 0 }
   0x3   :  { %12 = vsyncpa [#allocation4], 0  ;;  %s3146_s15 = smov [#allocation5]   ;;  %s3147_s17 = smov [#allocation2]  }
   0x4   :  { %s31_s16 = sshll.u32 %s3146_s15, 4  ;;  %s18_s18 = sshll.u32 %s3147_s17, 4  ;;  %s32_s16 = int_to_ptr.vmem [resolvable:$true] %s31_s16  ;;  %s19_s18 = int_to_ptr.vmem [resolvable:$true] %s18_s18 }
   0x5   :  { %s3046_s19 = scalar_lea.vmem %s32_s16, 16  ;;  %s3050_s20 = scalar_lea.vmem %s32_s16, 32 }
   0x6   :  { %p3047_p0 = scmp.ne.s32.totalorder %s32_s16, %s3046_s19  ;;  %p3051_p1 = scmp.lt.s32.totalorder %s32_s16, %s32_s16 }
   0x7   :  { %p3052_p2 = scmp.lt.s32.totalorder %s3050_s20, %s3046_s19 }
   0x9   :  { %p3053_p3 = por %p3052_p2, %p3051_p1 }
   0xb   :  { %p3054_p4 = pnand %p3053_p3, %p3047_p0 }
   0xd   :  { %3057 = shalt.err (!%p3054_p4)
}
   0xe   :  { %34 = dma.hbm_to_vmem [thread:$0]  %s3658_s1, 16, %s32_s16, [#allocation6]  }
   0xf   :  { %s3066_s23 = scalar_lea.vmem %s19_s18, 32768  ;;  %p3071_p6 = scmp.lt.s32.totalorder %s19_s18, %s19_s18 }
  0x10   :  { %p3067_p5 = scmp.ne.s32.totalorder %s19_s18, %s3066_s23  ;;  %p3072_p7 = scmp.lt.s32.totalorder %s3066_s23, %s3066_s23 }
  0x12   :  { %p3073_p8 = por %p3072_p7, %p3071_p6 }
  0x14   :  { %p3074_p9 = pnand %p3073_p8, %p3067_p5 }
  0x16   :  { %3077 = shalt.err (!%p3074_p9)
}
  0x17   :  { %s3148_s24 = smov 1024   ;;  %s3149_s25 = smov 64  }
  0x18   :  { %24 = dma.hbm_to_vmem [thread:$0]  %s3657_s0, 32768, %s19_s18, [#allocation3], %s3148_s24, %s3148_s24, %s3149_s25  }
  0x19   :  { %s3150_s28 = smov [#allocation7]  }
  0x1a   :  { %s40_s29 = sshll.u32 %s3150_s28, 4  ;;  %s41_s29 = int_to_ptr.vmem [resolvable:$true] %s40_s29 }
  0x1b   :  { %s3086_s30 = scalar_lea.vmem %s41_s29, 98304  ;;  %p3091_p11 = scmp.lt.s32.totalorder %s41_s29, %s41_s29 }
  0x1c   :  { %p3087_p10 = scmp.ne.s32.totalorder %s41_s29, %s3086_s30  ;;  %p3092_p12 = scmp.lt.s32.totalorder %s3086_s30, %s3086_s30 }
  0x1e   :  { %p3093_p13 = por %p3092_p12, %p3091_p11 }
  0x20   :  { %p3094_p0 = pnand %p3093_p13, %p3087_p10 }
  0x22   :  { %3097 = shalt.err (!%p3094_p0)
}
  0x23   :  { %s3151_s1 = smov 768   ;;  %s3152_s5 = smov 48  }
  0x24   :  { %46 = dma.hbm_to_vmem [thread:$0]  %s3659_s2, 98304, %s41_s29, [#allocation6], %s3151_s1, %s3151_s1, %s3152_s5  }
  0x25   :  { %s3153_s8 = smov [#allocation8]  }
  0x26   :  { %s53_s9 = sshll.u32 %s3153_s8, 4  ;;  %s54_s9 = int_to_ptr.vmem [resolvable:$true] %s53_s9 }
  0x27   :  { %s3106_s0 = scalar_lea.vmem %s54_s9, 96  ;;  %p3111_p2 = scmp.lt.s32.totalorder %s54_s9, %s54_s9 }
  0x28   :  { %p3107_p1 = scmp.ne.s32.totalorder %s54_s9, %s3106_s0  ;;  %p3112_p3 = scmp.lt.s32.totalorder %s3106_s0, %s3106_s0 }
  0x2a   :  { %p3113_p4 = por %p3112_p3, %p3111_p2 }
  0x2c   :  { %p3114_p5 = pnand %p3113_p4, %p3107_p1 }
  0x2e   :  { %3117 = shalt.err (!%p3114_p5)
}
  0x2f   :  { %56 = dma.hbm_to_vmem [thread:$0]  %s3660_s3, 96, %s54_s9, [#allocation9]  }
  0x30   :  { %3138 = dma.done.wait [#allocation3], 32768  }
  0x31   :  { %3139 = vsyncadd [#allocation3], 4294934528 }
  0x32   :  { %3140 = dma.done.wait [#allocation6], 98320  }
  0x33   :  { %3141 = vsyncadd [#allocation6], 4294868976 }
  0x34   :  { %3142 = dma.done.wait [#allocation9], 96  }
  0x35   :  { %3143 = vsyncadd [#allocation9], 4294967200  ;;  %v3193_v0 = vld [vmem:[#allocation5] ss:$0 sm:$0xff]  ;;  %v1379_v3 = vld [vmem:[#allocation7 + $0x2d0] sm:$0xff]  ;;  %vm2105_vm0 = vcmask 1041409  }
  0x36   :  { %v1380_v1 = vld [vmem:[#allocation7 + $0x2d8] sm:$0xff]  ;;  %443 = vbcast.lane.b32.xlu1 %v3193_v0, 288  ;;  %139 = vbcast.lane.b32.xlu0 %v3193_v0, 256  ;;  %v1571_v4 = vld [vmem:[#allocation7 + $0x8d0] sm:$0xff]  ;;  %v1374_v5 = vld [vmem:[#allocation7 + $0x2a8] sm:$0xff]  ;;  %s3155_s2 = smov [#allocation10]  }
  0x37   :  { %v1572_v2 = vld [vmem:[#allocation7 + $0x8d8] sm:$0xff]  ;;  %2122 = vmatprep.subr.mxu0 %v1380_v1  ;;  %v1566_v6 = vld [vmem:[#allocation7 + $0x8a8] sm:$0xff]  ;;  %v1373_v7 = vld [vmem:[#allocation7 + $0x2a0] sm:$0xff]  ;;  %s3015_s3 = sshll.u32 %s3155_s2, 4  ;;  %s3016_s3 = int_to_ptr.vmem [resolvable:$true] %s3015_s3 }
  0x38   :  { %2193 = vmatprep.subr.mxu1 %v1572_v2  ;;  %2123 = vmatpush1.msra.mxu0 %v1379_v3  ;;  %v1565_v8 = vld [vmem:[#allocation7 + $0x8a0] sm:$0xff]  ;;  %v1368_v9 = vld [vmem:[#allocation7 + $0x278] sm:$0xff]  ;;  %v1367_v11 = vld [vmem:[#allocation7 + $0x270] sm:$0xff]  ;;  %s3118_s12 = scalar_lea.vmem %s3016_s3, 192  ;;  %p3123_p7 = scmp.lt.s32.totalorder %s3016_s3, %s3016_s3 }
  0x39   :  { %2194 = vmatpush1.msra.mxu1 %v1571_v4  ;;  %2124 = vmatprep.subr.mxu0 %v1374_v5  ;;  %v1560_v10 = vld [vmem:[#allocation7 + $0x878] sm:$0xff]  ;;  %v1559_v12 = vld [vmem:[#allocation7 + $0x870] sm:$0xff]  ;;  %v1362_v13 = vld [vmem:[#allocation7 + $0x248] sm:$0xff]  ;;  %p3119_p6 = scmp.ne.s32.totalorder %s3016_s3, %s3118_s12  ;;  %p3124_p8 = scmp.lt.s32.totalorder %s3118_s12, %s3118_s12 }
  0x3a   :  { %2195 = vmatprep.subr.mxu1 %v1566_v6  ;;  %447 = vbcast.lane.b32.xlu1 %v3193_v0, 296  ;;  %v1554_v14 = vld [vmem:[#allocation7 + $0x848] sm:$0xff]  ;;  %v1361_v15 = vld [vmem:[#allocation7 + $0x240] sm:$0xff]  ;;  %v1356_v17 = vld [vmem:[#allocation7 + $0x218] sm:$0xff] }
  0x3b   :  { %143 = vbcast.lane.b32.xlu0 %v3193_v0, 264  ;;  %2125 = vmatpush1.msra.mxu0 %v1373_v7  ;;  %v1553_v16 = vld [vmem:[#allocation7 + $0x840] sm:$0xff]  ;;  %v1548_v18 = vld [vmem:[#allocation7 + $0x818] sm:$0xff]  ;;  %v1355_v19 = vld [vmem:[#allocation7 + $0x210] sm:$0xff]  ;;  %p3125_p9 = por %p3124_p8, %p3123_p7 }
  0x3c   :  { %2196 = vmatpush1.msra.mxu1 %v1565_v8  ;;  %2126 = vmatprep.subr.mxu0 %v1368_v9  ;;  %v1547_v20 = vld [vmem:[#allocation7 + $0x810] sm:$0xff]  ;;  %v1350_v21 = vld [vmem:[#allocation7 + $0x1e8] sm:$0xff]  ;;  %v1349_v23 = vld [vmem:[#allocation7 + $0x1e0] sm:$0xff] }
  0x3d   :  { %2197 = vmatprep.subr.mxu1 %v1560_v10  ;;  %2127 = vmatpush1.msra.mxu0 %v1367_v11  ;;  %v1542_v22 = vld [vmem:[#allocation7 + $0x7e8] sm:$0xff]  ;;  %v1541_v24 = vld [vmem:[#allocation7 + $0x7e0] sm:$0xff]  ;;  %v1344_v25 = vld [vmem:[#allocation7 + $0x1b8] sm:$0xff]  ;;  %p3126_p10 = pnand %p3125_p9, %p3119_p6 }
  0x3e   :  { %2198 = vmatpush1.msra.mxu1 %v1559_v12  ;;  %451 = vbcast.lane.b32.xlu1 %v3193_v0, 304  ;;  %v1536_v26 = vld [vmem:[#allocation7 + $0x7b8] sm:$0xff]  ;;  %v1343_v27 = vld [vmem:[#allocation7 + $0x1b0] sm:$0xff]  ;;  %v1338_v29 = vld [vmem:[#allocation7 + $0x188] sm:$0xff] }
  0x3f   :  { %147 = vbcast.lane.b32.xlu0 %v3193_v0, 272  ;;  %2128 = vmatprep.subr.mxu0 %v1362_v13  ;;  %v1535_v28 = vld [vmem:[#allocation7 + $0x7b0] sm:$0xff]  ;;  %v1530_v30 = vld [vmem:[#allocation7 + $0x788] sm:$0xff]  ;;  %v1337_v31 = vld [vmem:[#allocation7 + $0x180] sm:$0xff] }
  0x40   :  { %2199 = vmatprep.subr.mxu1 %v1554_v14  ;;  %2129 = vmatpush1.msra.mxu0 %v1361_v15  ;;  %v1529_v32 = vld [vmem:[#allocation7 + $0x780] sm:$0xff]  ;;  %v1332_v33 = vld [vmem:[#allocation7 + $0x158] sm:$0xff]  ;;  %v1331_v35 = vld [vmem:[#allocation7 + $0x150] sm:$0xff] }
  0x41   :  { %2200 = vmatpush1.msra.mxu1 %v1553_v16  ;;  %2130 = vmatprep.subr.mxu0 %v1356_v17  ;;  %v1524_v34 = vld [vmem:[#allocation7 + $0x758] sm:$0xff]  ;;  %v1523_v36 = vld [vmem:[#allocation7 + $0x750] sm:$0xff]  ;;  %v1326_v37 = vld [vmem:[#allocation7 + $0x128] sm:$0xff] }
  0x42   :  { %2201 = vmatprep.subr.mxu1 %v1548_v18  ;;  %751 = vbcast.lane.b32.xlu1 %v3193_v0, 328  ;;  %v1518_v38 = vld [vmem:[#allocation7 + $0x728] sm:$0xff]  ;;  %v1325_v39 = vld [vmem:[#allocation7 + $0x120] sm:$0xff]  ;;  %v1320_v41 = vld [vmem:[#allocation7 + $0xf8] sm:$0xff] }
  0x43   :  { %747 = vbcast.lane.b32.xlu0 %v3193_v0, 320  ;;  %2131 = vmatpush1.msra.mxu0 %v1355_v19  ;;  %v1517_v40 = vld [vmem:[#allocation7 + $0x720] sm:$0xff]  ;;  %v1512_v42 = vld [vmem:[#allocation7 + $0x6f8] sm:$0xff]  ;;  %v1319_v43 = vld [vmem:[#allocation7 + $0xf0] sm:$0xff] }
  0x44   :  { %2202 = vmatpush1.msra.mxu1 %v1547_v20  ;;  %2132 = vmatprep.subr.mxu0 %v1350_v21  ;;  %v1511_v44 = vld [vmem:[#allocation7 + $0x6f0] sm:$0xff]  ;;  %v1314_v45 = vld [vmem:[#allocation7 + $0xc8] sm:$0xff]  ;;  %v1313_v47 = vld [vmem:[#allocation7 + $0xc0] sm:$0xff] }
  0x45   :  { %2203 = vmatprep.subr.mxu1 %v1542_v22  ;;  %2133 = vmatpush1.msra.mxu0 %v1349_v23  ;;  %v1506_v46 = vld [vmem:[#allocation7 + $0x6c8] sm:$0xff]  ;;  %v1505_v48 = vld [vmem:[#allocation7 + $0x6c0] sm:$0xff]  ;;  %v1308_v49 = vld [vmem:[#allocation7 + $0x98] sm:$0xff] }
  0x46   :  { %2204 = vmatpush1.msra.mxu1 %v1541_v24  ;;  %455 = vbcast.lane.b32.xlu1 %v3193_v0, 312  ;;  %v1500_v50 = vld [vmem:[#allocation7 + $0x698] sm:$0xff]  ;;  %v1307_v51 = vld [vmem:[#allocation7 + $0x90] sm:$0xff]  ;;  %v1302_v53 = vld [vmem:[#allocation7 + $0x68] sm:$0xff] }
  0x47   :  { %151 = vbcast.lane.b32.xlu0 %v3193_v0, 280  ;;  %2134 = vmatprep.subr.mxu0 %v1344_v25  ;;  %v1499_v52 = vld [vmem:[#allocation7 + $0x690] sm:$0xff]  ;;  %v1494_v54 = vld [vmem:[#allocation7 + $0x668] sm:$0xff]  ;;  %v1301_v55 = vld [vmem:[#allocation7 + $0x60] sm:$0xff] }
  0x48   :  { %2205 = vmatprep.subr.mxu1 %v1536_v26  ;;  %2135 = vmatpush1.msra.mxu0 %v1343_v27  ;;  %v1493_v56 = vld [vmem:[#allocation7 + $0x660] sm:$0xff]  ;;  %v1296_v57 = vld [vmem:[#allocation7 + $0x38] sm:$0xff]  ;;  %v1295_v59 = vld [vmem:[#allocation7 + $0x30] sm:$0xff] }
  0x49   :  { %2206 = vmatpush1.msra.mxu1 %v1535_v28  ;;  %2136 = vmatprep.subr.mxu0 %v1338_v29  ;;  %v1488_v58 = vld [vmem:[#allocation7 + $0x638] sm:$0xff]  ;;  %v1487_v60 = vld [vmem:[#allocation7 + $0x630] sm:$0xff]  ;;  %v1290_v61 = vld [vmem:[#allocation7 + $0x8] sm:$0xff] }
  0x4a   :  { %2207 = vmatprep.subr.mxu1 %v1530_v30  ;;  %1051 = vbcast.lane.b32.xlu1 %v3193_v0, 352  ;;  %v1482_v62 = vld [vmem:[#allocation7 + $0x608] sm:$0xff]  ;;  %v1289_v63 = vld [vmem:[#allocation7] sm:$0xff]  ;;  %v1476_v1 = vld [vmem:[#allocation7 + $0x5d8] sm:$0xff] }
  0x4b   :  { %755 = vbcast.lane.b32.xlu0 %v3193_v0, 336  ;;  %2137 = vmatpush1.msra.mxu0 %v1337_v31  ;;  %v1668_v2 = vld [vmem:[#allocation7 + $0xbd8] sm:$0xff]  ;;  %v1475_v3 = vld [vmem:[#allocation7 + $0x5d0] sm:$0xff]  ;;  %v1470_v5 = vld [vmem:[#allocation7 + $0x5a8] sm:$0xff] }
  0x4c   :  { %2208 = vmatpush1.msra.mxu1 %v1529_v32  ;;  %2138 = vmatprep.subr.mxu0 %v1332_v33  ;;  %v1667_v4 = vld [vmem:[#allocation7 + $0xbd0] sm:$0xff]  ;;  %v1662_v6 = vld [vmem:[#allocation7 + $0xba8] sm:$0xff]  ;;  %v1469_v7 = vld [vmem:[#allocation7 + $0x5a0] sm:$0xff] }
  0x4d   :  { %2209 = vmatprep.subr.mxu1 %v1524_v34  ;;  %2139 = vmatpush1.msra.mxu0 %v1331_v35  ;;  %v1661_v8 = vld [vmem:[#allocation7 + $0xba0] sm:$0xff]  ;;  %v1464_v9 = vld [vmem:[#allocation7 + $0x578] sm:$0xff]  ;;  %v1463_v11 = vld [vmem:[#allocation7 + $0x570] sm:$0xff] }
  0x4e   :  { %2210 = vmatpush1.msra.mxu1 %v1523_v36  ;;  %759 = vbcast.lane.b32.xlu1 %v3193_v0, 344  ;;  %v1656_v10 = vld [vmem:[#allocation7 + $0xb78] sm:$0xff]  ;;  %v1655_v12 = vld [vmem:[#allocation7 + $0xb70] sm:$0xff]  ;;  %v1458_v13 = vld [vmem:[#allocation7 + $0x548] sm:$0xff] }
  0x4f   :  { %1055 = vbcast.lane.b32.xlu0 %v3193_v0, 360  ;;  %2140 = vmatprep.subr.mxu0 %v1326_v37  ;;  %v1650_v14 = vld [vmem:[#allocation7 + $0xb48] sm:$0xff]  ;;  %v1457_v15 = vld [vmem:[#allocation7 + $0x540] sm:$0xff]  ;;  %v1452_v17 = vld [vmem:[#allocation7 + $0x518] sm:$0xff] }
  0x50   :  { %2211 = vmatprep.subr.mxu1 %v1518_v38  ;;  %2141 = vmatpush1.msra.mxu0 %v1325_v39  ;;  %v1649_v16 = vld [vmem:[#allocation7 + $0xb40] sm:$0xff]  ;;  %v1644_v18 = vld [vmem:[#allocation7 + $0xb18] sm:$0xff]  ;;  %v1451_v19 = vld [vmem:[#allocation7 + $0x510] sm:$0xff] }
  0x51   :  { %2212 = vmatpush1.msra.mxu1 %v1517_v40  ;;  %2142 = vmatprep.subr.mxu0 %v1320_v41  ;;  %v1643_v20 = vld [vmem:[#allocation7 + $0xb10] sm:$0xff]  ;;  %v1446_v21 = vld [vmem:[#allocation7 + $0x4e8] sm:$0xff]  ;;  %v1445_v23 = vld [vmem:[#allocation7 + $0x4e0] sm:$0xff] }
  0x52   :  { %2213 = vmatprep.subr.mxu1 %v1512_v42  ;;  %1063 = vbcast.lane.b32.xlu1 %v3193_v0, 376  ;;  %v1638_v22 = vld [vmem:[#allocation7 + $0xae8] sm:$0xff]  ;;  %v1637_v24 = vld [vmem:[#allocation7 + $0xae0] sm:$0xff]  ;;  %v1440_v25 = vld [vmem:[#allocation7 + $0x4b8] sm:$0xff] }
  0x53   :  { %1059 = vbcast.lane.b32.xlu0 %v3193_v0, 368  ;;  %2143 = vmatpush1.msra.mxu0 %v1319_v43  ;;  %v1481_v0 = vld [vmem:[#allocation7 + $0x600] sm:$0xff]  ;;  %v1632_v26 = vld [vmem:[#allocation7 + $0xab8] sm:$0xff]  ;;  %v1439_v27 = vld [vmem:[#allocation7 + $0x4b0] sm:$0xff] }
  0x54   :  { %2214 = vmatpush1.msra.mxu1 %v1511_v44  ;;  %2144 = vmatprep.subr.mxu0 %v1314_v45  ;;  %v1631_v28 = vld [vmem:[#allocation7 + $0xab0] sm:$0xff]  ;;  %v1434_v29 = vld [vmem:[#allocation7 + $0x488] sm:$0xff]  ;;  %v1433_v31 = vld [vmem:[#allocation7 + $0x480] sm:$0xff] }
  0x55   :  { %2215 = vmatprep.subr.mxu1 %v1506_v46  ;;  %2145 = vmatpush1.msra.mxu0 %v1313_v47  ;;  %v1626_v30 = vld [vmem:[#allocation7 + $0xa88] sm:$0xff]  ;;  %v1625_v32 = vld [vmem:[#allocation7 + $0xa80] sm:$0xff]  ;;  %v1428_v33 = vld [vmem:[#allocation7 + $0x458] sm:$0xff] }
  0x56   :  { %2216 = vmatpush1.msra.mxu1 %v1505_v48  ;;  %2146 = vmatprep.subr.mxu0 %v1308_v49  ;;  %v1620_v34 = vld [vmem:[#allocation7 + $0xa58] sm:$0xff]  ;;  %v1427_v35 = vld [vmem:[#allocation7 + $0x450] sm:$0xff]  ;;  %v1422_v37 = vld [vmem:[#allocation7 + $0x428] sm:$0xff] }
  0x57   :  { %2217 = vmatprep.subr.mxu1 %v1500_v50  ;;  %2147 = vmatpush1.msra.mxu0 %v1307_v51  ;;  %v1619_v36 = vld [vmem:[#allocation7 + $0xa50] sm:$0xff]  ;;  %v1614_v38 = vld [vmem:[#allocation7 + $0xa28] sm:$0xff]  ;;  %v1421_v39 = vld [vmem:[#allocation7 + $0x420] sm:$0xff] }
  0x58   :  { %2218 = vmatpush1.msra.mxu1 %v1499_v52  ;;  %2148 = vmatprep.subr.mxu0 %v1302_v53  ;;  %v1613_v40 = vld [vmem:[#allocation7 + $0xa20] sm:$0xff]  ;;  %v1416_v41 = vld [vmem:[#allocation7 + $0x3f8] sm:$0xff]  ;;  %v1415_v43 = vld [vmem:[#allocation7 + $0x3f0] sm:$0xff] }
  0x59   :  { %2219 = vmatprep.subr.mxu1 %v1494_v54  ;;  %2149 = vmatpush1.msra.mxu0 %v1301_v55  ;;  %v1608_v42 = vld [vmem:[#allocation7 + $0x9f8] sm:$0xff]  ;;  %v1607_v44 = vld [vmem:[#allocation7 + $0x9f0] sm:$0xff]  ;;  %v1410_v45 = vld [vmem:[#allocation7 + $0x3c8] sm:$0xff] }
  0x5a   :  { %2220 = vmatpush1.msra.mxu1 %v1493_v56  ;;  %2150 = vmatprep.subr.mxu0 %v1296_v57  ;;  %v1602_v46 = vld [vmem:[#allocation7 + $0x9c8] sm:$0xff]  ;;  %v1409_v47 = vld [vmem:[#allocation7 + $0x3c0] sm:$0xff]  ;;  %v1404_v49 = vld [vmem:[#allocation7 + $0x398] sm:$0xff] }
  0x5b   :  { %2221 = vmatprep.subr.mxu1 %v1488_v58  ;;  %2151 = vmatpush1.msra.mxu0 %v1295_v59  ;;  %v1601_v48 = vld [vmem:[#allocation7 + $0x9c0] sm:$0xff]  ;;  %v1596_v50 = vld [vmem:[#allocation7 + $0x998] sm:$0xff]  ;;  %v1403_v51 = vld [vmem:[#allocation7 + $0x390] sm:$0xff] }
  0x5c   :  { %2222 = vmatpush1.msra.mxu1 %v1487_v60  ;;  %2152 = vmatprep.subr.mxu0 %v1290_v61  ;;  %v1595_v52 = vld [vmem:[#allocation7 + $0x990] sm:$0xff]  ;;  %v1398_v53 = vld [vmem:[#allocation7 + $0x368] sm:$0xff]  ;;  %v1397_v55 = vld [vmem:[#allocation7 + $0x360] sm:$0xff] }
  0x5d   :  { %2223 = vmatprep.subr.mxu1 %v1482_v62  ;;  %2153 = vmatpush1.msra.mxu0 %v1289_v63  ;;  %v1590_v54 = vld [vmem:[#allocation7 + $0x968] sm:$0xff]  ;;  %v1589_v56 = vld [vmem:[#allocation7 + $0x960] sm:$0xff]  ;;  %v1392_v57 = vld [vmem:[#allocation7 + $0x338] sm:$0xff] }
  0x5e   :  { %2224 = vmatpush1.msra.mxu1 %v1481_v0  ;;  %2154 = vmatprep.subr.mxu0 %v1476_v1  ;;  %v1584_v58 = vld [vmem:[#allocation7 + $0x938] sm:$0xff]  ;;  %v1391_v59 = vld [vmem:[#allocation7 + $0x330] sm:$0xff]  ;;  %v1386_v61 = vld [vmem:[#allocation7 + $0x308] sm:$0xff] }
  0x5f   :  { %2225 = vmatprep.subr.mxu1 %v1668_v2  ;;  %2155 = vmatpush2.msra.mxu0 %v1475_v3  ;;  %v1583_v60 = vld [vmem:[#allocation7 + $0x930] sm:$0xff]  ;;  %v1578_v62 = vld [vmem:[#allocation7 + $0x908] sm:$0xff]  ;;  %v1385_v63 = vld [vmem:[#allocation7 + $0x300] sm:$0xff] }
  0x60   :  { %2226 = vmatpush2.msra.mxu1 %v1667_v4  ;;  %2156 = vmatprep.subr.mxu0 %v1470_v5  ;;  %v1577_v0 = vld [vmem:[#allocation7 + $0x900] sm:$0xff]  ;;  %v1764_v1 = vld [vmem:[#allocation7 + $0xed8] sm:$0xff] }
  0x61   :  { %2227 = vmatprep.subr.mxu1 %v1662_v6  ;;  %2157 = vmatpush2.msra.mxu0 %v1469_v7  ;;  %v1956_v2 = vld [vmem:[#allocation7 + $0x14d8] sm:$0xff]  ;;  %v71_v3 = vld [vmem:[#allocation2 + $0x8] sm:$0xff] }
  0x62   :  { %2228 = vmatpush2.msra.mxu1 %v1661_v8  ;;  %2158 = vmatprep.subr.mxu0 %v1464_v9  ;;  %v103_v4 = vld [vmem:[#allocation2 + $0x408] sm:$0xff]  ;;  %v73_v7 = vld [vmem:[#allocation2 + $0x18] sm:$0xff] }
  0x63   :  { %2229 = vmatprep.subr.mxu1 %v1656_v10  ;;  %2159 = vmatpush2.msra.mxu0 %v1463_v11  ;;  %v378_v5 = vld [vmem:[#allocation2 + $0x108] sm:$0xff]  ;;  %v105_v8 = vld [vmem:[#allocation2 + $0x418] sm:$0xff]  ;;  %v70_v11 = vld [vmem:[#allocation2] sm:$0xff] }
  0x64   :  { %2230 = vmatpush2.msra.mxu1 %v1655_v12  ;;  %2160 = vmatprep.subr.mxu0 %v1458_v13  ;;  %v410_v6 = vld [vmem:[#allocation2 + $0x508] sm:$0xff]  ;;  %v380_v9 = vld [vmem:[#allocation2 + $0x118] sm:$0xff]  ;;  %v102_v12 = vld [vmem:[#allocation2 + $0x400] sm:$0xff] }
  0x65   :  { %2231 = vmatprep.subr.mxu1 %v1650_v14  ;;  %2161 = vmatpush2.msra.mxu0 %v1457_v15  ;;  %v412_v10 = vld [vmem:[#allocation2 + $0x518] sm:$0xff]  ;;  %v79_v15 = vld [vmem:[#allocation2 + $0x48] sm:$0xff] }
  0x66   :  { %2232 = vmatpush2.msra.mxu1 %v1649_v16  ;;  %2162 = vmatprep.subr.mxu0 %v1452_v17  ;;  %v111_v16 = vld [vmem:[#allocation2 + $0x448] sm:$0xff]  ;;  %v377_v17 = vld [vmem:[#allocation2 + $0x100] sm:$0xff] }
  0x67   :  { %2233 = vmatprep.subr.mxu1 %v1644_v18  ;;  %2163 = vmatpush2.msra.mxu0 %v1451_v19  ;;  %v409_v18 = vld [vmem:[#allocation2 + $0x500] sm:$0xff]  ;;  %v72_v19 = vld [vmem:[#allocation2 + $0x10] sm:$0xff] }
  0x68   :  { %2234 = vmatpush2.msra.mxu1 %v1643_v20  ;;  %2164 = vmatprep.subr.mxu0 %v1446_v21 }
  0x69   :  { %2235 = vmatprep.subr.mxu1 %v1638_v22  ;;  %2165 = vmatpush2.msra.mxu0 %v1445_v23 }
  0x6a   :  { %2236 = vmatpush2.msra.mxu1 %v1637_v24  ;;  %2166 = vmatprep.subr.mxu0 %v1440_v25  ;;  %v104_v24 = vld [vmem:[#allocation2 + $0x410] sm:$0xff] }
  0x6b   :  { %2237 = vmatprep.subr.mxu1 %v1632_v26  ;;  %2167 = vmatpush2.msra.mxu0 %v1439_v27  ;;  %v379_v25 = vld [vmem:[#allocation2 + $0x110] sm:$0xff]  ;;  %v386_v27 = vld [vmem:[#allocation2 + $0x148] sm:$0xff] }
  0x6c   :  { %2238 = vmatpush2.msra.mxu1 %v1631_v28  ;;  %2168 = vmatprep.subr.mxu0 %v1434_v29  ;;  %v411_v26 = vld [vmem:[#allocation2 + $0x510] sm:$0xff]  ;;  %v418_v28 = vld [vmem:[#allocation2 + $0x548] sm:$0xff]  ;;  %v81_v29 = vld [vmem:[#allocation2 + $0x58] sm:$0xff] }
  0x6d   :  { %2239 = vmatprep.subr.mxu1 %v1626_v30  ;;  %2169 = vmatpush2.msra.mxu0 %v1433_v31 }
  0x6e   :  { %2240 = vmatpush2.msra.mxu1 %v1625_v32  ;;  %2170 = vmatprep.subr.mxu0 %v1428_v33 }
  0x6f   :  { %2241 = vmatprep.subr.mxu1 %v1620_v34  ;;  %2171 = vmatpush2.msra.mxu0 %v1427_v35  ;;  %v113_v34 = vld [vmem:[#allocation2 + $0x458] sm:$0xff] }
  0x70   :  { %2242 = vmatpush2.msra.mxu1 %v1619_v36  ;;  %2172 = vmatprep.subr.mxu0 %v1422_v37  ;;  %v388_v35 = vld [vmem:[#allocation2 + $0x158] sm:$0xff] }
  0x71   :  { %2243 = vmatprep.subr.mxu1 %v1614_v38  ;;  %2173 = vmatpush2.msra.mxu0 %v1421_v39  ;;  %v420_v36 = vld [vmem:[#allocation2 + $0x558] sm:$0xff] }
  0x72   :  { %2244 = vmatpush2.msra.mxu1 %v1613_v40  ;;  %2174 = vmatprep.subr.mxu0 %v1416_v41 }
  0x73   :  { %2245 = vmatprep.subr.mxu1 %v1608_v42  ;;  %2175 = vmatpush2.msra.mxu0 %v1415_v43 }
  0x74   :  { %2246 = vmatpush2.msra.mxu1 %v1607_v44  ;;  %2176 = vmatprep.subr.mxu0 %v1410_v45 }
  0x75   :  { %2247 = vmatprep.subr.mxu1 %v1602_v46  ;;  %2177 = vmatpush2.msra.mxu0 %v1409_v47  ;;  %v87_v47 = vld [vmem:[#allocation2 + $0x88] sm:$0xff] }
  0x76   :  { %2248 = vmatpush2.msra.mxu1 %v1601_v48  ;;  %2178 = vmatprep.subr.mxu0 %v1404_v49  ;;  %v119_v48 = vld [vmem:[#allocation2 + $0x488] sm:$0xff] }
  0x77   :  { %2249 = vmatprep.subr.mxu1 %v1596_v50  ;;  %2179 = vmatpush2.msra.mxu0 %v1403_v51 }
  0x78   :  { %2250 = vmatpush2.msra.mxu1 %v1595_v52  ;;  %2180 = vmatprep.subr.mxu0 %v1398_v53  ;;  %v394_v53 = vld [vmem:[#allocation2 + $0x188] sm:$0xff] }
  0x79   :  { %2251 = vmatprep.subr.mxu1 %v1590_v54  ;;  %2181 = vmatpush2.msra.mxu0 %v1397_v55  ;;  %v426_v54 = vld [vmem:[#allocation2 + $0x588] sm:$0xff]  ;;  %v89_v55 = vld [vmem:[#allocation2 + $0x98] sm:$0xff] }
  0x7a   :  { %2252 = vmatpush2.msra.mxu1 %v1589_v56  ;;  %2182 = vmatprep.subr.mxu0 %v1392_v57 }
  0x7b   :  { %2253 = vmatprep.subr.mxu1 %v1584_v58  ;;  %2183 = vmatpush2.msra.mxu0 %v1391_v59 }
  0x7c   :  { %2254 = vmatpush2.msra.mxu1 %v1583_v60  ;;  %2184 = vmatprep.subr.mxu0 %v1386_v61 }
  0x7d   :  { %2255 = vmatprep.subr.mxu1 %v1578_v62  ;;  %2185 = vmatpush2.msra.mxu0 %v1385_v63 }
  0x7e   :  { %2256 = vmatpush2.msra.mxu1 %v1577_v0  ;;  %2264 = vmatprep.subr.mxu0 %v1764_v1  ;;  %v121_v0 = vld [vmem:[#allocation2 + $0x498] sm:$0xff] }
  0x7f   :  { %2335 = vmatprep.subr.mxu1 %v1956_v2  ;;  %v396_v1 = vld [vmem:[#allocation2 + $0x198] sm:$0xff] }
  0x80   :  { %v428_v2 = vld [vmem:[#allocation2 + $0x598] sm:$0xff] }
  0xa8   :  { %v3211_v13 = vpop.permute.xlu1 %443  ;;  %v3213_v14 = vpop.permute.xlu0 %139 }
  0xa9   :  { %3666 = vst [vmem:[#allocation15_spill] sm:$0xff] %v3211_v13  ;;  %3667 = vst [vmem:[#allocation16_spill] sm:$0xff] %v3213_v14  ;;  %v154_v20 = vmul.f32 %v3213_v14, %v71_v3  ;;  %v186_v21 = vmul.f32 %v3213_v14, %v103_v4  ;;  %v458_v22 = vmul.f32 %v3211_v13, %v378_v5 }
  0xaa   :  { %v490_v23 = vmul.f32 %v3211_v13, %v410_v6  ;;  %v156_v30 = vmul.f32 %v3213_v14, %v73_v7  ;;  %v188_v31 = vmul.f32 %v3213_v14, %v105_v8  ;;  %v460_v32 = vmul.f32 %v3211_v13, %v380_v9 }
  0xab   :  { %v492_v33 = vmul.f32 %v3211_v13, %v412_v10  ;;  %v3224_v37 = vmul.f32 %v3213_v14, %v70_v11  ;;  %v3227_v38 = vmul.f32 %v3213_v14, %v102_v12  ;;  %v3230_v39 = vmul.f32 %v3211_v13, %v377_v17  ;;  %v714_v17 = vld [vmem:[#allocation2 + $0x608] sm:$0xff] }
  0xac   :  { %v3233_v40 = vmul.f32 %v3211_v13, %v409_v18  ;;  %v3235_v41 = vpop.permute.xlu1 %447  ;;  %v3240_v43 = vmul.f32 %v3213_v14, %v72_v19  ;;  %v3243_v44 = vmul.f32 %v3213_v14, %v104_v24  ;;  %v3246_v45 = vmul.f32 %v3211_v13, %v379_v25  ;;  %v722_v18 = vld [vmem:[#allocation2 + $0x648] sm:$0xff] }
  0xad   :  { %v3237_v42 = vpop.permute.xlu0 %143  ;;  %v3249_v46 = vmul.f32 %v3211_v13, %v411_v26  ;;  %v466_v51 = vmul.f32 %v3235_v41, %v386_v27  ;;  %v498_v52 = vmul.f32 %v3235_v41, %v418_v28  ;;  %v468_v58 = vmul.f32 %v3235_v41, %v388_v35  ;;  %v692_v28 = vld [vmem:[#allocation2 + $0x258] sm:$0xff] }
  0xae   :  { %3668 = vst [vmem:[#allocation17_spill] sm:$0xff] %v3240_v43  ;;  %3669 = vst [vmem:[#allocation18_spill] sm:$0xff] %v3243_v44  ;;  %v162_v49 = vmul.f32 %v3237_v42, %v79_v15  ;;  %v194_v50 = vmul.f32 %v3237_v42, %v111_v16  ;;  %v164_v56 = vmul.f32 %v3237_v42, %v81_v29  ;;  %v682_v15 = vld [vmem:[#allocation2 + $0x208] sm:$0xff]  ;;  %v716_v29 = vld [vmem:[#allocation2 + $0x618] sm:$0xff] }
  0xaf   :  { %3670 = vst [vmem:[#allocation19_spill] sm:$0xff] %v3246_v45  ;;  %3671 = vst [vmem:[#allocation20_spill] sm:$0xff] %v3249_v46  ;;  %v196_v57 = vmul.f32 %v3237_v42, %v113_v34  ;;  %v500_v59 = vmul.f32 %v3235_v41, %v420_v36  ;;  %v530_v62 = vadd.f32 %v466_v51, %v458_v22  ;;  %v690_v16 = vld [vmem:[#allocation2 + $0x248] sm:$0xff] }
  0xb0   :  { %v226_v60 = vadd.f32 %v162_v49, %v154_v20  ;;  %v298_v61 = vadd.f32 %v194_v50, %v186_v21  ;;  %v602_v63 = vadd.f32 %v498_v52, %v490_v23  ;;  %v3259_v3 = vpop.permute.xlu1 %451  ;;  %v244_v5 = vadd.f32 %v164_v56, %v156_v30  ;;  %v684_v23 = vld [vmem:[#allocation2 + $0x218] sm:$0xff]  ;;  %v86_v49 = vld [vmem:[#allocation2 + $0x80] sm:$0xff]  ;;  %v127_v50 = vld [vmem:[#allocation2 + $0x4c8] sm:$0xff] }
  0xb1   :  { %v3261_v4 = vpop.permute.xlu0 %147  ;;  %v316_v6 = vadd.f32 %v196_v57, %v188_v31  ;;  %v548_v7 = vadd.f32 %v468_v58, %v460_v32  ;;  %v620_v8 = vadd.f32 %v500_v59, %v492_v33  ;;  %v474_v11 = vmul.f32 %v3259_v3, %v394_v53  ;;  %v724_v30 = vld [vmem:[#allocation2 + $0x658] sm:$0xff]  ;;  %v95_v33 = vld [vmem:[#allocation2 + $0xc8] sm:$0xff]  ;;  %v118_v56 = vld [vmem:[#allocation2 + $0x480] sm:$0xff] }
  0xb2   :  { %v170_v9 = vmul.f32 %v3261_v4, %v87_v47  ;;  %v202_v10 = vmul.f32 %v3261_v4, %v119_v48  ;;  %v506_v12 = vmul.f32 %v3259_v3, %v426_v54  ;;  %v172_v19 = vmul.f32 %v3261_v4, %v89_v55  ;;  %v78_v48 = vld [vmem:[#allocation2 + $0x40] sm:$0xff]  ;;  %v402_v57 = vld [vmem:[#allocation2 + $0x1c8] sm:$0xff]  ;;  %v97_v59 = vld [vmem:[#allocation2 + $0xd8] sm:$0xff] }
  0xb3   :  { %v204_v20 = vmul.f32 %v3261_v4, %v121_v0  ;;  %v476_v21 = vmul.f32 %v3259_v3, %v396_v1  ;;  %v508_v22 = vmul.f32 %v3259_v3, %v428_v2  ;;  %v531_v26 = vadd.f32 %v530_v62, %v474_v11  ;;  %v110_v55 = vld [vmem:[#allocation2 + $0x440] sm:$0xff]  ;;  %v434_v58 = vld [vmem:[#allocation2 + $0x5c8] sm:$0xff]  ;;  %v129_v2 = vld [vmem:[#allocation2 + $0x4d8] sm:$0xff] }
  0xb4   :  { %v227_v24 = vadd.f32 %v226_v60, %v170_v9  ;;  %v299_v25 = vadd.f32 %v298_v61, %v202_v10  ;;  %v603_v27 = vadd.f32 %v602_v63, %v506_v12  ;;  %v3271_v31 = vpop.permute.xlu1 %751  ;;  %v245_v34 = vadd.f32 %v244_v5, %v172_v19  ;;  %v404_v5 = vld [vmem:[#allocation2 + $0x1d8] sm:$0xff]  ;;  %v1034_v45 = vld [vmem:[#allocation2 + $0x788] sm:$0xff] }
  0xb5   :  { %v3273_v32 = vpop.permute.xlu0 %747  ;;  %v317_v35 = vadd.f32 %v316_v6, %v204_v20  ;;  %v549_v36 = vadd.f32 %v548_v7, %v476_v21  ;;  %v621_v47 = vadd.f32 %v620_v8, %v508_v22  ;;  %v770_v52 = vmul.f32 %v3271_v31, %v690_v16  ;;  %v436_v6 = vld [vmem:[#allocation2 + $0x5d8] sm:$0xff]  ;;  %v698_v21 = vld [vmem:[#allocation2 + $0x288] sm:$0xff] }
  0xb6   :  { %v762_v51 = vmul.f32 %v3273_v32, %v682_v15  ;;  %v794_v53 = vmul.f32 %v3273_v32, %v714_v17  ;;  %v802_v54 = vmul.f32 %v3271_v31, %v722_v18  ;;  %v764_v60 = vmul.f32 %v3273_v32, %v684_v23 }
  0xb7   :  { %v772_v61 = vmul.f32 %v3271_v31, %v692_v28  ;;  %v796_v62 = vmul.f32 %v3273_v32, %v716_v29  ;;  %v804_v63 = vmul.f32 %v3271_v31, %v724_v30  ;;  %v3284_v7 = vmul.f32 %v3237_v42, %v78_v48 }
  0xb8   :  { %v834_v0 = vadd.f32 %v770_v52, %v762_v51  ;;  %v906_v1 = vadd.f32 %v802_v54, %v794_v53  ;;  %v3287_v8 = vmul.f32 %v3261_v4, %v86_v49  ;;  %v3289_v9 = vpop.permute.xlu1 %455  ;;  %v3298_v15 = vmul.f32 %v3237_v42, %v110_v55  ;;  %v986_v52 = vld [vmem:[#allocation2 + $0x308] sm:$0xff] }
  0xb9   :  { %v3291_v10 = vpop.permute.xlu0 %151  ;;  %v3293_v11 = vadd.f32 %v772_v61, %v764_v60  ;;  %v3295_v12 = vadd.f32 %v804_v63, %v796_v62  ;;  %v3301_v16 = vmul.f32 %v3261_v4, %v118_v56  ;;  %v482_v19 = vmul.f32 %v3289_v9, %v402_v57 }
  0xba   :  { %v178_v17 = vmul.f32 %v3291_v10, %v95_v33  ;;  %v210_v18 = vmul.f32 %v3291_v10, %v127_v50  ;;  %v514_v20 = vmul.f32 %v3289_v9, %v434_v58  ;;  %v180_v22 = vmul.f32 %v3291_v10, %v97_v59  ;;  %v730_v33 = vld [vmem:[#allocation2 + $0x688] sm:$0xff] }
  0xbb   :  { %v212_v23 = vmul.f32 %v3291_v10, %v129_v2  ;;  %v484_v28 = vmul.f32 %v3289_v9, %v404_v5  ;;  %v516_v29 = vmul.f32 %v3289_v9, %v436_v6  ;;  %v532_v49 = vadd.f32 %v531_v26, %v482_v19  ;;  %v1018_v50 = vld [vmem:[#allocation2 + $0x708] sm:$0xff] }
  0xbc   :  { %v228_v30 = vadd.f32 %v227_v24, %v178_v17  ;;  %v300_v48 = vadd.f32 %v299_v25, %v210_v18  ;;  %v604_v51 = vadd.f32 %v603_v27, %v514_v20  ;;  %v3311_v53 = vpop.permute.xlu1 %1051  ;;  %v3315_v55 = vadd.f32 %v245_v34, %v180_v22  ;;  %v706_v27 = vld [vmem:[#allocation2 + $0x2c8] sm:$0xff] }
  0xbd   :  { %v3313_v54 = vpop.permute.xlu0 %755  ;;  %v3317_v56 = vadd.f32 %v317_v35, %v212_v23  ;;  %v3319_v57 = vadd.f32 %v549_v36, %v484_v28  ;;  %v3321_v58 = vadd.f32 %v621_v47, %v516_v29  ;;  %v533_v25 = vrot.slane %v532_v49, 4  ;;  %v738_v5 = vld [vmem:[#allocation2 + $0x6c8] sm:$0xff] }
  0xbe   :  { %v229_v59 = vrot.slane %v228_v30, 4  ;;  %v301_v24 = vrot.slane %v300_v48, 4  ;;  %v605_v26 = vrot.slane %v604_v51, 4  ;;  %v778_v60 = vmul.f32 %v3313_v54, %v698_v21  ;;  %v994_v47 = vld [vmem:[#allocation2 + $0x348] sm:$0xff] }
  0xbf   :  { %v810_v61 = vmul.f32 %v3313_v54, %v730_v33  ;;  %v1066_v62 = vmul.f32 %v3311_v53, %v986_v52  ;;  %v1098_v34 = vmul.f32 %v3311_v53, %v1018_v50  ;;  %v534_v2 = vadd.f32 %v533_v25, %v532_v49  ;;  %v1026_v6 = vld [vmem:[#allocation2 + $0x748] sm:$0xff] }
  0xc0   :  { %v230_v63 = vadd.f32 %v229_v59, %v228_v30  ;;  %v302_v35 = vadd.f32 %v301_v24, %v300_v48  ;;  %v606_v36 = vadd.f32 %v605_v26, %v604_v51  ;;  %v3327_v17 = vpop.permute.xlu1 %759  ;;  %v835_v19 = vadd.f32 %v834_v0, %v778_v60  ;;  %v1002_v59 = vld [vmem:[#allocation2 + $0x388] sm:$0xff] }
  0xc1   :  { %v3329_v18 = vpop.permute.xlu0 %1055  ;;  %v907_v20 = vadd.f32 %v906_v1, %v810_v61  ;;  %v247_v21 = vrot.slane %v3315_v55, 4  ;;  %v319_v22 = vrot.slane %v3317_v56, 4  ;;  %v535_v29 = vrot.slane %v534_v2, 2  ;;  %v1010_v24 = vld [vmem:[#allocation2 + $0x3c8] sm:$0xff] }
  0xc2   :  { %v231_v23 = vrot.slane %v230_v63, 2  ;;  %v303_v28 = vrot.slane %v302_v35, 2  ;;  %v607_v30 = vrot.slane %v606_v36, 2  ;;  %v786_v48 = vmul.f32 %v3327_v17, %v706_v27 }
  0xc3   :  { %v818_v49 = vmul.f32 %v3327_v17, %v738_v5  ;;  %v1074_v51 = vmul.f32 %v3329_v18, %v994_v47  ;;  %v1106_v33 = vmul.f32 %v3329_v18, %v1026_v6  ;;  %v536_v0 = vadd.f32 %v535_v29, %v534_v2  ;;  %v1042_v6 = vld [vmem:[#allocation2 + $0x7c8] sm:$0xff] }
  0xc4   :  { %v232_v52 = vadd.f32 %v231_v23, %v230_v63  ;;  %v304_v50 = vadd.f32 %v303_v28, %v302_v35  ;;  %v608_v1 = vadd.f32 %v607_v30, %v606_v36  ;;  %v3339_v26 = vpop.permute.xlu1 %1063  ;;  %v836_v60 = vadd.f32 %v835_v19, %v786_v48 }
  0xc5   :  { %v3337_v25 = vpop.permute.xlu0 %1059  ;;  %v908_v61 = vadd.f32 %v907_v20, %v818_v49  ;;  %v1138_v13 = vadd.f32 %v1074_v51, %v1066_v62  ;;  %v1210_v27 = vadd.f32 %v1106_v33, %v1098_v34  ;;  %v537_v46 = vrot.slane %v536_v0, 1 }
  0xc6   :  { %v233_v14 = vrot.slane %v232_v52, 1  ;;  %v305_v5 = vrot.slane %v304_v50, 1  ;;  %v609_v47 = vrot.slane %v608_v1, 1  ;;  %v837_v63 = vrot.slane %v836_v60, 4 }
  0xc7   :  { %v909_v35 = vrot.slane %v908_v61, 4  ;;  %v1082_v2 = vmul.f32 %v3337_v25, %v1002_v59  ;;  %v1090_v36 = vmul.f32 %v3339_v26, %v1010_v24  ;;  %v538_v29 = vadd.f32 %v537_v46, %v536_v0 }
  0xc8   :  { %v234_v23 = vadd.f32 %v233_v14, %v232_v52  ;;  %v306_v28 = vadd.f32 %v305_v5, %v304_v50  ;;  %v610_v30 = vadd.f32 %v609_v47, %v608_v1  ;;  %v838_v19 = vadd.f32 %v837_v63, %v836_v60 }
  0xc9   :  { %v910_v20 = vadd.f32 %v909_v35, %v908_v61  ;;  %v1114_v62 = vmul.f32 %v3337_v25, %v1034_v45  ;;  %v1122_v34 = vmul.f32 %v3339_v26, %v1042_v6  ;;  %v1139_v51 = vadd.f32 %v1138_v13, %v1082_v2 }
  0xca   :  { %v666_v48 = vadd.f32 %v538_v29, %v234_v23  ;;  %v674_v49 = vadd.f32 %v610_v30, %v306_v28  ;;  %v248_v33 = vadd.f32 %v247_v21, %v3315_v55  ;;  %v839_v44 = vrot.slane %v838_v19, 2  ;;  %v700_v23 = vld [vmem:[#allocation2 + $0x298] sm:$0xff] }
  0xcb   :  { %v911_v43 = vrot.slane %v910_v20, 2  ;;  %v1211_v59 = vadd.f32 %v1210_v27, %v1114_v62  ;;  %v320_v24 = vadd.f32 %v319_v22, %v3317_v56  ;;  %v1140_v14 = vadd.f32 %v1139_v51, %v1090_v36 }
  0xcc   :  { %v249_v52 = vrot.slane %v248_v33, 2  ;;  %v551_v46 = vrot.slane %v3319_v57, 4  ;;  %v623_v50 = vrot.slane %v3321_v58, 4  ;;  %v840_v0 = vadd.f32 %v839_v44, %v838_v19  ;;  %v708_v19 = vld [vmem:[#allocation2 + $0x2d8] sm:$0xff] }
  0xcd   :  { %v912_v45 = vadd.f32 %v911_v43, %v910_v20  ;;  %v1212_v1 = vadd.f32 %v1211_v59, %v1122_v34  ;;  %v321_v60 = vrot.slane %v320_v24, 2  ;;  %v1141_v61 = vrot.slane %v1140_v14, 4  ;;  %v740_v20 = vld [vmem:[#allocation2 + $0x6d8] sm:$0xff] }
  0xce   :  { %v250_v5 = vadd.f32 %v249_v52, %v248_v33  ;;  %v552_v13 = vadd.f32 %v551_v46, %v3319_v57  ;;  %v624_v55 = vadd.f32 %v623_v50, %v3321_v58  ;;  %v841_v21 = vrot.slane %v840_v0, 1  ;;  %v732_v58 = vld [vmem:[#allocation2 + $0x698] sm:$0xff] }
  0xcf   :  { %v913_v27 = vrot.slane %v912_v45, 1  ;;  %v1213_v47 = vrot.slane %v1212_v1, 4  ;;  %v322_v56 = vadd.f32 %v321_v60, %v320_v24  ;;  %v1142_v22 = vadd.f32 %v1141_v61, %v1140_v14  ;;  %v988_v46 = vld [vmem:[#allocation2 + $0x318] sm:$0xff] }
  0xd0   :  { %v251_v6 = vrot.slane %v250_v5, 1  ;;  %v553_v63 = vrot.slane %v552_v13, 2  ;;  %v625_v35 = vrot.slane %v624_v55, 2  ;;  %v842_v2 = vadd.f32 %v841_v21, %v840_v0  ;;  %v996_v50 = vld [vmem:[#allocation2 + $0x358] sm:$0xff] }
  0xd1   :  { %v914_v36 = vadd.f32 %v913_v27, %v912_v45  ;;  %v1214_v44 = vadd.f32 %v1213_v47, %v1212_v1  ;;  %v323_v43 = vrot.slane %v322_v56, 1  ;;  %v1143_v28 = vrot.slane %v1142_v22, 2  ;;  %v1020_v47 = vld [vmem:[#allocation2 + $0x718] sm:$0xff] }
  0xd2   :  { %v252_v29 = vadd.f32 %v251_v6, %v250_v5  ;;  %v554_v30 = vadd.f32 %v553_v63, %v552_v13  ;;  %v626_v57 = vadd.f32 %v625_v35, %v624_v55  ;;  %v970_v62 = vadd.f32 %v842_v2, %v666_v48  ;;  %v1004_v13 = vld [vmem:[#allocation2 + $0x398] sm:$0xff] }
  0xd3   :  { %v978_v34 = vadd.f32 %v914_v36, %v674_v49  ;;  %v1215_v51 = vrot.slane %v1214_v44, 2  ;;  %v324_v33 = vadd.f32 %v323_v43, %v322_v56  ;;  %v1144_v59 = vadd.f32 %v1143_v28, %v1142_v22  ;;  %v1012_v55 = vld [vmem:[#allocation2 + $0x3d8] sm:$0xff] }
  0xd4   :  { %v555_v24 = vrot.slane %v554_v30, 1  ;;  %v627_v14 = vrot.slane %v626_v57, 1  ;;  %v780_v52 = vmul.f32 %v3313_v54, %v700_v23  ;;  %v788_v45 = vmul.f32 %v3327_v17, %v708_v19  ;;  %v1028_v56 = vld [vmem:[#allocation2 + $0x758] sm:$0xff] }
  0xd5   :  { %v1216_v0 = vadd.f32 %v1215_v51, %v1214_v44  ;;  %v812_v1 = vmul.f32 %v3313_v54, %v732_v58  ;;  %v820_v60 = vmul.f32 %v3327_v17, %v740_v20  ;;  %v1145_v61 = vrot.slane %v1144_v59, 1  ;;  %v1036_v44 = vld [vmem:[#allocation2 + $0x798] sm:$0xff] }
  0xd6   :  { %v556_v5 = vadd.f32 %v555_v24, %v554_v30  ;;  %v628_v48 = vadd.f32 %v627_v14, %v626_v57  ;;  %v853_v49 = vadd.f32 %v3293_v11, %v780_v52  ;;  %v1068_v22 = vmul.f32 %v3311_v53, %v988_v46  ;;  %v1044_v43 = vld [vmem:[#allocation2 + $0x7d8] sm:$0xff]  ;;  %v94_v30 = vld [vmem:[#allocation2 + $0xc0] sm:$0xff] }
  0xd7   :  { %v1217_v21 = vrot.slane %v1216_v0, 1  ;;  %v925_v27 = vadd.f32 %v3295_v12, %v812_v1  ;;  %v1076_v6 = vmul.f32 %v3329_v18, %v996_v50  ;;  %v1146_v63 = vadd.f32 %v1145_v61, %v1144_v59 }
  0xd8   :  { %v3359_v35 = vadd.f32 %v556_v5, %v252_v29  ;;  %v3361_v2 = vadd.f32 %v628_v48, %v324_v33  ;;  %v854_v36 = vadd.f32 %v853_v49, %v788_v45  ;;  %v1084_v28 = vmul.f32 %v3337_v25, %v1004_v13  ;;  %v126_v29 = vld [vmem:[#allocation2 + $0x4c0] sm:$0xff] }
  0xd9   :  { %v1218_v11 = vadd.f32 %v1217_v21, %v1216_v0  ;;  %v926_v23 = vadd.f32 %v925_v27, %v820_v60  ;;  %v1092_v12 = vmul.f32 %v3339_v26, %v1012_v55  ;;  %v1274_v57 = vadd.f32 %v1146_v63, %v970_v62  ;;  %v385_v0 = vld [vmem:[#allocation2 + $0x140] sm:$0xff] }
  0xda   :  { %v855_v19 = vrot.slane %v854_v36, 4  ;;  %v1100_v58 = vmul.f32 %v3311_v53, %v1020_v47  ;;  %v1108_v20 = vmul.f32 %v3329_v18, %v1028_v56  ;;  %v1116_v59 = vmul.f32 %v3337_v25, %v1036_v44  ;;  %v393_v45 = vld [vmem:[#allocation2 + $0x180] sm:$0xff] }
  0xdb   :  { %v1282_v51 = vadd.f32 %v1218_v11, %v978_v34  ;;  %v927_v33 = vrot.slane %v926_v23, 4  ;;  %v1124_v24 = vmul.f32 %v3339_v26, %v1044_v43  ;;  %v1156_v52 = vadd.f32 %v1076_v6, %v1068_v22  ;;  %v401_v13 = vld [vmem:[#allocation2 + $0x1c0] sm:$0xff] }
  0xdc   :  { %v856_v14 = vadd.f32 %v855_v19, %v854_v36  ;;  %v1228_v46 = vadd.f32 %v1108_v20, %v1100_v58  ;;  %v177_v50 = vmul.f32 %v3291_v10, %v94_v30  ;;  %v209_v60 = vmul.f32 %v3291_v10, %v126_v29  ;;  %v417_v55 = vld [vmem:[#allocation2 + $0x540] sm:$0xff] }
  0xdd   :  { %v3371_v62 = vsel %vm2105_vm0, %v1282_v51, %v1274_v57  ;;  %v928_v1 = vadd.f32 %v927_v33, %v926_v23  ;;  %v217_v34 = vadd.f32 %v3284_v7, %v3224_v37  ;;  %v1157_v5 = vadd.f32 %v1156_v52, %v1084_v28  ;;  %v425_v63 = vld [vmem:[#allocation2 + $0x580] sm:$0xff] }
  0xde   :  { %2186 = vmatprep.mubr.f32.mxu0 %v3371_v62  ;;  %v857_v61 = vrot.slane %v856_v14, 2  ;;  %v1229_v48 = vadd.f32 %v1228_v46, %v1116_v59  ;;  %v289_v49 = vadd.f32 %v3298_v15, %v3227_v38  ;;  %v465_v47 = vmul.f32 %v3235_v41, %v385_v0  ;;  %v433_v36 = vld [vmem:[#allocation2 + $0x5c0] sm:$0xff] }
  0xdf   :  { %v929_v21 = vrot.slane %v928_v1, 2  ;;  %v218_v27 = vadd.f32 %v217_v34, %v3287_v8  ;;  %v473_v56 = vmul.f32 %v3259_v3, %v393_v45  ;;  %v1158_v6 = vadd.f32 %v1157_v5, %v1092_v12  ;;  %v689_v45 = vld [vmem:[#allocation2 + $0x240] sm:$0xff] }
  0xe0   :  { %v858_v22 = vadd.f32 %v857_v61, %v856_v14  ;;  %v1230_v37 = vadd.f32 %v1229_v48, %v1124_v24  ;;  %v290_v7 = vadd.f32 %v289_v49, %v3301_v16  ;;  %v481_v38 = vmul.f32 %v3289_v9, %v401_v13  ;;  %v681_v14 = vld [vmem:[#allocation2 + $0x200] sm:$0xff] }
  0xe1   :  { %v930_v44 = vadd.f32 %v929_v21, %v928_v1  ;;  %v219_v43 = vadd.f32 %v218_v27, %v177_v50  ;;  %v497_v15 = vmul.f32 %v3235_v41, %v417_v55  ;;  %v1159_v23 = vrot.slane %v1158_v6, 4  ;;  %v697_v5 = vld [vmem:[#allocation2 + $0x280] sm:$0xff] }
  0xe2   :  { %v859_v11 = vrot.slane %v858_v22, 1  ;;  %v1231_v8 = vrot.slane %v1230_v37, 4  ;;  %v291_v28 = vadd.f32 %v290_v7, %v209_v60  ;;  %v505_v19 = vmul.f32 %v3259_v3, %v425_v63  ;;  %v705_v55 = vld [vmem:[#allocation2 + $0x2c0] sm:$0xff] }
  0xe3   :  { %v931_v30 = vrot.slane %v930_v44, 1  ;;  %v220_v57 = vrot.slane %v219_v43, 4  ;;  %v513_v12 = vmul.f32 %v3289_v9, %v433_v36  ;;  %v1160_v16 = vadd.f32 %v1159_v23, %v1158_v6 }
  0xe4   :  { %v860_v58 = vadd.f32 %v859_v11, %v858_v22  ;;  %v1232_v20 = vadd.f32 %v1231_v8, %v1230_v37  ;;  %v292_v29 = vrot.slane %v291_v28, 4  ;;  %v521_v59 = vadd.f32 %v465_v47, %v3230_v39 }
  0xe5   :  { %v932_v51 = vadd.f32 %v931_v30, %v930_v44  ;;  %v221_v33 = vadd.f32 %v220_v57, %v219_v43  ;;  %v593_v24 = vadd.f32 %v497_v15, %v3233_v40  ;;  %v1161_v46 = vrot.slane %v1160_v16, 2  ;;  %v729_v44 = vld [vmem:[#allocation2 + $0x680] sm:$0xff] }
  0xe6   :  { %v972_v52 = vadd.f32 %v860_v58, %v3359_v35  ;;  %v1233_v50 = vrot.slane %v1232_v20, 2  ;;  %v293_v0 = vadd.f32 %v292_v29, %v291_v28  ;;  %v522_v34 = vadd.f32 %v521_v59, %v473_v56  ;;  %v713_v35 = vld [vmem:[#allocation2 + $0x600] sm:$0xff] }
  0xe7   :  { %v980_v1 = vadd.f32 %v932_v51, %v3361_v2  ;;  %v222_v60 = vrot.slane %v221_v33, 2  ;;  %v594_v61 = vadd.f32 %v593_v24, %v505_v19  ;;  %v1162_v48 = vadd.f32 %v1161_v46, %v1160_v16  ;;  %v721_v2 = vld [vmem:[#allocation2 + $0x640] sm:$0xff] }
  0xe8   :  { %v1234_v49 = vadd.f32 %v1233_v50, %v1232_v20  ;;  %v294_v13 = vrot.slane %v293_v0, 2  ;;  %v761_v39 = vmul.f32 %v3273_v32, %v681_v14  ;;  %v523_v21 = vadd.f32 %v522_v34, %v481_v38  ;;  %v737_v38 = vld [vmem:[#allocation2 + $0x6c0] sm:$0xff] }
  0xe9   :  { %v223_v40 = vadd.f32 %v222_v60, %v221_v33  ;;  %v595_v27 = vadd.f32 %v594_v61, %v513_v12  ;;  %v769_v47 = vmul.f32 %v3271_v31, %v689_v45  ;;  %v1163_v22 = vrot.slane %v1162_v48, 1  ;;  %v985_v12 = vld [vmem:[#allocation2 + $0x300] sm:$0xff] }
  0xea   :  { %v1235_v6 = vrot.slane %v1234_v49, 1  ;;  %v295_v37 = vadd.f32 %v294_v13, %v293_v0  ;;  %v777_v56 = vmul.f32 %v3313_v54, %v697_v5  ;;  %v524_v63 = vrot.slane %v523_v21, 4  ;;  %v993_v58 = vld [vmem:[#allocation2 + $0x340] sm:$0xff] }
  0xeb   :  { %v224_v7 = vrot.slane %v223_v40, 1  ;;  %v596_v36 = vrot.slane %v595_v27, 4  ;;  %v785_v43 = vmul.f32 %v3327_v17, %v705_v55  ;;  %v1164_v15 = vadd.f32 %v1163_v22, %v1162_v48  ;;  %v1001_v33 = vld [vmem:[#allocation2 + $0x380] sm:$0xff] }
  0xec   :  { %v1236_v11 = vadd.f32 %v1235_v6, %v1234_v49  ;;  %v296_v23 = vrot.slane %v295_v37, 1  ;;  %v793_v8 = vmul.f32 %v3273_v32, %v713_v35  ;;  %v525_v30 = vadd.f32 %v524_v63, %v523_v21  ;;  %v1009_v50 = vld [vmem:[#allocation2 + $0x3c0] sm:$0xff]  ;;  %v80_v35 = vld [vmem:[#allocation2 + $0x50] sm:$0xff] }
  0xed   :  { %v225_v28 = vadd.f32 %v224_v7, %v223_v40  ;;  %v597_v57 = vadd.f32 %v596_v36, %v595_v27  ;;  %v801_v19 = vmul.f32 %v3271_v31, %v721_v2  ;;  %v1276_v16 = vadd.f32 %v1164_v15, %v972_v52  ;;  %v1017_v0 = vld [vmem:[#allocation2 + $0x700] sm:$0xff]  ;;  %v88_v2 = vld [vmem:[#allocation2 + $0x90] sm:$0xff] }
  0xee   :  { %v1284_v20 = vadd.f32 %v1236_v11, %v980_v1  ;;  %v297_v29 = vadd.f32 %v296_v23, %v295_v37  ;;  %v809_v51 = vmul.f32 %v3313_v54, %v729_v44  ;;  %v526_v59 = vrot.slane %v525_v30, 2  ;;  %v1025_v45 = vld [vmem:[#allocation2 + $0x740] sm:$0xff]  ;;  %v96_v44 = vld [vmem:[#allocation2 + $0xd0] sm:$0xff] }
  0xef   :  { %v598_v24 = vrot.slane %v597_v57, 2  ;;  %v817_v14 = vmul.f32 %v3327_v17, %v737_v38  ;;  %v825_v46 = vadd.f32 %v769_v47, %v761_v39  ;;  %v897_v34 = vadd.f32 %v801_v19, %v793_v8  ;;  %v1033_v61 = vld [vmem:[#allocation2 + $0x780] sm:$0xff]  ;;  %v112_v38 = vld [vmem:[#allocation2 + $0x450] sm:$0xff] }
  0xf0   :  { %v3400_v60 = vsel %vm2105_vm0, %v1284_v20, %v1276_v16  ;;  %v1065_v52 = vmul.f32 %v3311_v53, %v985_v12  ;;  %v1073_v1 = vmul.f32 %v3329_v18, %v993_v58  ;;  %v527_v5 = vadd.f32 %v526_v59, %v525_v30  ;;  %v1041_v13 = vld [vmem:[#allocation2 + $0x7c0] sm:$0xff]  ;;  %v120_v12 = vld [vmem:[#allocation2 + $0x490] sm:$0xff] }
  0xf1   :  { %2257 = vmatprep.mubr.f32.mxu1 %v3400_v60  ;;  %v599_v48 = vadd.f32 %v598_v24, %v597_v57  ;;  %v826_v49 = vadd.f32 %v825_v46, %v777_v56  ;;  %v1081_v55 = vmul.f32 %v3337_v25, %v1001_v33  ;;  %v898_v39 = vadd.f32 %v897_v34, %v809_v51 }
  0xf2   :  { %v1089_v40 = vmul.f32 %v3339_v26, %v1009_v50  ;;  %v1097_v21 = vmul.f32 %v3311_v53, %v1017_v0  ;;  %v1105_v27 = vmul.f32 %v3329_v18, %v1025_v45  ;;  %v528_v47 = vrot.slane %v527_v5, 1  ;;  %v387_v50 = vld [vmem:[#allocation2 + $0x150] sm:$0xff] }
  0xf3   :  { %v600_v22 = vrot.slane %v599_v48, 1  ;;  %v827_v6 = vadd.f32 %v826_v49, %v785_v43  ;;  %v1113_v37 = vmul.f32 %v3337_v25, %v1033_v61  ;;  %v899_v7 = vadd.f32 %v898_v39, %v817_v14  ;;  %v128_v43 = vld [vmem:[#allocation2 + $0x4d0] sm:$0xff] }
  0xf4   :  { %v1121_v56 = vmul.f32 %v3339_v26, %v1041_v13  ;;  %v1129_v63 = vadd.f32 %v1073_v1, %v1065_v52  ;;  %v1201_v36 = vadd.f32 %v1105_v27, %v1097_v21  ;;  %v529_v15 = vadd.f32 %v528_v47, %v527_v5  ;;  %v395_v0 = vld [vmem:[#allocation2 + $0x190] sm:$0xff]  ;;  %v3672_v52 = vld [vmem:[#allocation17_spill] sm:$0xff] }
  0xf5   :  { %v601_v11 = vadd.f32 %v600_v22, %v599_v48  ;;  %v828_v23 = vrot.slane %v827_v6, 4  ;;  %v163_v8 = vmul.f32 %v3237_v42, %v80_v35  ;;  %v900_v30 = vrot.slane %v899_v7, 4  ;;  %v3673_v48 = vld [vmem:[#allocation18_spill] sm:$0xff] }
  0xf6   :  { %v1130_v57 = vadd.f32 %v1129_v63, %v1081_v55  ;;  %v1202_v19 = vadd.f32 %v1201_v36, %v1113_v37  ;;  %v171_v58 = vmul.f32 %v3261_v4, %v88_v2  ;;  %v665_v16 = vadd.f32 %v529_v15, %v225_v28  ;;  %v403_v13 = vld [vmem:[#allocation2 + $0x1d0] sm:$0xff] }
  0xf7   :  { %v673_v20 = vadd.f32 %v601_v11, %v297_v29  ;;  %v829_v51 = vadd.f32 %v828_v23, %v827_v6  ;;  %v179_v33 = vmul.f32 %v3291_v10, %v96_v44  ;;  %v901_v59 = vadd.f32 %v900_v30, %v899_v7  ;;  %v419_v55 = vld [vmem:[#allocation2 + $0x550] sm:$0xff] }
  0xf8   :  { %v1131_v24 = vadd.f32 %v1130_v57, %v1089_v40  ;;  %v1203_v14 = vadd.f32 %v1202_v19, %v1121_v56  ;;  %v195_v46 = vmul.f32 %v3237_v42, %v112_v38  ;;  %v203_v34 = vmul.f32 %v3261_v4, %v120_v12  ;;  %v427_v37 = vld [vmem:[#allocation2 + $0x590] sm:$0xff] }
  0xf9   :  { %v830_v45 = vrot.slane %v829_v51, 2  ;;  %v211_v61 = vmul.f32 %v3291_v10, %v128_v43  ;;  %v235_v1 = vadd.f32 %v163_v8, %v3672_v52  ;;  %v902_v5 = vrot.slane %v901_v59, 2  ;;  %v435_v2 = vld [vmem:[#allocation2 + $0x5d0] sm:$0xff] }
  0xfa   :  { %v1132_v28 = vrot.slane %v1131_v24, 4  ;;  %v1204_v29 = vrot.slane %v1203_v14, 4  ;;  %v307_v49 = vadd.f32 %v195_v46, %v3673_v48  ;;  %v467_v21 = vmul.f32 %v3235_v41, %v387_v50  ;;  %v3675_v46 = vld [vmem:[#allocation20_spill] sm:$0xff]  ;;  %v707_v48 = vld [vmem:[#allocation2 + $0x2d0] sm:$0xff] }
  0xfb   :  { %v831_v39 = vadd.f32 %v830_v45, %v829_v51  ;;  %v236_v40 = vadd.f32 %v235_v1, %v171_v58  ;;  %v475_v27 = vmul.f32 %v3259_v3, %v395_v0  ;;  %v903_v35 = vadd.f32 %v902_v5, %v901_v59  ;;  %v683_v51 = vld [vmem:[#allocation2 + $0x210] sm:$0xff] }
  0xfc   :  { %v1133_v47 = vadd.f32 %v1132_v28, %v1131_v24  ;;  %v1205_v22 = vadd.f32 %v1204_v29, %v1203_v14  ;;  %v308_v6 = vadd.f32 %v307_v49, %v203_v34  ;;  %v483_v63 = vmul.f32 %v3289_v9, %v403_v13  ;;  %v3674_v24 = vld [vmem:[#allocation19_spill] sm:$0xff] }
  0xfd   :  { %v832_v7 = vrot.slane %v831_v39, 1  ;;  %v237_v56 = vadd.f32 %v236_v40, %v179_v33  ;;  %v499_v36 = vmul.f32 %v3235_v41, %v419_v55  ;;  %v904_v44 = vrot.slane %v903_v35, 1  ;;  %v691_v0 = vld [vmem:[#allocation2 + $0x250] sm:$0xff] }
  0xfe   :  { %v1134_v15 = vrot.slane %v1133_v47, 2  ;;  %v1206_v11 = vrot.slane %v1205_v22, 2  ;;  %v309_v23 = vadd.f32 %v308_v6, %v211_v61  ;;  %v507_v30 = vmul.f32 %v3259_v3, %v427_v37  ;;  %v699_v1 = vld [vmem:[#allocation2 + $0x290] sm:$0xff] }
  0xff   :  { %v833_v38 = vadd.f32 %v832_v7, %v831_v39  ;;  %v238_v8 = vrot.slane %v237_v56, 4  ;;  %v515_v57 = vmul.f32 %v3289_v9, %v435_v2  ;;  %v905_v19 = vadd.f32 %v904_v44, %v903_v35  ;;  %v715_v39 = vld [vmem:[#allocation2 + $0x610] sm:$0xff] }
 0x100   :  { %v1135_v12 = vadd.f32 %v1134_v15, %v1133_v47  ;;  %v1207_v43 = vadd.f32 %v1206_v11, %v1205_v22  ;;  %v310_v58 = vrot.slane %v309_v23, 4  ;;  %v539_v14 = vadd.f32 %v467_v21, %v3674_v24  ;;  %v731_v22 = vld [vmem:[#allocation2 + $0x690] sm:$0xff] }
 0x101   :  { %v969_v33 = vadd.f32 %v833_v38, %v665_v16  ;;  %v239_v59 = vadd.f32 %v238_v8, %v237_v56  ;;  %v611_v50 = vadd.f32 %v499_v36, %v3675_v46  ;;  %v977_v45 = vadd.f32 %v905_v19, %v673_v20  ;;  %v723_v20 = vld [vmem:[#allocation2 + $0x650] sm:$0xff]  ;;  %v1757_v46 = vld [vmem:[#allocation7 + $0xea0] sm:$0xff] }
 0x102   :  { %v1136_v34 = vrot.slane %v1135_v12, 1  ;;  %v1208_v61 = vrot.slane %v1207_v43, 1  ;;  %v311_v52 = vadd.f32 %v310_v58, %v309_v23  ;;  %v540_v28 = vadd.f32 %v539_v14, %v475_v27  ;;  %v739_v7 = vld [vmem:[#allocation2 + $0x6d0] sm:$0xff] }
 0x103   :  { %v240_v5 = vrot.slane %v239_v59, 2  ;;  %v612_v29 = vadd.f32 %v611_v50, %v507_v30  ;;  %v763_v49 = vmul.f32 %v3273_v32, %v683_v51  ;;  %v771_v40 = vmul.f32 %v3271_v31, %v691_v0  ;;  %v987_v23 = vld [vmem:[#allocation2 + $0x310] sm:$0xff] }
 0x104   :  { %v1137_v13 = vadd.f32 %v1136_v34, %v1135_v12  ;;  %v1209_v55 = vadd.f32 %v1208_v61, %v1207_v43  ;;  %v312_v16 = vrot.slane %v311_v52, 2  ;;  %v541_v35 = vadd.f32 %v540_v28, %v483_v63  ;;  %v1763_v38 = vld [vmem:[#allocation7 + $0xed0] sm:$0xff]  ;;  %v1758_v43 = vld [vmem:[#allocation7 + $0xea8] sm:$0xff] }
 0x105   :  { %v241_v21 = vadd.f32 %v240_v5, %v239_v59  ;;  %v613_v47 = vadd.f32 %v612_v29, %v515_v57  ;;  %v779_v6 = vmul.f32 %v3313_v54, %v699_v1  ;;  %v787_v56 = vmul.f32 %v3327_v17, %v707_v48  ;;  %v995_v19 = vld [vmem:[#allocation2 + $0x350] sm:$0xff]  ;;  %v1752_v1 = vld [vmem:[#allocation7 + $0xe78] sm:$0xff] }
 0x106   :  { %v1273_v37 = vadd.f32 %v1137_v13, %v969_v33  ;;  %v1281_v2 = vadd.f32 %v1209_v55, %v977_v45  ;;  %v313_v27 = vadd.f32 %v312_v16, %v311_v52  ;;  %v542_v44 = vrot.slane %v541_v35, 4  ;;  %v1003_v12 = vld [vmem:[#allocation2 + $0x390] sm:$0xff] }
 0x107   :  { %v242_v36 = vrot.slane %v241_v21, 1  ;;  %v614_v15 = vrot.slane %v613_v47, 4  ;;  %v795_v11 = vmul.f32 %v3273_v32, %v715_v39  ;;  %v803_v30 = vmul.f32 %v3271_v31, %v723_v20  ;;  %v1011_v24 = vld [vmem:[#allocation2 + $0x3d0] sm:$0xff] }
 0x108   :  { %v3433_v63 = vsel %vm2105_vm0, %v1281_v2, %v1273_v37  ;;  %v314_v8 = vrot.slane %v313_v27, 1  ;;  %v811_v57 = vmul.f32 %v3313_v54, %v731_v22  ;;  %v543_v51 = vadd.f32 %v542_v44, %v541_v35  ;;  %v1019_v14 = vld [vmem:[#allocation2 + $0x710] sm:$0xff]  ;;  %v83_v2 = vld [vmem:[#allocation2 + $0x68] sm:$0xff] }
 0x109   :  { %2187 = vmatmul.mubr.f32.vlgmr.msra.gmra.mxu0 %v3433_v63  ;;  %v3438_v58 = vadd.f32 %v242_v36, %v241_v21  ;;  %v615_v33 = vadd.f32 %v614_v15, %v613_v47  ;;  %v819_v59 = vmul.f32 %v3327_v17, %v739_v7  ;;  %v843_v0 = vadd.f32 %v771_v40, %v763_v49  ;;  %v1027_v34 = vld [vmem:[#allocation2 + $0x750] sm:$0xff]  ;;  %v75_v21 = vld [vmem:[#allocation2 + $0x28] sm:$0xff] }
 0x10a   :  { %v3441_v50 = vadd.f32 %v314_v8, %v313_v27  ;;  %v915_v45 = vadd.f32 %v803_v30, %v795_v11  ;;  %v1035_v61 = vld [vmem:[#allocation2 + $0x790] sm:$0xff]  ;;  %v1067_v52 = vmul.f32 %v3311_v53, %v987_v23  ;;  %2265 = vmatpush1.msra.mxu0 %v1763_v38  ;;  %v544_v5 = vrot.slane %v543_v51, 2  ;;  %v1745_v27 = vld [vmem:[#allocation7 + $0xe40] sm:$0xff]  ;;  %v1740_v11 = vld [vmem:[#allocation7 + $0xe18] sm:$0xff] }
 0x10b   :  { %v616_v28 = vrot.slane %v615_v33, 2  ;;  %v1043_v29 = vld [vmem:[#allocation2 + $0x7d0] sm:$0xff]  ;;  %v1075_v48 = vmul.f32 %v3329_v18, %v995_v19  ;;  %v1083_v13 = vmul.f32 %v3337_v25, %v1003_v12  ;;  %2266 = vmatprep.subr.mxu0 %v1758_v43  ;;  %v844_v16 = vadd.f32 %v843_v0, %v779_v6  ;;  %v91_v15 = vld [vmem:[#allocation2 + $0xa8] sm:$0xff] }
 0x10c   :  { %v1751_v55 = vld [vmem:[#allocation7 + $0xe70] sm:$0xff]  ;;  %v916_v39 = vadd.f32 %v915_v45, %v811_v57  ;;  %v1091_v49 = vmul.f32 %v3339_v26, %v1011_v24  ;;  %v1099_v40 = vmul.f32 %v3311_v53, %v1019_v14  ;;  %2267 = vmatpush1.msra.mxu0 %v1757_v46  ;;  %v1746_v35 = vld [vmem:[#allocation7 + $0xe48] sm:$0xff]  ;;  %v545_v47 = vadd.f32 %v544_v5, %v543_v51  ;;  %v3676_v57 = vld [vmem:[#allocation16_spill] sm:$0xff] }
 0x10d   :  { %v617_v20 = vadd.f32 %v616_v28, %v615_v33  ;;  %v1107_v22 = vmul.f32 %v3329_v18, %v1027_v34  ;;  %v1115_v37 = vmul.f32 %v3337_v25, %v1035_v61  ;;  %2268 = vmatprep.subr.mxu0 %v1752_v1  ;;  %v845_v7 = vadd.f32 %v844_v16, %v787_v56  ;;  %v99_v30 = vld [vmem:[#allocation2 + $0xe8] sm:$0xff]  ;;  %v1739_v12 = vld [vmem:[#allocation7 + $0xe10] sm:$0xff] }
 0x10e   :  { %v917_v36 = vadd.f32 %v916_v39, %v819_v59  ;;  %v1123_v6 = vmul.f32 %v3339_v26, %v1043_v29  ;;  %v1147_v44 = vadd.f32 %v1075_v48, %v1067_v52  ;;  %2269 = vmatpush1.msra.mxu0 %v1751_v55  ;;  %v546_v23 = vrot.slane %v545_v47, 1  ;;  %v107_v24 = vld [vmem:[#allocation2 + $0x428] sm:$0xff] }
 0x10f   :  { %v618_v38 = vrot.slane %v617_v20, 1  ;;  %v1219_v8 = vadd.f32 %v1107_v22, %v1099_v40  ;;  %v158_v19 = vmul.f32 %v3676_v57, %v75_v21  ;;  %2270 = vmatprep.subr.mxu0 %v1746_v35  ;;  %v846_v43 = vrot.slane %v845_v7, 4  ;;  %v1734_v59 = vld [vmem:[#allocation7 + $0xde8] sm:$0xff]  ;;  %v1733_v61 = vld [vmem:[#allocation7 + $0xde0] sm:$0xff]  ;;  %v1727_v21 = vld [vmem:[#allocation7 + $0xdb0] sm:$0xff] }
 0x110   :  { %v918_v51 = vrot.slane %v917_v36, 4  ;;  %v1148_v33 = vadd.f32 %v1147_v44, %v1083_v13  ;;  %v166_v56 = vmul.f32 %v3237_v42, %v83_v2  ;;  %2271 = vmatpush1.msra.mxu0 %v1745_v27  ;;  %v547_v14 = vadd.f32 %v546_v23, %v545_v47  ;;  %v115_v45 = vld [vmem:[#allocation2 + $0x468] sm:$0xff]  ;;  %v1728_v13 = vld [vmem:[#allocation7 + $0xdb8] sm:$0xff] }
 0x111   :  { %v619_v46 = vadd.f32 %v618_v38, %v617_v20  ;;  %v1220_v0 = vadd.f32 %v1219_v8, %v1115_v37  ;;  %v174_v34 = vmul.f32 %v3261_v4, %v91_v15  ;;  %2272 = vmatprep.subr.mxu0 %v1740_v11  ;;  %v847_v52 = vadd.f32 %v846_v43, %v845_v7  ;;  %v123_v28 = vld [vmem:[#allocation2 + $0x4a8] sm:$0xff]  ;;  %v1716_v8 = vld [vmem:[#allocation7 + $0xd58] sm:$0xff] }
 0x112   :  { %v919_v1 = vadd.f32 %v918_v51, %v917_v36  ;;  %v1149_v5 = vadd.f32 %v1148_v33, %v1091_v49  ;;  %v131_v29 = vld [vmem:[#allocation2 + $0x4e8] sm:$0xff]  ;;  %v182_v48 = vmul.f32 %v3291_v10, %v99_v30  ;;  %2273 = vmatpush1.msra.mxu0 %v1739_v12  ;;  %v667_v55 = vadd.f32 %v547_v14, %v3438_v58  ;;  %v3677_v43 = vld [vmem:[#allocation15_spill] sm:$0xff] }
 0x113   :  { %v675_v16 = vadd.f32 %v619_v46, %v3441_v50  ;;  %v1221_v39 = vadd.f32 %v1220_v0, %v1123_v6  ;;  %v190_v40 = vmul.f32 %v3676_v57, %v107_v24  ;;  %2274 = vmatprep.subr.mxu0 %v1734_v59  ;;  %v848_v35 = vrot.slane %v847_v52, 2  ;;  %v382_v22 = vld [vmem:[#allocation2 + $0x128] sm:$0xff]  ;;  %v1715_v24 = vld [vmem:[#allocation7 + $0xd50] sm:$0xff] }
 0x114   :  { %v920_v47 = vrot.slane %v919_v1, 2  ;;  %v1150_v20 = vrot.slane %v1149_v5, 4  ;;  %v198_v49 = vmul.f32 %v3237_v42, %v115_v45  ;;  %v390_v37 = vld [vmem:[#allocation2 + $0x168] sm:$0xff]  ;;  %2275 = vmatpush1.msra.mxu0 %v1733_v61  ;;  %v206_v7 = vmul.f32 %v3261_v4, %v123_v28 }
 0x115   :  { %v1722_v2 = vld [vmem:[#allocation7 + $0xd88] sm:$0xff]  ;;  %v1222_v27 = vrot.slane %v1221_v39, 4  ;;  %v214_v58 = vmul.f32 %v3291_v10, %v131_v29  ;;  %v262_v50 = vadd.f32 %v166_v56, %v158_v19  ;;  %2276 = vmatprep.subr.mxu0 %v1728_v13  ;;  %v1721_v36 = vld [vmem:[#allocation7 + $0xd80] sm:$0xff]  ;;  %v849_v6 = vadd.f32 %v848_v35, %v847_v52  ;;  %v1704_v35 = vld [vmem:[#allocation7 + $0xcf8] sm:$0xff] }
 0x116   :  { %v921_v44 = vadd.f32 %v920_v47, %v919_v1  ;;  %v1151_v15 = vadd.f32 %v1150_v20, %v1149_v5  ;;  %v334_v11 = vadd.f32 %v198_v49, %v190_v40  ;;  %v398_v23 = vld [vmem:[#allocation2 + $0x1a8] sm:$0xff]  ;;  %2277 = vmatpush1.msra.mxu0 %v1727_v21  ;;  %v462_v51 = vmul.f32 %v3677_v43, %v382_v22  ;;  %v1703_v22 = vld [vmem:[#allocation7 + $0xcf0] sm:$0xff] }
 0x117   :  { %v406_v38 = vld [vmem:[#allocation2 + $0x1e8] sm:$0xff]  ;;  %v1223_v30 = vadd.f32 %v1222_v27, %v1221_v39  ;;  %v263_v12 = vadd.f32 %v262_v50, %v174_v34  ;;  %v470_v33 = vmul.f32 %v3235_v41, %v390_v37  ;;  %2278 = vmatprep.subr.mxu0 %v1722_v2  ;;  %v850_v59 = vrot.slane %v849_v6, 1 }
 0x118   :  { %v922_v19 = vrot.slane %v921_v44, 1  ;;  %v1152_v56 = vrot.slane %v1151_v15, 2  ;;  %v335_v14 = vadd.f32 %v334_v11, %v206_v7  ;;  %v414_v46 = vld [vmem:[#allocation2 + $0x528] sm:$0xff]  ;;  %2279 = vmatpush1.msra.mxu0 %v1721_v36  ;;  %v478_v1 = vmul.f32 %v3259_v3, %v398_v23 }
 0x119   :  { %v422_v0 = vld [vmem:[#allocation2 + $0x568] sm:$0xff]  ;;  %v1224_v61 = vrot.slane %v1223_v30, 2  ;;  %v264_v52 = vadd.f32 %v263_v12, %v182_v48  ;;  %v3465_v34 = vmul.f32 %v3289_v9, %v406_v38  ;;  %2280 = vmatprep.subr.mxu0 %v1716_v8  ;;  %v851_v28 = vadd.f32 %v850_v59, %v849_v6 }
 0x11a   :  { %v1710_v45 = vld [vmem:[#allocation7 + $0xd28] sm:$0xff]  ;;  %v1709_v5 = vld [vmem:[#allocation7 + $0xd20] sm:$0xff]  ;;  %v923_v29 = vadd.f32 %v922_v19, %v921_v44  ;;  %v1153_v13 = vadd.f32 %v1152_v56, %v1151_v15  ;;  %v336_v39 = vadd.f32 %v335_v14, %v214_v58  ;;  %2281 = vmatpush1.msra.mxu0 %v1715_v24  ;;  %v494_v49 = vmul.f32 %v3677_v43, %v414_v46  ;;  %v1692_v24 = vld [vmem:[#allocation7 + $0xc98] sm:$0xff] }
 0x11b   :  { %v430_v40 = vld [vmem:[#allocation2 + $0x5a8] sm:$0xff]  ;;  %v1225_v47 = vadd.f32 %v1224_v61, %v1223_v30  ;;  %v265_v20 = vrot.slane %v264_v52, 4  ;;  %v502_v48 = vmul.f32 %v3235_v41, %v422_v0  ;;  %2282 = vmatprep.subr.mxu0 %v1710_v45  ;;  %v971_v37 = vadd.f32 %v851_v28, %v667_v55  ;;  %v1691_v0 = vld [vmem:[#allocation7 + $0xc90] sm:$0xff] }
 0x11c   :  { %v438_v21 = vld [vmem:[#allocation2 + $0x5e8] sm:$0xff]  ;;  %v979_v2 = vadd.f32 %v923_v29, %v675_v16  ;;  %v1154_v27 = vrot.slane %v1153_v13, 1  ;;  %v337_v7 = vrot.slane %v336_v39, 4  ;;  %2283 = vmatpush1.msra.mxu0 %v1709_v5  ;;  %v510_v15 = vmul.f32 %v3259_v3, %v430_v40 }
 0x11d   :  { %v686_v50 = vld [vmem:[#allocation2 + $0x228] sm:$0xff]  ;;  %v1226_v6 = vrot.slane %v1225_v47, 1  ;;  %v266_v44 = vadd.f32 %v265_v20, %v264_v52  ;;  %v518_v11 = vmul.f32 %v3289_v9, %v438_v21  ;;  %2284 = vmatprep.subr.mxu0 %v1704_v35  ;;  %v566_v30 = vadd.f32 %v470_v33, %v462_v51 }
 0x11e   :  { %v694_v36 = vld [vmem:[#allocation2 + $0x268] sm:$0xff]  ;;  %v1155_v38 = vadd.f32 %v1154_v27, %v1153_v13  ;;  %v338_v8 = vadd.f32 %v337_v7, %v336_v39  ;;  %v638_v12 = vadd.f32 %v502_v48, %v494_v49  ;;  %2285 = vmatpush1.msra.mxu0 %v1703_v22  ;;  %v766_v14 = vmul.f32 %v3273_v32, %v686_v50 }
 0x11f   :  { %v1698_v58 = vld [vmem:[#allocation7 + $0xcc8] sm:$0xff]  ;;  %v1697_v23 = vld [vmem:[#allocation7 + $0xcc0] sm:$0xff]  ;;  %v1227_v59 = vadd.f32 %v1226_v6, %v1225_v47  ;;  %v267_v19 = vrot.slane %v266_v44, 2  ;;  %v774_v46 = vmul.f32 %v3271_v31, %v694_v36  ;;  %v567_v52 = vadd.f32 %v566_v30, %v478_v1  ;;  %v1955_v47 = vld [vmem:[#allocation7 + $0x14d0] sm:$0xff] }
 0x120   :  { %v702_v55 = vld [vmem:[#allocation2 + $0x2a8] sm:$0xff]  ;;  %2286 = vmatprep.subr.mxu0 %v1698_v58  ;;  %v1275_v45 = vadd.f32 %v1155_v38, %v971_v37  ;;  %v339_v61 = vrot.slane %v338_v8, 2  ;;  %v639_v5 = vadd.f32 %v638_v12, %v510_v15 }
 0x121   :  { %v710_v16 = vld [vmem:[#allocation2 + $0x2e8] sm:$0xff]  ;;  %2287 = vmatpush1.msra.mxu0 %v1697_v23  ;;  %v1283_v29 = vadd.f32 %v1227_v59, %v979_v2  ;;  %v268_v13 = vadd.f32 %v267_v19, %v266_v44  ;;  %v782_v40 = vmul.f32 %v3313_v54, %v702_v55  ;;  %v568_v49 = vadd.f32 %v567_v52, %v3465_v34  ;;  %v1680_v59 = vld [vmem:[#allocation7 + $0xc38] sm:$0xff] }
 0x122   :  { %v718_v56 = vld [vmem:[#allocation2 + $0x628] sm:$0xff]  ;;  %v790_v21 = vmul.f32 %v3327_v17, %v710_v16  ;;  %2288 = vmatprep.subr.mxu0 %v1692_v24  ;;  %v340_v20 = vadd.f32 %v339_v61, %v338_v8  ;;  %v640_v48 = vadd.f32 %v639_v5, %v518_v11  ;;  %v870_v30 = vadd.f32 %v774_v46, %v766_v14  ;;  %v1944_v24 = vld [vmem:[#allocation7 + $0x1478] sm:$0xff]  ;;  %v1943_v5 = vld [vmem:[#allocation7 + $0x1470] sm:$0xff] }
 0x123   :  { %v726_v28 = vld [vmem:[#allocation2 + $0x668] sm:$0xff]  ;;  %v798_v1 = vmul.f32 %v3273_v32, %v718_v56  ;;  %2289 = vmatpush1.msra.mxu0 %v1691_v0  ;;  %v3478_v37 = vsel %vm2105_vm0, %v1283_v29, %v1275_v45  ;;  %v269_v2 = vrot.slane %v268_v13, 1  ;;  %v569_v6 = vrot.slane %v568_v49, 4 }
 0x124   :  { %v734_v51 = vld [vmem:[#allocation2 + $0x6a8] sm:$0xff]  ;;  %v806_v27 = vmul.f32 %v3271_v31, %v726_v28  ;;  %2258 = vmatmul.mubr.f32.vlgmr.msra.gmra.mxu1 %v3478_v37  ;;  %v341_v34 = vrot.slane %v340_v20, 1  ;;  %v641_v44 = vrot.slane %v640_v48, 4  ;;  %v871_v28 = vadd.f32 %v870_v30, %v782_v40  ;;  %v109_v30 = vld [vmem:[#allocation2 + $0x438] sm:$0xff] }
 0x125   :  { %v1686_v33 = vld [vmem:[#allocation7 + $0xc68] sm:$0xff]  ;;  %v1685_v35 = vld [vmem:[#allocation7 + $0xc60] sm:$0xff]  ;;  %v814_v7 = vmul.f32 %v3313_v54, %v734_v51  ;;  %2336 = vmatpush1.msra.mxu1 %v1955_v47  ;;  %v3484_v8 = vadd.f32 %v269_v2, %v268_v13  ;;  %v570_v56 = vadd.f32 %v569_v6, %v568_v49  ;;  %v93_v6 = vld [vmem:[#allocation2 + $0xb8] sm:$0xff] }
 0x126   :  { %v742_v39 = vld [vmem:[#allocation2 + $0x6e8] sm:$0xff]  ;;  %2290 = vmatprep.subr.mxu0 %v1686_v33  ;;  %v942_v12 = vadd.f32 %v806_v27, %v798_v1  ;;  %v3487_v19 = vadd.f32 %v341_v34, %v340_v20  ;;  %v642_v0 = vadd.f32 %v641_v44, %v640_v48  ;;  %v77_v33 = vld [vmem:[#allocation2 + $0x38] sm:$0xff]  ;;  %v872_v40 = vadd.f32 %v871_v28, %v790_v21 }
 0x127   :  { %v990_v22 = vld [vmem:[#allocation2 + $0x328] sm:$0xff]  ;;  %v822_v15 = vmul.f32 %v3327_v17, %v742_v39  ;;  %2291 = vmatpush1.msra.mxu0 %v1685_v35  ;;  %v571_v13 = vrot.slane %v570_v56, 2  ;;  %v85_v20 = vld [vmem:[#allocation2 + $0x78] sm:$0xff]  ;;  %v160_v21 = vmul.f32 %v3676_v57, %v77_v33 }
 0x128   :  { %v998_v50 = vld [vmem:[#allocation2 + $0x368] sm:$0xff]  ;;  %v1070_v16 = vmul.f32 %v3311_v53, %v990_v22  ;;  %v943_v51 = vadd.f32 %v942_v12, %v814_v7  ;;  %v643_v39 = vrot.slane %v642_v0, 2  ;;  %2292 = vmatprep.subr.mxu0 %v1680_v59  ;;  %v1679_v48 = vld [vmem:[#allocation7 + $0xc30] sm:$0xff]  ;;  %v1932_v27 = vld [vmem:[#allocation7 + $0x1418] sm:$0xff] }
 0x129   :  { %v1022_v36 = vld [vmem:[#allocation2 + $0x728] sm:$0xff]  ;;  %v1078_v52 = vmul.f32 %v3329_v18, %v998_v50  ;;  %v572_v50 = vadd.f32 %v571_v13, %v570_v56  ;;  %v101_v44 = vld [vmem:[#allocation2 + $0xf8] sm:$0xff]  ;;  %2293 = vmatpush1.msra.mxu0 %v1679_v48 }
 0x12a   :  { %v1950_v58 = vld [vmem:[#allocation7 + $0x14a8] sm:$0xff]  ;;  %v1949_v38 = vld [vmem:[#allocation7 + $0x14a0] sm:$0xff]  ;;  %v1102_v35 = vmul.f32 %v3311_v53, %v1022_v36  ;;  %v944_v1 = vadd.f32 %v943_v51, %v822_v15  ;;  %v168_v15 = vmul.f32 %v3237_v42, %v85_v20  ;;  %v3500_v28 = vmul.f32 %v3291_v10, %v101_v44  ;;  %v1920_v51 = vld [vmem:[#allocation7 + $0x13b8] sm:$0xff] }
 0x12b   :  { %v1006_v11 = vld [vmem:[#allocation2 + $0x3a8] sm:$0xff]  ;;  %2337 = vmatprep.subr.mxu1 %v1950_v58  ;;  %v644_v58 = vadd.f32 %v643_v39, %v642_v0  ;;  %v1174_v34 = vadd.f32 %v1078_v52, %v1070_v16  ;;  %v117_v16 = vld [vmem:[#allocation2 + $0x478] sm:$0xff] }
 0x12c   :  { %v1014_v23 = vld [vmem:[#allocation2 + $0x3e8] sm:$0xff]  ;;  %v1086_v14 = vmul.f32 %v3337_v25, %v1006_v11  ;;  %2338 = vmatpush1.msra.mxu1 %v1949_v38  ;;  %v1931_v11 = vld [vmem:[#allocation7 + $0x1410] sm:$0xff]  ;;  %v945_v38 = vrot.slane %v944_v1, 4  ;;  %v1860_v33 = vld [vmem:[#allocation7 + $0x11d8] sm:$0xff] }
 0x12d   :  { %v1030_v55 = vld [vmem:[#allocation2 + $0x768] sm:$0xff]  ;;  %v1094_v46 = vmul.f32 %v3339_v26, %v1014_v23  ;;  %2339 = vmatprep.subr.mxu1 %v1944_v24  ;;  %v873_v23 = vrot.slane %v872_v40, 4  ;;  %v645_v24 = vrot.slane %v644_v58, 1  ;;  %v1919_v20 = vld [vmem:[#allocation7 + $0x13b0] sm:$0xff] }
 0x12e   :  { %v1038_v45 = vld [vmem:[#allocation2 + $0x7a8] sm:$0xff]  ;;  %v1110_v47 = vmul.f32 %v3329_v18, %v1030_v55  ;;  %2340 = vmatpush1.msra.mxu1 %v1943_v5  ;;  %v573_v55 = vrot.slane %v572_v50, 1  ;;  %v1175_v59 = vadd.f32 %v1174_v34, %v1086_v14  ;;  %v946_v52 = vadd.f32 %v945_v38, %v944_v1  ;;  %v1908_v38 = vld [vmem:[#allocation7 + $0x1358] sm:$0xff] }
 0x12f   :  { %v1046_v61 = vld [vmem:[#allocation2 + $0x7e8] sm:$0xff]  ;;  %v1118_v22 = vmul.f32 %v3337_v25, %v1038_v45  ;;  %v176_v5 = vmul.f32 %v3261_v4, %v93_v6  ;;  %v646_v13 = vadd.f32 %v645_v24, %v644_v58  ;;  %v200_v1 = vmul.f32 %v3237_v42, %v117_v16  ;;  %v392_v58 = vld [vmem:[#allocation2 + $0x178] sm:$0xff] }
 0x130   :  { %v1938_v29 = vld [vmem:[#allocation7 + $0x1448] sm:$0xff]  ;;  %v1937_v49 = vld [vmem:[#allocation7 + $0x1440] sm:$0xff]  ;;  %v1126_v2 = vmul.f32 %v3339_v26, %v1046_v61  ;;  %v1246_v36 = vadd.f32 %v1110_v47, %v1102_v35  ;;  %v874_v61 = vadd.f32 %v873_v23, %v872_v40  ;;  %v1176_v39 = vadd.f32 %v1175_v59, %v1094_v46  ;;  %v125_v35 = vld [vmem:[#allocation2 + $0x4b8] sm:$0xff] }
 0x131   :  { %v1674_v7 = vld [vmem:[#allocation7 + $0xc08] sm:$0xff]  ;;  %2341 = vmatprep.subr.mxu1 %v1938_v29  ;;  %v1925_v0 = vld [vmem:[#allocation7 + $0x13e0] sm:$0xff]  ;;  %v574_v29 = vadd.f32 %v573_v55, %v572_v50  ;;  %v133_v47 = vld [vmem:[#allocation2 + $0x4f8] sm:$0xff]  ;;  %v947_v48 = vrot.slane %v946_v52, 2  ;;  %v192_v40 = vmul.f32 %v3676_v57, %v109_v30  ;;  %v678_v50 = vadd.f32 %v646_v13, %v3487_v19 }
 0x132   :  { %2342 = vmatpush1.msra.mxu1 %v1937_v49  ;;  %v1926_v12 = vld [vmem:[#allocation7 + $0x13e8] sm:$0xff]  ;;  %v1247_v56 = vadd.f32 %v1246_v36, %v1118_v22  ;;  %2294 = vmatprep.subr.mxu0 %v1674_v7  ;;  %v1673_v45 = vld [vmem:[#allocation7 + $0xc00] sm:$0xff]  ;;  %v875_v49 = vrot.slane %v874_v61, 2  ;;  %v384_v22 = vld [vmem:[#allocation2 + $0x138] sm:$0xff]  ;;  %v1177_v46 = vrot.slane %v1176_v39, 4  ;;  %v216_v23 = vmul.f32 %v3291_v10, %v133_v47 }
 0x133   :  { %2343 = vmatprep.subr.mxu1 %v1932_v27  ;;  %v1914_v27 = vld [vmem:[#allocation7 + $0x1388] sm:$0xff]  ;;  %2295 = vmatpush1.msra.mxu0 %v1673_v45  ;;  %v670_v7 = vadd.f32 %v574_v29, %v3484_v8  ;;  %v1913_v34 = vld [vmem:[#allocation7 + $0x1380] sm:$0xff]  ;;  %v1859_v36 = vld [vmem:[#allocation7 + $0x11d0] sm:$0xff]  ;;  %v948_v44 = vadd.f32 %v947_v48, %v946_v52  ;;  %v280_v55 = vadd.f32 %v168_v15, %v160_v21 }
 0x134   :  { %2344 = vmatpush1.msra.mxu1 %v1931_v11  ;;  %v1248_v14 = vadd.f32 %v1247_v56, %v1126_v2  ;;  %2296 = vmatprep.subr.mxu0 %v1860_v33  ;;  %v876_v6 = vadd.f32 %v875_v49, %v874_v61  ;;  %v208_v11 = vmul.f32 %v3261_v4, %v125_v35  ;;  %v1854_v30 = vld [vmem:[#allocation7 + $0x11a8] sm:$0xff]  ;;  %v400_v24 = vld [vmem:[#allocation2 + $0x1b8] sm:$0xff]  ;;  %v1901_v15 = vld [vmem:[#allocation7 + $0x1320] sm:$0xff] }
 0x135   :  { %2345 = vmatprep.subr.mxu1 %v1926_v12  ;;  %v1178_v12 = vadd.f32 %v1177_v46, %v1176_v39  ;;  %v352_v19 = vadd.f32 %v200_v1, %v192_v40  ;;  %v408_v59 = vld [vmem:[#allocation2 + $0x1f8] sm:$0xff]  ;;  %v464_v45 = vmul.f32 %v3677_v43, %v384_v22  ;;  %v472_v61 = vmul.f32 %v3235_v41, %v392_v58  ;;  %v1902_v52 = vld [vmem:[#allocation7 + $0x1328] sm:$0xff]  ;;  %v1853_v48 = vld [vmem:[#allocation7 + $0x11a0] sm:$0xff] }
 0x136   :  { %2346 = vmatpush1.msra.mxu1 %v1925_v0  ;;  %v1249_v2 = vrot.slane %v1248_v14, 4  ;;  %v1907_v56 = vld [vmem:[#allocation7 + $0x1350] sm:$0xff]  ;;  %v877_v16 = vrot.slane %v876_v6, 1  ;;  %v949_v0 = vrot.slane %v948_v44, 1  ;;  %2297 = vmatpush2.msra.mxu0 %v1859_v36  ;;  %v281_v29 = vadd.f32 %v280_v55, %v176_v5  ;;  %v1896_v49 = vld [vmem:[#allocation7 + $0x12f8] sm:$0xff] }
 0x137   :  { %2347 = vmatprep.subr.mxu1 %v1920_v51  ;;  %v1179_v51 = vrot.slane %v1178_v12, 2  ;;  %v353_v13 = vadd.f32 %v352_v19, %v208_v11  ;;  %v416_v39 = vld [vmem:[#allocation2 + $0x538] sm:$0xff]  ;;  %2298 = vmatprep.subr.mxu0 %v1854_v30  ;;  %v480_v47 = vmul.f32 %v3259_v3, %v400_v24  ;;  %v1890_v11 = vld [vmem:[#allocation7 + $0x12c8] sm:$0xff] }
 0x138   :  { %2348 = vmatpush1.msra.mxu1 %v1919_v20  ;;  %v1250_v8 = vadd.f32 %v1249_v2, %v1248_v14  ;;  %v424_v21 = vld [vmem:[#allocation2 + $0x578] sm:$0xff]  ;;  %v878_v14 = vadd.f32 %v877_v16, %v876_v6  ;;  %v950_v35 = vadd.f32 %v949_v0, %v948_v44  ;;  %v488_v20 = vmul.f32 %v3289_v9, %v408_v59 }
 0x139   :  { %2349 = vmatprep.subr.mxu1 %v1914_v27  ;;  %v1180_v40 = vadd.f32 %v1179_v51, %v1178_v12  ;;  %v282_v22 = vadd.f32 %v281_v29, %v3500_v28  ;;  %v354_v5 = vadd.f32 %v353_v13, %v216_v23  ;;  %v432_v27 = vld [vmem:[#allocation2 + $0x5b8] sm:$0xff]  ;;  %v496_v36 = vmul.f32 %v3677_v43, %v416_v39  ;;  %v1889_v28 = vld [vmem:[#allocation7 + $0x12c0] sm:$0xff] }
 0x13a   :  { %2350 = vmatpush1.msra.mxu1 %v1913_v34  ;;  %v1251_v33 = vrot.slane %v1250_v8, 2  ;;  %v440_v46 = vld [vmem:[#allocation2 + $0x5f8] sm:$0xff]  ;;  %v974_v58 = vadd.f32 %v878_v14, %v670_v7  ;;  %v982_v34 = vadd.f32 %v950_v35, %v678_v50  ;;  %v504_v6 = vmul.f32 %v3235_v41, %v424_v21  ;;  %2299 = vmatpush2.msra.mxu0 %v1853_v48 }
 0x13b   :  { %2351 = vmatprep.subr.mxu1 %v1908_v38  ;;  %v1895_v2 = vld [vmem:[#allocation7 + $0x12f0] sm:$0xff]  ;;  %v1181_v38 = vrot.slane %v1180_v40, 1  ;;  %v283_v12 = vrot.slane %v282_v22, 4  ;;  %v512_v23 = vmul.f32 %v3259_v3, %v432_v27  ;;  %v520_v7 = vmul.f32 %v3289_v9, %v440_v46  ;;  %v1884_v24 = vld [vmem:[#allocation7 + $0x1298] sm:$0xff] }
 0x13c   :  { %2352 = vmatpush1.msra.mxu1 %v1907_v56  ;;  %v1252_v1 = vadd.f32 %v1251_v33, %v1250_v8  ;;  %v688_v44 = vld [vmem:[#allocation2 + $0x238] sm:$0xff]  ;;  %v355_v8 = vrot.slane %v354_v5, 4  ;;  %v584_v50 = vadd.f32 %v472_v61, %v464_v45  ;;  %v656_v19 = vadd.f32 %v504_v6, %v496_v36  ;;  %v1878_v45 = vld [vmem:[#allocation7 + $0x1268] sm:$0xff] }
 0x13d   :  { %2353 = vmatprep.subr.mxu1 %v1902_v52  ;;  %v696_v55 = vld [vmem:[#allocation2 + $0x278] sm:$0xff]  ;;  %v1182_v56 = vadd.f32 %v1181_v38, %v1180_v40  ;;  %v284_v0 = vadd.f32 %v283_v12, %v282_v22  ;;  %v768_v21 = vmul.f32 %v3273_v32, %v688_v44 }
 0x13e   :  { %2354 = vmatpush1.msra.mxu1 %v1901_v15  ;;  %v1253_v30 = vrot.slane %v1252_v1, 1  ;;  %v1848_v59 = vld [vmem:[#allocation7 + $0x1178] sm:$0xff]  ;;  %v356_v52 = vadd.f32 %v355_v8, %v354_v5  ;;  %v1883_v33 = vld [vmem:[#allocation7 + $0x1290] sm:$0xff]  ;;  %v585_v29 = vadd.f32 %v584_v50, %v480_v47  ;;  %v657_v13 = vadd.f32 %v656_v19, %v512_v23  ;;  %v1866_v23 = vld [vmem:[#allocation7 + $0x1208] sm:$0xff] }
 0x13f   :  { %2355 = vmatprep.subr.mxu1 %v1896_v49  ;;  %v704_v51 = vld [vmem:[#allocation2 + $0x2b8] sm:$0xff]  ;;  %v776_v15 = vmul.f32 %v3271_v31, %v696_v55  ;;  %v1278_v61 = vadd.f32 %v1182_v56, %v974_v58  ;;  %v285_v35 = vrot.slane %v284_v0, 2  ;;  %2300 = vmatprep.subr.mxu0 %v1848_v59  ;;  %v1865_v59 = vld [vmem:[#allocation7 + $0x1200] sm:$0xff]  ;;  %v1842_v56 = vld [vmem:[#allocation7 + $0x1148] sm:$0xff] }
 0x140   :  { %2356 = vmatpush1.msra.mxu1 %v1895_v2  ;;  %v1254_v16 = vadd.f32 %v1253_v30, %v1252_v1  ;;  %v720_v39 = vld [vmem:[#allocation2 + $0x638] sm:$0xff]  ;;  %v357_v49 = vrot.slane %v356_v52, 2  ;;  %v1877_v1 = vld [vmem:[#allocation7 + $0x1260] sm:$0xff]  ;;  %v586_v22 = vadd.f32 %v585_v29, %v488_v20  ;;  %v658_v5 = vadd.f32 %v657_v13, %v520_v7 }
 0x141   :  { %2357 = vmatprep.subr.mxu1 %v1890_v11  ;;  %v728_v48 = vld [vmem:[#allocation2 + $0x678] sm:$0xff]  ;;  %v784_v27 = vmul.f32 %v3313_v54, %v704_v51  ;;  %v3523_v58 = vadd.f32 %v285_v35, %v284_v0  ;;  %v800_v44 = vmul.f32 %v3273_v32, %v720_v39  ;;  %v888_v19 = vadd.f32 %v776_v15, %v768_v21 }
 0x142   :  { %2358 = vmatpush1.msra.mxu1 %v1889_v28  ;;  %v1286_v14 = vadd.f32 %v1254_v16, %v982_v34  ;;  %v736_v40 = vld [vmem:[#allocation2 + $0x6b8] sm:$0xff]  ;;  %v3525_v34 = vadd.f32 %v357_v49, %v356_v52  ;;  %v587_v38 = vrot.slane %v586_v22, 4  ;;  %v659_v30 = vrot.slane %v658_v5, 4 }
 0x143   :  { %2359 = vmatprep.subr.mxu1 %v1884_v24  ;;  %v712_v47 = vld [vmem:[#allocation2 + $0x2f8] sm:$0xff]  ;;  %v808_v12 = vmul.f32 %v3271_v31, %v728_v48  ;;  %v816_v8 = vmul.f32 %v3313_v54, %v736_v40  ;;  %v287_v7 = vrot.slane %v3523_v58, 1 }
 0x144   :  { %2360 = vmatpush1.msra.mxu1 %v1883_v33  ;;  %v1872_v46 = vld [vmem:[#allocation7 + $0x1238] sm:$0xff]  ;;  %v1847_v2 = vld [vmem:[#allocation7 + $0x1170] sm:$0xff]  ;;  %v3521_v36 = vsel %vm2105_vm0, %v1286_v14, %v1278_v61  ;;  %v792_v50 = vmul.f32 %v3327_v17, %v712_v47  ;;  %v588_v16 = vadd.f32 %v587_v38, %v586_v22  ;;  %v660_v0 = vadd.f32 %v659_v30, %v658_v5  ;;  %v2046_v22 = vld [vmem:[#allocation7 + $0x17a8] sm:$0xff] }
 0x145   :  { %v744_v6 = vld [vmem:[#allocation2 + $0x6f8] sm:$0xff]  ;;  %2361 = vmatprep.subr.mxu1 %v1878_v45  ;;  %2328 = vmatprep.mubr.f32.mxu0 %v3521_v36  ;;  %v960_v51 = vadd.f32 %v808_v12, %v800_v44  ;;  %v359_v39 = vrot.slane %v3525_v34, 1  ;;  %v889_v45 = vadd.f32 %v888_v19, %v784_v27  ;;  %v1841_v5 = vld [vmem:[#allocation7 + $0x1140] sm:$0xff] }
 0x146   :  { %v992_v11 = vld [vmem:[#allocation2 + $0x338] sm:$0xff]  ;;  %2362 = vmatpush1.msra.mxu1 %v1877_v1  ;;  %2301 = vmatpush2.msra.mxu0 %v1847_v2  ;;  %v824_v52 = vmul.f32 %v3327_v17, %v744_v6  ;;  %v589_v35 = vrot.slane %v588_v16, 2  ;;  %v661_v49 = vrot.slane %v660_v0, 2  ;;  %v2045_v6 = vld [vmem:[#allocation7 + $0x17a0] sm:$0xff] }
 0x147   :  { %v1871_v20 = vld [vmem:[#allocation7 + $0x1230] sm:$0xff]  ;;  %2363 = vmatprep.subr.mxu1 %v1872_v46  ;;  %v2052_v13 = vld [vmem:[#allocation7 + $0x17d8] sm:$0xff]  ;;  %v1072_v21 = vmul.f32 %v3311_v53, %v992_v11  ;;  %v961_v48 = vadd.f32 %v960_v51, %v816_v8  ;;  %2302 = vmatprep.subr.mxu0 %v1842_v56  ;;  %v890_v47 = vadd.f32 %v889_v45, %v792_v50  ;;  %v2034_v51 = vld [vmem:[#allocation7 + $0x1748] sm:$0xff] }
 0x148   :  { %v1000_v55 = vld [vmem:[#allocation2 + $0x378] sm:$0xff]  ;;  %2364 = vmatpush1.msra.mxu1 %v1871_v20  ;;  %v590_v11 = vadd.f32 %v589_v35, %v588_v16  ;;  %v662_v20 = vadd.f32 %v661_v49, %v660_v0  ;;  %2303 = vmatpush2.msra.mxu0 %v1841_v5  ;;  %v3544_v56 = vadd.f32 %v287_v7, %v3523_v58  ;;  %v106_v35 = vld [vmem:[#allocation2 + $0x420] sm:$0xff] }
 0x149   :  { %v1024_v28 = vld [vmem:[#allocation2 + $0x738] sm:$0xff]  ;;  %v1080_v15 = vmul.f32 %v3329_v18, %v1000_v55  ;;  %2365 = vmatprep.subr.mxu1 %v1866_v23  ;;  %v962_v38 = vadd.f32 %v961_v48, %v824_v52  ;;  %v891_v55 = vrot.slane %v890_v47, 4  ;;  %v3547_v58 = vadd.f32 %v359_v39, %v3525_v34  ;;  %v2022_v39 = vld [vmem:[#allocation7 + $0x16e8] sm:$0xff] }
 0x14a   :  { %v1008_v24 = vld [vmem:[#allocation2 + $0x3b8] sm:$0xff]  ;;  %2366 = vmatpush1.msra.mxu1 %v1865_v59  ;;  %v1104_v46 = vmul.f32 %v3311_v53, %v1024_v28  ;;  %v74_v59 = vld [vmem:[#allocation2 + $0x20] sm:$0xff]  ;;  %v591_v16 = vrot.slane %v590_v11, 1  ;;  %v663_v0 = vrot.slane %v662_v20, 1 }
 0x14b   :  { %v1016_v33 = vld [vmem:[#allocation2 + $0x3f8] sm:$0xff]  ;;  %v1088_v1 = vmul.f32 %v3337_v25, %v1008_v24  ;;  %2367 = vmatprep.subr.mxu1 %v2052_v13  ;;  %v1192_v50 = vadd.f32 %v1080_v15, %v1072_v21  ;;  %v1830_v24 = vld [vmem:[#allocation7 + $0x10e8] sm:$0xff]  ;;  %v963_v52 = vrot.slane %v962_v38, 4  ;;  %v892_v13 = vadd.f32 %v891_v55, %v890_v47  ;;  %v2033_v21 = vld [vmem:[#allocation7 + $0x1740] sm:$0xff] }
 0x14c   :  { %v1032_v29 = vld [vmem:[#allocation2 + $0x778] sm:$0xff]  ;;  %v1096_v27 = vmul.f32 %v3339_v26, %v1016_v33  ;;  %v1829_v33 = vld [vmem:[#allocation7 + $0x10e0] sm:$0xff]  ;;  %v592_v5 = vadd.f32 %v591_v16, %v590_v11 }
 0x14d   :  { %v1040_v61 = vld [vmem:[#allocation2 + $0x7b8] sm:$0xff]  ;;  %v1112_v2 = vmul.f32 %v3329_v18, %v1032_v29  ;;  %v82_v29 = vld [vmem:[#allocation2 + $0x60] sm:$0xff]  ;;  %v1193_v45 = vadd.f32 %v1192_v50, %v1088_v1  ;;  %v964_v7 = vadd.f32 %v963_v52, %v962_v38  ;;  %v893_v1 = vrot.slane %v892_v13, 2 }
 0x14e   :  { %v2051_v14 = vld [vmem:[#allocation7 + $0x17d0] sm:$0xff]  ;;  %v1836_v44 = vld [vmem:[#allocation7 + $0x1118] sm:$0xff]  ;;  %v1120_v30 = vmul.f32 %v3337_v25, %v1040_v61  ;;  %v1817_v38 = vld [vmem:[#allocation7 + $0x1080] sm:$0xff] }
 0x14f   :  { %v1048_v40 = vld [vmem:[#allocation2 + $0x7f8] sm:$0xff]  ;;  %2368 = vmatpush2.msra.mxu1 %v2051_v14  ;;  %v1264_v19 = vadd.f32 %v1112_v2, %v1104_v46  ;;  %2304 = vmatprep.subr.mxu0 %v1836_v44  ;;  %v90_v14 = vld [vmem:[#allocation2 + $0xa0] sm:$0xff]  ;;  %v1194_v47 = vadd.f32 %v1193_v45, %v1096_v27  ;;  %v965_v34 = vrot.slane %v964_v7, 2  ;;  %v894_v11 = vadd.f32 %v893_v1, %v892_v13  ;;  %v1806_v45 = vld [vmem:[#allocation7 + $0x1028] sm:$0xff] }
 0x150   :  { %v2040_v12 = vld [vmem:[#allocation7 + $0x1778] sm:$0xff]  ;;  %v1835_v8 = vld [vmem:[#allocation7 + $0x1110] sm:$0xff]  ;;  %v1128_v23 = vmul.f32 %v3339_v26, %v1048_v40  ;;  %2369 = vmatprep.subr.mxu1 %v2046_v22  ;;  %v157_v22 = vmul.f32 %v3676_v57, %v74_v59  ;;  %v173_v55 = vmul.f32 %v3261_v4, %v90_v14  ;;  %v1805_v14 = vld [vmem:[#allocation7 + $0x1020] sm:$0xff] }
 0x151   :  { %v2039_v28 = vld [vmem:[#allocation7 + $0x1770] sm:$0xff]  ;;  %2370 = vmatpush2.msra.mxu1 %v2045_v6  ;;  %v1265_v61 = vadd.f32 %v1264_v19, %v1120_v30  ;;  %2305 = vmatpush2.msra.mxu0 %v1835_v8  ;;  %v1824_v15 = vld [vmem:[#allocation7 + $0x10b8] sm:$0xff]  ;;  %v1818_v6 = vld [vmem:[#allocation7 + $0x1088] sm:$0xff]  ;;  %v664_v30 = vadd.f32 %v663_v0, %v662_v20  ;;  %v165_v8 = vmul.f32 %v3237_v42, %v82_v29  ;;  %v1195_v50 = vrot.slane %v1194_v47, 4 }
 0x152   :  { %2371 = vmatprep.subr.mxu1 %v2040_v12  ;;  %v2028_v49 = vld [vmem:[#allocation7 + $0x1718] sm:$0xff]  ;;  %2306 = vmatprep.subr.mxu0 %v1830_v24  ;;  %v1823_v48 = vld [vmem:[#allocation7 + $0x10b0] sm:$0xff]  ;;  %v966_v24 = vadd.f32 %v965_v34, %v964_v7  ;;  %v189_v0 = vmul.f32 %v3676_v57, %v106_v35 }
 0x153   :  { %2372 = vmatpush2.msra.mxu1 %v2039_v28  ;;  %v98_v40 = vld [vmem:[#allocation2 + $0xe0] sm:$0xff]  ;;  %v1266_v46 = vadd.f32 %v1265_v61, %v1128_v23  ;;  %v2027_v2 = vld [vmem:[#allocation7 + $0x1710] sm:$0xff]  ;;  %2307 = vmatpush2.msra.mxu0 %v1829_v33  ;;  %v1196_v33 = vadd.f32 %v1195_v50, %v1194_v47 }
 0x154   :  { %2373 = vmatprep.subr.mxu1 %v2034_v51  ;;  %v114_v44 = vld [vmem:[#allocation2 + $0x460] sm:$0xff]  ;;  %2308 = vmatprep.subr.mxu0 %v1824_v15  ;;  %v181_v20 = vmul.f32 %v3291_v10, %v98_v40  ;;  %v1811_v16 = vld [vmem:[#allocation7 + $0x1050] sm:$0xff]  ;;  %v895_v51 = vrot.slane %v894_v11, 1  ;;  %v2010_v15 = vld [vmem:[#allocation7 + $0x1688] sm:$0xff] }
 0x155   :  { %2374 = vmatpush2.msra.mxu1 %v2033_v21  ;;  %v122_v12 = vld [vmem:[#allocation2 + $0x4a0] sm:$0xff]  ;;  %v1267_v27 = vrot.slane %v1266_v46, 4  ;;  %2309 = vmatpush2.msra.mxu0 %v1823_v48  ;;  %v197_v52 = vmul.f32 %v3237_v42, %v114_v44  ;;  %v2015_v13 = vld [vmem:[#allocation7 + $0x16b0] sm:$0xff]  ;;  %v967_v21 = vrot.slane %v966_v24, 1  ;;  %v672_v48 = vadd.f32 %v592_v5, %v3544_v56 }
 0x156   :  { %2375 = vmatprep.subr.mxu1 %v2028_v49  ;;  %v2021_v23 = vld [vmem:[#allocation7 + $0x16e0] sm:$0xff]  ;;  %v1812_v19 = vld [vmem:[#allocation7 + $0x1058] sm:$0xff]  ;;  %2310 = vmatprep.subr.mxu0 %v1818_v6  ;;  %v205_v61 = vmul.f32 %v3261_v4, %v122_v12  ;;  %v253_v49 = vadd.f32 %v165_v8, %v157_v22  ;;  %v896_v40 = vadd.f32 %v895_v51, %v894_v11  ;;  %v1197_v1 = vrot.slane %v1196_v33, 2  ;;  %v2003_v5 = vld [vmem:[#allocation7 + $0x1650] sm:$0xff] }
 0x157   :  { %v130_v28 = vld [vmem:[#allocation2 + $0x4e0] sm:$0xff]  ;;  %2376 = vmatpush2.msra.mxu1 %v2027_v2  ;;  %v1268_v29 = vadd.f32 %v1267_v27, %v1266_v46  ;;  %2311 = vmatpush2.msra.mxu0 %v1817_v38  ;;  %v325_v35 = vadd.f32 %v197_v52, %v189_v0  ;;  %v968_v44 = vadd.f32 %v967_v21, %v966_v24  ;;  %v1794_v11 = vld [vmem:[#allocation7 + $0xfc8] sm:$0xff] }
 0x158   :  { %v2016_v59 = vld [vmem:[#allocation7 + $0x16b8] sm:$0xff]  ;;  %2377 = vmatprep.subr.mxu1 %v2022_v39  ;;  %2312 = vmatprep.subr.mxu0 %v1812_v19  ;;  %v213_v7 = vmul.f32 %v3291_v10, %v130_v28  ;;  %v2009_v46 = vld [vmem:[#allocation7 + $0x1680] sm:$0xff]  ;;  %v1799_v39 = vld [vmem:[#allocation7 + $0xff0] sm:$0xff]  ;;  %v254_v38 = vadd.f32 %v253_v49, %v173_v55  ;;  %v680_v22 = vadd.f32 %v664_v30, %v3547_v58 }
 0x159   :  { %2378 = vmatpush2.msra.mxu1 %v2021_v23  ;;  %v1269_v47 = vrot.slane %v1268_v29, 2  ;;  %2313 = vmatpush2.msra.mxu0 %v1811_v16  ;;  %v1800_v2 = vld [vmem:[#allocation7 + $0xff8] sm:$0xff]  ;;  %v326_v12 = vadd.f32 %v325_v35, %v205_v61  ;;  %v1198_v8 = vadd.f32 %v1197_v1, %v1196_v33  ;;  %v1998_v23 = vld [vmem:[#allocation7 + $0x1628] sm:$0xff]  ;;  %v1793_v19 = vld [vmem:[#allocation7 + $0xfc0] sm:$0xff]  ;;  %v976_v16 = vadd.f32 %v896_v40, %v672_v48 }
 0x15a   :  { %2379 = vmatprep.subr.mxu1 %v2016_v59  ;;  %v381_v6 = vld [vmem:[#allocation2 + $0x120] sm:$0xff]  ;;  %2314 = vmatprep.subr.mxu0 %v1806_v45  ;;  %v255_v28 = vadd.f32 %v254_v38, %v181_v20  ;;  %v984_v0 = vadd.f32 %v968_v44, %v680_v22  ;;  %v1991_v49 = vld [vmem:[#allocation7 + $0x15f0] sm:$0xff]  ;;  %v1782_v35 = vld [vmem:[#allocation7 + $0xf68] sm:$0xff] }
 0x15b   :  { %2380 = vmatpush2.msra.mxu1 %v2015_v13  ;;  %v2004_v34 = vld [vmem:[#allocation7 + $0x1658] sm:$0xff]  ;;  %v1270_v56 = vadd.f32 %v1269_v47, %v1268_v29  ;;  %2315 = vmatpush2.msra.mxu0 %v1805_v14  ;;  %v327_v24 = vadd.f32 %v326_v12, %v213_v7  ;;  %v461_v55 = vmul.f32 %v3677_v43, %v381_v6  ;;  %v1199_v52 = vrot.slane %v1198_v8, 1  ;;  %v1997_v30 = vld [vmem:[#allocation7 + $0x1620] sm:$0xff]  ;;  %v1787_v13 = vld [vmem:[#allocation7 + $0xf90] sm:$0xff] }
 0x15c   :  { %v389_v50 = vld [vmem:[#allocation2 + $0x160] sm:$0xff]  ;;  %2381 = vmatprep.subr.mxu1 %v2010_v15  ;;  %2316 = vmatprep.subr.mxu0 %v1800_v2  ;;  %v256_v45 = vrot.slane %v255_v28, 4  ;;  %v1986_v1 = vld [vmem:[#allocation7 + $0x15c8] sm:$0xff] }
 0x15d   :  { %v397_v27 = vld [vmem:[#allocation2 + $0x1a0] sm:$0xff]  ;;  %2382 = vmatpush2.msra.mxu1 %v2009_v46  ;;  %v1271_v58 = vrot.slane %v1270_v56, 1  ;;  %2317 = vmatpush2.msra.mxu0 %v1799_v39  ;;  %v328_v61 = vrot.slane %v327_v24, 4  ;;  %v469_v21 = vmul.f32 %v3235_v41, %v389_v50  ;;  %v1200_v14 = vadd.f32 %v1199_v52, %v1198_v8  ;;  %v1979_v50 = vld [vmem:[#allocation7 + $0x1590] sm:$0xff]  ;;  %v1974_v8 = vld [vmem:[#allocation7 + $0x1568] sm:$0xff] }
 0x15e   :  { %v421_v59 = vld [vmem:[#allocation2 + $0x560] sm:$0xff]  ;;  %2383 = vmatprep.subr.mxu1 %v2004_v34  ;;  %2318 = vmatprep.subr.mxu0 %v1794_v11  ;;  %v477_v15 = vmul.f32 %v3259_v3, %v397_v27  ;;  %v257_v46 = vadd.f32 %v256_v45, %v255_v28 }
 0x15f   :  { %v1788_v51 = vld [vmem:[#allocation7 + $0xf98] sm:$0xff]  ;;  %2384 = vmatpush2.msra.mxu1 %v2003_v5  ;;  %v1272_v7 = vadd.f32 %v1271_v58, %v1270_v56  ;;  %2319 = vmatpush2.msra.mxu0 %v1793_v19  ;;  %v501_v40 = vmul.f32 %v3235_v41, %v421_v59  ;;  %v1781_v47 = vld [vmem:[#allocation7 + $0xf60] sm:$0xff]  ;;  %v329_v2 = vadd.f32 %v328_v61, %v327_v24 }
 0x160   :  { %v413_v33 = vld [vmem:[#allocation2 + $0x520] sm:$0xff]  ;;  %2385 = vmatprep.subr.mxu1 %v1998_v23  ;;  %2320 = vmatprep.subr.mxu0 %v1788_v51  ;;  %v1280_v34 = vadd.f32 %v1200_v14, %v976_v16  ;;  %v258_v5 = vrot.slane %v257_v46, 2  ;;  %v557_v23 = vadd.f32 %v469_v21, %v461_v55  ;;  %v1775_v16 = vld [vmem:[#allocation7 + $0xf30] sm:$0xff]  ;;  %v1770_v51 = vld [vmem:[#allocation7 + $0xf08] sm:$0xff] }
 0x161   :  { %v1992_v29 = vld [vmem:[#allocation7 + $0x15f8] sm:$0xff]  ;;  %2386 = vmatpush2.msra.mxu1 %v1997_v30  ;;  %v493_v44 = vmul.f32 %v3677_v43, %v413_v33  ;;  %v1288_v39 = vadd.f32 %v1272_v7, %v984_v0  ;;  %v1985_v38 = vld [vmem:[#allocation7 + $0x15c0] sm:$0xff]  ;;  %2321 = vmatpush2.msra.mxu0 %v1787_v13  ;;  %v330_v11 = vrot.slane %v329_v2, 2 }
 0x162   :  { %v429_v20 = vld [vmem:[#allocation2 + $0x5a0] sm:$0xff]  ;;  %2387 = vmatprep.subr.mxu1 %v1992_v29  ;;  %2322 = vmatprep.subr.mxu0 %v1782_v35  ;;  %v259_v33 = vadd.f32 %v258_v5, %v257_v46  ;;  %v558_v29 = vadd.f32 %v557_v23, %v477_v15  ;;  %v1967_v35 = vld [vmem:[#allocation7 + $0x1530] sm:$0xff]  ;;  %v1382_v46 = vld [vmem:[#allocation7 + $0x2e8] sm:$0xff] }
 0x163   :  { %v405_v48 = vld [vmem:[#allocation2 + $0x1e0] sm:$0xff]  ;;  %v509_v22 = vmul.f32 %v3259_v3, %v429_v20  ;;  %2388 = vmatpush2.msra.mxu1 %v1991_v49  ;;  %v3567_v24 = vsel %vm2105_vm0, %v1288_v39, %v1280_v34  ;;  %2323 = vmatpush2.msra.mxu0 %v1781_v47  ;;  %v629_v52 = vadd.f32 %v501_v40, %v493_v44 }
 0x164   :  { %v437_v6 = vld [vmem:[#allocation2 + $0x5e0] sm:$0xff]  ;;  %v485_v27 = vmul.f32 %v3289_v9, %v405_v48  ;;  %2389 = vmatprep.subr.mxu1 %v1986_v1  ;;  %2399 = vmatprep.mubr.f32.mxu1 %v3567_v24  ;;  %v3571_v55 = vadd.f32 %v330_v11, %v329_v2  ;;  %v260_v48 = vrot.slane %v259_v33, 1 }
 0x165   :  { %v1980_v12 = vld [vmem:[#allocation7 + $0x1598] sm:$0xff]  ;;  %v1973_v59 = vld [vmem:[#allocation7 + $0x1560] sm:$0xff]  ;;  %v517_v0 = vmul.f32 %v3289_v9, %v437_v6  ;;  %2390 = vmatpush2.msra.mxu1 %v1985_v38  ;;  %v630_v21 = vadd.f32 %v629_v52, %v509_v22 }
 0x166   :  { %v1776_v56 = vld [vmem:[#allocation7 + $0xf38] sm:$0xff]  ;;  %2391 = vmatprep.subr.mxu1 %v1980_v12  ;;  %v1769_v20 = vld [vmem:[#allocation7 + $0xf00] sm:$0xff]  ;;  %v559_v40 = vadd.f32 %v558_v29, %v485_v27  ;;  %v1962_v12 = vld [vmem:[#allocation7 + $0x1508] sm:$0xff]  ;;  %v3579_v22 = vadd.f32 %v260_v48, %v259_v33 }
 0x167   :  { %v685_v19 = vld [vmem:[#allocation2 + $0x220] sm:$0xff]  ;;  %2324 = vmatprep.subr.mxu0 %v1776_v56  ;;  %2392 = vmatpush2.msra.mxu1 %v1979_v50  ;;  %v631_v2 = vadd.f32 %v630_v21, %v517_v0  ;;  %v332_v56 = vrot.slane %v3571_v55, 1  ;;  %v1574_v33 = vld [vmem:[#allocation7 + $0x8e8] sm:$0xff] }
 0x168   :  { %v693_v28 = vld [vmem:[#allocation2 + $0x260] sm:$0xff]  ;;  %v765_v7 = vmul.f32 %v3273_v32, %v685_v19  ;;  %2325 = vmatpush2.msra.mxu0 %v1775_v16  ;;  %2393 = vmatprep.subr.mxu1 %v1974_v8  ;;  %v560_v5 = vrot.slane %v559_v40, 4 }
 0x169   :  { %v701_v58 = vld [vmem:[#allocation2 + $0x2a0] sm:$0xff]  ;;  %v773_v49 = vmul.f32 %v3271_v31, %v693_v28  ;;  %2326 = vmatprep.subr.mxu0 %v1770_v51  ;;  %2394 = vmatpush2.msra.mxu1 %v1973_v59  ;;  %v632_v27 = vrot.slane %v631_v2, 4 }
 0x16a   :  { %v717_v30 = vld [vmem:[#allocation2 + $0x620] sm:$0xff]  ;;  %v781_v15 = vmul.f32 %v3313_v54, %v701_v58  ;;  %2327 = vmatpush2.msra.mxu0 %v1769_v20  ;;  %v561_v52 = vadd.f32 %v560_v5, %v559_v40  ;;  %v116_v5 = vld [vmem:[#allocation2 + $0x470] sm:$0xff] }
 0x16b   :  { %v725_v13 = vld [vmem:[#allocation2 + $0x660] sm:$0xff]  ;;  %v797_v47 = vmul.f32 %v3273_v32, %v717_v30  ;;  %v861_v19 = vadd.f32 %v773_v49, %v765_v7  ;;  %2406 = vmatprep.subr.mxu0 %v1382_v46  ;;  %v633_v29 = vadd.f32 %v632_v27, %v631_v2  ;;  %v84_v46 = vld [vmem:[#allocation2 + $0x70] sm:$0xff] }
 0x16c   :  { %v733_v45 = vld [vmem:[#allocation2 + $0x6a0] sm:$0xff]  ;;  %v805_v6 = vmul.f32 %v3271_v31, %v725_v13  ;;  %v562_v21 = vrot.slane %v561_v52, 2 }
 0x16d   :  { %v1968_v61 = vld [vmem:[#allocation7 + $0x1538] sm:$0xff]  ;;  %v813_v44 = vmul.f32 %v3313_v54, %v733_v45  ;;  %v1961_v50 = vld [vmem:[#allocation7 + $0x1500] sm:$0xff]  ;;  %v862_v13 = vadd.f32 %v861_v19, %v781_v15  ;;  %v333_v15 = vadd.f32 %v332_v56, %v3571_v55  ;;  %v100_v56 = vld [vmem:[#allocation2 + $0xf0] sm:$0xff] }
 0x16e   :  { %v709_v14 = vld [vmem:[#allocation2 + $0x2e0] sm:$0xff]  ;;  %2395 = vmatprep.subr.mxu1 %v1968_v61  ;;  %v933_v28 = vadd.f32 %v805_v6, %v797_v47  ;;  %v76_v47 = vld [vmem:[#allocation2 + $0x30] sm:$0xff]  ;;  %v563_v2 = vadd.f32 %v562_v21, %v561_v52 }
 0x16f   :  { %v741_v1 = vld [vmem:[#allocation2 + $0x6e0] sm:$0xff]  ;;  %v789_v8 = vmul.f32 %v3327_v17, %v709_v14  ;;  %2396 = vmatpush2.msra.mxu1 %v1967_v35  ;;  %v634_v35 = vrot.slane %v633_v29, 2 }
 0x170   :  { %v989_v34 = vld [vmem:[#allocation2 + $0x320] sm:$0xff]  ;;  %v821_v23 = vmul.f32 %v3327_v17, %v741_v1  ;;  %2397 = vmatprep.subr.mxu1 %v1962_v12  ;;  %v934_v45 = vadd.f32 %v933_v28, %v813_v44 }
 0x171   :  { %v997_v39 = vld [vmem:[#allocation2 + $0x360] sm:$0xff]  ;;  %v1069_v58 = vmul.f32 %v3311_v53, %v989_v34  ;;  %2398 = vmatpush2.msra.mxu1 %v1961_v50  ;;  %v863_v48 = vadd.f32 %v862_v13, %v789_v8  ;;  %v635_v34 = vadd.f32 %v634_v35, %v633_v29  ;;  %v92_v50 = vld [vmem:[#allocation2 + $0xb0] sm:$0xff]  ;;  %v159_v8 = vmul.f32 %v3676_v57, %v76_v47 }
 0x172   :  { %v1005_v38 = vld [vmem:[#allocation2 + $0x3a0] sm:$0xff]  ;;  %v1077_v30 = vmul.f32 %v3329_v18, %v997_v39  ;;  %v935_v40 = vadd.f32 %v934_v45, %v821_v23  ;;  %2477 = vmatprep.subr.mxu1 %v1574_v33  ;;  %v167_v23 = vmul.f32 %v3237_v42, %v84_v46 }
 0x173   :  { %v1013_v11 = vld [vmem:[#allocation2 + $0x3e0] sm:$0xff]  ;;  %v1085_v51 = vmul.f32 %v3337_v25, %v1005_v38  ;;  %v864_v39 = vrot.slane %v863_v48, 4  ;;  %v636_v19 = vrot.slane %v635_v34, 1 }
 0x174   :  { %v1021_v16 = vld [vmem:[#allocation2 + $0x720] sm:$0xff]  ;;  %v1093_v20 = vmul.f32 %v3339_v26, %v1013_v11  ;;  %v1165_v1 = vadd.f32 %v1077_v30, %v1069_v58  ;;  %v936_v38 = vrot.slane %v935_v40, 4  ;;  %v564_v11 = vrot.slane %v563_v2, 1 }
 0x175   :  { %v1029_v0 = vld [vmem:[#allocation2 + $0x760] sm:$0xff]  ;;  %v1101_v14 = vmul.f32 %v3311_v53, %v1021_v16  ;;  %v865_v28 = vadd.f32 %v864_v39, %v863_v48  ;;  %v175_v30 = vmul.f32 %v3261_v4, %v92_v50  ;;  %v637_v33 = vadd.f32 %v636_v19, %v635_v34 }
 0x176   :  { %v1037_v59 = vld [vmem:[#allocation2 + $0x7a0] sm:$0xff]  ;;  %v1109_v7 = vmul.f32 %v3329_v18, %v1029_v0  ;;  %v1166_v12 = vadd.f32 %v1165_v1, %v1085_v51  ;;  %v937_v16 = vadd.f32 %v936_v38, %v935_v40  ;;  %v108_v0 = vld [vmem:[#allocation2 + $0x430] sm:$0xff]  ;;  %v565_v52 = vadd.f32 %v564_v11, %v563_v2 }
 0x177   :  { %v1045_v61 = vld [vmem:[#allocation2 + $0x7e0] sm:$0xff]  ;;  %v1117_v49 = vmul.f32 %v3337_v25, %v1037_v59  ;;  %v124_v59 = vld [vmem:[#allocation2 + $0x4b0] sm:$0xff]  ;;  %v199_v51 = vmul.f32 %v3237_v42, %v116_v5  ;;  %v866_v29 = vrot.slane %v865_v28, 2  ;;  %v271_v46 = vadd.f32 %v167_v23, %v159_v8 }
 0x178   :  { %v1125_v6 = vmul.f32 %v3339_v26, %v1045_v61  ;;  %v1237_v44 = vadd.f32 %v1109_v7, %v1101_v14  ;;  %v1167_v55 = vadd.f32 %v1166_v12, %v1093_v20  ;;  %v938_v13 = vrot.slane %v937_v16, 2  ;;  %v132_v61 = vld [vmem:[#allocation2 + $0x4f0] sm:$0xff] }
 0x179   :  { %v183_v14 = vmul.f32 %v3291_v10, %v100_v56  ;;  %v191_v7 = vmul.f32 %v3676_v57, %v108_v0  ;;  %v207_v20 = vmul.f32 %v3261_v4, %v124_v59  ;;  %v867_v35 = vadd.f32 %v866_v29, %v865_v28  ;;  %v383_v1 = vld [vmem:[#allocation2 + $0x130] sm:$0xff] }
 0x17a   :  { %v1238_v27 = vadd.f32 %v1237_v44, %v1117_v49  ;;  %v1168_v45 = vrot.slane %v1167_v55, 4  ;;  %v669_v49 = vadd.f32 %v565_v52, %v3579_v22  ;;  %v939_v48 = vadd.f32 %v938_v13, %v937_v16  ;;  %v399_v44 = vld [vmem:[#allocation2 + $0x1b0] sm:$0xff] }
 0x17b   :  { %v215_v42 = vmul.f32 %v3291_v10, %v132_v61  ;;  %v343_v2 = vadd.f32 %v199_v51, %v191_v7  ;;  %v677_v34 = vadd.f32 %v637_v33, %v333_v15  ;;  %v868_v39 = vrot.slane %v867_v35, 1  ;;  %v407_v5 = vld [vmem:[#allocation2 + $0x1f0] sm:$0xff] }
 0x17c   :  { %v1239_v58 = vadd.f32 %v1238_v27, %v1125_v6  ;;  %v1169_v40 = vadd.f32 %v1168_v45, %v1167_v55  ;;  %v391_v6 = vld [vmem:[#allocation2 + $0x170] sm:$0xff]  ;;  %v940_v38 = vrot.slane %v939_v48, 1  ;;  %v272_v50 = vadd.f32 %v271_v46, %v175_v30 }
 0x17d   :  { %v344_v4 = vadd.f32 %v343_v2, %v207_v20  ;;  %v415_v22 = vld [vmem:[#allocation2 + $0x530] sm:$0xff]  ;;  %v463_v27 = vmul.f32 %v3677_v43, %v383_v1  ;;  %v869_v19 = vadd.f32 %v868_v39, %v867_v35  ;;  %v471_v10 = vmul.f32 %v3235_v41, %v391_v6 }
 0x17e   :  { %v1240_v21 = vrot.slane %v1239_v58, 4  ;;  %v1170_v12 = vrot.slane %v1169_v40, 2  ;;  %v423_v11 = vld [vmem:[#allocation2 + $0x570] sm:$0xff]  ;;  %v479_v8 = vmul.f32 %v3259_v3, %v399_v44  ;;  %v941_v23 = vadd.f32 %v940_v38, %v939_v48 }
 0x17f   :  { %v431_v16 = vld [vmem:[#allocation2 + $0x5b0] sm:$0xff]  ;;  %v273_v55 = vadd.f32 %v272_v50, %v183_v14  ;;  %v345_v56 = vadd.f32 %v344_v4, %v215_v42  ;;  %v487_v52 = vmul.f32 %v3289_v9, %v407_v5  ;;  %v503_v30 = vmul.f32 %v3235_v41, %v423_v11  ;;  %v1376_v11 = vld [vmem:[#allocation7 + $0x2b8] sm:$0xff] }
 0x180   :  { %v1241_v47 = vadd.f32 %v1240_v21, %v1239_v58  ;;  %v1171_v28 = vadd.f32 %v1170_v12, %v1169_v40  ;;  %v439_v0 = vld [vmem:[#allocation2 + $0x5f0] sm:$0xff]  ;;  %v495_v58 = vmul.f32 %v3677_v43, %v415_v22  ;;  %v973_v51 = vadd.f32 %v869_v19, %v669_v49 }
 0x181   :  { %v274_v29 = vrot.slane %v273_v55, 4  ;;  %v511_v13 = vmul.f32 %v3259_v3, %v431_v16  ;;  %v519_v61 = vmul.f32 %v3289_v9, %v439_v0  ;;  %v575_v21 = vadd.f32 %v471_v10, %v463_v27  ;;  %v687_v14 = vld [vmem:[#allocation2 + $0x230] sm:$0xff] }
 0x182   :  { %v1242_v57 = vrot.slane %v1241_v47, 2  ;;  %v1172_v59 = vrot.slane %v1171_v28, 1  ;;  %v647_v7 = vadd.f32 %v503_v30, %v495_v58  ;;  %v695_v20 = vld [vmem:[#allocation2 + $0x270] sm:$0xff]  ;;  %v981_v35 = vadd.f32 %v941_v23, %v677_v34 }
 0x183   :  { %v346_v40 = vrot.slane %v345_v56, 4  ;;  %v719_v1 = vld [vmem:[#allocation2 + $0x630] sm:$0xff]  ;;  %v576_v43 = vadd.f32 %v575_v21, %v479_v8  ;;  %v767_v3 = vmul.f32 %v3273_v32, %v687_v14  ;;  %v775_v9 = vmul.f32 %v3271_v31, %v695_v20  ;;  %v1364_v21 = vld [vmem:[#allocation7 + $0x258] sm:$0xff] }
 0x184   :  { %v1243_v15 = vadd.f32 %v1242_v57, %v1241_v47  ;;  %v1173_v45 = vadd.f32 %v1172_v59, %v1171_v28  ;;  %v648_v42 = vadd.f32 %v647_v7, %v511_v13  ;;  %v703_v41 = vld [vmem:[#allocation2 + $0x2b0] sm:$0xff]  ;;  %v3612_v44 = vadd.f32 %v274_v29, %v273_v55  ;;  %v1381_v57 = vld [vmem:[#allocation7 + $0x2e0] sm:$0xff] }
 0x185   :  { %v727_v49 = vld [vmem:[#allocation2 + $0x670] sm:$0xff]  ;;  %v577_v39 = vadd.f32 %v576_v43, %v487_v52  ;;  %v799_v12 = vmul.f32 %v3273_v32, %v719_v1  ;;  %v347_v4 = vadd.f32 %v346_v40, %v345_v56  ;;  %v783_v5 = vmul.f32 %v3313_v54, %v703_v41 }
 0x186   :  { %v1244_v33 = vrot.slane %v1243_v15, 1  ;;  %v1277_v47 = vadd.f32 %v1173_v45, %v973_v51  ;;  %v711_v2 = vld [vmem:[#allocation2 + $0x2f0] sm:$0xff]  ;;  %v649_v38 = vadd.f32 %v648_v42, %v519_v61  ;;  %v807_v22 = vmul.f32 %v3271_v31, %v727_v49 }
 0x187   :  { %v735_v6 = vld [vmem:[#allocation2 + $0x6b0] sm:$0xff]  ;;  %v578_v27 = vrot.slane %v577_v39, 4  ;;  %v791_v28 = vmul.f32 %v3327_v17, %v711_v2  ;;  %v276_v59 = vrot.slane %v3612_v44, 2  ;;  %v1357_v2 = vld [vmem:[#allocation7 + $0x220] sm:$0xff] }
 0x188   :  { %v1245_v48 = vadd.f32 %v1244_v33, %v1243_v15  ;;  %v743_v34 = vld [vmem:[#allocation2 + $0x6f0] sm:$0xff]  ;;  %v650_v19 = vrot.slane %v649_v38, 4  ;;  %v815_v16 = vmul.f32 %v3313_v54, %v735_v6  ;;  %v879_v15 = vadd.f32 %v775_v9, %v767_v3  ;;  %v1369_v54 = vld [vmem:[#allocation7 + $0x280] sm:$0xff] }
 0x189   :  { %v991_v10 = vld [vmem:[#allocation2 + $0x330] sm:$0xff]  ;;  %v823_v23 = vmul.f32 %v3327_v17, %v743_v34  ;;  %v951_v55 = vadd.f32 %v807_v22, %v799_v12  ;;  %v579_v52 = vadd.f32 %v578_v27, %v577_v39  ;;  %v348_v33 = vrot.slane %v347_v4, 2  ;;  %v1345_v27 = vld [vmem:[#allocation7 + $0x1c0] sm:$0xff] }
 0x18a   :  { %v1285_v46 = vadd.f32 %v1245_v48, %v981_v35  ;;  %v999_v32 = vld [vmem:[#allocation2 + $0x370] sm:$0xff]  ;;  %v651_v58 = vadd.f32 %v650_v19, %v649_v38  ;;  %v880_v29 = vadd.f32 %v879_v15, %v783_v5  ;;  %v1071_v20 = vmul.f32 %v3311_v53, %v991_v10  ;;  %v1352_v38 = vld [vmem:[#allocation7 + $0x1f8] sm:$0xff] }
 0x18b   :  { %v1375_v8 = vld [vmem:[#allocation7 + $0x2b0] sm:$0xff]  ;;  %v1370_v31 = vld [vmem:[#allocation7 + $0x288] sm:$0xff]  ;;  %v952_v13 = vadd.f32 %v951_v55, %v815_v16  ;;  %v1079_v61 = vmul.f32 %v3329_v18, %v999_v32  ;;  %v580_v7 = vrot.slane %v579_v52, 2  ;;  %v349_v34 = vadd.f32 %v348_v33, %v347_v4  ;;  %v1340_v32 = vld [vmem:[#allocation7 + $0x198] sm:$0xff] }
 0x18c   :  { %v3616_v50 = vsel %vm2105_vm0, %v1285_v46, %v1277_v47  ;;  %v1007_v56 = vld [vmem:[#allocation2 + $0x3b0] sm:$0xff]  ;;  %v652_v14 = vrot.slane %v651_v58, 2  ;;  %v881_v40 = vadd.f32 %v880_v29, %v791_v28  ;;  %v1328_v33 = vld [vmem:[#allocation7 + $0x138] sm:$0xff] }
 0x18d   :  { %2329 = vmatmul.mubr.f32.vlgmr.msra.gmra.mxu0 %v3616_v50  ;;  %v1015_v0 = vld [vmem:[#allocation2 + $0x3f0] sm:$0xff]  ;;  %v1087_v35 = vmul.f32 %v3337_v25, %v1007_v56  ;;  %v953_v1 = vadd.f32 %v952_v13, %v823_v23  ;;  %v1183_v9 = vadd.f32 %v1079_v61, %v1071_v20  ;;  %v350_v4 = vrot.slane %v349_v34, 1  ;;  %v1321_v20 = vld [vmem:[#allocation7 + $0x100] sm:$0xff] }
 0x18e   :  { %2407 = vmatpush1.msra.mxu0 %v1381_v57  ;;  %2470 = vmatprep.mubr.f32.mxu0 %v3371_v62  ;;  %v1023_v30 = vld [vmem:[#allocation2 + $0x730] sm:$0xff]  ;;  %v1095_v41 = vmul.f32 %v3339_v26, %v1015_v0  ;;  %v882_v6 = vrot.slane %v881_v40, 4  ;;  %v653_v12 = vadd.f32 %v652_v14, %v651_v58 }
 0x18f   :  { %v1031_v51 = vld [vmem:[#allocation2 + $0x770] sm:$0xff]  ;;  %2408 = vmatprep.subr.mxu0 %v1376_v11  ;;  %v1103_v47 = vmul.f32 %v3311_v53, %v1023_v30  ;;  %v954_v3 = vrot.slane %v953_v1, 4  ;;  %v277_v53 = vadd.f32 %v276_v59, %v3612_v44  ;;  %v351_v13 = vadd.f32 %v350_v4, %v349_v34 }
 0x190   :  { %v1039_v17 = vld [vmem:[#allocation2 + $0x7b0] sm:$0xff]  ;;  %2409 = vmatpush1.msra.mxu0 %v1375_v8  ;;  %v1111_v43 = vmul.f32 %v3329_v18, %v1031_v51  ;;  %v581_v18 = vadd.f32 %v580_v7, %v579_v52  ;;  %v883_v5 = vadd.f32 %v882_v6, %v881_v40  ;;  %v654_v23 = vrot.slane %v653_v12, 1  ;;  %v1333_v52 = vld [vmem:[#allocation7 + $0x160] sm:$0xff] }
 0x191   :  { %v1047_v45 = vld [vmem:[#allocation2 + $0x7f0] sm:$0xff]  ;;  %2410 = vmatprep.subr.mxu0 %v1370_v31  ;;  %v1119_v49 = vmul.f32 %v3337_v25, %v1039_v17  ;;  %v955_v22 = vadd.f32 %v954_v3, %v953_v1  ;;  %v1184_v25 = vadd.f32 %v1183_v9, %v1087_v35  ;;  %v278_v44 = vrot.slane %v277_v53, 1  ;;  %v1309_v6 = vld [vmem:[#allocation7 + $0xa0] sm:$0xff] }
 0x192   :  { %v1363_v48 = vld [vmem:[#allocation7 + $0x250] sm:$0xff]  ;;  %2411 = vmatpush1.msra.mxu0 %v1369_v54  ;;  %v1358_v42 = vld [vmem:[#allocation7 + $0x228] sm:$0xff]  ;;  %v1127_v46 = vmul.f32 %v3339_v26, %v1047_v45  ;;  %v1255_v39 = vadd.f32 %v1111_v43, %v1103_v47  ;;  %v884_v19 = vrot.slane %v883_v5, 2  ;;  %v582_v8 = vrot.slane %v581_v18, 1  ;;  %v1316_v47 = vld [vmem:[#allocation7 + $0xd8] sm:$0xff] }
 0x193   :  { %2412 = vmatprep.subr.mxu0 %v1364_v21  ;;  %v1351_v57 = vld [vmem:[#allocation7 + $0x1f0] sm:$0xff]  ;;  %v1346_v26 = vld [vmem:[#allocation7 + $0x1c8] sm:$0xff]  ;;  %v956_v28 = vrot.slane %v955_v22, 2  ;;  %v1185_v16 = vadd.f32 %v1184_v25, %v1095_v41  ;;  %v279_v29 = vadd.f32 %v278_v44, %v277_v53  ;;  %v655_v61 = vadd.f32 %v654_v23, %v653_v12  ;;  %v1304_v53 = vld [vmem:[#allocation7 + $0x78] sm:$0xff] }
 0x194   :  { %2413 = vmatpush1.msra.mxu0 %v1363_v48  ;;  %v1256_v11 = vadd.f32 %v1255_v39, %v1119_v49  ;;  %v1339_v15 = vld [vmem:[#allocation7 + $0x190] sm:$0xff]  ;;  %v885_v55 = vadd.f32 %v884_v19, %v883_v5  ;;  %v1334_v59 = vld [vmem:[#allocation7 + $0x168] sm:$0xff]  ;;  %v583_v45 = vadd.f32 %v582_v8, %v581_v18  ;;  %v1573_v5 = vld [vmem:[#allocation7 + $0x8e0] sm:$0xff] }
 0x195   :  { %2414 = vmatprep.subr.mxu0 %v1358_v42  ;;  %v957_v56 = vadd.f32 %v956_v28, %v955_v22  ;;  %v1186_v0 = vrot.slane %v1185_v16, 4  ;;  %v1327_v17 = vld [vmem:[#allocation7 + $0x130] sm:$0xff]  ;;  %v1322_v14 = vld [vmem:[#allocation7 + $0x108] sm:$0xff]  ;;  %v679_v41 = vadd.f32 %v655_v61, %v351_v13  ;;  %v1568_v25 = vld [vmem:[#allocation7 + $0x8b8] sm:$0xff] }
 0x196   :  { %2415 = vmatpush1.msra.mxu0 %v1357_v2  ;;  %v1257_v10 = vadd.f32 %v1256_v11, %v1127_v46  ;;  %v886_v58 = vrot.slane %v885_v55, 1  ;;  %v1315_v43 = vld [vmem:[#allocation7 + $0xd0] sm:$0xff]  ;;  %v671_v42 = vadd.f32 %v583_v45, %v279_v29  ;;  %v1310_v2 = vld [vmem:[#allocation7 + $0xa8] sm:$0xff]  ;;  %v1297_v11 = vld [vmem:[#allocation7 + $0x40] sm:$0xff] }
 0x197   :  { %2416 = vmatprep.subr.mxu0 %v1352_v38  ;;  %v958_v30 = vrot.slane %v957_v56, 1  ;;  %v1187_v51 = vadd.f32 %v1186_v0, %v1185_v16  ;;  %v1303_v34 = vld [vmem:[#allocation7 + $0x70] sm:$0xff]  ;;  %v1562_v19 = vld [vmem:[#allocation7 + $0x888] sm:$0xff]  ;;  %v1561_v16 = vld [vmem:[#allocation7 + $0x880] sm:$0xff] }
 0x198   :  { %2417 = vmatpush1.msra.mxu0 %v1351_v57  ;;  %v1258_v31 = vrot.slane %v1257_v10, 4  ;;  %v887_v35 = vadd.f32 %v886_v58, %v885_v55  ;;  %v1298_v57 = vld [vmem:[#allocation7 + $0x48] sm:$0xff]  ;;  %v1291_v28 = vld [vmem:[#allocation7 + $0x10] sm:$0xff]  ;;  %v1477_v44 = vld [vmem:[#allocation7 + $0x5e0] sm:$0xff] }
 0x199   :  { %2418 = vmatprep.subr.mxu0 %v1346_v26  ;;  %v1188_v21 = vrot.slane %v1187_v51, 2  ;;  %v959_v48 = vadd.f32 %v958_v30, %v957_v56  ;;  %v1567_v26 = vld [vmem:[#allocation7 + $0x8b0] sm:$0xff]  ;;  %v1472_v8 = vld [vmem:[#allocation7 + $0x5b8] sm:$0xff]  ;;  %v1550_v23 = vld [vmem:[#allocation7 + $0x828] sm:$0xff] }
 0x19a   :  { %2419 = vmatpush1.msra.mxu0 %v1345_v27  ;;  %v1259_v54 = vadd.f32 %v1258_v31, %v1257_v10  ;;  %v975_v3 = vadd.f32 %v887_v35, %v671_v42  ;;  %v1292_v27 = vld [vmem:[#allocation7 + $0x18] sm:$0xff]  ;;  %v1478_v10 = vld [vmem:[#allocation7 + $0x5e8] sm:$0xff]  ;;  %v1555_v4 = vld [vmem:[#allocation7 + $0x850] sm:$0xff] }
 0x19b   :  { %2420 = vmatprep.subr.mxu0 %v1340_v32  ;;  %v1189_v40 = vadd.f32 %v1188_v21, %v1187_v51  ;;  %v983_v9 = vadd.f32 %v959_v48, %v679_v41  ;;  %v1556_v32 = vld [vmem:[#allocation7 + $0x858] sm:$0xff]  ;;  %v1549_v55 = vld [vmem:[#allocation7 + $0x820] sm:$0xff]  ;;  %v1466_v56 = vld [vmem:[#allocation7 + $0x588] sm:$0xff] }
 0x19c   :  { %2421 = vmatpush1.msra.mxu0 %v1339_v15  ;;  %v1260_v7 = vrot.slane %v1259_v54, 2  ;;  %v1471_v15 = vld [vmem:[#allocation7 + $0x5b0] sm:$0xff]  ;;  %v1544_v0 = vld [vmem:[#allocation7 + $0x7f8] sm:$0xff]  ;;  %v1465_v31 = vld [vmem:[#allocation7 + $0x580] sm:$0xff] }
 0x19d   :  { %2422 = vmatprep.subr.mxu0 %v1334_v59  ;;  %v1190_v49 = vrot.slane %v1189_v40, 1  ;;  %v1543_v59 = vld [vmem:[#allocation7 + $0x7f0] sm:$0xff]  ;;  %v1538_v58 = vld [vmem:[#allocation7 + $0x7c8] sm:$0xff]  ;;  %v1537_v51 = vld [vmem:[#allocation7 + $0x7c0] sm:$0xff] }
 0x19e   :  { %2423 = vmatpush1.msra.mxu0 %v1333_v52  ;;  %v1261_v1 = vadd.f32 %v1260_v7, %v1259_v54  ;;  %v1460_v52 = vld [vmem:[#allocation7 + $0x558] sm:$0xff]  ;;  %v1459_v30 = vld [vmem:[#allocation7 + $0x550] sm:$0xff]  ;;  %v1454_v54 = vld [vmem:[#allocation7 + $0x528] sm:$0xff] }
 0x19f   :  { %2424 = vmatprep.subr.mxu0 %v1328_v33  ;;  %v1191_v39 = vadd.f32 %v1190_v49, %v1189_v40  ;;  %v1532_v33 = vld [vmem:[#allocation7 + $0x798] sm:$0xff]  ;;  %v1453_v29 = vld [vmem:[#allocation7 + $0x520] sm:$0xff]  ;;  %v1531_v13 = vld [vmem:[#allocation7 + $0x790] sm:$0xff] }
 0x1a0   :  { %2425 = vmatpush1.msra.mxu0 %v1327_v17  ;;  %v1262_v46 = vrot.slane %v1261_v1, 1  ;;  %v1448_v17 = vld [vmem:[#allocation7 + $0x4f8] sm:$0xff]  ;;  %v1526_v45 = vld [vmem:[#allocation7 + $0x768] sm:$0xff]  ;;  %v1447_v61 = vld [vmem:[#allocation7 + $0x4f0] sm:$0xff] }
 0x1a1   :  { %2426 = vmatprep.subr.mxu0 %v1322_v14  ;;  %v1279_v18 = vadd.f32 %v1191_v39, %v975_v3  ;;  %v1525_v21 = vld [vmem:[#allocation7 + $0x760] sm:$0xff]  ;;  %v1442_v7 = vld [vmem:[#allocation7 + $0x4c8] sm:$0xff]  ;;  %v1520_v14 = vld [vmem:[#allocation7 + $0x738] sm:$0xff] }
 0x1a2   :  { %2427 = vmatpush1.msra.mxu0 %v1321_v20  ;;  %v1263_v38 = vadd.f32 %v1262_v46, %v1261_v1  ;;  %v1441_v20 = vld [vmem:[#allocation7 + $0x4c0] sm:$0xff]  ;;  %v1519_v35 = vld [vmem:[#allocation7 + $0x730] sm:$0xff]  ;;  %v1436_v48 = vld [vmem:[#allocation7 + $0x498] sm:$0xff] }
 0x1a3   :  { %2428 = vmatprep.subr.mxu0 %v1316_v47  ;;  %v1514_v40 = vld [vmem:[#allocation7 + $0x708] sm:$0xff]  ;;  %v1435_v1 = vld [vmem:[#allocation7 + $0x490] sm:$0xff]  ;;  %v1513_v47 = vld [vmem:[#allocation7 + $0x700] sm:$0xff] }
 0x1a4   :  { %2429 = vmatpush1.msra.mxu0 %v1315_v43  ;;  %v1287_v12 = vadd.f32 %v1263_v38, %v983_v9  ;;  %v1430_v43 = vld [vmem:[#allocation7 + $0x468] sm:$0xff]  ;;  %v1508_v42 = vld [vmem:[#allocation7 + $0x6d8] sm:$0xff]  ;;  %v1429_v41 = vld [vmem:[#allocation7 + $0x460] sm:$0xff] }
 0x1a5   :  { %2430 = vmatprep.subr.mxu0 %v1310_v2  ;;  %v1507_v49 = vld [vmem:[#allocation7 + $0x6d0] sm:$0xff]  ;;  %v1424_v46 = vld [vmem:[#allocation7 + $0x438] sm:$0xff]  ;;  %v1502_v2 = vld [vmem:[#allocation7 + $0x6a8] sm:$0xff] }
 0x1a6   :  { %2431 = vmatpush1.msra.mxu0 %v1309_v6  ;;  %v3636_v22 = vsel %vm2105_vm0, %v1287_v12, %v1279_v18  ;;  %v1423_v6 = vld [vmem:[#allocation7 + $0x430] sm:$0xff]  ;;  %v1501_v3 = vld [vmem:[#allocation7 + $0x6a0] sm:$0xff]  ;;  %v1418_v9 = vld [vmem:[#allocation7 + $0x408] sm:$0xff] }
 0x1a7   :  { %2432 = vmatprep.subr.mxu0 %v1304_v53  ;;  %2400 = vmatmul.mubr.f32.vlgmr.msra.gmra.mxu1 %v3636_v22  ;;  %v1496_v39 = vld [vmem:[#allocation7 + $0x678] sm:$0xff]  ;;  %v1417_v38 = vld [vmem:[#allocation7 + $0x400] sm:$0xff]  ;;  %v1495_v53 = vld [vmem:[#allocation7 + $0x670] sm:$0xff] }
 0x1a8   :  { %2433 = vmatpush1.msra.mxu0 %v1303_v34  ;;  %2478 = vmatpush1.msra.mxu1 %v1573_v5  ;;  %v1412_v34 = vld [vmem:[#allocation7 + $0x3d8] sm:$0xff]  ;;  %v1490_v18 = vld [vmem:[#allocation7 + $0x648] sm:$0xff]  ;;  %v1411_v12 = vld [vmem:[#allocation7 + $0x3d0] sm:$0xff] }
 0x1a9   :  { %2434 = vmatprep.subr.mxu0 %v1298_v57  ;;  %2541 = vmatprep.mubr.f32.mxu1 %v3400_v60  ;;  %v1489_v57 = vld [vmem:[#allocation7 + $0x640] sm:$0xff]  ;;  %v1406_v5 = vld [vmem:[#allocation7 + $0x3a8] sm:$0xff] }
 0x1aa   :  { %2479 = vmatprep.subr.mxu1 %v1568_v25  ;;  %2435 = vmatpush1.msra.mxu0 %v1297_v11  ;;  %v1484_v25 = vld [vmem:[#allocation7 + $0x618] sm:$0xff]  ;;  %v1405_v11 = vld [vmem:[#allocation7 + $0x3a0] sm:$0xff] }
 0x1ab   :  { %2480 = vmatpush1.msra.mxu1 %v1567_v26  ;;  %2436 = vmatprep.subr.mxu0 %v1292_v27  ;;  %v1483_v26 = vld [vmem:[#allocation7 + $0x610] sm:$0xff]  ;;  %v1400_v27 = vld [vmem:[#allocation7 + $0x378] sm:$0xff] }
 0x1ac   :  { %2481 = vmatprep.subr.mxu1 %v1562_v19  ;;  %2437 = vmatpush1.msra.mxu0 %v1291_v28  ;;  %v1670_v19 = vld [vmem:[#allocation7 + $0xbe8] sm:$0xff]  ;;  %v1399_v28 = vld [vmem:[#allocation7 + $0x370] sm:$0xff] }
 0x1ad   :  { %2482 = vmatpush1.msra.mxu1 %v1561_v16  ;;  %2438 = vmatprep.subr.mxu0 %v1478_v10  ;;  %v1669_v16 = vld [vmem:[#allocation7 + $0xbe0] sm:$0xff]  ;;  %v1394_v10 = vld [vmem:[#allocation7 + $0x348] sm:$0xff] }
 0x1ae   :  { %2483 = vmatprep.subr.mxu1 %v1556_v32  ;;  %2439 = vmatpush2.msra.mxu0 %v1477_v44  ;;  %v1664_v32 = vld [vmem:[#allocation7 + $0xbb8] sm:$0xff]  ;;  %v1393_v44 = vld [vmem:[#allocation7 + $0x340] sm:$0xff] }
 0x1af   :  { %2484 = vmatpush1.msra.mxu1 %v1555_v4  ;;  %2440 = vmatprep.subr.mxu0 %v1472_v8  ;;  %v1663_v4 = vld [vmem:[#allocation7 + $0xbb0] sm:$0xff]  ;;  %v1388_v8 = vld [vmem:[#allocation7 + $0x318] sm:$0xff] }
 0x1b0   :  { %2485 = vmatprep.subr.mxu1 %v1550_v23  ;;  %2441 = vmatpush2.msra.mxu0 %v1471_v15  ;;  %v1658_v23 = vld [vmem:[#allocation7 + $0xb88] sm:$0xff]  ;;  %v1387_v15 = vld [vmem:[#allocation7 + $0x310] sm:$0xff] }
 0x1b1   :  { %2486 = vmatpush1.msra.mxu1 %v1549_v55  ;;  %2442 = vmatprep.subr.mxu0 %v1466_v56  ;;  %v1657_v55 = vld [vmem:[#allocation7 + $0xb80] sm:$0xff]  ;;  %v1652_v56 = vld [vmem:[#allocation7 + $0xb58] sm:$0xff] }
 0x1b2   :  { %2487 = vmatprep.subr.mxu1 %v1544_v0  ;;  %2443 = vmatpush2.msra.mxu0 %v1465_v31  ;;  %v1766_v0 = vld [vmem:[#allocation7 + $0xee8] sm:$0xff]  ;;  %v1651_v31 = vld [vmem:[#allocation7 + $0xb50] sm:$0xff] }
 0x1b3   :  { %2488 = vmatpush1.msra.mxu1 %v1543_v59  ;;  %2444 = vmatprep.subr.mxu0 %v1460_v52  ;;  %v1765_v59 = vld [vmem:[#allocation7 + $0xee0] sm:$0xff]  ;;  %v1646_v52 = vld [vmem:[#allocation7 + $0xb28] sm:$0xff] }
 0x1b4   :  { %2489 = vmatprep.subr.mxu1 %v1538_v58  ;;  %2445 = vmatpush2.msra.mxu0 %v1459_v30  ;;  %v1645_v58 = vld [vmem:[#allocation7 + $0xb20] sm:$0xff]  ;;  %v1760_v30 = vld [vmem:[#allocation7 + $0xeb8] sm:$0xff] }
 0x1b5   :  { %2490 = vmatpush1.msra.mxu1 %v1537_v51  ;;  %2446 = vmatprep.subr.mxu0 %v1454_v54  ;;  %v1640_v51 = vld [vmem:[#allocation7 + $0xaf8] sm:$0xff]  ;;  %v1759_v54 = vld [vmem:[#allocation7 + $0xeb0] sm:$0xff] }
 0x1b6   :  { %2491 = vmatprep.subr.mxu1 %v1532_v33  ;;  %2447 = vmatpush2.msra.mxu0 %v1453_v29  ;;  %v1639_v33 = vld [vmem:[#allocation7 + $0xaf0] sm:$0xff]  ;;  %v1754_v29 = vld [vmem:[#allocation7 + $0xe88] sm:$0xff] }
 0x1b7   :  { %2492 = vmatpush1.msra.mxu1 %v1531_v13  ;;  %2448 = vmatprep.subr.mxu0 %v1448_v17  ;;  %v1634_v13 = vld [vmem:[#allocation7 + $0xac8] sm:$0xff]  ;;  %v1753_v17 = vld [vmem:[#allocation7 + $0xe80] sm:$0xff] }
 0x1b8   :  { %2493 = vmatprep.subr.mxu1 %v1526_v45  ;;  %2449 = vmatpush2.msra.mxu0 %v1447_v61  ;;  %v1633_v45 = vld [vmem:[#allocation7 + $0xac0] sm:$0xff]  ;;  %v1748_v61 = vld [vmem:[#allocation7 + $0xe58] sm:$0xff] }
 0x1b9   :  { %2494 = vmatpush1.msra.mxu1 %v1525_v21  ;;  %2450 = vmatprep.subr.mxu0 %v1442_v7  ;;  %v1628_v21 = vld [vmem:[#allocation7 + $0xa98] sm:$0xff]  ;;  %v1747_v7 = vld [vmem:[#allocation7 + $0xe50] sm:$0xff] }
 0x1ba   :  { %2495 = vmatprep.subr.mxu1 %v1520_v14  ;;  %2451 = vmatpush2.msra.mxu0 %v1441_v20  ;;  %v1627_v14 = vld [vmem:[#allocation7 + $0xa90] sm:$0xff]  ;;  %v1742_v20 = vld [vmem:[#allocation7 + $0xe28] sm:$0xff] }
 0x1bb   :  { %2496 = vmatpush1.msra.mxu1 %v1519_v35  ;;  %2452 = vmatprep.subr.mxu0 %v1436_v48  ;;  %v1622_v35 = vld [vmem:[#allocation7 + $0xa68] sm:$0xff]  ;;  %v1741_v48 = vld [vmem:[#allocation7 + $0xe20] sm:$0xff] }
 0x1bc   :  { %2497 = vmatprep.subr.mxu1 %v1514_v40  ;;  %2453 = vmatpush2.msra.mxu0 %v1435_v1  ;;  %v1621_v40 = vld [vmem:[#allocation7 + $0xa60] sm:$0xff]  ;;  %v1736_v1 = vld [vmem:[#allocation7 + $0xdf8] sm:$0xff] }
 0x1bd   :  { %2498 = vmatpush1.msra.mxu1 %v1513_v47  ;;  %2454 = vmatprep.subr.mxu0 %v1430_v43  ;;  %v1616_v47 = vld [vmem:[#allocation7 + $0xa38] sm:$0xff]  ;;  %v1735_v43 = vld [vmem:[#allocation7 + $0xdf0] sm:$0xff] }
 0x1be   :  { %2499 = vmatprep.subr.mxu1 %v1508_v42  ;;  %2455 = vmatpush2.msra.mxu0 %v1429_v41  ;;  %v1615_v42 = vld [vmem:[#allocation7 + $0xa30] sm:$0xff]  ;;  %v1730_v41 = vld [vmem:[#allocation7 + $0xdc8] sm:$0xff] }
 0x1bf   :  { %2500 = vmatpush1.msra.mxu1 %v1507_v49  ;;  %2456 = vmatprep.subr.mxu0 %v1424_v46  ;;  %v1610_v49 = vld [vmem:[#allocation7 + $0xa08] sm:$0xff]  ;;  %v1729_v46 = vld [vmem:[#allocation7 + $0xdc0] sm:$0xff] }
 0x1c0   :  { %2501 = vmatprep.subr.mxu1 %v1502_v2  ;;  %2457 = vmatpush2.msra.mxu0 %v1423_v6  ;;  %v1609_v2 = vld [vmem:[#allocation7 + $0xa00] sm:$0xff]  ;;  %v1724_v6 = vld [vmem:[#allocation7 + $0xd98] sm:$0xff] }
 0x1c1   :  { %2502 = vmatpush1.msra.mxu1 %v1501_v3  ;;  %2458 = vmatprep.subr.mxu0 %v1418_v9  ;;  %v1604_v3 = vld [vmem:[#allocation7 + $0x9d8] sm:$0xff]  ;;  %v1723_v9 = vld [vmem:[#allocation7 + $0xd90] sm:$0xff] }
 0x1c2   :  { %2503 = vmatprep.subr.mxu1 %v1496_v39  ;;  %2459 = vmatpush2.msra.mxu0 %v1417_v38  ;;  %v1603_v39 = vld [vmem:[#allocation7 + $0x9d0] sm:$0xff]  ;;  %v1718_v38 = vld [vmem:[#allocation7 + $0xd68] sm:$0xff] }
 0x1c3   :  { %2504 = vmatpush1.msra.mxu1 %v1495_v53  ;;  %2460 = vmatprep.subr.mxu0 %v1412_v34  ;;  %v1598_v53 = vld [vmem:[#allocation7 + $0x9a8] sm:$0xff]  ;;  %v1717_v34 = vld [vmem:[#allocation7 + $0xd60] sm:$0xff] }
 0x1c4   :  { %2505 = vmatprep.subr.mxu1 %v1490_v18  ;;  %2461 = vmatpush2.msra.mxu0 %v1411_v12  ;;  %v1597_v18 = vld [vmem:[#allocation7 + $0x9a0] sm:$0xff]  ;;  %v1712_v12 = vld [vmem:[#allocation7 + $0xd38] sm:$0xff] }
 0x1c5   :  { %2506 = vmatpush1.msra.mxu1 %v1489_v57  ;;  %2462 = vmatprep.subr.mxu0 %v1406_v5  ;;  %v1592_v57 = vld [vmem:[#allocation7 + $0x978] sm:$0xff]  ;;  %v1711_v5 = vld [vmem:[#allocation7 + $0xd30] sm:$0xff] }
 0x1c6   :  { %2507 = vmatprep.subr.mxu1 %v1484_v25  ;;  %2463 = vmatpush2.msra.mxu0 %v1405_v11  ;;  %v1591_v25 = vld [vmem:[#allocation7 + $0x970] sm:$0xff]  ;;  %v1706_v11 = vld [vmem:[#allocation7 + $0xd08] sm:$0xff] }
 0x1c7   :  { %2508 = vmatpush1.msra.mxu1 %v1483_v26  ;;  %2464 = vmatprep.subr.mxu0 %v1400_v27  ;;  %v1586_v26 = vld [vmem:[#allocation7 + $0x948] sm:$0xff]  ;;  %v1705_v27 = vld [vmem:[#allocation7 + $0xd00] sm:$0xff] }
 0x1c8   :  { %2509 = vmatprep.subr.mxu1 %v1670_v19  ;;  %2465 = vmatpush2.msra.mxu0 %v1399_v28  ;;  %v1585_v19 = vld [vmem:[#allocation7 + $0x940] sm:$0xff]  ;;  %v1700_v28 = vld [vmem:[#allocation7 + $0xcd8] sm:$0xff] }
 0x1c9   :  { %2510 = vmatpush2.msra.mxu1 %v1669_v16  ;;  %2466 = vmatprep.subr.mxu0 %v1394_v10  ;;  %v1580_v16 = vld [vmem:[#allocation7 + $0x918] sm:$0xff]  ;;  %v1699_v10 = vld [vmem:[#allocation7 + $0xcd0] sm:$0xff] }
 0x1ca   :  { %2511 = vmatprep.subr.mxu1 %v1664_v32  ;;  %2467 = vmatpush2.msra.mxu0 %v1393_v44  ;;  %v1579_v32 = vld [vmem:[#allocation7 + $0x910] sm:$0xff]  ;;  %v1694_v44 = vld [vmem:[#allocation7 + $0xca8] sm:$0xff] }
 0x1cb   :  { %2512 = vmatpush2.msra.mxu1 %v1663_v4  ;;  %2468 = vmatprep.subr.mxu0 %v1388_v8  ;;  %v1958_v4 = vld [vmem:[#allocation7 + $0x14e8] sm:$0xff]  ;;  %v1957_v8 = vld [vmem:[#allocation7 + $0x14e0] sm:$0xff] }
 0x1cc   :  { %2513 = vmatprep.subr.mxu1 %v1658_v23  ;;  %2469 = vmatpush2.msra.mxu0 %v1387_v15  ;;  %v1952_v23 = vld [vmem:[#allocation7 + $0x14b8] sm:$0xff]  ;;  %v1693_v15 = vld [vmem:[#allocation7 + $0xca0] sm:$0xff] }
 0x1cd   :  { %2514 = vmatpush2.msra.mxu1 %v1657_v55  ;;  %2471 = vmatmul.mubr.f32.vlgmr.msra.gmra.mxu0 %v3433_v63  ;;  %v1951_v55 = vld [vmem:[#allocation7 + $0x14b0] sm:$0xff] }
 0x1ce   :  { %2515 = vmatprep.subr.mxu1 %v1652_v56  ;;  %2548 = vmatprep.subr.mxu0 %v1766_v0  ;;  %v1688_v56 = vld [vmem:[#allocation7 + $0xc78] sm:$0xff]  ;;  %v1946_v0 = vld [vmem:[#allocation7 + $0x1488] sm:$0xff] }
 0x1cf   :  { %2516 = vmatpush2.msra.mxu1 %v1651_v31  ;;  %2549 = vmatpush1.msra.mxu0 %v1765_v59  ;;  %v1687_v31 = vld [vmem:[#allocation7 + $0xc70] sm:$0xff]  ;;  %v1945_v59 = vld [vmem:[#allocation7 + $0x1480] sm:$0xff] }
 0x1d0   :  { %2517 = vmatprep.subr.mxu1 %v1646_v52  ;;  %2612 = vmatprep.mubr.f32.mxu0 %v3521_v36  ;;  %v1682_v52 = vld [vmem:[#allocation7 + $0xc48] sm:$0xff] }
 0x1d1   :  { %2518 = vmatpush2.msra.mxu1 %v1645_v58  ;;  %2550 = vmatprep.subr.mxu0 %v1760_v30  ;;  %v1940_v58 = vld [vmem:[#allocation7 + $0x1458] sm:$0xff]  ;;  %v1681_v30 = vld [vmem:[#allocation7 + $0xc40] sm:$0xff] }
 0x1d2   :  { %2519 = vmatprep.subr.mxu1 %v1640_v51  ;;  %2551 = vmatpush1.msra.mxu0 %v1759_v54  ;;  %v1939_v51 = vld [vmem:[#allocation7 + $0x1450] sm:$0xff]  ;;  %v1676_v54 = vld [vmem:[#allocation7 + $0xc18] sm:$0xff] }
 0x1d3   :  { %2520 = vmatpush2.msra.mxu1 %v1639_v33  ;;  %2552 = vmatprep.subr.mxu0 %v1754_v29  ;;  %v1934_v33 = vld [vmem:[#allocation7 + $0x1428] sm:$0xff]  ;;  %v1675_v29 = vld [vmem:[#allocation7 + $0xc10] sm:$0xff] }
 0x1d4   :  { %2521 = vmatprep.subr.mxu1 %v1634_v13  ;;  %2553 = vmatpush1.msra.mxu0 %v1753_v17  ;;  %v1933_v13 = vld [vmem:[#allocation7 + $0x1420] sm:$0xff]  ;;  %v1862_v17 = vld [vmem:[#allocation7 + $0x11e8] sm:$0xff] }
 0x1d5   :  { %2522 = vmatpush2.msra.mxu1 %v1633_v45  ;;  %2554 = vmatprep.subr.mxu0 %v1748_v61  ;;  %v1928_v45 = vld [vmem:[#allocation7 + $0x13f8] sm:$0xff]  ;;  %v1861_v61 = vld [vmem:[#allocation7 + $0x11e0] sm:$0xff] }
 0x1d6   :  { %2523 = vmatprep.subr.mxu1 %v1628_v21  ;;  %2555 = vmatpush1.msra.mxu0 %v1747_v7  ;;  %v1927_v21 = vld [vmem:[#allocation7 + $0x13f0] sm:$0xff]  ;;  %v1856_v7 = vld [vmem:[#allocation7 + $0x11b8] sm:$0xff] }
 0x1d7   :  { %2524 = vmatpush2.msra.mxu1 %v1627_v14  ;;  %2556 = vmatprep.subr.mxu0 %v1742_v20  ;;  %v1922_v14 = vld [vmem:[#allocation7 + $0x13c8] sm:$0xff]  ;;  %v1855_v20 = vld [vmem:[#allocation7 + $0x11b0] sm:$0xff] }
 0x1d8   :  { %2525 = vmatprep.subr.mxu1 %v1622_v35  ;;  %2557 = vmatpush1.msra.mxu0 %v1741_v48  ;;  %v1921_v35 = vld [vmem:[#allocation7 + $0x13c0] sm:$0xff]  ;;  %v1850_v48 = vld [vmem:[#allocation7 + $0x1188] sm:$0xff] }
 0x1d9   :  { %2526 = vmatpush2.msra.mxu1 %v1621_v40  ;;  %2558 = vmatprep.subr.mxu0 %v1736_v1  ;;  %v1916_v40 = vld [vmem:[#allocation7 + $0x1398] sm:$0xff]  ;;  %v1849_v1 = vld [vmem:[#allocation7 + $0x1180] sm:$0xff] }
 0x1da   :  { %2527 = vmatprep.subr.mxu1 %v1616_v47  ;;  %2559 = vmatpush1.msra.mxu0 %v1735_v43  ;;  %v1915_v47 = vld [vmem:[#allocation7 + $0x1390] sm:$0xff]  ;;  %v1844_v43 = vld [vmem:[#allocation7 + $0x1158] sm:$0xff] }
 0x1db   :  { %2528 = vmatpush2.msra.mxu1 %v1615_v42  ;;  %2560 = vmatprep.subr.mxu0 %v1730_v41  ;;  %v1910_v42 = vld [vmem:[#allocation7 + $0x1368] sm:$0xff]  ;;  %v1843_v41 = vld [vmem:[#allocation7 + $0x1150] sm:$0xff] }
 0x1dc   :  { %2529 = vmatprep.subr.mxu1 %v1610_v49  ;;  %2561 = vmatpush1.msra.mxu0 %v1729_v46  ;;  %v1909_v49 = vld [vmem:[#allocation7 + $0x1360] sm:$0xff]  ;;  %v1838_v46 = vld [vmem:[#allocation7 + $0x1128] sm:$0xff] }
 0x1dd   :  { %2530 = vmatpush2.msra.mxu1 %v1609_v2  ;;  %2562 = vmatprep.subr.mxu0 %v1724_v6  ;;  %v1904_v2 = vld [vmem:[#allocation7 + $0x1338] sm:$0xff]  ;;  %v1837_v6 = vld [vmem:[#allocation7 + $0x1120] sm:$0xff] }
 0x1de   :  { %2531 = vmatprep.subr.mxu1 %v1604_v3  ;;  %2563 = vmatpush1.msra.mxu0 %v1723_v9  ;;  %v1903_v3 = vld [vmem:[#allocation7 + $0x1330] sm:$0xff]  ;;  %v1832_v9 = vld [vmem:[#allocation7 + $0x10f8] sm:$0xff] }
 0x1df   :  { %2532 = vmatpush2.msra.mxu1 %v1603_v39  ;;  %2564 = vmatprep.subr.mxu0 %v1718_v38  ;;  %v1898_v39 = vld [vmem:[#allocation7 + $0x1308] sm:$0xff]  ;;  %v1831_v38 = vld [vmem:[#allocation7 + $0x10f0] sm:$0xff] }
 0x1e0   :  { %2533 = vmatprep.subr.mxu1 %v1598_v53  ;;  %2565 = vmatpush1.msra.mxu0 %v1717_v34  ;;  %v1897_v53 = vld [vmem:[#allocation7 + $0x1300] sm:$0xff]  ;;  %v1826_v34 = vld [vmem:[#allocation7 + $0x10c8] sm:$0xff] }
 0x1e1   :  { %2534 = vmatpush2.msra.mxu1 %v1597_v18  ;;  %2566 = vmatprep.subr.mxu0 %v1712_v12  ;;  %v1892_v18 = vld [vmem:[#allocation7 + $0x12d8] sm:$0xff]  ;;  %v1825_v12 = vld [vmem:[#allocation7 + $0x10c0] sm:$0xff] }
 0x1e2   :  { %2535 = vmatprep.subr.mxu1 %v1592_v57  ;;  %2567 = vmatpush1.msra.mxu0 %v1711_v5  ;;  %v1891_v57 = vld [vmem:[#allocation7 + $0x12d0] sm:$0xff]  ;;  %v1820_v5 = vld [vmem:[#allocation7 + $0x1098] sm:$0xff] }
 0x1e3   :  { %2536 = vmatpush2.msra.mxu1 %v1591_v25  ;;  %2568 = vmatprep.subr.mxu0 %v1706_v11  ;;  %v1886_v25 = vld [vmem:[#allocation7 + $0x12a8] sm:$0xff]  ;;  %v1819_v11 = vld [vmem:[#allocation7 + $0x1090] sm:$0xff] }
 0x1e4   :  { %2537 = vmatprep.subr.mxu1 %v1586_v26  ;;  %2569 = vmatpush1.msra.mxu0 %v1705_v27  ;;  %v1885_v26 = vld [vmem:[#allocation7 + $0x12a0] sm:$0xff]  ;;  %v1814_v27 = vld [vmem:[#allocation7 + $0x1068] sm:$0xff] }
 0x1e5   :  { %2538 = vmatpush2.msra.mxu1 %v1585_v19  ;;  %2570 = vmatprep.subr.mxu0 %v1700_v28  ;;  %v1880_v19 = vld [vmem:[#allocation7 + $0x1278] sm:$0xff]  ;;  %v1813_v28 = vld [vmem:[#allocation7 + $0x1060] sm:$0xff] }
 0x1e6   :  { %2539 = vmatprep.subr.mxu1 %v1580_v16  ;;  %2571 = vmatpush1.msra.mxu0 %v1699_v10  ;;  %v1879_v16 = vld [vmem:[#allocation7 + $0x1270] sm:$0xff]  ;;  %v1808_v10 = vld [vmem:[#allocation7 + $0x1038] sm:$0xff] }
 0x1e7   :  { %2540 = vmatpush2.msra.mxu1 %v1579_v32  ;;  %2572 = vmatprep.subr.mxu0 %v1694_v44  ;;  %v1874_v32 = vld [vmem:[#allocation7 + $0x1248] sm:$0xff]  ;;  %v1807_v44 = vld [vmem:[#allocation7 + $0x1030] sm:$0xff] }
 0x1e8   :  { %2542 = vmatmul.mubr.f32.vlgmr.msra.gmra.mxu1 %v3478_v37  ;;  %2619 = vmatprep.subr.mxu1 %v1958_v4  ;;  %v1873_v4 = vld [vmem:[#allocation7 + $0x1240] sm:$0xff] }
 0x1e9   :  { %2620 = vmatpush1.msra.mxu1 %v1957_v8  ;;  %2683 = vmatprep.mubr.f32.mxu1 %v3567_v24  ;;  %v1802_v8 = vld [vmem:[#allocation7 + $0x1008] sm:$0xff] }
 0x1ea   :  { %2621 = vmatprep.subr.mxu1 %v1952_v23  ;;  %2573 = vmatpush1.msra.mxu0 %v1693_v15  ;;  %v1868_v23 = vld [vmem:[#allocation7 + $0x1218] sm:$0xff]  ;;  %v1801_v15 = vld [vmem:[#allocation7 + $0x1000] sm:$0xff] }
 0x1eb   :  { %2622 = vmatpush1.msra.mxu1 %v1951_v55  ;;  %2574 = vmatprep.subr.mxu0 %v1688_v56  ;;  %v1867_v55 = vld [vmem:[#allocation7 + $0x1210] sm:$0xff]  ;;  %v1796_v56 = vld [vmem:[#allocation7 + $0xfd8] sm:$0xff] }
 0x1ec   :  { %2623 = vmatprep.subr.mxu1 %v1946_v0  ;;  %2575 = vmatpush1.msra.mxu0 %v1687_v31  ;;  %v2054_v0 = vld [vmem:[#allocation7 + $0x17e8] sm:$0xff]  ;;  %v1795_v31 = vld [vmem:[#allocation7 + $0xfd0] sm:$0xff] }
 0x1ed   :  { %2624 = vmatpush1.msra.mxu1 %v1945_v59  ;;  %2576 = vmatprep.subr.mxu0 %v1682_v52  ;;  %v2053_v59 = vld [vmem:[#allocation7 + $0x17e0] sm:$0xff]  ;;  %v1790_v52 = vld [vmem:[#allocation7 + $0xfa8] sm:$0xff] }
 0x1ee   :  { %2625 = vmatprep.subr.mxu1 %v1940_v58  ;;  %2577 = vmatpush1.msra.mxu0 %v1681_v30  ;;  %v2048_v58 = vld [vmem:[#allocation7 + $0x17b8] sm:$0xff]  ;;  %v1789_v30 = vld [vmem:[#allocation7 + $0xfa0] sm:$0xff] }
 0x1ef   :  { %2626 = vmatpush1.msra.mxu1 %v1939_v51  ;;  %2578 = vmatprep.subr.mxu0 %v1676_v54  ;;  %v2047_v51 = vld [vmem:[#allocation7 + $0x17b0] sm:$0xff]  ;;  %v1784_v54 = vld [vmem:[#allocation7 + $0xf78] sm:$0xff] }
 0x1f0   :  { %2627 = vmatprep.subr.mxu1 %v1934_v33  ;;  %2579 = vmatpush1.msra.mxu0 %v1675_v29  ;;  %v2042_v33 = vld [vmem:[#allocation7 + $0x1788] sm:$0xff]  ;;  %v1783_v29 = vld [vmem:[#allocation7 + $0xf70] sm:$0xff] }
 0x1f1   :  { %2628 = vmatpush1.msra.mxu1 %v1933_v13  ;;  %2580 = vmatprep.subr.mxu0 %v1862_v17  ;;  %v2041_v13 = vld [vmem:[#allocation7 + $0x1780] sm:$0xff]  ;;  %v1778_v17 = vld [vmem:[#allocation7 + $0xf48] sm:$0xff] }
 0x1f2   :  { %2629 = vmatprep.subr.mxu1 %v1928_v45  ;;  %2581 = vmatpush2.msra.mxu0 %v1861_v61  ;;  %v2036_v45 = vld [vmem:[#allocation7 + $0x1758] sm:$0xff]  ;;  %v1777_v61 = vld [vmem:[#allocation7 + $0xf40] sm:$0xff] }
 0x1f3   :  { %2630 = vmatpush1.msra.mxu1 %v1927_v21  ;;  %2582 = vmatprep.subr.mxu0 %v1856_v7  ;;  %v2035_v21 = vld [vmem:[#allocation7 + $0x1750] sm:$0xff]  ;;  %v1772_v7 = vld [vmem:[#allocation7 + $0xf18] sm:$0xff] }
 0x1f4   :  { %2631 = vmatprep.subr.mxu1 %v1922_v14  ;;  %2583 = vmatpush2.msra.mxu0 %v1855_v20  ;;  %v2030_v14 = vld [vmem:[#allocation7 + $0x1728] sm:$0xff]  ;;  %v1771_v20 = vld [vmem:[#allocation7 + $0xf10] sm:$0xff] }
 0x1f5   :  { %2632 = vmatpush1.msra.mxu1 %v1921_v35  ;;  %2584 = vmatprep.subr.mxu0 %v1850_v48  ;;  %v2029_v35 = vld [vmem:[#allocation7 + $0x1720] sm:$0xff]  ;;  %v2024_v48 = vld [vmem:[#allocation7 + $0x16f8] sm:$0xff] }
 0x1f6   :  { %2633 = vmatprep.subr.mxu1 %v1916_v40  ;;  %2585 = vmatpush2.msra.mxu0 %v1849_v1  ;;  %v1384_v40 = vld [vmem:[#allocation7 + $0x2f8] sm:$0xff]  ;;  %v2023_v1 = vld [vmem:[#allocation7 + $0x16f0] sm:$0xff] }
 0x1f7   :  { %2634 = vmatpush1.msra.mxu1 %v1915_v47  ;;  %2586 = vmatprep.subr.mxu0 %v1844_v43  ;;  %v1383_v47 = vld [vmem:[#allocation7 + $0x2f0] sm:$0xff]  ;;  %v2018_v43 = vld [vmem:[#allocation7 + $0x16c8] sm:$0xff] }
 0x1f8   :  { %2635 = vmatprep.subr.mxu1 %v1910_v42  ;;  %2587 = vmatpush2.msra.mxu0 %v1843_v41  ;;  %v2017_v42 = vld [vmem:[#allocation7 + $0x16c0] sm:$0xff]  ;;  %v1378_v41 = vld [vmem:[#allocation7 + $0x2c8] sm:$0xff] }
 0x1f9   :  { %2636 = vmatpush1.msra.mxu1 %v1909_v49  ;;  %2588 = vmatprep.subr.mxu0 %v1838_v46  ;;  %v2012_v49 = vld [vmem:[#allocation7 + $0x1698] sm:$0xff]  ;;  %v1377_v46 = vld [vmem:[#allocation7 + $0x2c0] sm:$0xff] }
 0x1fa   :  { %2637 = vmatprep.subr.mxu1 %v1904_v2  ;;  %2589 = vmatpush2.msra.mxu0 %v1837_v6  ;;  %v2011_v2 = vld [vmem:[#allocation7 + $0x1690] sm:$0xff]  ;;  %v1372_v6 = vld [vmem:[#allocation7 + $0x298] sm:$0xff] }
 0x1fb   :  { %2638 = vmatpush1.msra.mxu1 %v1903_v3  ;;  %2590 = vmatprep.subr.mxu0 %v1832_v9  ;;  %v2006_v3 = vld [vmem:[#allocation7 + $0x1668] sm:$0xff]  ;;  %v1371_v9 = vld [vmem:[#allocation7 + $0x290] sm:$0xff] }
 0x1fc   :  { %2639 = vmatprep.subr.mxu1 %v1898_v39  ;;  %2591 = vmatpush2.msra.mxu0 %v1831_v38  ;;  %v2005_v39 = vld [vmem:[#allocation7 + $0x1660] sm:$0xff]  ;;  %v1366_v38 = vld [vmem:[#allocation7 + $0x268] sm:$0xff] }
 0x1fd   :  { %2640 = vmatpush1.msra.mxu1 %v1897_v53  ;;  %2592 = vmatprep.subr.mxu0 %v1826_v34  ;;  %v2000_v53 = vld [vmem:[#allocation7 + $0x1638] sm:$0xff]  ;;  %v1365_v34 = vld [vmem:[#allocation7 + $0x260] sm:$0xff] }
 0x1fe   :  { %2641 = vmatprep.subr.mxu1 %v1892_v18  ;;  %2593 = vmatpush2.msra.mxu0 %v1825_v12  ;;  %v1999_v18 = vld [vmem:[#allocation7 + $0x1630] sm:$0xff]  ;;  %v1360_v12 = vld [vmem:[#allocation7 + $0x238] sm:$0xff] }
 0x1ff   :  { %2642 = vmatpush1.msra.mxu1 %v1891_v57  ;;  %2594 = vmatprep.subr.mxu0 %v1820_v5  ;;  %v1994_v57 = vld [vmem:[#allocation7 + $0x1608] sm:$0xff]  ;;  %v1993_v5 = vld [vmem:[#allocation7 + $0x1600] sm:$0xff] }
 0x200   :  { %2643 = vmatprep.subr.mxu1 %v1886_v25  ;;  %2595 = vmatpush2.msra.mxu0 %v1819_v11  ;;  %v1354_v25 = vld [vmem:[#allocation7 + $0x208] sm:$0xff]  ;;  %v1988_v11 = vld [vmem:[#allocation7 + $0x15d8] sm:$0xff] }
 0x201   :  { %2644 = vmatpush1.msra.mxu1 %v1885_v26  ;;  %2596 = vmatprep.subr.mxu0 %v1814_v27  ;;  %v1353_v26 = vld [vmem:[#allocation7 + $0x200] sm:$0xff]  ;;  %v1987_v27 = vld [vmem:[#allocation7 + $0x15d0] sm:$0xff] }
 0x202   :  { %2645 = vmatprep.subr.mxu1 %v1880_v19  ;;  %2597 = vmatpush2.msra.mxu0 %v1813_v28  ;;  %v1348_v19 = vld [vmem:[#allocation7 + $0x1d8] sm:$0xff]  ;;  %v1982_v28 = vld [vmem:[#allocation7 + $0x15a8] sm:$0xff] }
 0x203   :  { %2646 = vmatpush1.msra.mxu1 %v1879_v16  ;;  %2598 = vmatprep.subr.mxu0 %v1808_v10  ;;  %v1347_v16 = vld [vmem:[#allocation7 + $0x1d0] sm:$0xff]  ;;  %v1981_v10 = vld [vmem:[#allocation7 + $0x15a0] sm:$0xff] }
 0x204   :  { %2647 = vmatprep.subr.mxu1 %v1874_v32  ;;  %2599 = vmatpush2.msra.mxu0 %v1807_v44  ;;  %v1342_v32 = vld [vmem:[#allocation7 + $0x1a8] sm:$0xff]  ;;  %v1976_v44 = vld [vmem:[#allocation7 + $0x1578] sm:$0xff] }
 0x205   :  { %2648 = vmatpush1.msra.mxu1 %v1873_v4  ;;  %2600 = vmatprep.subr.mxu0 %v1802_v8  ;;  %v1341_v4 = vld [vmem:[#allocation7 + $0x1a0] sm:$0xff]  ;;  %v1975_v8 = vld [vmem:[#allocation7 + $0x1570] sm:$0xff] }
 0x206   :  { %2649 = vmatprep.subr.mxu1 %v1868_v23  ;;  %2601 = vmatpush2.msra.mxu0 %v1801_v15  ;;  %v1336_v23 = vld [vmem:[#allocation7 + $0x178] sm:$0xff]  ;;  %v1970_v15 = vld [vmem:[#allocation7 + $0x1548] sm:$0xff] }
 0x207   :  { %2650 = vmatpush1.msra.mxu1 %v1867_v55  ;;  %2602 = vmatprep.subr.mxu0 %v1796_v56  ;;  %v1335_v55 = vld [vmem:[#allocation7 + $0x170] sm:$0xff]  ;;  %v1969_v56 = vld [vmem:[#allocation7 + $0x1540] sm:$0xff] }
 0x208   :  { %2651 = vmatprep.subr.mxu1 %v2054_v0  ;;  %2603 = vmatpush2.msra.mxu0 %v1795_v31  ;;  %v1330_v0 = vld [vmem:[#allocation7 + $0x148] sm:$0xff]  ;;  %v1964_v31 = vld [vmem:[#allocation7 + $0x1518] sm:$0xff] }
 0x209   :  { %2652 = vmatpush2.msra.mxu1 %v2053_v59  ;;  %2604 = vmatprep.subr.mxu0 %v1790_v52  ;;  %v1329_v59 = vld [vmem:[#allocation7 + $0x140] sm:$0xff]  ;;  %v1963_v52 = vld [vmem:[#allocation7 + $0x1510] sm:$0xff] }
 0x20a   :  { %2653 = vmatprep.subr.mxu1 %v2048_v58  ;;  %2605 = vmatpush2.msra.mxu0 %v1789_v30  ;;  %v1324_v58 = vld [vmem:[#allocation7 + $0x118] sm:$0xff] }
 0x20b   :  { %2654 = vmatpush2.msra.mxu1 %v2047_v51  ;;  %2606 = vmatprep.subr.mxu0 %v1784_v54  ;;  %v1576_v30 = vld [vmem:[#allocation7 + $0x8f8] sm:$0xff]  ;;  %v1575_v51 = vld [vmem:[#allocation7 + $0x8f0] sm:$0xff]  ;;  %v1570_v54 = vld [vmem:[#allocation7 + $0x8c8] sm:$0xff] }
 0x20c   :  { %2655 = vmatprep.subr.mxu1 %v2042_v33  ;;  %2607 = vmatpush2.msra.mxu0 %v1783_v29  ;;  %v1323_v33 = vld [vmem:[#allocation7 + $0x110] sm:$0xff]  ;;  %v1569_v29 = vld [vmem:[#allocation7 + $0x8c0] sm:$0xff] }
 0x20d   :  { %2656 = vmatpush2.msra.mxu1 %v2041_v13  ;;  %2608 = vmatprep.subr.mxu0 %v1778_v17  ;;  %v1318_v13 = vld [vmem:[#allocation7 + $0xe8] sm:$0xff]  ;;  %v1564_v17 = vld [vmem:[#allocation7 + $0x898] sm:$0xff] }
 0x20e   :  { %2657 = vmatprep.subr.mxu1 %v2036_v45  ;;  %2609 = vmatpush2.msra.mxu0 %v1777_v61  ;;  %v1317_v45 = vld [vmem:[#allocation7 + $0xe0] sm:$0xff]  ;;  %v1563_v61 = vld [vmem:[#allocation7 + $0x890] sm:$0xff] }
 0x20f   :  { %2658 = vmatpush2.msra.mxu1 %v2035_v21  ;;  %2610 = vmatprep.subr.mxu0 %v1772_v7  ;;  %v1312_v21 = vld [vmem:[#allocation7 + $0xb8] sm:$0xff]  ;;  %v1558_v7 = vld [vmem:[#allocation7 + $0x868] sm:$0xff] }
 0x210   :  { %2659 = vmatprep.subr.mxu1 %v2030_v14  ;;  %2611 = vmatpush2.msra.mxu0 %v1771_v20  ;;  %v1311_v14 = vld [vmem:[#allocation7 + $0xb0] sm:$0xff]  ;;  %v1557_v20 = vld [vmem:[#allocation7 + $0x860] sm:$0xff] }
 0x211   :  { %2660 = vmatpush2.msra.mxu1 %v2029_v35  ;;  %2613 = vmatmul.mubr.f32.vlgmr.msra.gmra.mxu0 %v3616_v50  ;;  %v1306_v35 = vld [vmem:[#allocation7 + $0x88] sm:$0xff] }
 0x212   :  { %2661 = vmatprep.subr.mxu1 %v2024_v48  ;;  %2690 = vmatprep.subr.mxu0 %v1384_v40  ;;  %v1552_v48 = vld [vmem:[#allocation7 + $0x838] sm:$0xff]  ;;  %v1305_v40 = vld [vmem:[#allocation7 + $0x80] sm:$0xff] }
 0x213   :  { %2662 = vmatpush2.msra.mxu1 %v2023_v1  ;;  %2691 = vmatpush1.msra.mxu0 %v1383_v47  ;;  %v1300_v1 = vld [vmem:[#allocation7 + $0x58] sm:$0xff]  ;;  %v1546_v47 = vld [vmem:[#allocation7 + $0x808] sm:$0xff] }
 0x214   :  { %2663 = vmatprep.subr.mxu1 %v2018_v43  ;;  %2754 = vmatprep.mubr.f32.mxu0 %v3371_v62  ;;  %v1359_v62 = vld [vmem:[#allocation7 + $0x230] sm:$0xff] }
 0x215   :  { %2664 = vmatpush2.msra.mxu1 %v2017_v42  ;;  %2692 = vmatprep.subr.mxu0 %v1378_v41  ;;  %v1299_v43 = vld [vmem:[#allocation7 + $0x50] sm:$0xff]  ;;  %v1545_v42 = vld [vmem:[#allocation7 + $0x800] sm:$0xff]  ;;  %v1294_v41 = vld [vmem:[#allocation7 + $0x28] sm:$0xff] }
 0x216   :  { %2665 = vmatprep.subr.mxu1 %v2012_v49  ;;  %2693 = vmatpush1.msra.mxu0 %v1377_v46  ;;  %v1540_v49 = vld [vmem:[#allocation7 + $0x7d8] sm:$0xff]  ;;  %v1293_v46 = vld [vmem:[#allocation7 + $0x20] sm:$0xff] }
 0x217   :  { %2666 = vmatpush2.msra.mxu1 %v2011_v2  ;;  %2694 = vmatprep.subr.mxu0 %v1372_v6  ;;  %v1539_v2 = vld [vmem:[#allocation7 + $0x7d0] sm:$0xff]  ;;  %v1480_v6 = vld [vmem:[#allocation7 + $0x5f8] sm:$0xff] }
 0x218   :  { %2667 = vmatprep.subr.mxu1 %v2006_v3  ;;  %2695 = vmatpush1.msra.mxu0 %v1371_v9  ;;  %v1534_v3 = vld [vmem:[#allocation7 + $0x7a8] sm:$0xff]  ;;  %v1479_v9 = vld [vmem:[#allocation7 + $0x5f0] sm:$0xff] }
 0x219   :  { %2668 = vmatpush2.msra.mxu1 %v2005_v39  ;;  %2696 = vmatprep.subr.mxu0 %v1366_v38  ;;  %v1533_v39 = vld [vmem:[#allocation7 + $0x7a0] sm:$0xff]  ;;  %v1474_v38 = vld [vmem:[#allocation7 + $0x5c8] sm:$0xff] }
 0x21a   :  { %2669 = vmatprep.subr.mxu1 %v2000_v53  ;;  %2697 = vmatpush1.msra.mxu0 %v1365_v34  ;;  %v1528_v53 = vld [vmem:[#allocation7 + $0x778] sm:$0xff]  ;;  %v1473_v34 = vld [vmem:[#allocation7 + $0x5c0] sm:$0xff] }
 0x21b   :  { %2670 = vmatpush2.msra.mxu1 %v1999_v18  ;;  %2698 = vmatprep.subr.mxu0 %v1360_v12  ;;  %v1527_v18 = vld [vmem:[#allocation7 + $0x770] sm:$0xff]  ;;  %v1468_v12 = vld [vmem:[#allocation7 + $0x598] sm:$0xff] }
 0x21c   :  { %2671 = vmatprep.subr.mxu1 %v1994_v57  ;;  %2699 = vmatpush1.msra.mxu0 %v1359_v62  ;;  %v1522_v57 = vld [vmem:[#allocation7 + $0x748] sm:$0xff]  ;;  %v1467_v62 = vld [vmem:[#allocation7 + $0x590] sm:$0xff] }
 0x21d   :  { %2672 = vmatpush2.msra.mxu1 %v1993_v5  ;;  %2700 = vmatprep.subr.mxu0 %v1354_v25  ;;  %v1521_v5 = vld [vmem:[#allocation7 + $0x740] sm:$0xff]  ;;  %v1462_v25 = vld [vmem:[#allocation7 + $0x568] sm:$0xff] }
 0x21e   :  { %2673 = vmatprep.subr.mxu1 %v1988_v11  ;;  %2701 = vmatpush1.msra.mxu0 %v1353_v26  ;;  %v1516_v11 = vld [vmem:[#allocation7 + $0x718] sm:$0xff]  ;;  %v1461_v26 = vld [vmem:[#allocation7 + $0x560] sm:$0xff] }
 0x21f   :  { %2674 = vmatpush2.msra.mxu1 %v1987_v27  ;;  %2702 = vmatprep.subr.mxu0 %v1348_v19  ;;  %v1515_v27 = vld [vmem:[#allocation7 + $0x710] sm:$0xff]  ;;  %v1456_v19 = vld [vmem:[#allocation7 + $0x538] sm:$0xff] }
 0x220   :  { %2675 = vmatprep.subr.mxu1 %v1982_v28  ;;  %2703 = vmatpush1.msra.mxu0 %v1347_v16  ;;  %v1510_v28 = vld [vmem:[#allocation7 + $0x6e8] sm:$0xff]  ;;  %v1455_v16 = vld [vmem:[#allocation7 + $0x530] sm:$0xff] }
 0x221   :  { %2676 = vmatpush2.msra.mxu1 %v1981_v10  ;;  %2704 = vmatprep.subr.mxu0 %v1342_v32  ;;  %v1509_v10 = vld [vmem:[#allocation7 + $0x6e0] sm:$0xff]  ;;  %v1450_v32 = vld [vmem:[#allocation7 + $0x508] sm:$0xff] }
 0x222   :  { %2677 = vmatprep.subr.mxu1 %v1976_v44  ;;  %2705 = vmatpush1.msra.mxu0 %v1341_v4  ;;  %v1504_v44 = vld [vmem:[#allocation7 + $0x6b8] sm:$0xff]  ;;  %v1449_v4 = vld [vmem:[#allocation7 + $0x500] sm:$0xff] }
 0x223   :  { %2678 = vmatpush2.msra.mxu1 %v1975_v8  ;;  %2706 = vmatprep.subr.mxu0 %v1336_v23  ;;  %v1503_v8 = vld [vmem:[#allocation7 + $0x6b0] sm:$0xff]  ;;  %v1444_v23 = vld [vmem:[#allocation7 + $0x4d8] sm:$0xff] }
 0x224   :  { %2679 = vmatprep.subr.mxu1 %v1970_v15  ;;  %2707 = vmatpush1.msra.mxu0 %v1335_v55  ;;  %v1498_v15 = vld [vmem:[#allocation7 + $0x688] sm:$0xff]  ;;  %v1443_v55 = vld [vmem:[#allocation7 + $0x4d0] sm:$0xff] }
 0x225   :  { %2680 = vmatpush2.msra.mxu1 %v1969_v56  ;;  %2708 = vmatprep.subr.mxu0 %v1330_v0  ;;  %v1497_v56 = vld [vmem:[#allocation7 + $0x680] sm:$0xff]  ;;  %v1438_v0 = vld [vmem:[#allocation7 + $0x4a8] sm:$0xff] }
 0x226   :  { %2681 = vmatprep.subr.mxu1 %v1964_v31  ;;  %2709 = vmatpush1.msra.mxu0 %v1329_v59  ;;  %v1492_v31 = vld [vmem:[#allocation7 + $0x658] sm:$0xff]  ;;  %v1437_v59 = vld [vmem:[#allocation7 + $0x4a0] sm:$0xff] }
 0x227   :  { %2682 = vmatpush2.msra.mxu1 %v1963_v52  ;;  %2710 = vmatprep.subr.mxu0 %v1324_v58  ;;  %v1491_v52 = vld [vmem:[#allocation7 + $0x650] sm:$0xff]  ;;  %v1432_v58 = vld [vmem:[#allocation7 + $0x478] sm:$0xff] }
 0x228   :  { %2684 = vmatmul.mubr.f32.vlgmr.msra.gmra.mxu1 %v3636_v22  ;;  %2761 = vmatprep.subr.mxu1 %v1576_v30  ;;  %v1486_v30 = vld [vmem:[#allocation7 + $0x628] sm:$0xff] }
 0x229   :  { %2762 = vmatpush1.msra.mxu1 %v1575_v51  ;;  %2825 = vmatprep.mubr.f32.mxu1 %v3400_v60  ;;  %v1551_v60 = vld [vmem:[#allocation7 + $0x830] sm:$0xff] }
 0x22a   :  { %2763 = vmatprep.subr.mxu1 %v1570_v54  ;;  %2711 = vmatpush1.msra.mxu0 %v1323_v33  ;;  %v1431_v51 = vld [vmem:[#allocation7 + $0x470] sm:$0xff]  ;;  %v1485_v54 = vld [vmem:[#allocation7 + $0x620] sm:$0xff]  ;;  %v1426_v33 = vld [vmem:[#allocation7 + $0x448] sm:$0xff] }
 0x22b   :  { %2764 = vmatpush1.msra.mxu1 %v1569_v29  ;;  %2712 = vmatprep.subr.mxu0 %v1318_v13  ;;  %v1672_v29 = vld [vmem:[#allocation7 + $0xbf8] sm:$0xff]  ;;  %v1425_v13 = vld [vmem:[#allocation7 + $0x440] sm:$0xff] }
 0x22c   :  { %2765 = vmatprep.subr.mxu1 %v1564_v17  ;;  %2713 = vmatpush1.msra.mxu0 %v1317_v45  ;;  %v1671_v17 = vld [vmem:[#allocation7 + $0xbf0] sm:$0xff]  ;;  %v1420_v45 = vld [vmem:[#allocation7 + $0x418] sm:$0xff] }
 0x22d   :  { %2766 = vmatpush1.msra.mxu1 %v1563_v61  ;;  %2714 = vmatprep.subr.mxu0 %v1312_v21  ;;  %v1666_v61 = vld [vmem:[#allocation7 + $0xbc8] sm:$0xff]  ;;  %v1419_v21 = vld [vmem:[#allocation7 + $0x410] sm:$0xff] }
 0x22e   :  { %2767 = vmatprep.subr.mxu1 %v1558_v7  ;;  %2715 = vmatpush1.msra.mxu0 %v1311_v14  ;;  %v1665_v7 = vld [vmem:[#allocation7 + $0xbc0] sm:$0xff]  ;;  %v1414_v14 = vld [vmem:[#allocation7 + $0x3e8] sm:$0xff] }
 0x22f   :  { %2768 = vmatpush1.msra.mxu1 %v1557_v20  ;;  %2716 = vmatprep.subr.mxu0 %v1306_v35  ;;  %v1660_v20 = vld [vmem:[#allocation7 + $0xb98] sm:$0xff]  ;;  %v1413_v35 = vld [vmem:[#allocation7 + $0x3e0] sm:$0xff] }
 0x230   :  { %2769 = vmatprep.subr.mxu1 %v1552_v48  ;;  %2717 = vmatpush1.msra.mxu0 %v1305_v40  ;;  %v1659_v48 = vld [vmem:[#allocation7 + $0xb90] sm:$0xff]  ;;  %v1408_v40 = vld [vmem:[#allocation7 + $0x3b8] sm:$0xff] }
 0x231   :  { %2770 = vmatpush1.msra.mxu1 %v1551_v60  ;;  %2718 = vmatprep.subr.mxu0 %v1300_v1  ;;  %v1654_v60 = vld [vmem:[#allocation7 + $0xb68] sm:$0xff]  ;;  %v1407_v1 = vld [vmem:[#allocation7 + $0x3b0] sm:$0xff] }
 0x232   :  { %2771 = vmatprep.subr.mxu1 %v1546_v47  ;;  %2719 = vmatpush1.msra.mxu0 %v1299_v43  ;;  %v1653_v47 = vld [vmem:[#allocation7 + $0xb60] sm:$0xff]  ;;  %v1402_v43 = vld [vmem:[#allocation7 + $0x388] sm:$0xff] }
 0x233   :  { %2772 = vmatpush1.msra.mxu1 %v1545_v42  ;;  %2720 = vmatprep.subr.mxu0 %v1294_v41  ;;  %v1648_v42 = vld [vmem:[#allocation7 + $0xb38] sm:$0xff]  ;;  %v1401_v41 = vld [vmem:[#allocation7 + $0x380] sm:$0xff] }
 0x234   :  { %2773 = vmatprep.subr.mxu1 %v1540_v49  ;;  %2721 = vmatpush1.msra.mxu0 %v1293_v46  ;;  %v1647_v49 = vld [vmem:[#allocation7 + $0xb30] sm:$0xff]  ;;  %v1396_v46 = vld [vmem:[#allocation7 + $0x358] sm:$0xff] }
 0x235   :  { %2774 = vmatpush1.msra.mxu1 %v1539_v2  ;;  %2722 = vmatprep.subr.mxu0 %v1480_v6  ;;  %v1642_v2 = vld [vmem:[#allocation7 + $0xb08] sm:$0xff]  ;;  %v1395_v6 = vld [vmem:[#allocation7 + $0x350] sm:$0xff] }
 0x236   :  { %2775 = vmatprep.subr.mxu1 %v1534_v3  ;;  %2723 = vmatpush2.msra.mxu0 %v1479_v9  ;;  %v1641_v3 = vld [vmem:[#allocation7 + $0xb00] sm:$0xff]  ;;  %v1390_v9 = vld [vmem:[#allocation7 + $0x328] sm:$0xff] }
 0x237   :  { %2776 = vmatpush1.msra.mxu1 %v1533_v39  ;;  %2724 = vmatprep.subr.mxu0 %v1474_v38  ;;  %v1636_v39 = vld [vmem:[#allocation7 + $0xad8] sm:$0xff]  ;;  %v1389_v38 = vld [vmem:[#allocation7 + $0x320] sm:$0xff] }
 0x238   :  { %2777 = vmatprep.subr.mxu1 %v1528_v53  ;;  %2725 = vmatpush2.msra.mxu0 %v1473_v34  ;;  %v1635_v53 = vld [vmem:[#allocation7 + $0xad0] sm:$0xff]  ;;  %v1630_v34 = vld [vmem:[#allocation7 + $0xaa8] sm:$0xff] }
 0x239   :  { %2778 = vmatpush1.msra.mxu1 %v1527_v18  ;;  %2726 = vmatprep.subr.mxu0 %v1468_v12  ;;  %v1768_v18 = vld [vmem:[#allocation7 + $0xef8] sm:$0xff]  ;;  %v1629_v12 = vld [vmem:[#allocation7 + $0xaa0] sm:$0xff] }
 0x23a   :  { %2779 = vmatprep.subr.mxu1 %v1522_v57  ;;  %2727 = vmatpush2.msra.mxu0 %v1467_v62  ;;  %v1767_v57 = vld [vmem:[#allocation7 + $0xef0] sm:$0xff]  ;;  %v1624_v62 = vld [vmem:[#allocation7 + $0xa78] sm:$0xff] }
 0x23b   :  { %2780 = vmatpush1.msra.mxu1 %v1521_v5  ;;  %2728 = vmatprep.subr.mxu0 %v1462_v25  ;;  %v1623_v5 = vld [vmem:[#allocation7 + $0xa70] sm:$0xff]  ;;  %v1762_v25 = vld [vmem:[#allocation7 + $0xec8] sm:$0xff] }
 0x23c   :  { %2781 = vmatprep.subr.mxu1 %v1516_v11  ;;  %2729 = vmatpush2.msra.mxu0 %v1461_v26  ;;  %v1618_v11 = vld [vmem:[#allocation7 + $0xa48] sm:$0xff]  ;;  %v1761_v26 = vld [vmem:[#allocation7 + $0xec0] sm:$0xff] }
 0x23d   :  { %2782 = vmatpush1.msra.mxu1 %v1515_v27  ;;  %2730 = vmatprep.subr.mxu0 %v1456_v19  ;;  %v1617_v27 = vld [vmem:[#allocation7 + $0xa40] sm:$0xff]  ;;  %v1756_v19 = vld [vmem:[#allocation7 + $0xe98] sm:$0xff] }
 0x23e   :  { %2783 = vmatprep.subr.mxu1 %v1510_v28  ;;  %2731 = vmatpush2.msra.mxu0 %v1455_v16  ;;  %v1612_v28 = vld [vmem:[#allocation7 + $0xa18] sm:$0xff]  ;;  %v1755_v16 = vld [vmem:[#allocation7 + $0xe90] sm:$0xff] }
 0x23f   :  { %2784 = vmatpush1.msra.mxu1 %v1509_v10  ;;  %2732 = vmatprep.subr.mxu0 %v1450_v32  ;;  %v1611_v10 = vld [vmem:[#allocation7 + $0xa10] sm:$0xff]  ;;  %v1606_v32 = vld [vmem:[#allocation7 + $0x9e8] sm:$0xff] }
 0x240   :  { %2785 = vmatprep.subr.mxu1 %v1504_v44  ;;  %2733 = vmatpush2.msra.mxu0 %v1449_v4  ;;  %v1749_v44 = vld [vmem:[#allocation7 + $0xe60] sm:$0xff] }
 0x241   :  { %2786 = vmatpush1.msra.mxu1 %v1503_v8  ;;  %2734 = vmatprep.subr.mxu0 %v1444_v23  ;;  %v1605_v4 = vld [vmem:[#allocation7 + $0x9e0] sm:$0xff]  ;;  %v1744_v8 = vld [vmem:[#allocation7 + $0xe38] sm:$0xff] }
 0x242   :  { %2787 = vmatprep.subr.mxu1 %v1498_v15  ;;  %2735 = vmatpush2.msra.mxu0 %v1443_v55  ;;  %v1600_v23 = vld [vmem:[#allocation7 + $0x9b8] sm:$0xff]  ;;  %v1599_v15 = vld [vmem:[#allocation7 + $0x9b0] sm:$0xff]  ;;  %v1738_v55 = vld [vmem:[#allocation7 + $0xe08] sm:$0xff] }
 0x243   :  { %2788 = vmatpush1.msra.mxu1 %v1497_v56  ;;  %2736 = vmatprep.subr.mxu0 %v1438_v0  ;;  %v1594_v56 = vld [vmem:[#allocation7 + $0x988] sm:$0xff]  ;;  %v1737_v0 = vld [vmem:[#allocation7 + $0xe00] sm:$0xff] }
 0x244   :  { %2789 = vmatprep.subr.mxu1 %v1492_v31  ;;  %2737 = vmatpush2.msra.mxu0 %v1437_v59  ;;  %v1593_v31 = vld [vmem:[#allocation7 + $0x980] sm:$0xff]  ;;  %v1732_v59 = vld [vmem:[#allocation7 + $0xdd8] sm:$0xff] }
 0x245   :  { %2790 = vmatpush1.msra.mxu1 %v1491_v52  ;;  %2738 = vmatprep.subr.mxu0 %v1432_v58  ;;  %v1588_v52 = vld [vmem:[#allocation7 + $0x958] sm:$0xff]  ;;  %v1731_v58 = vld [vmem:[#allocation7 + $0xdd0] sm:$0xff] }
 0x246   :  { %2791 = vmatprep.subr.mxu1 %v1486_v30  ;;  %2739 = vmatpush2.msra.mxu0 %v1431_v51  ;;  %v1587_v30 = vld [vmem:[#allocation7 + $0x950] sm:$0xff]  ;;  %v1726_v51 = vld [vmem:[#allocation7 + $0xda8] sm:$0xff] }
 0x247   :  { %2792 = vmatpush1.msra.mxu1 %v1485_v54  ;;  %2740 = vmatprep.subr.mxu0 %v1426_v33  ;;  %v1582_v54 = vld [vmem:[#allocation7 + $0x928] sm:$0xff]  ;;  %v1725_v33 = vld [vmem:[#allocation7 + $0xda0] sm:$0xff] }
 0x248   :  { %2793 = vmatprep.subr.mxu1 %v1672_v29  ;;  %2741 = vmatpush2.msra.mxu0 %v1425_v13  ;;  %v1581_v29 = vld [vmem:[#allocation7 + $0x920] sm:$0xff]  ;;  %v1720_v13 = vld [vmem:[#allocation7 + $0xd78] sm:$0xff] }
 0x249   :  { %2794 = vmatpush2.msra.mxu1 %v1671_v17  ;;  %2742 = vmatprep.subr.mxu0 %v1420_v45  ;;  %v1960_v17 = vld [vmem:[#allocation7 + $0x14f8] sm:$0xff]  ;;  %v1959_v45 = vld [vmem:[#allocation7 + $0x14f0] sm:$0xff] }
 0x24a   :  { %2795 = vmatprep.subr.mxu1 %v1666_v61  ;;  %2743 = vmatpush2.msra.mxu0 %v1419_v21  ;;  %v1954_v61 = vld [vmem:[#allocation7 + $0x14c8] sm:$0xff]  ;;  %v1719_v21 = vld [vmem:[#allocation7 + $0xd70] sm:$0xff] }
 0x24b   :  { %2796 = vmatpush2.msra.mxu1 %v1665_v7  ;;  %2744 = vmatprep.subr.mxu0 %v1414_v14  ;;  %v1953_v7 = vld [vmem:[#allocation7 + $0x14c0] sm:$0xff]  ;;  %v1714_v14 = vld [vmem:[#allocation7 + $0xd48] sm:$0xff] }
 0x24c   :  { %2797 = vmatprep.subr.mxu1 %v1660_v20  ;;  %2745 = vmatpush2.msra.mxu0 %v1413_v35  ;;  %v1948_v20 = vld [vmem:[#allocation7 + $0x1498] sm:$0xff]  ;;  %v1713_v35 = vld [vmem:[#allocation7 + $0xd40] sm:$0xff] }
 0x24d   :  { %2798 = vmatpush2.msra.mxu1 %v1659_v48  ;;  %2746 = vmatprep.subr.mxu0 %v1408_v40  ;;  %v1947_v48 = vld [vmem:[#allocation7 + $0x1490] sm:$0xff]  ;;  %v1708_v40 = vld [vmem:[#allocation7 + $0xd18] sm:$0xff] }
 0x24e   :  { %2799 = vmatprep.subr.mxu1 %v1654_v60  ;;  %2747 = vmatpush2.msra.mxu0 %v1407_v1  ;;  %v1942_v60 = vld [vmem:[#allocation7 + $0x1468] sm:$0xff]  ;;  %v1707_v1 = vld [vmem:[#allocation7 + $0xd10] sm:$0xff] }
 0x24f   :  { %2800 = vmatpush2.msra.mxu1 %v1653_v47  ;;  %2748 = vmatprep.subr.mxu0 %v1402_v43  ;;  %v1941_v47 = vld [vmem:[#allocation7 + $0x1460] sm:$0xff]  ;;  %v1936_v43 = vld [vmem:[#allocation7 + $0x1438] sm:$0xff] }
 0x250   :  { %2801 = vmatprep.subr.mxu1 %v1648_v42  ;;  %2749 = vmatpush2.msra.mxu0 %v1401_v41  ;;  %v1701_v42 = vld [vmem:[#allocation7 + $0xce0] sm:$0xff]  ;;  %v1696_v41 = vld [vmem:[#allocation7 + $0xcb8] sm:$0xff] }
 0x251   :  { %2802 = vmatpush2.msra.mxu1 %v1647_v49  ;;  %2750 = vmatprep.subr.mxu0 %v1396_v46  ;;  %v1930_v49 = vld [vmem:[#allocation7 + $0x1408] sm:$0xff]  ;;  %v1695_v46 = vld [vmem:[#allocation7 + $0xcb0] sm:$0xff] }
 0x252   :  { %2803 = vmatprep.subr.mxu1 %v1642_v2  ;;  %2751 = vmatpush2.msra.mxu0 %v1395_v6  ;;  %v1929_v2 = vld [vmem:[#allocation7 + $0x1400] sm:$0xff]  ;;  %v1690_v6 = vld [vmem:[#allocation7 + $0xc88] sm:$0xff] }
 0x253   :  { %2804 = vmatpush2.msra.mxu1 %v1641_v3  ;;  %2752 = vmatprep.subr.mxu0 %v1390_v9  ;;  %v1924_v3 = vld [vmem:[#allocation7 + $0x13d8] sm:$0xff]  ;;  %v1689_v9 = vld [vmem:[#allocation7 + $0xc80] sm:$0xff] }
 0x254   :  { %2805 = vmatprep.subr.mxu1 %v1636_v39  ;;  %2753 = vmatpush2.msra.mxu0 %v1389_v38  ;;  %v1923_v39 = vld [vmem:[#allocation7 + $0x13d0] sm:$0xff]  ;;  %v1684_v38 = vld [vmem:[#allocation7 + $0xc58] sm:$0xff] }
 0x255   :  { %2806 = vmatpush2.msra.mxu1 %v1635_v53  ;;  %2755 = vmatmul.mubr.f32.vlgmr.msra.gmra.mxu0 %v3433_v63  ;;  %v1750_v63 = vld [vmem:[#allocation7 + $0xe68] sm:$0xff] }
 0x256   :  { %2807 = vmatprep.subr.mxu1 %v1630_v34  ;;  %2832 = vmatprep.subr.mxu0 %v1768_v18  ;;  %v1918_v53 = vld [vmem:[#allocation7 + $0x13a8] sm:$0xff]  ;;  %v1683_v34 = vld [vmem:[#allocation7 + $0xc50] sm:$0xff]  ;;  %v1917_v18 = vld [vmem:[#allocation7 + $0x13a0] sm:$0xff] }
 0x257   :  { %2808 = vmatpush2.msra.mxu1 %v1629_v12  ;;  %2833 = vmatpush1.msra.mxu0 %v1767_v57  ;;  %v1678_v12 = vld [vmem:[#allocation7 + $0xc28] sm:$0xff]  ;;  %v1912_v57 = vld [vmem:[#allocation7 + $0x1378] sm:$0xff] }
 0x258   :  { %2809 = vmatprep.subr.mxu1 %v1624_v62  ;;  %2896 = vmatprep.mubr.f32.mxu0 %v3521_v36  ;;  %v1743_v36 = vld [vmem:[#allocation7 + $0xe30] sm:$0xff]  ;;  %v1677_v62 = vld [vmem:[#allocation7 + $0xc20] sm:$0xff] }
 0x259   :  { %2810 = vmatpush2.msra.mxu1 %v1623_v5  ;;  %2834 = vmatprep.subr.mxu0 %v1762_v25  ;;  %v1911_v5 = vld [vmem:[#allocation7 + $0x1370] sm:$0xff]  ;;  %v1864_v25 = vld [vmem:[#allocation7 + $0x11f8] sm:$0xff] }
 0x25a   :  { %2811 = vmatprep.subr.mxu1 %v1618_v11  ;;  %2835 = vmatpush1.msra.mxu0 %v1761_v26  ;;  %v1906_v11 = vld [vmem:[#allocation7 + $0x1348] sm:$0xff]  ;;  %v1863_v26 = vld [vmem:[#allocation7 + $0x11f0] sm:$0xff] }
 0x25b   :  { %2812 = vmatpush2.msra.mxu1 %v1617_v27  ;;  %2836 = vmatprep.subr.mxu0 %v1756_v19  ;;  %v1905_v27 = vld [vmem:[#allocation7 + $0x1340] sm:$0xff]  ;;  %v1858_v19 = vld [vmem:[#allocation7 + $0x11c8] sm:$0xff] }
 0x25c   :  { %2813 = vmatprep.subr.mxu1 %v1612_v28  ;;  %2837 = vmatpush1.msra.mxu0 %v1755_v16  ;;  %v1900_v28 = vld [vmem:[#allocation7 + $0x1318] sm:$0xff]  ;;  %v1857_v16 = vld [vmem:[#allocation7 + $0x11c0] sm:$0xff] }
 0x25d   :  { %2814 = vmatpush2.msra.mxu1 %v1611_v10  ;;  %2838 = vmatprep.subr.mxu0 %v1750_v63  ;;  %v1899_v10 = vld [vmem:[#allocation7 + $0x1310] sm:$0xff]  ;;  %v1852_v63 = vld [vmem:[#allocation7 + $0x1198] sm:$0xff] }
 0x25e   :  { %2815 = vmatprep.subr.mxu1 %v1606_v32  ;;  %2839 = vmatpush1.msra.mxu0 %v1749_v44  ;;  %v1894_v32 = vld [vmem:[#allocation7 + $0x12e8] sm:$0xff]  ;;  %v1851_v44 = vld [vmem:[#allocation7 + $0x1190] sm:$0xff] }
 0x25f   :  { %2816 = vmatpush2.msra.mxu1 %v1605_v4  ;;  %2840 = vmatprep.subr.mxu0 %v1744_v8  ;;  %v1893_v4 = vld [vmem:[#allocation7 + $0x12e0] sm:$0xff]  ;;  %v1846_v8 = vld [vmem:[#allocation7 + $0x1168] sm:$0xff] }
 0x260   :  { %2817 = vmatprep.subr.mxu1 %v1600_v23  ;;  %2841 = vmatpush1.msra.mxu0 %v1743_v36  ;;  %v1888_v23 = vld [vmem:[#allocation7 + $0x12b8] sm:$0xff]  ;;  %v1845_v36 = vld [vmem:[#allocation7 + $0x1160] sm:$0xff] }
 0x261   :  { %2818 = vmatpush2.msra.mxu1 %v1599_v15  ;;  %2842 = vmatprep.subr.mxu0 %v1738_v55  ;;  %v1887_v15 = vld [vmem:[#allocation7 + $0x12b0] sm:$0xff]  ;;  %v1840_v55 = vld [vmem:[#allocation7 + $0x1138] sm:$0xff] }
 0x262   :  { %2819 = vmatprep.subr.mxu1 %v1594_v56  ;;  %2843 = vmatpush1.msra.mxu0 %v1737_v0  ;;  %v1882_v56 = vld [vmem:[#allocation7 + $0x1288] sm:$0xff]  ;;  %v1839_v0 = vld [vmem:[#allocation7 + $0x1130] sm:$0xff] }
 0x263   :  { %2820 = vmatpush2.msra.mxu1 %v1593_v31  ;;  %2844 = vmatprep.subr.mxu0 %v1732_v59  ;;  %v1881_v31 = vld [vmem:[#allocation7 + $0x1280] sm:$0xff]  ;;  %v1834_v59 = vld [vmem:[#allocation7 + $0x1108] sm:$0xff] }
 0x264   :  { %2821 = vmatprep.subr.mxu1 %v1588_v52  ;;  %2845 = vmatpush1.msra.mxu0 %v1731_v58  ;;  %v1876_v52 = vld [vmem:[#allocation7 + $0x1258] sm:$0xff]  ;;  %v1833_v58 = vld [vmem:[#allocation7 + $0x1100] sm:$0xff] }
 0x265   :  { %2822 = vmatpush2.msra.mxu1 %v1587_v30  ;;  %2846 = vmatprep.subr.mxu0 %v1726_v51  ;;  %v1875_v30 = vld [vmem:[#allocation7 + $0x1250] sm:$0xff]  ;;  %v1828_v51 = vld [vmem:[#allocation7 + $0x10d8] sm:$0xff] }
 0x266   :  { %2823 = vmatprep.subr.mxu1 %v1582_v54  ;;  %2847 = vmatpush1.msra.mxu0 %v1725_v33  ;;  %v1870_v54 = vld [vmem:[#allocation7 + $0x1228] sm:$0xff]  ;;  %v1827_v33 = vld [vmem:[#allocation7 + $0x10d0] sm:$0xff] }
 0x267   :  { %2824 = vmatpush2.msra.mxu1 %v1581_v29  ;;  %2848 = vmatprep.subr.mxu0 %v1720_v13  ;;  %v1869_v29 = vld [vmem:[#allocation7 + $0x1220] sm:$0xff]  ;;  %v1822_v13 = vld [vmem:[#allocation7 + $0x10a8] sm:$0xff] }
 0x268   :  { %2826 = vmatmul.mubr.f32.vlgmr.msra.gmra.mxu1 %v3478_v37  ;;  %2903 = vmatprep.subr.mxu1 %v1960_v17  ;;  %v1702_v37 = vld [vmem:[#allocation7 + $0xce8] sm:$0xff]  ;;  %v2056_v17 = vld [vmem:[#allocation7 + $0x17f8] sm:$0xff] }
 0x269   :  { %2904 = vmatpush1.msra.mxu1 %v1959_v45  ;;  %2967 = vmatprep.mubr.f32.mxu1 %v3567_v24  ;;  %v1935_v24 = vld [vmem:[#allocation7 + $0x1430] sm:$0xff]  ;;  %v1821_v45 = vld [vmem:[#allocation7 + $0x10a0] sm:$0xff] }
 0x26a   :  { %2905 = vmatprep.subr.mxu1 %v1954_v61  ;;  %2849 = vmatpush1.msra.mxu0 %v1719_v21  ;;  %v2055_v61 = vld [vmem:[#allocation7 + $0x17f0] sm:$0xff]  ;;  %v1816_v21 = vld [vmem:[#allocation7 + $0x1078] sm:$0xff] }
 0x26b   :  { %2906 = vmatpush1.msra.mxu1 %v1953_v7  ;;  %2850 = vmatprep.subr.mxu0 %v1714_v14  ;;  %v2050_v7 = vld [vmem:[#allocation7 + $0x17c8] sm:$0xff]  ;;  %v1815_v14 = vld [vmem:[#allocation7 + $0x1070] sm:$0xff] }
 0x26c   :  { %2907 = vmatprep.subr.mxu1 %v1948_v20  ;;  %2851 = vmatpush1.msra.mxu0 %v1713_v35  ;;  %v2049_v20 = vld [vmem:[#allocation7 + $0x17c0] sm:$0xff]  ;;  %v1810_v35 = vld [vmem:[#allocation7 + $0x1048] sm:$0xff] }
 0x26d   :  { %2908 = vmatpush1.msra.mxu1 %v1947_v48  ;;  %2852 = vmatprep.subr.mxu0 %v1708_v40  ;;  %v2044_v48 = vld [vmem:[#allocation7 + $0x1798] sm:$0xff]  ;;  %v1809_v40 = vld [vmem:[#allocation7 + $0x1040] sm:$0xff] }
 0x26e   :  { %2909 = vmatprep.subr.mxu1 %v1942_v60  ;;  %2853 = vmatpush1.msra.mxu0 %v1707_v1  ;;  %v2043_v60 = vld [vmem:[#allocation7 + $0x1790] sm:$0xff]  ;;  %v1804_v1 = vld [vmem:[#allocation7 + $0x1018] sm:$0xff] }
 0x26f   :  { %2910 = vmatpush1.msra.mxu1 %v1941_v47  ;;  %2854 = vmatprep.subr.mxu0 %v1702_v37  ;;  %v2038_v47 = vld [vmem:[#allocation7 + $0x1768] sm:$0xff]  ;;  %v1803_v37 = vld [vmem:[#allocation7 + $0x1010] sm:$0xff] }
 0x270   :  { %2911 = vmatprep.subr.mxu1 %v1936_v43  ;;  %2855 = vmatpush1.msra.mxu0 %v1701_v42  ;;  %v2037_v43 = vld [vmem:[#allocation7 + $0x1760] sm:$0xff]  ;;  %v1798_v42 = vld [vmem:[#allocation7 + $0xfe8] sm:$0xff] }
 0x271   :  { %2912 = vmatpush1.msra.mxu1 %v1935_v24  ;;  %2856 = vmatprep.subr.mxu0 %v1696_v41  ;;  %v2032_v24 = vld [vmem:[#allocation7 + $0x1738] sm:$0xff]  ;;  %v1797_v41 = vld [vmem:[#allocation7 + $0xfe0] sm:$0xff] }
 0x272   :  { %2913 = vmatprep.subr.mxu1 %v1930_v49  ;;  %2857 = vmatpush1.msra.mxu0 %v1695_v46  ;;  %v2031_v49 = vld [vmem:[#allocation7 + $0x1730] sm:$0xff]  ;;  %v1792_v46 = vld [vmem:[#allocation7 + $0xfb8] sm:$0xff] }
 0x273   :  { %2914 = vmatpush1.msra.mxu1 %v1929_v2  ;;  %2858 = vmatprep.subr.mxu0 %v1690_v6  ;;  %v2026_v2 = vld [vmem:[#allocation7 + $0x1708] sm:$0xff]  ;;  %v1791_v6 = vld [vmem:[#allocation7 + $0xfb0] sm:$0xff] }
 0x274   :  { %2915 = vmatprep.subr.mxu1 %v1924_v3  ;;  %2859 = vmatpush1.msra.mxu0 %v1689_v9  ;;  %v2025_v3 = vld [vmem:[#allocation7 + $0x1700] sm:$0xff]  ;;  %v1786_v9 = vld [vmem:[#allocation7 + $0xf88] sm:$0xff] }
 0x275   :  { %2916 = vmatpush1.msra.mxu1 %v1923_v39  ;;  %2860 = vmatprep.subr.mxu0 %v1684_v38  ;;  %v2020_v39 = vld [vmem:[#allocation7 + $0x16d8] sm:$0xff]  ;;  %v1785_v38 = vld [vmem:[#allocation7 + $0xf80] sm:$0xff] }
 0x276   :  { %2917 = vmatprep.subr.mxu1 %v1918_v53  ;;  %2861 = vmatpush1.msra.mxu0 %v1683_v34  ;;  %v2019_v53 = vld [vmem:[#allocation7 + $0x16d0] sm:$0xff]  ;;  %v1780_v34 = vld [vmem:[#allocation7 + $0xf58] sm:$0xff] }
 0x277   :  { %2918 = vmatpush1.msra.mxu1 %v1917_v18  ;;  %2862 = vmatprep.subr.mxu0 %v1678_v12  ;;  %v2014_v18 = vld [vmem:[#allocation7 + $0x16a8] sm:$0xff]  ;;  %v1779_v12 = vld [vmem:[#allocation7 + $0xf50] sm:$0xff] }
 0x278   :  { %2919 = vmatprep.subr.mxu1 %v1912_v57  ;;  %2863 = vmatpush1.msra.mxu0 %v1677_v62  ;;  %v2013_v57 = vld [vmem:[#allocation7 + $0x16a0] sm:$0xff]  ;;  %v1774_v62 = vld [vmem:[#allocation7 + $0xf28] sm:$0xff] }
 0x279   :  { %2920 = vmatpush1.msra.mxu1 %v1911_v5  ;;  %2864 = vmatprep.subr.mxu0 %v1864_v25  ;;  %v2008_v5 = vld [vmem:[#allocation7 + $0x1678] sm:$0xff]  ;;  %v1773_v25 = vld [vmem:[#allocation7 + $0xf20] sm:$0xff] }
 0x27a   :  { %2921 = vmatprep.subr.mxu1 %v1906_v11  ;;  %2865 = vmatpush2.msra.mxu0 %v1863_v26  ;;  %v2007_v11 = vld [vmem:[#allocation7 + $0x1670] sm:$0xff]  ;;  %v2002_v26 = vld [vmem:[#allocation7 + $0x1648] sm:$0xff] }
 0x27b   :  { %2922 = vmatpush1.msra.mxu1 %v1905_v27  ;;  %2866 = vmatprep.subr.mxu0 %v1858_v19  ;;  %v2001_v27 = vld [vmem:[#allocation7 + $0x1640] sm:$0xff]  ;;  %v1996_v19 = vld [vmem:[#allocation7 + $0x1618] sm:$0xff] }
 0x27c   :  { %2923 = vmatprep.subr.mxu1 %v1900_v28  ;;  %2867 = vmatpush2.msra.mxu0 %v1857_v16  ;;  %v1995_v28 = vld [vmem:[#allocation7 + $0x1610] sm:$0xff]  ;;  %v1990_v16 = vld [vmem:[#allocation7 + $0x15e8] sm:$0xff] }
 0x27d   :  { %2924 = vmatpush1.msra.mxu1 %v1899_v10  ;;  %2868 = vmatprep.subr.mxu0 %v1852_v63  ;;  %v1989_v10 = vld [vmem:[#allocation7 + $0x15e0] sm:$0xff]  ;;  %v1984_v63 = vld [vmem:[#allocation7 + $0x15b8] sm:$0xff] }
 0x27e   :  { %2925 = vmatprep.subr.mxu1 %v1894_v32  ;;  %2869 = vmatpush2.msra.mxu0 %v1851_v44  ;;  %v1983_v32 = vld [vmem:[#allocation7 + $0x15b0] sm:$0xff]  ;;  %v1978_v44 = vld [vmem:[#allocation7 + $0x1588] sm:$0xff] }
 0x27f   :  { %2926 = vmatpush1.msra.mxu1 %v1893_v4  ;;  %2870 = vmatprep.subr.mxu0 %v1846_v8  ;;  %v1977_v4 = vld [vmem:[#allocation7 + $0x1580] sm:$0xff]  ;;  %v1972_v8 = vld [vmem:[#allocation7 + $0x1558] sm:$0xff] }
 0x280   :  { %2927 = vmatprep.subr.mxu1 %v1888_v23  ;;  %2871 = vmatpush2.msra.mxu0 %v1845_v36  ;;  %v1971_v23 = vld [vmem:[#allocation7 + $0x1550] sm:$0xff]  ;;  %v1965_v36 = vld [vmem:[#allocation7 + $0x1520] sm:$0xff] }
 0x281   :  { %2928 = vmatpush1.msra.mxu1 %v1887_v15  ;;  %2872 = vmatprep.subr.mxu0 %v1840_v55  ;;  %v2188_v15 = vpop.f32.mrf.mxu0  ;;  %v2059_v55 = vlaneseq }
 0x282   :  { %2929 = vmatprep.subr.mxu1 %v1882_v56  ;;  %2873 = vmatpush2.msra.mxu0 %v1839_v0 }
 0x283   :  { %2930 = vmatpush1.msra.mxu1 %v1881_v31  ;;  %2874 = vmatprep.subr.mxu0 %v1834_v59  ;;  %v2190_v56 = vpop.f32.mrf.mxu0  ;;  %v2060_v0 = vshrl.u32 %v2059_v55, 7  ;;  %v2259_v31 = vpop.f32.mrf.mxu1 }
 0x284   :  { %2931 = vmatprep.subr.mxu1 %v1876_v52  ;;  %2875 = vmatpush2.msra.mxu0 %v1833_v58 }
 0x285   :  { %2932 = vmatpush1.msra.mxu1 %v1875_v30  ;;  %2876 = vmatprep.subr.mxu0 %v1828_v51  ;;  %v2330_v59 = vpop.f32.mrf.mxu0  ;;  %v2065_v52 = vsub.s32 1, %v2060_v0  ;;  %v2061_v58 = vsub.s32 0, %v2060_v0  ;;  %v2057_v30 = vld [vmem:[#allocation8] sm:$0x3f]  ;;  %v2261_v51 = vpop.f32.mrf.mxu1 }
 0x286   :  { %2933 = vmatprep.subr.mxu1 %v1870_v54  ;;  %2877 = vmatpush2.msra.mxu0 %v1827_v33 }
 0x287   :  { %2934 = vmatpush1.msra.mxu1 %v1869_v29  ;;  %2878 = vmatprep.subr.mxu0 %v1822_v13  ;;  %v2332_v54 = vpop.f32.mrf.mxu0  ;;  %v2066_v33 = vrot.slane %v2057_v30, %v2065_v52  ;;  %v2069_v29 = vsub.s32 2, %v2060_v0  ;;  %v2073_v13 = vsub.s32 3, %v2060_v0 }
 0x288   :  { %2935 = vmatprep.subr.mxu1 %v2056_v17  ;;  %2879 = vmatpush2.msra.mxu0 %v1821_v45  ;;  %v2401_v17 = vpop.f32.mrf.mxu1 }
 0x289   :  { %2936 = vmatpush2.msra.mxu1 %v2055_v61  ;;  %2880 = vmatprep.subr.mxu0 %v1816_v21  ;;  %v2062_v61 = vrot.slane %v2057_v30, %v2061_v58  ;;  %v2191_v21 = vadd.f32 %v2190_v56, %v2066_v33 }
 0x28a   :  { %2937 = vmatprep.subr.mxu1 %v2050_v7  ;;  %2881 = vmatpush2.msra.mxu0 %v1815_v14  ;;  %v2070_v7 = vrot.slane %v2057_v30, %v2069_v29  ;;  %v2403_v14 = vpop.f32.mrf.mxu1 }
 0x28b   :  { %2938 = vmatpush2.msra.mxu1 %v2049_v20  ;;  %2882 = vmatprep.subr.mxu0 %v1810_v35  ;;  %v2189_v35 = vadd.f32 %v2188_v15, %v2062_v61 }
 0x28c   :  { %2939 = vmatprep.subr.mxu1 %v2044_v48  ;;  %2883 = vmatpush2.msra.mxu0 %v1809_v40 }
 0x28d   :  { %2940 = vmatpush2.msra.mxu1 %v2043_v60  ;;  %2884 = vmatprep.subr.mxu0 %v1804_v1  ;;  %v2472_v45 = vpop.f32.mrf.mxu0  ;;  %v2262_v60 = vadd.f32 %v2261_v51, %v2191_v21 }
 0x28e   :  { %2941 = vmatprep.subr.mxu1 %v2038_v47  ;;  %2885 = vmatpush2.msra.mxu0 %v1803_v37  ;;  %v2473_v1 = vadd.f32 %v2472_v45, %v2070_v7  ;;  %v2260_v37 = vadd.f32 %v2259_v31, %v2189_v35 }
 0x28f   :  { %2942 = vmatpush2.msra.mxu1 %v2037_v43  ;;  %2886 = vmatprep.subr.mxu0 %v1798_v42  ;;  %v2474_v20 = vpop.f32.mrf.mxu0  ;;  %v2333_v43 = vadd.f32 %v2332_v54, %v2262_v60  ;;  %v3154_v42 = vmov 1983009808  }
 0x290   :  { %2943 = vmatprep.subr.mxu1 %v2032_v24  ;;  %2887 = vmatpush2.msra.mxu0 %v1797_v41  ;;  %v2983_v24 = vunpack.c.l.s4 %v3154_v42 }
 0x291   :  { %2944 = vmatpush2.msra.mxu1 %v2031_v49  ;;  %2888 = vmatprep.subr.mxu0 %v1792_v46  ;;  %v2331_v46 = vadd.f32 %v2330_v59, %v2260_v37 }
 0x292   :  { %2945 = vmatprep.subr.mxu1 %v2026_v2  ;;  %2889 = vmatpush2.msra.mxu0 %v1791_v6 }
 0x293   :  { %2946 = vmatpush2.msra.mxu1 %v2025_v3  ;;  %2890 = vmatprep.subr.mxu0 %v1786_v9  ;;  %v2404_v3 = vadd.f32 %v2403_v14, %v2333_v43  ;;  %v2984_v9 = vunpack.c.0.s8 %v2983_v24 }
 0x294   :  { %2947 = vmatprep.subr.mxu1 %v2020_v39  ;;  %2891 = vmatpush2.msra.mxu0 %v1785_v38 }
 0x295   :  { %2948 = vmatpush2.msra.mxu1 %v2019_v53  ;;  %2892 = vmatprep.subr.mxu0 %v1780_v34  ;;  %v2402_v34 = vadd.f32 %v2401_v17, %v2331_v46 }
 0x296   :  { %2949 = vmatprep.subr.mxu1 %v2014_v18  ;;  %2893 = vmatpush2.msra.mxu0 %v1779_v12 }
 0x297   :  { %2950 = vmatpush2.msra.mxu1 %v2013_v57  ;;  %2894 = vmatprep.subr.mxu0 %v1774_v62  ;;  %v2980_v12 = vcombine.low %v2402_v34, %v2404_v3  ;;  %v2987_v57 = vsub.s32 %v2984_v9, %v2060_v0 }
 0x298   :  { %2951 = vmatprep.subr.mxu1 %v2008_v5  ;;  %2895 = vmatpush2.msra.mxu0 %v1773_v25 }
 0x299   :  { %2952 = vmatpush2.msra.mxu1 %v2007_v11  ;;  %2897 = vmatmul.mubr.f32.vlgmr.msra.gmra.mxu0 %v3616_v50  ;;  %v1966_v50 = vld [vmem:[#allocation7 + $0x1528] sm:$0xff]  ;;  %v2988_v11 = vrot.slane %v2980_v12, %v2987_v57 }
 0x29a   :  { %2953 = vmatprep.subr.mxu1 %v2002_v26 }
 0x29b   :  { %2954 = vmatpush2.msra.mxu1 %v2001_v27 }
 0x29c   :  { %2955 = vmatprep.subr.mxu1 %v1996_v19  ;;  %v2077_v19 = vsub.s32 4, %v2060_v0 }
 0x29d   :  { %2956 = vmatpush2.msra.mxu1 %v1995_v28  ;;  %v2081_v28 = vsub.s32 5, %v2060_v0 }
 0x29e   :  { %2957 = vmatprep.subr.mxu1 %v1990_v16 }
 0x29f   :  { %2958 = vmatpush2.msra.mxu1 %v1989_v10  ;;  %v2078_v10 = vrot.slane %v2057_v30, %v2077_v19 }
 0x2a0   :  { %2959 = vmatprep.subr.mxu1 %v1984_v63  ;;  %v2082_v63 = vrot.slane %v2057_v30, %v2081_v28 }
 0x2a1   :  { %2960 = vmatpush2.msra.mxu1 %v1983_v32 }
 0x2a2   :  { %2961 = vmatprep.subr.mxu1 %v1978_v44 }
 0x2a3   :  { %2962 = vmatpush2.msra.mxu1 %v1977_v4 }
 0x2a4   :  { %2963 = vmatprep.subr.mxu1 %v1972_v8 }
 0x2a5   :  { %2964 = vmatpush2.msra.mxu1 %v1971_v23 }
 0x2a6   :  { %2965 = vmatprep.subr.mxu1 %v1966_v50 }
 0x2a7   :  { %2966 = vmatpush2.msra.mxu1 %v1965_v36 }
 0x2a8   :  { %2968 = vmatmul.mubr.f32.vlgmr.msra.gmra.mxu1 %v3636_v22  ;;  %v2074_v22 = vrot.slane %v2057_v30, %v2073_v13  ;;  %v2543_v48 = vpop.f32.mrf.mxu1 }
 0x2a9   :  { %v2544_v2 = vadd.f32 %v2543_v48, %v2473_v1 }
 0x2aa   :  { %v2475_v47 = vadd.f32 %v2474_v20, %v2074_v22  ;;  %v2545_v41 = vpop.f32.mrf.mxu1 }
 0x2ac   :  { %v2546_v6 = vadd.f32 %v2545_v41, %v2475_v47 }
 0x2d1   :  { %v2614_v40 = vpop.f32.mrf.mxu0 }
 0x2d2   :  { %v2615_v39 = vadd.f32 %v2614_v40, %v2544_v2 }
 0x2d3   :  { %v2616_v49 = vpop.f32.mrf.mxu0 }
 0x2d4   :  { %v2617_v38 = vadd.f32 %v2616_v49, %v2546_v6 }
 0x2e8   :  { %v2685_v53 = vpop.f32.mrf.mxu1 }
 0x2e9   :  { %v2686_v62 = vadd.f32 %v2685_v53, %v2615_v39 }
 0x2ea   :  { %v2687_v18 = vpop.f32.mrf.mxu1 }
 0x2eb   :  { %v2688_v5 = vadd.f32 %v2687_v18, %v2617_v38 }
 0x2ed   :  { %v2981_v25 = vcombine.low %v2686_v62, %v2688_v5 }
 0x2ef   :  { %v2995_v26 = vrot.slane %v2981_v25, %v2987_v57 }
 0x2f1   :  { %v2996_v27 = vcombine.low %v2988_v11, %v2995_v26 }
 0x2f3   :  { %3007 = vst [vmem:[#allocation10] sm:$0xff] %v2996_v27 }
 0x315   :  { %v2756_v16 = vpop.f32.mrf.mxu0 }
 0x316   :  { %v2757_v8 = vadd.f32 %v2756_v16, %v2078_v10 }
 0x317   :  { %v2758_v32 = vpop.f32.mrf.mxu0 }
 0x318   :  { %v2759_v23 = vadd.f32 %v2758_v32, %v2082_v63 }
 0x328   :  { %v2827_v44 = vpop.f32.mrf.mxu1 }
 0x329   :  { %v2828_v15 = vadd.f32 %v2827_v44, %v2757_v8 }
 0x32a   :  { %v2829_v50 = vpop.f32.mrf.mxu1 }
 0x32b   :  { %v2830_v55 = vadd.f32 %v2829_v50, %v2759_v23 }
 0x359   :  { %v2898_v4 = vpop.f32.mrf.mxu0 }
 0x35a   :  { %v2899_v56 = vadd.f32 %v2898_v4, %v2828_v15 }
 0x35b   :  { %v2900_v36 = vpop.f32.mrf.mxu0 }
 0x35c   :  { %v2901_v31 = vadd.f32 %v2900_v36, %v2830_v55 }
 0x368   :  { %v2969_v59 = vpop.f32.mrf.mxu1 }
 0x369   :  { %v2970_v58 = vadd.f32 %v2969_v59, %v2899_v56 }
 0x36a   :  { %v2971_v52 = vpop.f32.mrf.mxu1 }
 0x36b   :  { %v2972_v0 = vadd.f32 %v2971_v52, %v2901_v31 }
 0x36d   :  { %v2997_v51 = vcombine.low %v2970_v58, %v2972_v0 }
 0x36f   :  { %3027 = vst.sshfl [vmem:[#allocation10 + $0x8] sm:$0x33 pattern:$0x76325410] %v2997_v51 }
 0x370   :  { %3129 = shalt.err (!%p3126_p10)
}
 0x371   :  { %3018 = dma.vmem_to_hbm [thread:$0]  %s3016_s3, 192, %s3661_s4, [#allocation4]  }
 0x372   :  { %3144 = dma.done.wait [#allocation4], 192  }
 0x373   :  { %3145 = vsyncadd [#allocation4], 4294967104 }
 0x374   :  { %3022 = vsyncpa [#allocation3], 1 }
 0x375   :  { %3023 = vsyncpa [#allocation6], 1 }
 0x376   :  { %3024 = vsyncpa [#allocation9], 1 }
 0x377   :  { %3025 = vsyncpa [#allocation4], 1 }

// kernel: tpu_custom_call.1
= control target key start
LH: loop header
LB: loop body
LE: loop exit
PB: predicated region body
PF: predicated region fallthrough
CT: control target
= control target key end

     0   :  { %9 = vsyncpa [#allocation3], 0  ;;  %s3657_s0 = inlined_call_operand.hbm [shape: f32[2,128,1024], index: 0, kind: input, shape index: {}]   ;;  %s3658_s1 = inlined_call_operand.hbm [shape: f32[1,128], index: 1, kind: input, shape index: {}]   ;;  %s3659_s2 = inlined_call_operand.hbm [shape: f32[1024,768], index: 2, kind: input, shape index: {}]   ;;  %s3660_s3 = inlined_call_operand.hbm [shape: f32[1,768], index: 3, kind: input, shape index: {}]   ;;  %s3661_s4 = inlined_call_operand.hbm [shape: f32[2,768], index: 4, kind: output, shape index: {}]  }
   0x1   :  { %10 = vsyncpa [#allocation6], 0 }
   0x2   :  { %11 = vsyncpa [#allocation9], 0 }
   0x3   :  { %12 = vsyncpa [#allocation4], 0  ;;  %s3146_s15 = smov [#allocation5]   ;;  %s3147_s17 = smov [#allocation2]  }
   0x4   :  { %s31_s16 = sshll.u32 %s3146_s15, 4  ;;  %s18_s18 = sshll.u32 %s3147_s17, 4  ;;  %s32_s16 = int_to_ptr.vmem [resolvable:$true] %s31_s16  ;;  %s19_s18 = int_to_ptr.vmem [resolvable:$true] %s18_s18 }
   0x5   :  { %s3046_s19 = scalar_lea.vmem %s32_s16, 16  ;;  %s3050_s20 = scalar_lea.vmem %s32_s16, 32 }
   0x6   :  { %p3047_p0 = scmp.ne.s32.totalorder %s32_s16, %s3046_s19  ;;  %p3051_p1 = scmp.lt.s32.totalorder %s32_s16, %s32_s16 }
   0x7   :  { %p3052_p2 = scmp.lt.s32.totalorder %s3050_s20, %s3046_s19 }
   0x9   :  { %p3053_p3 = por %p3052_p2, %p3051_p1 }
   0xb   :  { %p3054_p4 = pnand %p3053_p3, %p3047_p0 }
   0xd   :  { %3057 = shalt.err (!%p3054_p4)
}
   0xe   :  { %34 = dma.hbm_to_vmem [thread:$0]  %s3658_s1, 16, %s32_s16, [#allocation6]  }
   0xf   :  { %s3066_s23 = scalar_lea.vmem %s19_s18, 32768  ;;  %p3071_p6 = scmp.lt.s32.totalorder %s19_s18, %s19_s18 }
  0x10   :  { %p3067_p5 = scmp.ne.s32.totalorder %s19_s18, %s3066_s23  ;;  %p3072_p7 = scmp.lt.s32.totalorder %s3066_s23, %s3066_s23 }
  0x12   :  { %p3073_p8 = por %p3072_p7, %p3071_p6 }
  0x14   :  { %p3074_p9 = pnand %p3073_p8, %p3067_p5 }
  0x16   :  { %3077 = shalt.err (!%p3074_p9)
}
  0x17   :  { %s3148_s24 = smov 1024   ;;  %s3149_s25 = smov 64  }
  0x18   :  { %24 = dma.hbm_to_vmem [thread:$0]  %s3657_s0, 32768, %s19_s18, [#allocation3], %s3148_s24, %s3148_s24, %s3149_s25  }
  0x19   :  { %s3150_s28 = smov [#allocation7]  }
  0x1a   :  { %s40_s29 = sshll.u32 %s3150_s28, 4  ;;  %s41_s29 = int_to_ptr.vmem [resolvable:$true] %s40_s29 }
  0x1b   :  { %s3086_s30 = scalar_lea.vmem %s41_s29, 98304  ;;  %p3091_p11 = scmp.lt.s32.totalorder %s41_s29, %s41_s29 }
  0x1c   :  { %p3087_p10 = scmp.ne.s32.totalorder %s41_s29, %s3086_s30  ;;  %p3092_p12 = scmp.lt.s32.totalorder %s3086_s30, %s3086_s30 }
  0x1e   :  { %p3093_p13 = por %p3092_p12, %p3091_p11 }
  0x20   :  { %p3094_p0 = pnand %p3093_p13, %p3087_p10 }
  0x22   :  { %3097 = shalt.err (!%p3094_p0)
}
  0x23   :  { %s3151_s1 = smov 768   ;;  %s3152_s5 = smov 48  }
  0x24   :  { %46 = dma.hbm_to_vmem [thread:$0]  %s3659_s2, 98304, %s41_s29, [#allocation6], %s3151_s1, %s3151_s1, %s3152_s5  }
  0x25   :  { %s3153_s8 = smov [#allocation8]  }
  0x26   :  { %s53_s9 = sshll.u32 %s3153_s8, 4  ;;  %s54_s9 = int_to_ptr.vmem [resolvable:$true] %s53_s9 }
  0x27   :  { %s3106_s0 = scalar_lea.vmem %s54_s9, 96  ;;  %p3111_p2 = scmp.lt.s32.totalorder %s54_s9, %s54_s9 }
  0x28   :  { %p3107_p1 = scmp.ne.s32.totalorder %s54_s9, %s3106_s0  ;;  %p3112_p3 = scmp.lt.s32.totalorder %s3106_s0, %s3106_s0 }
  0x2a   :  { %p3113_p4 = por %p3112_p3, %p3111_p2 }
  0x2c   :  { %p3114_p5 = pnand %p3113_p4, %p3107_p1 }
  0x2e   :  { %3117 = shalt.err (!%p3114_p5)
}
  0x2f   :  { %56 = dma.hbm_to_vmem [thread:$0]  %s3660_s3, 96, %s54_s9, [#allocation9]  }
  0x30   :  { %3138 = dma.done.wait [#allocation3], 32768  }
  0x31   :  { %3139 = vsyncadd [#allocation3], 4294934528 }
  0x32   :  { %3140 = dma.done.wait [#allocation6], 98320  }
  0x33   :  { %3141 = vsyncadd [#allocation6], 4294868976 }
  0x34   :  { %3142 = dma.done.wait [#allocation9], 96  }
  0x35   :  { %3143 = vsyncadd [#allocation9], 4294967200  ;;  %v3193_v0 = vld [vmem:[#allocation5] ss:$0 sm:$0xff]  ;;  %v1379_v3 = vld [vmem:[#allocation7 + $0x2d0] sm:$0xff]  ;;  %vm2105_vm0 = vcmask 1041409  }
  0x36   :  { %v1380_v1 = vld [vmem:[#allocation7 + $0x2d8] sm:$0xff]  ;;  %443 = vbcast.lane.b32.xlu1 %v3193_v0, 288  ;;  %139 = vbcast.lane.b32.xlu0 %v3193_v0, 256  ;;  %v1571_v4 = vld [vmem:[#allocation7 + $0x8d0] sm:$0xff]  ;;  %v1374_v5 = vld [vmem:[#allocation7 + $0x2a8] sm:$0xff]  ;;  %s3155_s2 = smov [#allocation10]  }
  0x37   :  { %v1572_v2 = vld [vmem:[#allocation7 + $0x8d8] sm:$0xff]  ;;  %2122 = vmatprep.subr.mxu0 %v1380_v1  ;;  %v1566_v6 = vld [vmem:[#allocation7 + $0x8a8] sm:$0xff]  ;;  %v1373_v7 = vld [vmem:[#allocation7 + $0x2a0] sm:$0xff]  ;;  %s3015_s3 = sshll.u32 %s3155_s2, 4  ;;  %s3016_s3 = int_to_ptr.vmem [resolvable:$true] %s3015_s3 }
  0x38   :  { %2193 = vmatprep.subr.mxu1 %v1572_v2  ;;  %2123 = vmatpush1.msra.mxu0 %v1379_v3  ;;  %v1565_v8 = vld [vmem:[#allocation7 + $0x8a0] sm:$0xff]  ;;  %v1368_v9 = vld [vmem:[#allocation7 + $0x278] sm:$0xff]  ;;  %v1367_v11 = vld [vmem:[#allocation7 + $0x270] sm:$0xff]  ;;  %s3118_s12 = scalar_lea.vmem %s3016_s3, 192  ;;  %p3123_p7 = scmp.lt.s32.totalorder %s3016_s3, %s3016_s3 }
  0x39   :  { %2194 = vmatpush1.msra.mxu1 %v1571_v4  ;;  %2124 = vmatprep.subr.mxu0 %v1374_v5  ;;  %v1560_v10 = vld [vmem:[#allocation7 + $0x878] sm:$0xff]  ;;  %v1559_v12 = vld [vmem:[#allocation7 + $0x870] sm:$0xff]  ;;  %v1362_v13 = vld [vmem:[#allocation7 + $0x248] sm:$0xff]  ;;  %p3119_p6 = scmp.ne.s32.totalorder %s3016_s3, %s3118_s12  ;;  %p3124_p8 = scmp.lt.s32.totalorder %s3118_s12, %s3118_s12 }
  0x3a   :  { %2195 = vmatprep.subr.mxu1 %v1566_v6  ;;  %447 = vbcast.lane.b32.xlu1 %v3193_v0, 296  ;;  %v1554_v14 = vld [vmem:[#allocation7 + $0x848] sm:$0xff]  ;;  %v1361_v15 = vld [vmem:[#allocation7 + $0x240] sm:$0xff]  ;;  %v1356_v17 = vld [vmem:[#allocation7 + $0x218] sm:$0xff] }
  0x3b   :  { %143 = vbcast.lane.b32.xlu0 %v3193_v0, 264  ;;  %2125 = vmatpush1.msra.mxu0 %v1373_v7  ;;  %v1553_v16 = vld [vmem:[#allocation7 + $0x840] sm:$0xff]  ;;  %v1548_v18 = vld [vmem:[#allocation7 + $0x818] sm:$0xff]  ;;  %v1355_v19 = vld [vmem:[#allocation7 + $0x210] sm:$0xff]  ;;  %p3125_p9 = por %p3124_p8, %p3123_p7 }
  0x3c   :  { %2196 = vmatpush1.msra.mxu1 %v1565_v8  ;;  %2126 = vmatprep.subr.mxu0 %v1368_v9  ;;  %v1547_v20 = vld [vmem:[#allocation7 + $0x810] sm:$0xff]  ;;  %v1350_v21 = vld [vmem:[#allocation7 + $0x1e8] sm:$0xff]  ;;  %v1349_v23 = vld [vmem:[#allocation7 + $0x1e0] sm:$0xff] }
  0x3d   :  { %2197 = vmatprep.subr.mxu1 %v1560_v10  ;;  %2127 = vmatpush1.msra.mxu0 %v1367_v11  ;;  %v1542_v22 = vld [vmem:[#allocation7 + $0x7e8] sm:$0xff]  ;;  %v1541_v24 = vld [vmem:[#allocation7 + $0x7e0] sm:$0xff]  ;;  %v1344_v25 = vld [vmem:[#allocation7 + $0x1b8] sm:$0xff]  ;;  %p3126_p10 = pnand %p3125_p9, %p3119_p6 }
  0x3e   :  { %2198 = vmatpush1.msra.mxu1 %v1559_v12  ;;  %451 = vbcast.lane.b32.xlu1 %v3193_v0, 304  ;;  %v1536_v26 = vld [vmem:[#allocation7 + $0x7b8] sm:$0xff]  ;;  %v1343_v27 = vld [vmem:[#allocation7 + $0x1b0] sm:$0xff]  ;;  %v1338_v29 = vld [vmem:[#allocation7 + $0x188] sm:$0xff] }
  0x3f   :  { %147 = vbcast.lane.b32.xlu0 %v3193_v0, 272  ;;  %2128 = vmatprep.subr.mxu0 %v1362_v13  ;;  %v1535_v28 = vld [vmem:[#allocation7 + $0x7b0] sm:$0xff]  ;;  %v1530_v30 = vld [vmem:[#allocation7 + $0x788] sm:$0xff]  ;;  %v1337_v31 = vld [vmem:[#allocation7 + $0x180] sm:$0xff] }
  0x40   :  { %2199 = vmatprep.subr.mxu1 %v1554_v14  ;;  %2129 = vmatpush1.msra.mxu0 %v1361_v15  ;;  %v1529_v32 = vld [vmem:[#allocation7 + $0x780] sm:$0xff]  ;;  %v1332_v33 = vld [vmem:[#allocation7 + $0x158] sm:$0xff]  ;;  %v1331_v35 = vld [vmem:[#allocation7 + $0x150] sm:$0xff] }
  0x41   :  { %2200 = vmatpush1.msra.mxu1 %v1553_v16  ;;  %2130 = vmatprep.subr.mxu0 %v1356_v17  ;;  %v1524_v34 = vld [vmem:[#allocation7 + $0x758] sm:$0xff]  ;;  %v1523_v36 = vld [vmem:[#allocation7 + $0x750] sm:$0xff]  ;;  %v1326_v37 = vld [vmem:[#allocation7 + $0x128] sm:$0xff] }
  0x42   :  { %2201 = vmatprep.subr.mxu1 %v1548_v18  ;;  %751 = vbcast.lane.b32.xlu1 %v3193_v0, 328  ;;  %v1518_v38 = vld [vmem:[#allocation7 + $0x728] sm:$0xff]  ;;  %v1325_v39 = vld [vmem:[#allocation7 + $0x120] sm:$0xff]  ;;  %v1320_v41 = vld [vmem:[#allocation7 + $0xf8] sm:$0xff] }
  0x43   :  { %747 = vbcast.lane.b32.xlu0 %v3193_v0, 320  ;;  %2131 = vmatpush1.msra.mxu0 %v1355_v19  ;;  %v1517_v40 = vld [vmem:[#allocation7 + $0x720] sm:$0xff]  ;;  %v1512_v42 = vld [vmem:[#allocation7 + $0x6f8] sm:$0xff]  ;;  %v1319_v43 = vld [vmem:[#allocation7 + $0xf0] sm:$0xff] }
  0x44   :  { %2202 = vmatpush1.msra.mxu1 %v1547_v20  ;;  %2132 = vmatprep.subr.mxu0 %v1350_v21  ;;  %v1511_v44 = vld [vmem:[#allocation7 + $0x6f0] sm:$0xff]  ;;  %v1314_v45 = vld [vmem:[#allocation7 + $0xc8] sm:$0xff]  ;;  %v1313_v47 = vld [vmem:[#allocation7 + $0xc0] sm:$0xff] }
  0x45   :  { %2203 = vmatprep.subr.mxu1 %v1542_v22  ;;  %2133 = vmatpush1.msra.mxu0 %v1349_v23  ;;  %v1506_v46 = vld [vmem:[#allocation7 + $0x6c8] sm:$0xff]  ;;  %v1505_v48 = vld [vmem:[#allocation7 + $0x6c0] sm:$0xff]  ;;  %v1308_v49 = vld [vmem:[#allocation7 + $0x98] sm:$0xff] }
  0x46   :  { %2204 = vmatpush1.msra.mxu1 %v1541_v24  ;;  %455 = vbcast.lane.b32.xlu1 %v3193_v0, 312  ;;  %v1500_v50 = vld [vmem:[#allocation7 + $0x698] sm:$0xff]  ;;  %v1307_v51 = vld [vmem:[#allocation7 + $0x90] sm:$0xff]  ;;  %v1302_v53 = vld [vmem:[#allocation7 + $0x68] sm:$0xff] }
  0x47   :  { %151 = vbcast.lane.b32.xlu0 %v3193_v0, 280  ;;  %2134 = vmatprep.subr.mxu0 %v1344_v25  ;;  %v1499_v52 = vld [vmem:[#allocation7 + $0x690] sm:$0xff]  ;;  %v1494_v54 = vld [vmem:[#allocation7 + $0x668] sm:$0xff]  ;;  %v1301_v55 = vld [vmem:[#allocation7 + $0x60] sm:$0xff] }
  0x48   :  { %2205 = vmatprep.subr.mxu1 %v1536_v26  ;;  %2135 = vmatpush1.msra.mxu0 %v1343_v27  ;;  %v1493_v56 = vld [vmem:[#allocation7 + $0x660] sm:$0xff]  ;;  %v1296_v57 = vld [vmem:[#allocation7 + $0x38] sm:$0xff]  ;;  %v1295_v59 = vld [vmem:[#allocation7 + $0x30] sm:$0xff] }
  0x49   :  { %2206 = vmatpush1.msra.mxu1 %v1535_v28  ;;  %2136 = vmatprep.subr.mxu0 %v1338_v29  ;;  %v1488_v58 = vld [vmem:[#allocation7 + $0x638] sm:$0xff]  ;;  %v1487_v60 = vld [vmem:[#allocation7 + $0x630] sm:$0xff]  ;;  %v1290_v61 = vld [vmem:[#allocation7 + $0x8] sm:$0xff] }
  0x4a   :  { %2207 = vmatprep.subr.mxu1 %v1530_v30  ;;  %1051 = vbcast.lane.b32.xlu1 %v3193_v0, 352  ;;  %v1482_v62 = vld [vmem:[#allocation7 + $0x608] sm:$0xff]  ;;  %v1289_v63 = vld [vmem:[#allocation7] sm:$0xff]  ;;  %v1476_v1 = vld [vmem:[#allocation7 + $0x5d8] sm:$0xff] }
  0x4b   :  { %755 = vbcast.lane.b32.xlu0 %v3193_v0, 336  ;;  %2137 = vmatpush1.msra.mxu0 %v1337_v31  ;;  %v1668_v2 = vld [vmem:[#allocation7 + $0xbd8] sm:$0xff]  ;;  %v1475_v3 = vld [vmem:[#allocation7 + $0x5d0] sm:$0xff]  ;;  %v1470_v5 = vld [vmem:[#allocation7 + $0x5a8] sm:$0xff] }
  0x4c   :  { %2208 = vmatpush1.msra.mxu1 %v1529_v32  ;;  %2138 = vmatprep.subr.mxu0 %v1332_v33  ;;  %v1667_v4 = vld [vmem:[#allocation7 + $0xbd0] sm:$0xff]  ;;  %v1662_v6 = vld [vmem:[#allocation7 + $0xba8] sm:$0xff]  ;;  %v1469_v7 = vld [vmem:[#allocation7 + $0x5a0] sm:$0xff] }
  0x4d   :  { %2209 = vmatprep.subr.mxu1 %v1524_v34  ;;  %2139 = vmatpush1.msra.mxu0 %v1331_v35  ;;  %v1661_v8 = vld [vmem:[#allocation7 + $0xba0] sm:$0xff]  ;;  %v1464_v9 = vld [vmem:[#allocation7 + $0x578] sm:$0xff]  ;;  %v1463_v11 = vld [vmem:[#allocation7 + $0x570] sm:$0xff] }
  0x4e   :  { %2210 = vmatpush1.msra.mxu1 %v1523_v36  ;;  %759 = vbcast.lane.b32.xlu1 %v3193_v0, 344  ;;  %v1656_v10 = vld [vmem:[#allocation7 + $0xb78] sm:$0xff]  ;;  %v1655_v12 = vld [vmem:[#allocation7 + $0xb70] sm:$0xff]  ;;  %v1458_v13 = vld [vmem:[#allocation7 + $0x548] sm:$0xff] }
  0x4f   :  { %1055 = vbcast.lane.b32.xlu0 %v3193_v0, 360  ;;  %2140 = vmatprep.subr.mxu0 %v1326_v37  ;;  %v1650_v14 = vld [vmem:[#allocation7 + $0xb48] sm:$0xff]  ;;  %v1457_v15 = vld [vmem:[#allocation7 + $0x540] sm:$0xff]  ;;  %v1452_v17 = vld [vmem:[#allocation7 + $0x518] sm:$0xff] }
  0x50   :  { %2211 = vmatprep.subr.mxu1 %v1518_v38  ;;  %2141 = vmatpush1.msra.mxu0 %v1325_v39  ;;  %v1649_v16 = vld [vmem:[#allocation7 + $0xb40] sm:$0xff]  ;;  %v1644_v18 = vld [vmem:[#allocation7 + $0xb18] sm:$0xff]  ;;  %v1451_v19 = vld [vmem:[#allocation7 + $0x510] sm:$0xff] }
  0x51   :  { %2212 = vmatpush1.msra.mxu1 %v1517_v40  ;;  %2142 = vmatprep.subr.mxu0 %v1320_v41  ;;  %v1643_v20 = vld [vmem:[#allocation7 + $0xb10] sm:$0xff]  ;;  %v1446_v21 = vld [vmem:[#allocation7 + $0x4e8] sm:$0xff]  ;;  %v1445_v23 = vld [vmem:[#allocation7 + $0x4e0] sm:$0xff] }
  0x52   :  { %2213 = vmatprep.subr.mxu1 %v1512_v42  ;;  %1063 = vbcast.lane.b32.xlu1 %v3193_v0, 376  ;;  %v1638_v22 = vld [vmem:[#allocation7 + $0xae8] sm:$0xff]  ;;  %v1637_v24 = vld [vmem:[#allocation7 + $0xae0] sm:$0xff]  ;;  %v1440_v25 = vld [vmem:[#allocation7 + $0x4b8] sm:$0xff] }
  0x53   :  { %1059 = vbcast.lane.b32.xlu0 %v3193_v0, 368  ;;  %2143 = vmatpush1.msra.mxu0 %v1319_v43  ;;  %v1481_v0 = vld [vmem:[#allocation7 + $0x600] sm:$0xff]  ;;  %v1632_v26 = vld [vmem:[#allocation7 + $0xab8] sm:$0xff]  ;;  %v1439_v27 = vld [vmem:[#allocation7 + $0x4b0] sm:$0xff] }
  0x54   :  { %2214 = vmatpush1.msra.mxu1 %v1511_v44  ;;  %2144 = vmatprep.subr.mxu0 %v1314_v45  ;;  %v1631_v28 = vld [vmem:[#allocation7 + $0xab0] sm:$0xff]  ;;  %v1434_v29 = vld [vmem:[#allocation7 + $0x488] sm:$0xff]  ;;  %v1433_v31 = vld [vmem:[#allocation7 + $0x480] sm:$0xff] }
  0x55   :  { %2215 = vmatprep.subr.mxu1 %v1506_v46  ;;  %2145 = vmatpush1.msra.mxu0 %v1313_v47  ;;  %v1626_v30 = vld [vmem:[#allocation7 + $0xa88] sm:$0xff]  ;;  %v1625_v32 = vld [vmem:[#allocation7 + $0xa80] sm:$0xff]  ;;  %v1428_v33 = vld [vmem:[#allocation7 + $0x458] sm:$0xff] }
  0x56   :  { %2216 = vmatpush1.msra.mxu1 %v1505_v48  ;;  %2146 = vmatprep.subr.mxu0 %v1308_v49  ;;  %v1620_v34 = vld [vmem:[#allocation7 + $0xa58] sm:$0xff]  ;;  %v1427_v35 = vld [vmem:[#allocation7 + $0x450] sm:$0xff]  ;;  %v1422_v37 = vld [vmem:[#allocation7 + $0x428] sm:$0xff] }
  0x57   :  { %2217 = vmatprep.subr.mxu1 %v1500_v50  ;;  %2147 = vmatpush1.msra.mxu0 %v1307_v51  ;;  %v1619_v36 = vld [vmem:[#allocation7 + $0xa50] sm:$0xff]  ;;  %v1614_v38 = vld [vmem:[#allocation7 + $0xa28] sm:$0xff]  ;;  %v1421_v39 = vld [vmem:[#allocation7 + $0x420] sm:$0xff] }
  0x58   :  { %2218 = vmatpush1.msra.mxu1 %v1499_v52  ;;  %2148 = vmatprep.subr.mxu0 %v1302_v53  ;;  %v1613_v40 = vld [vmem:[#allocation7 + $0xa20] sm:$0xff]  ;;  %v1416_v41 = vld [vmem:[#allocation7 + $0x3f8] sm:$0xff]  ;;  %v1415_v43 = vld [vmem:[#allocation7 + $0x3f0] sm:$0xff] }
  0x59   :  { %2219 = vmatprep.subr.mxu1 %v1494_v54  ;;  %2149 = vmatpush1.msra.mxu0 %v1301_v55  ;;  %v1608_v42 = vld [vmem:[#allocation7 + $0x9f8] sm:$0xff]  ;;  %v1607_v44 = vld [vmem:[#allocation7 + $0x9f0] sm:$0xff]  ;;  %v1410_v45 = vld [vmem:[#allocation7 + $0x3c8] sm:$0xff] }
  0x5a   :  { %2220 = vmatpush1.msra.mxu1 %v1493_v56  ;;  %2150 = vmatprep.subr.mxu0 %v1296_v57  ;;  %v1602_v46 = vld [vmem:[#allocation7 + $0x9c8] sm:$0xff]  ;;  %v1409_v47 = vld [vmem:[#allocation7 + $0x3c0] sm:$0xff]  ;;  %v1404_v49 = vld [vmem:[#allocation7 + $0x398] sm:$0xff] }
  0x5b   :  { %2221 = vmatprep.subr.mxu1 %v1488_v58  ;;  %2151 = vmatpush1.msra.mxu0 %v1295_v59  ;;  %v1601_v48 = vld [vmem:[#allocation7 + $0x9c0] sm:$0xff]  ;;  %v1596_v50 = vld [vmem:[#allocation7 + $0x998] sm:$0xff]  ;;  %v1403_v51 = vld [vmem:[#allocation7 + $0x390] sm:$0xff] }
  0x5c   :  { %2222 = vmatpush1.msra.mxu1 %v1487_v60  ;;  %2152 = vmatprep.subr.mxu0 %v1290_v61  ;;  %v1595_v52 = vld [vmem:[#allocation7 + $0x990] sm:$0xff]  ;;  %v1398_v53 = vld [vmem:[#allocation7 + $0x368] sm:$0xff]  ;;  %v1397_v55 = vld [vmem:[#allocation7 + $0x360] sm:$0xff] }
  0x5d   :  { %2223 = vmatprep.subr.mxu1 %v1482_v62  ;;  %2153 = vmatpush1.msra.mxu0 %v1289_v63  ;;  %v1590_v54 = vld [vmem:[#allocation7 + $0x968] sm:$0xff]  ;;  %v1589_v56 = vld [vmem:[#allocation7 + $0x960] sm:$0xff]  ;;  %v1392_v57 = vld [vmem:[#allocation7 + $0x338] sm:$0xff] }
  0x5e   :  { %2224 = vmatpush1.msra.mxu1 %v1481_v0  ;;  %2154 = vmatprep.subr.mxu0 %v1476_v1  ;;  %v1584_v58 = vld [vmem:[#allocation7 + $0x938] sm:$0xff]  ;;  %v1391_v59 = vld [vmem:[#allocation7 + $0x330] sm:$0xff]  ;;  %v1386_v61 = vld [vmem:[#allocation7 + $0x308] sm:$0xff] }
  0x5f   :  { %2225 = vmatprep.subr.mxu1 %v1668_v2  ;;  %2155 = vmatpush2.msra.mxu0 %v1475_v3  ;;  %v1583_v60 = vld [vmem:[#allocation7 + $0x930] sm:$0xff]  ;;  %v1578_v62 = vld [vmem:[#allocation7 + $0x908] sm:$0xff]  ;;  %v1385_v63 = vld [vmem:[#allocation7 + $0x300] sm:$0xff] }
  0x60   :  { %2226 = vmatpush2.msra.mxu1 %v1667_v4  ;;  %2156 = vmatprep.subr.mxu0 %v1470_v5  ;;  %v1577_v0 = vld [vmem:[#allocation7 + $0x900] sm:$0xff]  ;;  %v1764_v1 = vld [vmem:[#allocation7 + $0xed8] sm:$0xff] }
  0x61   :  { %2227 = vmatprep.subr.mxu1 %v1662_v6  ;;  %2157 = vmatpush2.msra.mxu0 %v1469_v7  ;;  %v1956_v2 = vld [vmem:[#allocation7 + $0x14d8] sm:$0xff]  ;;  %v71_v3 = vld [vmem:[#allocation2 + $0x8] sm:$0xff] }
  0x62   :  { %2228 = vmatpush2.msra.mxu1 %v1661_v8  ;;  %2158 = vmatprep.subr.mxu0 %v1464_v9  ;;  %v103_v4 = vld [vmem:[#allocation2 + $0x408] sm:$0xff]  ;;  %v73_v7 = vld [vmem:[#allocation2 + $0x18] sm:$0xff] }
  0x63   :  { %2229 = vmatprep.subr.mxu1 %v1656_v10  ;;  %2159 = vmatpush2.msra.mxu0 %v1463_v11  ;;  %v378_v5 = vld [vmem:[#allocation2 + $0x108] sm:$0xff]  ;;  %v105_v8 = vld [vmem:[#allocation2 + $0x418] sm:$0xff]  ;;  %v70_v11 = vld [vmem:[#allocation2] sm:$0xff] }
  0x64   :  { %2230 = vmatpush2.msra.mxu1 %v1655_v12  ;;  %2160 = vmatprep.subr.mxu0 %v1458_v13  ;;  %v410_v6 = vld [vmem:[#allocation2 + $0x508] sm:$0xff]  ;;  %v380_v9 = vld [vmem:[#allocation2 + $0x118] sm:$0xff]  ;;  %v102_v12 = vld [vmem:[#allocation2 + $0x400] sm:$0xff] }
  0x65   :  { %2231 = vmatprep.subr.mxu1 %v1650_v14  ;;  %2161 = vmatpush2.msra.mxu0 %v1457_v15  ;;  %v412_v10 = vld [vmem:[#allocation2 + $0x518] sm:$0xff]  ;;  %v79_v15 = vld [vmem:[#allocation2 + $0x48] sm:$0xff] }
  0x66   :  { %2232 = vmatpush2.msra.mxu1 %v1649_v16  ;;  %2162 = vmatprep.subr.mxu0 %v1452_v17  ;;  %v111_v16 = vld [vmem:[#allocation2 + $0x448] sm:$0xff]  ;;  %v377_v17 = vld [vmem:[#allocation2 + $0x100] sm:$0xff] }
  0x67   :  { %2233 = vmatprep.subr.mxu1 %v1644_v18  ;;  %2163 = vmatpush2.msra.mxu0 %v1451_v19  ;;  %v409_v18 = vld [vmem:[#allocation2 + $0x500] sm:$0xff]  ;;  %v72_v19 = vld [vmem:[#allocation2 + $0x10] sm:$0xff] }
  0x68   :  { %2234 = vmatpush2.msra.mxu1 %v1643_v20  ;;  %2164 = vmatprep.subr.mxu0 %v1446_v21 }
  0x69   :  { %2235 = vmatprep.subr.mxu1 %v1638_v22  ;;  %2165 = vmatpush2.msra.mxu0 %v1445_v23 }
  0x6a   :  { %2236 = vmatpush2.msra.mxu1 %v1637_v24  ;;  %2166 = vmatprep.subr.mxu0 %v1440_v25  ;;  %v104_v24 = vld [vmem:[#allocation2 + $0x410] sm:$0xff] }
  0x6b   :  { %2237 = vmatprep.subr.mxu1 %v1632_v26  ;;  %2167 = vmatpush2.msra.mxu0 %v1439_v27  ;;  %v379_v25 = vld [vmem:[#allocation2 + $0x110] sm:$0xff]  ;;  %v386_v27 = vld [vmem:[#allocation2 + $0x148] sm:$0xff] }
  0x6c   :  { %2238 = vmatpush2.msra.mxu1 %v1631_v28  ;;  %2168 = vmatprep.subr.mxu0 %v1434_v29  ;;  %v411_v26 = vld [vmem:[#allocation2 + $0x510] sm:$0xff]  ;;  %v418_v28 = vld [vmem:[#allocation2 + $0x548] sm:$0xff]  ;;  %v81_v29 = vld [vmem:[#allocation2 + $0x58] sm:$0xff] }
  0x6d   :  { %2239 = vmatprep.subr.mxu1 %v1626_v30  ;;  %2169 = vmatpush2.msra.mxu0 %v1433_v31 }
  0x6e   :  { %2240 = vmatpush2.msra.mxu1 %v1625_v32  ;;  %2170 = vmatprep.subr.mxu0 %v1428_v33 }
  0x6f   :  { %2241 = vmatprep.subr.mxu1 %v1620_v34  ;;  %2171 = vmatpush2.msra.mxu0 %v1427_v35  ;;  %v113_v34 = vld [vmem:[#allocation2 + $0x458] sm:$0xff] }
  0x70   :  { %2242 = vmatpush2.msra.mxu1 %v1619_v36  ;;  %2172 = vmatprep.subr.mxu0 %v1422_v37  ;;  %v388_v35 = vld [vmem:[#allocation2 + $0x158] sm:$0xff] }
  0x71   :  { %2243 = vmatprep.subr.mxu1 %v1614_v38  ;;  %2173 = vmatpush2.msra.mxu0 %v1421_v39  ;;  %v420_v36 = vld [vmem:[#allocation2 + $0x558] sm:$0xff] }
  0x72   :  { %2244 = vmatpush2.msra.mxu1 %v1613_v40  ;;  %2174 = vmatprep.subr.mxu0 %v1416_v41 }
  0x73   :  { %2245 = vmatprep.subr.mxu1 %v1608_v42  ;;  %2175 = vmatpush2.msra.mxu0 %v1415_v43 }
  0x74   :  { %2246 = vmatpush2.msra.mxu1 %v1607_v44  ;;  %2176 = vmatprep.subr.mxu0 %v1410_v45 }
  0x75   :  { %2247 = vmatprep.subr.mxu1 %v1602_v46  ;;  %2177 = vmatpush2.msra.mxu0 %v1409_v47  ;;  %v87_v47 = vld [vmem:[#allocation2 + $0x88] sm:$0xff] }
  0x76   :  { %2248 = vmatpush2.msra.mxu1 %v1601_v48  ;;  %2178 = vmatprep.subr.mxu0 %v1404_v49  ;;  %v119_v48 = vld [vmem:[#allocation2 + $0x488] sm:$0xff] }
  0x77   :  { %2249 = vmatprep.subr.mxu1 %v1596_v50  ;;  %2179 = vmatpush2.msra.mxu0 %v1403_v51 }
  0x78   :  { %2250 = vmatpush2.msra.mxu1 %v1595_v52  ;;  %2180 = vmatprep.subr.mxu0 %v1398_v53  ;;  %v394_v53 = vld [vmem:[#allocation2 + $0x188] sm:$0xff] }
  0x79   :  { %2251 = vmatprep.subr.mxu1 %v1590_v54  ;;  %2181 = vmatpush2.msra.mxu0 %v1397_v55  ;;  %v426_v54 = vld [vmem:[#allocation2 + $0x588] sm:$0xff]  ;;  %v89_v55 = vld [vmem:[#allocation2 + $0x98] sm:$0xff] }
  0x7a   :  { %2252 = vmatpush2.msra.mxu1 %v1589_v56  ;;  %2182 = vmatprep.subr.mxu0 %v1392_v57 }
  0x7b   :  { %2253 = vmatprep.subr.mxu1 %v1584_v58  ;;  %2183 = vmatpush2.msra.mxu0 %v1391_v59 }
  0x7c   :  { %2254 = vmatpush2.msra.mxu1 %v1583_v60  ;;  %2184 = vmatprep.subr.mxu0 %v1386_v61 }
  0x7d   :  { %2255 = vmatprep.subr.mxu1 %v1578_v62  ;;  %2185 = vmatpush2.msra.mxu0 %v1385_v63 }
  0x7e   :  { %2256 = vmatpush2.msra.mxu1 %v1577_v0  ;;  %2264 = vmatprep.subr.mxu0 %v1764_v1  ;;  %v121_v0 = vld [vmem:[#allocation2 + $0x498] sm:$0xff] }
  0x7f   :  { %2335 = vmatprep.subr.mxu1 %v1956_v2  ;;  %v396_v1 = vld [vmem:[#allocation2 + $0x198] sm:$0xff] }
  0x80   :  { %v428_v2 = vld [vmem:[#allocation2 + $0x598] sm:$0xff] }
  0xa8   :  { %v3211_v13 = vpop.permute.xlu1 %443  ;;  %v3213_v14 = vpop.permute.xlu0 %139 }
  0xa9   :  { %3666 = vst [vmem:[#allocation15_spill] sm:$0xff] %v3211_v13  ;;  %3667 = vst [vmem:[#allocation16_spill] sm:$0xff] %v3213_v14  ;;  %v154_v20 = vmul.f32 %v3213_v14, %v71_v3  ;;  %v186_v21 = vmul.f32 %v3213_v14, %v103_v4  ;;  %v458_v22 = vmul.f32 %v3211_v13, %v378_v5 }
  0xaa   :  { %v490_v23 = vmul.f32 %v3211_v13, %v410_v6  ;;  %v156_v30 = vmul.f32 %v3213_v14, %v73_v7  ;;  %v188_v31 = vmul.f32 %v3213_v14, %v105_v8  ;;  %v460_v32 = vmul.f32 %v3211_v13, %v380_v9 }
  0xab   :  { %v492_v33 = vmul.f32 %v3211_v13, %v412_v10  ;;  %v3224_v37 = vmul.f32 %v3213_v14, %v70_v11  ;;  %v3227_v38 = vmul.f32 %v3213_v14, %v102_v12  ;;  %v3230_v39 = vmul.f32 %v3211_v13, %v377_v17  ;;  %v714_v17 = vld [vmem:[#allocation2 + $0x608] sm:$0xff] }
  0xac   :  { %v3233_v40 = vmul.f32 %v3211_v13, %v409_v18  ;;  %v3235_v41 = vpop.permute.xlu1 %447  ;;  %v3240_v43 = vmul.f32 %v3213_v14, %v72_v19  ;;  %v3243_v44 = vmul.f32 %v3213_v14, %v104_v24  ;;  %v3246_v45 = vmul.f32 %v3211_v13, %v379_v25  ;;  %v722_v18 = vld [vmem:[#allocation2 + $0x648] sm:$0xff] }
  0xad   :  { %v3237_v42 = vpop.permute.xlu0 %143  ;;  %v3249_v46 = vmul.f32 %v3211_v13, %v411_v26  ;;  %v466_v51 = vmul.f32 %v3235_v41, %v386_v27  ;;  %v498_v52 = vmul.f32 %v3235_v41, %v418_v28  ;;  %v468_v58 = vmul.f32 %v3235_v41, %v388_v35  ;;  %v692_v28 = vld [vmem:[#allocation2 + $0x258] sm:$0xff] }
  0xae   :  { %3668 = vst [vmem:[#allocation17_spill] sm:$0xff] %v3240_v43  ;;  %3669 = vst [vmem:[#allocation18_spill] sm:$0xff] %v3243_v44  ;;  %v162_v49 = vmul.f32 %v3237_v42, %v79_v15  ;;  %v194_v50 = vmul.f32 %v3237_v42, %v111_v16  ;;  %v164_v56 = vmul.f32 %v3237_v42, %v81_v29  ;;  %v682_v15 = vld [vmem:[#allocation2 + $0x208] sm:$0xff]  ;;  %v716_v29 = vld [vmem:[#allocation2 + $0x618] sm:$0xff] }
  0xaf   :  { %3670 = vst [vmem:[#allocation19_spill] sm:$0xff] %v3246_v45  ;;  %3671 = vst [vmem:[#allocation20_spill] sm:$0xff] %v3249_v46  ;;  %v196_v57 = vmul.f32 %v3237_v42, %v113_v34  ;;  %v500_v59 = vmul.f32 %v3235_v41, %v420_v36  ;;  %v530_v62 = vadd.f32 %v466_v51, %v458_v22  ;;  %v690_v16 = vld [vmem:[#allocation2 + $0x248] sm:$0xff] }
  0xb0   :  { %v226_v60 = vadd.f32 %v162_v49, %v154_v20  ;;  %v298_v61 = vadd.f32 %v194_v50, %v186_v21  ;;  %v602_v63 = vadd.f32 %v498_v52, %v490_v23  ;;  %v3259_v3 = vpop.permute.xlu1 %451  ;;  %v244_v5 = vadd.f32 %v164_v56, %v156_v30  ;;  %v684_v23 = vld [vmem:[#allocation2 + $0x218] sm:$0xff]  ;;  %v86_v49 = vld [vmem:[#allocation2 + $0x80] sm:$0xff]  ;;  %v127_v50 = vld [vmem:[#allocation2 + $0x4c8] sm:$0xff] }
  0xb1   :  { %v3261_v4 = vpop.permute.xlu0 %147  ;;  %v316_v6 = vadd.f32 %v196_v57, %v188_v31  ;;  %v548_v7 = vadd.f32 %v468_v58, %v460_v32  ;;  %v620_v8 = vadd.f32 %v500_v59, %v492_v33  ;;  %v474_v11 = vmul.f32 %v3259_v3, %v394_v53  ;;  %v724_v30 = vld [vmem:[#allocation2 + $0x658] sm:$0xff]  ;;  %v95_v33 = vld [vmem:[#allocation2 + $0xc8] sm:$0xff]  ;;  %v118_v56 = vld [vmem:[#allocation2 + $0x480] sm:$0xff] }
  0xb2   :  { %v170_v9 = vmul.f32 %v3261_v4, %v87_v47  ;;  %v202_v10 = vmul.f32 %v3261_v4, %v119_v48  ;;  %v506_v12 = vmul.f32 %v3259_v3, %v426_v54  ;;  %v172_v19 = vmul.f32 %v3261_v4, %v89_v55  ;;  %v78_v48 = vld [vmem:[#allocation2 + $0x40] sm:$0xff]  ;;  %v402_v57 = vld [vmem:[#allocation2 + $0x1c8] sm:$0xff]  ;;  %v97_v59 = vld [vmem:[#allocation2 + $0xd8] sm:$0xff] }
  0xb3   :  { %v204_v20 = vmul.f32 %v3261_v4, %v121_v0  ;;  %v476_v21 = vmul.f32 %v3259_v3, %v396_v1  ;;  %v508_v22 = vmul.f32 %v3259_v3, %v428_v2  ;;  %v531_v26 = vadd.f32 %v530_v62, %v474_v11  ;;  %v110_v55 = vld [vmem:[#allocation2 + $0x440] sm:$0xff]  ;;  %v434_v58 = vld [vmem:[#allocation2 + $0x5c8] sm:$0xff]  ;;  %v129_v2 = vld [vmem:[#allocation2 + $0x4d8] sm:$0xff] }
  0xb4   :  { %v227_v24 = vadd.f32 %v226_v60, %v170_v9  ;;  %v299_v25 = vadd.f32 %v298_v61, %v202_v10  ;;  %v603_v27 = vadd.f32 %v602_v63, %v506_v12  ;;  %v3271_v31 = vpop.permute.xlu1 %751  ;;  %v245_v34 = vadd.f32 %v244_v5, %v172_v19  ;;  %v404_v5 = vld [vmem:[#allocation2 + $0x1d8] sm:$0xff]  ;;  %v1034_v45 = vld [vmem:[#allocation2 + $0x788] sm:$0xff] }
  0xb5   :  { %v3273_v32 = vpop.permute.xlu0 %747  ;;  %v317_v35 = vadd.f32 %v316_v6, %v204_v20  ;;  %v549_v36 = vadd.f32 %v548_v7, %v476_v21  ;;  %v621_v47 = vadd.f32 %v620_v8, %v508_v22  ;;  %v770_v52 = vmul.f32 %v3271_v31, %v690_v16  ;;  %v436_v6 = vld [vmem:[#allocation2 + $0x5d8] sm:$0xff]  ;;  %v698_v21 = vld [vmem:[#allocation2 + $0x288] sm:$0xff] }
  0xb6   :  { %v762_v51 = vmul.f32 %v3273_v32, %v682_v15  ;;  %v794_v53 = vmul.f32 %v3273_v32, %v714_v17  ;;  %v802_v54 = vmul.f32 %v3271_v31, %v722_v18  ;;  %v764_v60 = vmul.f32 %v3273_v32, %v684_v23 }
  0xb7   :  { %v772_v61 = vmul.f32 %v3271_v31, %v692_v28  ;;  %v796_v62 = vmul.f32 %v3273_v32, %v716_v29  ;;  %v804_v63 = vmul.f32 %v3271_v31, %v724_v30  ;;  %v3284_v7 = vmul.f32 %v3237_v42, %v78_v48 }
  0xb8   :  { %v834_v0 = vadd.f32 %v770_v52, %v762_v51  ;;  %v906_v1 = vadd.f32 %v802_v54, %v794_v53  ;;  %v3287_v8 = vmul.f32 %v3261_v4, %v86_v49  ;;  %v3289_v9 = vpop.permute.xlu1 %455  ;;  %v3298_v15 = vmul.f32 %v3237_v42, %v110_v55  ;;  %v986_v52 = vld [vmem:[#allocation2 + $0x308] sm:$0xff] }
  0xb9   :  { %v3291_v10 = vpop.permute.xlu0 %151  ;;  %v3293_v11 = vadd.f32 %v772_v61, %v764_v60  ;;  %v3295_v12 = vadd.f32 %v804_v63, %v796_v62  ;;  %v3301_v16 = vmul.f32 %v3261_v4, %v118_v56  ;;  %v482_v19 = vmul.f32 %v3289_v9, %v402_v57 }
  0xba   :  { %v178_v17 = vmul.f32 %v3291_v10, %v95_v33  ;;  %v210_v18 = vmul.f32 %v3291_v10, %v127_v50  ;;  %v514_v20 = vmul.f32 %v3289_v9, %v434_v58  ;;  %v180_v22 = vmul.f32 %v3291_v10, %v97_v59  ;;  %v730_v33 = vld [vmem:[#allocation2 + $0x688] sm:$0xff] }
  0xbb   :  { %v212_v23 = vmul.f32 %v3291_v10, %v129_v2  ;;  %v484_v28 = vmul.f32 %v3289_v9, %v404_v5  ;;  %v516_v29 = vmul.f32 %v3289_v9, %v436_v6  ;;  %v532_v49 = vadd.f32 %v531_v26, %v482_v19  ;;  %v1018_v50 = vld [vmem:[#allocation2 + $0x708] sm:$0xff] }
  0xbc   :  { %v228_v30 = vadd.f32 %v227_v24, %v178_v17  ;;  %v300_v48 = vadd.f32 %v299_v25, %v210_v18  ;;  %v604_v51 = vadd.f32 %v603_v27, %v514_v20  ;;  %v3311_v53 = vpop.permute.xlu1 %1051  ;;  %v3315_v55 = vadd.f32 %v245_v34, %v180_v22  ;;  %v706_v27 = vld [vmem:[#allocation2 + $0x2c8] sm:$0xff] }
  0xbd   :  { %v3313_v54 = vpop.permute.xlu0 %755  ;;  %v3317_v56 = vadd.f32 %v317_v35, %v212_v23  ;;  %v3319_v57 = vadd.f32 %v549_v36, %v484_v28  ;;  %v3321_v58 = vadd.f32 %v621_v47, %v516_v29  ;;  %v533_v25 = vrot.slane %v532_v49, 4  ;;  %v738_v5 = vld [vmem:[#allocation2 + $0x6c8] sm:$0xff] }
  0xbe   :  { %v229_v59 = vrot.slane %v228_v30, 4  ;;  %v301_v24 = vrot.slane %v300_v48, 4  ;;  %v605_v26 = vrot.slane %v604_v51, 4  ;;  %v778_v60 = vmul.f32 %v3313_v54, %v698_v21  ;;  %v994_v47 = vld [vmem:[#allocation2 + $0x348] sm:$0xff] }
  0xbf   :  { %v810_v61 = vmul.f32 %v3313_v54, %v730_v33  ;;  %v1066_v62 = vmul.f32 %v3311_v53, %v986_v52  ;;  %v1098_v34 = vmul.f32 %v3311_v53, %v1018_v50  ;;  %v534_v2 = vadd.f32 %v533_v25, %v532_v49  ;;  %v1026_v6 = vld [vmem:[#allocation2 + $0x748] sm:$0xff] }
  0xc0   :  { %v230_v63 = vadd.f32 %v229_v59, %v228_v30  ;;  %v302_v35 = vadd.f32 %v301_v24, %v300_v48  ;;  %v606_v36 = vadd.f32 %v605_v26, %v604_v51  ;;  %v3327_v17 = vpop.permute.xlu1 %759  ;;  %v835_v19 = vadd.f32 %v834_v0, %v778_v60  ;;  %v1002_v59 = vld [vmem:[#allocation2 + $0x388] sm:$0xff] }
  0xc1   :  { %v3329_v18 = vpop.permute.xlu0 %1055  ;;  %v907_v20 = vadd.f32 %v906_v1, %v810_v61  ;;  %v247_v21 = vrot.slane %v3315_v55, 4  ;;  %v319_v22 = vrot.slane %v3317_v56, 4  ;;  %v535_v29 = vrot.slane %v534_v2, 2  ;;  %v1010_v24 = vld [vmem:[#allocation2 + $0x3c8] sm:$0xff] }
  0xc2   :  { %v231_v23 = vrot.slane %v230_v63, 2  ;;  %v303_v28 = vrot.slane %v302_v35, 2  ;;  %v607_v30 = vrot.slane %v606_v36, 2  ;;  %v786_v48 = vmul.f32 %v3327_v17, %v706_v27 }
  0xc3   :  { %v818_v49 = vmul.f32 %v3327_v17, %v738_v5  ;;  %v1074_v51 = vmul.f32 %v3329_v18, %v994_v47  ;;  %v1106_v33 = vmul.f32 %v3329_v18, %v1026_v6  ;;  %v536_v0 = vadd.f32 %v535_v29, %v534_v2  ;;  %v1042_v6 = vld [vmem:[#allocation2 + $0x7c8] sm:$0xff] }
  0xc4   :  { %v232_v52 = vadd.f32 %v231_v23, %v230_v63  ;;  %v304_v50 = vadd.f32 %v303_v28, %v302_v35  ;;  %v608_v1 = vadd.f32 %v607_v30, %v606_v36  ;;  %v3339_v26 = vpop.permute.xlu1 %1063  ;;  %v836_v60 = vadd.f32 %v835_v19, %v786_v48 }
  0xc5   :  { %v3337_v25 = vpop.permute.xlu0 %1059  ;;  %v908_v61 = vadd.f32 %v907_v20, %v818_v49  ;;  %v1138_v13 = vadd.f32 %v1074_v51, %v1066_v62  ;;  %v1210_v27 = vadd.f32 %v1106_v33, %v1098_v34  ;;  %v537_v46 = vrot.slane %v536_v0, 1 }
  0xc6   :  { %v233_v14 = vrot.slane %v232_v52, 1  ;;  %v305_v5 = vrot.slane %v304_v50, 1  ;;  %v609_v47 = vrot.slane %v608_v1, 1  ;;  %v837_v63 = vrot.slane %v836_v60, 4 }
  0xc7   :  { %v909_v35 = vrot.slane %v908_v61, 4  ;;  %v1082_v2 = vmul.f32 %v3337_v25, %v1002_v59  ;;  %v1090_v36 = vmul.f32 %v3339_v26, %v1010_v24  ;;  %v538_v29 = vadd.f32 %v537_v46, %v536_v0 }
  0xc8   :  { %v234_v23 = vadd.f32 %v233_v14, %v232_v52  ;;  %v306_v28 = vadd.f32 %v305_v5, %v304_v50  ;;  %v610_v30 = vadd.f32 %v609_v47, %v608_v1  ;;  %v838_v19 = vadd.f32 %v837_v63, %v836_v60 }
  0xc9   :  { %v910_v20 = vadd.f32 %v909_v35, %v908_v61  ;;  %v1114_v62 = vmul.f32 %v3337_v25, %v1034_v45  ;;  %v1122_v34 = vmul.f32 %v3339_v26, %v1042_v6  ;;  %v1139_v51 = vadd.f32 %v1138_v13, %v1082_v2 }
  0xca   :  { %v666_v48 = vadd.f32 %v538_v29, %v234_v23  ;;  %v674_v49 = vadd.f32 %v610_v30, %v306_v28  ;;  %v248_v33 = vadd.f32 %v247_v21, %v3315_v55  ;;  %v839_v44 = vrot.slane %v838_v19, 2  ;;  %v700_v23 = vld [vmem:[#allocation2 + $0x298] sm:$0xff] }
  0xcb   :  { %v911_v43 = vrot.slane %v910_v20, 2  ;;  %v1211_v59 = vadd.f32 %v1210_v27, %v1114_v62  ;;  %v320_v24 = vadd.f32 %v319_v22, %v3317_v56  ;;  %v1140_v14 = vadd.f32 %v1139_v51, %v1090_v36 }
  0xcc   :  { %v249_v52 = vrot.slane %v248_v33, 2  ;;  %v551_v46 = vrot.slane %v3319_v57, 4  ;;  %v623_v50 = vrot.slane %v3321_v58, 4  ;;  %v840_v0 = vadd.f32 %v839_v44, %v838_v19  ;;  %v708_v19 = vld [vmem:[#allocation2 + $0x2d8] sm:$0xff] }
  0xcd   :  { %v912_v45 = vadd.f32 %v911_v43, %v910_v20  ;;  %v1212_v1 = vadd.f32 %v1211_v59, %v1122_v34  ;;  %v321_v60 = vrot.slane %v320_v24, 2  ;;  %v1141_v61 = vrot.slane %v1140_v14, 4  ;;  %v740_v20 = vld [vmem:[#allocation2 + $0x6d8] sm:$0xff] }
  0xce   :  { %v250_v5 = vadd.f32 %v249_v52, %v248_v33  ;;  %v552_v13 = vadd.f32 %v551_v46, %v3319_v57  ;;  %v624_v55 = vadd.f32 %v623_v50, %v3321_v58  ;;  %v841_v21 = vrot.slane %v840_v0, 1  ;;  %v732_v58 = vld [vmem:[#allocation2 + $0x698] sm:$0xff] }
  0xcf   :  { %v913_v27 = vrot.slane %v912_v45, 1  ;;  %v1213_v47 = vrot.slane %v1212_v1, 4  ;;  %v322_v56 = vadd.f32 %v321_v60, %v320_v24  ;;  %v1142_v22 = vadd.f32 %v1141_v61, %v1140_v14  ;;  %v988_v46 = vld [vmem:[#allocation2 + $0x318] sm:$0xff] }
  0xd0   :  { %v251_v6 = vrot.slane %v250_v5, 1  ;;  %v553_v63 = vrot.slane %v552_v13, 2  ;;  %v625_v35 = vrot.slane %v624_v55, 2  ;;  %v842_v2 = vadd.f32 %v841_v21, %v840_v0  ;;  %v996_v50 = vld [vmem:[#allocation2 + $0x358] sm:$0xff] }
  0xd1   :  { %v914_v36 = vadd.f32 %v913_v27, %v912_v45  ;;  %v1214_v44 = vadd.f32 %v1213_v47, %v1212_v1  ;;  %v323_v43 = vrot.slane %v322_v56, 1  ;;  %v1143_v28 = vrot.slane %v1142_v22, 2  ;;  %v1020_v47 = vld [vmem:[#allocation2 + $0x718] sm:$0xff] }
  0xd2   :  { %v252_v29 = vadd.f32 %v251_v6, %v250_v5  ;;  %v554_v30 = vadd.f32 %v553_v63, %v552_v13  ;;  %v626_v57 = vadd.f32 %v625_v35, %v624_v55  ;;  %v970_v62 = vadd.f32 %v842_v2, %v666_v48  ;;  %v1004_v13 = vld [vmem:[#allocation2 + $0x398] sm:$0xff] }
  0xd3   :  { %v978_v34 = vadd.f32 %v914_v36, %v674_v49  ;;  %v1215_v51 = vrot.slane %v1214_v44, 2  ;;  %v324_v33 = vadd.f32 %v323_v43, %v322_v56  ;;  %v1144_v59 = vadd.f32 %v1143_v28, %v1142_v22  ;;  %v1012_v55 = vld [vmem:[#allocation2 + $0x3d8] sm:$0xff] }
  0xd4   :  { %v555_v24 = vrot.slane %v554_v30, 1  ;;  %v627_v14 = vrot.slane %v626_v57, 1  ;;  %v780_v52 = vmul.f32 %v3313_v54, %v700_v23  ;;  %v788_v45 = vmul.f32 %v3327_v17, %v708_v19  ;;  %v1028_v56 = vld [vmem:[#allocation2 + $0x758] sm:$0xff] }
  0xd5   :  { %v1216_v0 = vadd.f32 %v1215_v51, %v1214_v44  ;;  %v812_v1 = vmul.f32 %v3313_v54, %v732_v58  ;;  %v820_v60 = vmul.f32 %v3327_v17, %v740_v20  ;;  %v1145_v61 = vrot.slane %v1144_v59, 1  ;;  %v1036_v44 = vld [vmem:[#allocation2 + $0x798] sm:$0xff] }
  0xd6   :  { %v556_v5 = vadd.f32 %v555_v24, %v554_v30  ;;  %v628_v48 = vadd.f32 %v627_v14, %v626_v57  ;;  %v853_v49 = vadd.f32 %v3293_v11, %v780_v52  ;;  %v1068_v22 = vmul.f32 %v3311_v53, %v988_v46  ;;  %v1044_v43 = vld [vmem:[#allocation2 + $0x7d8] sm:$0xff]  ;;  %v94_v30 = vld [vmem:[#allocation2 + $0xc0] sm:$0xff] }
  0xd7   :  { %v1217_v21 = vrot.slane %v1216_v0, 1  ;;  %v925_v27 = vadd.f32 %v3295_v12, %v812_v1  ;;  %v1076_v6 = vmul.f32 %v3329_v18, %v996_v50  ;;  %v1146_v63 = vadd.f32 %v1145_v61, %v1144_v59 }
  0xd8   :  { %v3359_v35 = vadd.f32 %v556_v5, %v252_v29  ;;  %v3361_v2 = vadd.f32 %v628_v48, %v324_v33  ;;  %v854_v36 = vadd.f32 %v853_v49, %v788_v45  ;;  %v1084_v28 = vmul.f32 %v3337_v25, %v1004_v13  ;;  %v126_v29 = vld [vmem:[#allocation2 + $0x4c0] sm:$0xff] }
  0xd9   :  { %v1218_v11 = vadd.f32 %v1217_v21, %v1216_v0  ;;  %v926_v23 = vadd.f32 %v925_v27, %v820_v60  ;;  %v1092_v12 = vmul.f32 %v3339_v26, %v1012_v55  ;;  %v1274_v57 = vadd.f32 %v1146_v63, %v970_v62  ;;  %v385_v0 = vld [vmem:[#allocation2 + $0x140] sm:$0xff] }
  0xda   :  { %v855_v19 = vrot.slane %v854_v36, 4  ;;  %v1100_v58 = vmul.f32 %v3311_v53, %v1020_v47  ;;  %v1108_v20 = vmul.f32 %v3329_v18, %v1028_v56  ;;  %v1116_v59 = vmul.f32 %v3337_v25, %v1036_v44  ;;  %v393_v45 = vld [vmem:[#allocation2 + $0x180] sm:$0xff] }
  0xdb   :  { %v1282_v51 = vadd.f32 %v1218_v11, %v978_v34  ;;  %v927_v33 = vrot.slane %v926_v23, 4  ;;  %v1124_v24 = vmul.f32 %v3339_v26, %v1044_v43  ;;  %v1156_v52 = vadd.f32 %v1076_v6, %v1068_v22  ;;  %v401_v13 = vld [vmem:[#allocation2 + $0x1c0] sm:$0xff] }
  0xdc   :  { %v856_v14 = vadd.f32 %v855_v19, %v854_v36  ;;  %v1228_v46 = vadd.f32 %v1108_v20, %v1100_v58  ;;  %v177_v50 = vmul.f32 %v3291_v10, %v94_v30  ;;  %v209_v60 = vmul.f32 %v3291_v10, %v126_v29  ;;  %v417_v55 = vld [vmem:[#allocation2 + $0x540] sm:$0xff] }
  0xdd   :  { %v3371_v62 = vsel %vm2105_vm0, %v1282_v51, %v1274_v57  ;;  %v928_v1 = vadd.f32 %v927_v33, %v926_v23  ;;  %v217_v34 = vadd.f32 %v3284_v7, %v3224_v37  ;;  %v1157_v5 = vadd.f32 %v1156_v52, %v1084_v28  ;;  %v425_v63 = vld [vmem:[#allocation2 + $0x580] sm:$0xff] }
  0xde   :  { %2186 = vmatprep.mubr.f32.mxu0 %v3371_v62  ;;  %v857_v61 = vrot.slane %v856_v14, 2  ;;  %v1229_v48 = vadd.f32 %v1228_v46, %v1116_v59  ;;  %v289_v49 = vadd.f32 %v3298_v15, %v3227_v38  ;;  %v465_v47 = vmul.f32 %v3235_v41, %v385_v0  ;;  %v433_v36 = vld [vmem:[#allocation2 + $0x5c0] sm:$0xff] }
  0xdf   :  { %v929_v21 = vrot.slane %v928_v1, 2  ;;  %v218_v27 = vadd.f32 %v217_v34, %v3287_v8  ;;  %v473_v56 = vmul.f32 %v3259_v3, %v393_v45  ;;  %v1158_v6 = vadd.f32 %v1157_v5, %v1092_v12  ;;  %v689_v45 = vld [vmem:[#allocation2 + $0x240] sm:$0xff] }
  0xe0   :  { %v858_v22 = vadd.f32 %v857_v61, %v856_v14  ;;  %v1230_v37 = vadd.f32 %v1229_v48, %v1124_v24  ;;  %v290_v7 = vadd.f32 %v289_v49, %v3301_v16  ;;  %v481_v38 = vmul.f32 %v3289_v9, %v401_v13  ;;  %v681_v14 = vld [vmem:[#allocation2 + $0x200] sm:$0xff] }
  0xe1   :  { %v930_v44 = vadd.f32 %v929_v21, %v928_v1  ;;  %v219_v43 = vadd.f32 %v218_v27, %v177_v50  ;;  %v497_v15 = vmul.f32 %v3235_v41, %v417_v55  ;;  %v1159_v23 = vrot.slane %v1158_v6, 4  ;;  %v697_v5 = vld [vmem:[#allocation2 + $0x280] sm:$0xff] }
  0xe2   :  { %v859_v11 = vrot.slane %v858_v22, 1  ;;  %v1231_v8 = vrot.slane %v1230_v37, 4  ;;  %v291_v28 = vadd.f32 %v290_v7, %v209_v60  ;;  %v505_v19 = vmul.f32 %v3259_v3, %v425_v63  ;;  %v705_v55 = vld [vmem:[#allocation2 + $0x2c0] sm:$0xff] }
  0xe3   :  { %v931_v30 = vrot.slane %v930_v44, 1  ;;  %v220_v57 = vrot.slane %v219_v43, 4  ;;  %v513_v12 = vmul.f32 %v3289_v9, %v433_v36  ;;  %v1160_v16 = vadd.f32 %v1159_v23, %v1158_v6 }
  0xe4   :  { %v860_v58 = vadd.f32 %v859_v11, %v858_v22  ;;  %v1232_v20 = vadd.f32 %v1231_v8, %v1230_v37  ;;  %v292_v29 = vrot.slane %v291_v28, 4  ;;  %v521_v59 = vadd.f32 %v465_v47, %v3230_v39 }
  0xe5   :  { %v932_v51 = vadd.f32 %v931_v30, %v930_v44  ;;  %v221_v33 = vadd.f32 %v220_v57, %v219_v43  ;;  %v593_v24 = vadd.f32 %v497_v15, %v3233_v40  ;;  %v1161_v46 = vrot.slane %v1160_v16, 2  ;;  %v729_v44 = vld [vmem:[#allocation2 + $0x680] sm:$0xff] }
  0xe6   :  { %v972_v52 = vadd.f32 %v860_v58, %v3359_v35  ;;  %v1233_v50 = vrot.slane %v1232_v20, 2  ;;  %v293_v0 = vadd.f32 %v292_v29, %v291_v28  ;;  %v522_v34 = vadd.f32 %v521_v59, %v473_v56  ;;  %v713_v35 = vld [vmem:[#allocation2 + $0x600] sm:$0xff] }
  0xe7   :  { %v980_v1 = vadd.f32 %v932_v51, %v3361_v2  ;;  %v222_v60 = vrot.slane %v221_v33, 2  ;;  %v594_v61 = vadd.f32 %v593_v24, %v505_v19  ;;  %v1162_v48 = vadd.f32 %v1161_v46, %v1160_v16  ;;  %v721_v2 = vld [vmem:[#allocation2 + $0x640] sm:$0xff] }
  0xe8   :  { %v1234_v49 = vadd.f32 %v1233_v50, %v1232_v20  ;;  %v294_v13 = vrot.slane %v293_v0, 2  ;;  %v761_v39 = vmul.f32 %v3273_v32, %v681_v14  ;;  %v523_v21 = vadd.f32 %v522_v34, %v481_v38  ;;  %v737_v38 = vld [vmem:[#allocation2 + $0x6c0] sm:$0xff] }
  0xe9   :  { %v223_v40 = vadd.f32 %v222_v60, %v221_v33  ;;  %v595_v27 = vadd.f32 %v594_v61, %v513_v12  ;;  %v769_v47 = vmul.f32 %v3271_v31, %v689_v45  ;;  %v1163_v22 = vrot.slane %v1162_v48, 1  ;;  %v985_v12 = vld [vmem:[#allocation2 + $0x300] sm:$0xff] }
  0xea   :  { %v1235_v6 = vrot.slane %v1234_v49, 1  ;;  %v295_v37 = vadd.f32 %v294_v13, %v293_v0  ;;  %v777_v56 = vmul.f32 %v3313_v54, %v697_v5  ;;  %v524_v63 = vrot.slane %v523_v21, 4  ;;  %v993_v58 = vld [vmem:[#allocation2 + $0x340] sm:$0xff] }
  0xeb   :  { %v224_v7 = vrot.slane %v223_v40, 1  ;;  %v596_v36 = vrot.slane %v595_v27, 4  ;;  %v785_v43 = vmul.f32 %v3327_v17, %v705_v55  ;;  %v1164_v15 = vadd.f32 %v1163_v22, %v1162_v48  ;;  %v1001_v33 = vld [vmem:[#allocation2 + $0x380] sm:$0xff] }
  0xec   :  { %v1236_v11 = vadd.f32 %v1235_v6, %v1234_v49  ;;  %v296_v23 = vrot.slane %v295_v37, 1  ;;  %v793_v8 = vmul.f32 %v3273_v32, %v713_v35  ;;  %v525_v30 = vadd.f32 %v524_v63, %v523_v21  ;;  %v1009_v50 = vld [vmem:[#allocation2 + $0x3c0] sm:$0xff]  ;;  %v80_v35 = vld [vmem:[#allocation2 + $0x50] sm:$0xff] }
  0xed   :  { %v225_v28 = vadd.f32 %v224_v7, %v223_v40  ;;  %v597_v57 = vadd.f32 %v596_v36, %v595_v27  ;;  %v801_v19 = vmul.f32 %v3271_v31, %v721_v2  ;;  %v1276_v16 = vadd.f32 %v1164_v15, %v972_v52  ;;  %v1017_v0 = vld [vmem:[#allocation2 + $0x700] sm:$0xff]  ;;  %v88_v2 = vld [vmem:[#allocation2 + $0x90] sm:$0xff] }
  0xee   :  { %v1284_v20 = vadd.f32 %v1236_v11, %v980_v1  ;;  %v297_v29 = vadd.f32 %v296_v23, %v295_v37  ;;  %v809_v51 = vmul.f32 %v3313_v54, %v729_v44  ;;  %v526_v59 = vrot.slane %v525_v30, 2  ;;  %v1025_v45 = vld [vmem:[#allocation2 + $0x740] sm:$0xff]  ;;  %v96_v44 = vld [vmem:[#allocation2 + $0xd0] sm:$0xff] }
  0xef   :  { %v598_v24 = vrot.slane %v597_v57, 2  ;;  %v817_v14 = vmul.f32 %v3327_v17, %v737_v38  ;;  %v825_v46 = vadd.f32 %v769_v47, %v761_v39  ;;  %v897_v34 = vadd.f32 %v801_v19, %v793_v8  ;;  %v1033_v61 = vld [vmem:[#allocation2 + $0x780] sm:$0xff]  ;;  %v112_v38 = vld [vmem:[#allocation2 + $0x450] sm:$0xff] }
  0xf0   :  { %v3400_v60 = vsel %vm2105_vm0, %v1284_v20, %v1276_v16  ;;  %v1065_v52 = vmul.f32 %v3311_v53, %v985_v12  ;;  %v1073_v1 = vmul.f32 %v3329_v18, %v993_v58  ;;  %v527_v5 = vadd.f32 %v526_v59, %v525_v30  ;;  %v1041_v13 = vld [vmem:[#allocation2 + $0x7c0] sm:$0xff]  ;;  %v120_v12 = vld [vmem:[#allocation2 + $0x490] sm:$0xff] }
  0xf1   :  { %2257 = vmatprep.mubr.f32.mxu1 %v3400_v60  ;;  %v599_v48 = vadd.f32 %v598_v24, %v597_v57  ;;  %v826_v49 = vadd.f32 %v825_v46, %v777_v56  ;;  %v1081_v55 = vmul.f32 %v3337_v25, %v1001_v33  ;;  %v898_v39 = vadd.f32 %v897_v34, %v809_v51 }
  0xf2   :  { %v1089_v40 = vmul.f32 %v3339_v26, %v1009_v50  ;;  %v1097_v21 = vmul.f32 %v3311_v53, %v1017_v0  ;;  %v1105_v27 = vmul.f32 %v3329_v18, %v1025_v45  ;;  %v528_v47 = vrot.slane %v527_v5, 1  ;;  %v387_v50 = vld [vmem:[#allocation2 + $0x150] sm:$0xff] }
  0xf3   :  { %v600_v22 = vrot.slane %v599_v48, 1  ;;  %v827_v6 = vadd.f32 %v826_v49, %v785_v43  ;;  %v1113_v37 = vmul.f32 %v3337_v25, %v1033_v61  ;;  %v899_v7 = vadd.f32 %v898_v39, %v817_v14  ;;  %v128_v43 = vld [vmem:[#allocation2 + $0x4d0] sm:$0xff] }
  0xf4   :  { %v1121_v56 = vmul.f32 %v3339_v26, %v1041_v13  ;;  %v1129_v63 = vadd.f32 %v1073_v1, %v1065_v52  ;;  %v1201_v36 = vadd.f32 %v1105_v27, %v1097_v21  ;;  %v529_v15 = vadd.f32 %v528_v47, %v527_v5  ;;  %v395_v0 = vld [vmem:[#allocation2 + $0x190] sm:$0xff]  ;;  %v3672_v52 = vld [vmem:[#allocation17_spill] sm:$0xff] }
  0xf5   :  { %v601_v11 = vadd.f32 %v600_v22, %v599_v48  ;;  %v828_v23 = vrot.slane %v827_v6, 4  ;;  %v163_v8 = vmul.f32 %v3237_v42, %v80_v35  ;;  %v900_v30 = vrot.slane %v899_v7, 4  ;;  %v3673_v48 = vld [vmem:[#allocation18_spill] sm:$0xff] }
  0xf6   :  { %v1130_v57 = vadd.f32 %v1129_v63, %v1081_v55  ;;  %v1202_v19 = vadd.f32 %v1201_v36, %v1113_v37  ;;  %v171_v58 = vmul.f32 %v3261_v4, %v88_v2  ;;  %v665_v16 = vadd.f32 %v529_v15, %v225_v28  ;;  %v403_v13 = vld [vmem:[#allocation2 + $0x1d0] sm:$0xff] }
  0xf7   :  { %v673_v20 = vadd.f32 %v601_v11, %v297_v29  ;;  %v829_v51 = vadd.f32 %v828_v23, %v827_v6  ;;  %v179_v33 = vmul.f32 %v3291_v10, %v96_v44  ;;  %v901_v59 = vadd.f32 %v900_v30, %v899_v7  ;;  %v419_v55 = vld [vmem:[#allocation2 + $0x550] sm:$0xff] }
  0xf8   :  { %v1131_v24 = vadd.f32 %v1130_v57, %v1089_v40  ;;  %v1203_v14 = vadd.f32 %v1202_v19, %v1121_v56  ;;  %v195_v46 = vmul.f32 %v3237_v42, %v112_v38  ;;  %v203_v34 = vmul.f32 %v3261_v4, %v120_v12  ;;  %v427_v37 = vld [vmem:[#allocation2 + $0x590] sm:$0xff] }
  0xf9   :  { %v830_v45 = vrot.slane %v829_v51, 2  ;;  %v211_v61 = vmul.f32 %v3291_v10, %v128_v43  ;;  %v235_v1 = vadd.f32 %v163_v8, %v3672_v52  ;;  %v902_v5 = vrot.slane %v901_v59, 2  ;;  %v435_v2 = vld [vmem:[#allocation2 + $0x5d0] sm:$0xff] }
  0xfa   :  { %v1132_v28 = vrot.slane %v1131_v24, 4  ;;  %v1204_v29 = vrot.slane %v1203_v14, 4  ;;  %v307_v49 = vadd.f32 %v195_v46, %v3673_v48  ;;  %v467_v21 = vmul.f32 %v3235_v41, %v387_v50  ;;  %v3675_v46 = vld [vmem:[#allocation20_spill] sm:$0xff]  ;;  %v707_v48 = vld [vmem:[#allocation2 + $0x2d0] sm:$0xff] }
  0xfb   :  { %v831_v39 = vadd.f32 %v830_v45, %v829_v51  ;;  %v236_v40 = vadd.f32 %v235_v1, %v171_v58  ;;  %v475_v27 = vmul.f32 %v3259_v3, %v395_v0  ;;  %v903_v35 = vadd.f32 %v902_v5, %v901_v59  ;;  %v683_v51 = vld [vmem:[#allocation2 + $0x210] sm:$0xff] }
  0xfc   :  { %v1133_v47 = vadd.f32 %v1132_v28, %v1131_v24  ;;  %v1205_v22 = vadd.f32 %v1204_v29, %v1203_v14  ;;  %v308_v6 = vadd.f32 %v307_v49, %v203_v34  ;;  %v483_v63 = vmul.f32 %v3289_v9, %v403_v13  ;;  %v3674_v24 = vld [vmem:[#allocation19_spill] sm:$0xff] }
  0xfd   :  { %v832_v7 = vrot.slane %v831_v39, 1  ;;  %v237_v56 = vadd.f32 %v236_v40, %v179_v33  ;;  %v499_v36 = vmul.f32 %v3235_v41, %v419_v55  ;;  %v904_v44 = vrot.slane %v903_v35, 1  ;;  %v691_v0 = vld [vmem:[#allocation2 + $0x250] sm:$0xff] }
  0xfe   :  { %v1134_v15 = vrot.slane %v1133_v47, 2  ;;  %v1206_v11 = vrot.slane %v1205_v22, 2  ;;  %v309_v23 = vadd.f32 %v308_v6, %v211_v61  ;;  %v507_v30 = vmul.f32 %v3259_v3, %v427_v37  ;;  %v699_v1 = vld [vmem:[#allocation2 + $0x290] sm:$0xff] }
  0xff   :  { %v833_v38 = vadd.f32 %v832_v7, %v831_v39  ;;  %v238_v8 = vrot.slane %v237_v56, 4  ;;  %v515_v57 = vmul.f32 %v3289_v9, %v435_v2  ;;  %v905_v19 = vadd.f32 %v904_v44, %v903_v35  ;;  %v715_v39 = vld [vmem:[#allocation2 + $0x610] sm:$0xff] }
 0x100   :  { %v1135_v12 = vadd.f32 %v1134_v15, %v1133_v47  ;;  %v1207_v43 = vadd.f32 %v1206_v11, %v1205_v22  ;;  %v310_v58 = vrot.slane %v309_v23, 4  ;;  %v539_v14 = vadd.f32 %v467_v21, %v3674_v24  ;;  %v731_v22 = vld [vmem:[#allocation2 + $0x690] sm:$0xff] }
 0x101   :  { %v969_v33 = vadd.f32 %v833_v38, %v665_v16  ;;  %v239_v59 = vadd.f32 %v238_v8, %v237_v56  ;;  %v611_v50 = vadd.f32 %v499_v36, %v3675_v46  ;;  %v977_v45 = vadd.f32 %v905_v19, %v673_v20  ;;  %v723_v20 = vld [vmem:[#allocation2 + $0x650] sm:$0xff]  ;;  %v1757_v46 = vld [vmem:[#allocation7 + $0xea0] sm:$0xff] }
 0x102   :  { %v1136_v34 = vrot.slane %v1135_v12, 1  ;;  %v1208_v61 = vrot.slane %v1207_v43, 1  ;;  %v311_v52 = vadd.f32 %v310_v58, %v309_v23  ;;  %v540_v28 = vadd.f32 %v539_v14, %v475_v27  ;;  %v739_v7 = vld [vmem:[#allocation2 + $0x6d0] sm:$0xff] }
 0x103   :  { %v240_v5 = vrot.slane %v239_v59, 2  ;;  %v612_v29 = vadd.f32 %v611_v50, %v507_v30  ;;  %v763_v49 = vmul.f32 %v3273_v32, %v683_v51  ;;  %v771_v40 = vmul.f32 %v3271_v31, %v691_v0  ;;  %v987_v23 = vld [vmem:[#allocation2 + $0x310] sm:$0xff] }
 0x104   :  { %v1137_v13 = vadd.f32 %v1136_v34, %v1135_v12  ;;  %v1209_v55 = vadd.f32 %v1208_v61, %v1207_v43  ;;  %v312_v16 = vrot.slane %v311_v52, 2  ;;  %v541_v35 = vadd.f32 %v540_v28, %v483_v63  ;;  %v1763_v38 = vld [vmem:[#allocation7 + $0xed0] sm:$0xff]  ;;  %v1758_v43 = vld [vmem:[#allocation7 + $0xea8] sm:$0xff] }
 0x105   :  { %v241_v21 = vadd.f32 %v240_v5, %v239_v59  ;;  %v613_v47 = vadd.f32 %v612_v29, %v515_v57  ;;  %v779_v6 = vmul.f32 %v3313_v54, %v699_v1  ;;  %v787_v56 = vmul.f32 %v3327_v17, %v707_v48  ;;  %v995_v19 = vld [vmem:[#allocation2 + $0x350] sm:$0xff]  ;;  %v1752_v1 = vld [vmem:[#allocation7 + $0xe78] sm:$0xff] }
 0x106   :  { %v1273_v37 = vadd.f32 %v1137_v13, %v969_v33  ;;  %v1281_v2 = vadd.f32 %v1209_v55, %v977_v45  ;;  %v313_v27 = vadd.f32 %v312_v16, %v311_v52  ;;  %v542_v44 = vrot.slane %v541_v35, 4  ;;  %v1003_v12 = vld [vmem:[#allocation2 + $0x390] sm:$0xff] }
 0x107   :  { %v242_v36 = vrot.slane %v241_v21, 1  ;;  %v614_v15 = vrot.slane %v613_v47, 4  ;;  %v795_v11 = vmul.f32 %v3273_v32, %v715_v39  ;;  %v803_v30 = vmul.f32 %v3271_v31, %v723_v20  ;;  %v1011_v24 = vld [vmem:[#allocation2 + $0x3d0] sm:$0xff] }
 0x108   :  { %v3433_v63 = vsel %vm2105_vm0, %v1281_v2, %v1273_v37  ;;  %v314_v8 = vrot.slane %v313_v27, 1  ;;  %v811_v57 = vmul.f32 %v3313_v54, %v731_v22  ;;  %v543_v51 = vadd.f32 %v542_v44, %v541_v35  ;;  %v1019_v14 = vld [vmem:[#allocation2 + $0x710] sm:$0xff]  ;;  %v83_v2 = vld [vmem:[#allocation2 + $0x68] sm:$0xff] }
 0x109   :  { %2187 = vmatmul.mubr.f32.vlgmr.msra.gmra.mxu0 %v3433_v63  ;;  %v3438_v58 = vadd.f32 %v242_v36, %v241_v21  ;;  %v615_v33 = vadd.f32 %v614_v15, %v613_v47  ;;  %v819_v59 = vmul.f32 %v3327_v17, %v739_v7  ;;  %v843_v0 = vadd.f32 %v771_v40, %v763_v49  ;;  %v1027_v34 = vld [vmem:[#allocation2 + $0x750] sm:$0xff]  ;;  %v75_v21 = vld [vmem:[#allocation2 + $0x28] sm:$0xff] }
 0x10a   :  { %v3441_v50 = vadd.f32 %v314_v8, %v313_v27  ;;  %v915_v45 = vadd.f32 %v803_v30, %v795_v11  ;;  %v1035_v61 = vld [vmem:[#allocation2 + $0x790] sm:$0xff]  ;;  %v1067_v52 = vmul.f32 %v3311_v53, %v987_v23  ;;  %2265 = vmatpush1.msra.mxu0 %v1763_v38  ;;  %v544_v5 = vrot.slane %v543_v51, 2  ;;  %v1745_v27 = vld [vmem:[#allocation7 + $0xe40] sm:$0xff]  ;;  %v1740_v11 = vld [vmem:[#allocation7 + $0xe18] sm:$0xff] }
 0x10b   :  { %v616_v28 = vrot.slane %v615_v33, 2  ;;  %v1043_v29 = vld [vmem:[#allocation2 + $0x7d0] sm:$0xff]  ;;  %v1075_v48 = vmul.f32 %v3329_v18, %v995_v19  ;;  %v1083_v13 = vmul.f32 %v3337_v25, %v1003_v12  ;;  %2266 = vmatprep.subr.mxu0 %v1758_v43  ;;  %v844_v16 = vadd.f32 %v843_v0, %v779_v6  ;;  %v91_v15 = vld [vmem:[#allocation2 + $0xa8] sm:$0xff] }
 0x10c   :  { %v1751_v55 = vld [vmem:[#allocation7 + $0xe70] sm:$0xff]  ;;  %v916_v39 = vadd.f32 %v915_v45, %v811_v57  ;;  %v1091_v49 = vmul.f32 %v3339_v26, %v1011_v24  ;;  %v1099_v40 = vmul.f32 %v3311_v53, %v1019_v14  ;;  %2267 = vmatpush1.msra.mxu0 %v1757_v46  ;;  %v1746_v35 = vld [vmem:[#allocation7 + $0xe48] sm:$0xff]  ;;  %v545_v47 = vadd.f32 %v544_v5, %v543_v51  ;;  %v3676_v57 = vld [vmem:[#allocation16_spill] sm:$0xff] }
 0x10d   :  { %v617_v20 = vadd.f32 %v616_v28, %v615_v33  ;;  %v1107_v22 = vmul.f32 %v3329_v18, %v1027_v34  ;;  %v1115_v37 = vmul.f32 %v3337_v25, %v1035_v61  ;;  %2268 = vmatprep.subr.mxu0 %v1752_v1  ;;  %v845_v7 = vadd.f32 %v844_v16, %v787_v56  ;;  %v99_v30 = vld [vmem:[#allocation2 + $0xe8] sm:$0xff]  ;;  %v1739_v12 = vld [vmem:[#allocation7 + $0xe10] sm:$0xff] }
 0x10e   :  { %v917_v36 = vadd.f32 %v916_v39, %v819_v59  ;;  %v1123_v6 = vmul.f32 %v3339_v26, %v1043_v29  ;;  %v1147_v44 = vadd.f32 %v1075_v48, %v1067_v52  ;;  %2269 = vmatpush1.msra.mxu0 %v1751_v55  ;;  %v546_v23 = vrot.slane %v545_v47, 1  ;;  %v107_v24 = vld [vmem:[#allocation2 + $0x428] sm:$0xff] }
 0x10f   :  { %v618_v38 = vrot.slane %v617_v20, 1  ;;  %v1219_v8 = vadd.f32 %v1107_v22, %v1099_v40  ;;  %v158_v19 = vmul.f32 %v3676_v57, %v75_v21  ;;  %2270 = vmatprep.subr.mxu0 %v1746_v35  ;;  %v846_v43 = vrot.slane %v845_v7, 4  ;;  %v1734_v59 = vld [vmem:[#allocation7 + $0xde8] sm:$0xff]  ;;  %v1733_v61 = vld [vmem:[#allocation7 + $0xde0] sm:$0xff]  ;;  %v1727_v21 = vld [vmem:[#allocation7 + $0xdb0] sm:$0xff] }
 0x110   :  { %v918_v51 = vrot.slane %v917_v36, 4  ;;  %v1148_v33 = vadd.f32 %v1147_v44, %v1083_v13  ;;  %v166_v56 = vmul.f32 %v3237_v42, %v83_v2  ;;  %2271 = vmatpush1.msra.mxu0 %v1745_v27  ;;  %v547_v14 = vadd.f32 %v546_v23, %v545_v47  ;;  %v115_v45 = vld [vmem:[#allocation2 + $0x468] sm:$0xff]  ;;  %v1728_v13 = vld [vmem:[#allocation7 + $0xdb8] sm:$0xff] }
 0x111   :  { %v619_v46 = vadd.f32 %v618_v38, %v617_v20  ;;  %v1220_v0 = vadd.f32 %v1219_v8, %v1115_v37  ;;  %v174_v34 = vmul.f32 %v3261_v4, %v91_v15  ;;  %2272 = vmatprep.subr.mxu0 %v1740_v11  ;;  %v847_v52 = vadd.f32 %v846_v43, %v845_v7  ;;  %v123_v28 = vld [vmem:[#allocation2 + $0x4a8] sm:$0xff]  ;;  %v1716_v8 = vld [vmem:[#allocation7 + $0xd58] sm:$0xff] }
 0x112   :  { %v919_v1 = vadd.f32 %v918_v51, %v917_v36  ;;  %v1149_v5 = vadd.f32 %v1148_v33, %v1091_v49  ;;  %v131_v29 = vld [vmem:[#allocation2 + $0x4e8] sm:$0xff]  ;;  %v182_v48 = vmul.f32 %v3291_v10, %v99_v30  ;;  %2273 = vmatpush1.msra.mxu0 %v1739_v12  ;;  %v667_v55 = vadd.f32 %v547_v14, %v3438_v58  ;;  %v3677_v43 = vld [vmem:[#allocation15_spill] sm:$0xff] }
 0x113   :  { %v675_v16 = vadd.f32 %v619_v46, %v3441_v50  ;;  %v1221_v39 = vadd.f32 %v1220_v0, %v1123_v6  ;;  %v190_v40 = vmul.f32 %v3676_v57, %v107_v24  ;;  %2274 = vmatprep.subr.mxu0 %v1734_v59  ;;  %v848_v35 = vrot.slane %v847_v52, 2  ;;  %v382_v22 = vld [vmem:[#allocation2 + $0x128] sm:$0xff]  ;;  %v1715_v24 = vld [vmem:[#allocation7 + $0xd50] sm:$0xff] }
 0x114   :  { %v920_v47 = vrot.slane %v919_v1, 2  ;;  %v1150_v20 = vrot.slane %v1149_v5, 4  ;;  %v198_v49 = vmul.f32 %v3237_v42, %v115_v45  ;;  %v390_v37 = vld [vmem:[#allocation2 + $0x168] sm:$0xff]  ;;  %2275 = vmatpush1.msra.mxu0 %v1733_v61  ;;  %v206_v7 = vmul.f32 %v3261_v4, %v123_v28 }
 0x115   :  { %v1722_v2 = vld [vmem:[#allocation7 + $0xd88] sm:$0xff]  ;;  %v1222_v27 = vrot.slane %v1221_v39, 4  ;;  %v214_v58 = vmul.f32 %v3291_v10, %v131_v29  ;;  %v262_v50 = vadd.f32 %v166_v56, %v158_v19  ;;  %2276 = vmatprep.subr.mxu0 %v1728_v13  ;;  %v1721_v36 = vld [vmem:[#allocation7 + $0xd80] sm:$0xff]  ;;  %v849_v6 = vadd.f32 %v848_v35, %v847_v52  ;;  %v1704_v35 = vld [vmem:[#allocation7 + $0xcf8] sm:$0xff] }
 0x116   :  { %v921_v44 = vadd.f32 %v920_v47, %v919_v1  ;;  %v1151_v15 = vadd.f32 %v1150_v20, %v1149_v5  ;;  %v334_v11 = vadd.f32 %v198_v49, %v190_v40  ;;  %v398_v23 = vld [vmem:[#allocation2 + $0x1a8] sm:$0xff]  ;;  %2277 = vmatpush1.msra.mxu0 %v1727_v21  ;;  %v462_v51 = vmul.f32 %v3677_v43, %v382_v22  ;;  %v1703_v22 = vld [vmem:[#allocation7 + $0xcf0] sm:$0xff] }
 0x117   :  { %v406_v38 = vld [vmem:[#allocation2 + $0x1e8] sm:$0xff]  ;;  %v1223_v30 = vadd.f32 %v1222_v27, %v1221_v39  ;;  %v263_v12 = vadd.f32 %v262_v50, %v174_v34  ;;  %v470_v33 = vmul.f32 %v3235_v41, %v390_v37  ;;  %2278 = vmatprep.subr.mxu0 %v1722_v2  ;;  %v850_v59 = vrot.slane %v849_v6, 1 }
 0x118   :  { %v922_v19 = vrot.slane %v921_v44, 1  ;;  %v1152_v56 = vrot.slane %v1151_v15, 2  ;;  %v335_v14 = vadd.f32 %v334_v11, %v206_v7  ;;  %v414_v46 = vld [vmem:[#allocation2 + $0x528] sm:$0xff]  ;;  %2279 = vmatpush1.msra.mxu0 %v1721_v36  ;;  %v478_v1 = vmul.f32 %v3259_v3, %v398_v23 }
 0x119   :  { %v422_v0 = vld [vmem:[#allocation2 + $0x568] sm:$0xff]  ;;  %v1224_v61 = vrot.slane %v1223_v30, 2  ;;  %v264_v52 = vadd.f32 %v263_v12, %v182_v48  ;;  %v3465_v34 = vmul.f32 %v3289_v9, %v406_v38  ;;  %2280 = vmatprep.subr.mxu0 %v1716_v8  ;;  %v851_v28 = vadd.f32 %v850_v59, %v849_v6 }
 0x11a   :  { %v1710_v45 = vld [vmem:[#allocation7 + $0xd28] sm:$0xff]  ;;  %v1709_v5 = vld [vmem:[#allocation7 + $0xd20] sm:$0xff]  ;;  %v923_v29 = vadd.f32 %v922_v19, %v921_v44  ;;  %v1153_v13 = vadd.f32 %v1152_v56, %v1151_v15  ;;  %v336_v39 = vadd.f32 %v335_v14, %v214_v58  ;;  %2281 = vmatpush1.msra.mxu0 %v1715_v24  ;;  %v494_v49 = vmul.f32 %v3677_v43, %v414_v46  ;;  %v1692_v24 = vld [vmem:[#allocation7 + $0xc98] sm:$0xff] }
 0x11b   :  { %v430_v40 = vld [vmem:[#allocation2 + $0x5a8] sm:$0xff]  ;;  %v1225_v47 = vadd.f32 %v1224_v61, %v1223_v30  ;;  %v265_v20 = vrot.slane %v264_v52, 4  ;;  %v502_v48 = vmul.f32 %v3235_v41, %v422_v0  ;;  %2282 = vmatprep.subr.mxu0 %v1710_v45  ;;  %v971_v37 = vadd.f32 %v851_v28, %v667_v55  ;;  %v1691_v0 = vld [vmem:[#allocation7 + $0xc90] sm:$0xff] }
 0x11c   :  { %v438_v21 = vld [vmem:[#allocation2 + $0x5e8] sm:$0xff]  ;;  %v979_v2 = vadd.f32 %v923_v29, %v675_v16  ;;  %v1154_v27 = vrot.slane %v1153_v13, 1  ;;  %v337_v7 = vrot.slane %v336_v39, 4  ;;  %2283 = vmatpush1.msra.mxu0 %v1709_v5  ;;  %v510_v15 = vmul.f32 %v3259_v3, %v430_v40 }
 0x11d   :  { %v686_v50 = vld [vmem:[#allocation2 + $0x228] sm:$0xff]  ;;  %v1226_v6 = vrot.slane %v1225_v47, 1  ;;  %v266_v44 = vadd.f32 %v265_v20, %v264_v52  ;;  %v518_v11 = vmul.f32 %v3289_v9, %v438_v21  ;;  %2284 = vmatprep.subr.mxu0 %v1704_v35  ;;  %v566_v30 = vadd.f32 %v470_v33, %v462_v51 }
 0x11e   :  { %v694_v36 = vld [vmem:[#allocation2 + $0x268] sm:$0xff]  ;;  %v1155_v38 = vadd.f32 %v1154_v27, %v1153_v13  ;;  %v338_v8 = vadd.f32 %v337_v7, %v336_v39  ;;  %v638_v12 = vadd.f32 %v502_v48, %v494_v49  ;;  %2285 = vmatpush1.msra.mxu0 %v1703_v22  ;;  %v766_v14 = vmul.f32 %v3273_v32, %v686_v50 }
 0x11f   :  { %v1698_v58 = vld [vmem:[#allocation7 + $0xcc8] sm:$0xff]  ;;  %v1697_v23 = vld [vmem:[#allocation7 + $0xcc0] sm:$0xff]  ;;  %v1227_v59 = vadd.f32 %v1226_v6, %v1225_v47  ;;  %v267_v19 = vrot.slane %v266_v44, 2  ;;  %v774_v46 = vmul.f32 %v3271_v31, %v694_v36  ;;  %v567_v52 = vadd.f32 %v566_v30, %v478_v1  ;;  %v1955_v47 = vld [vmem:[#allocation7 + $0x14d0] sm:$0xff] }
 0x120   :  { %v702_v55 = vld [vmem:[#allocation2 + $0x2a8] sm:$0xff]  ;;  %2286 = vmatprep.subr.mxu0 %v1698_v58  ;;  %v1275_v45 = vadd.f32 %v1155_v38, %v971_v37  ;;  %v339_v61 = vrot.slane %v338_v8, 2  ;;  %v639_v5 = vadd.f32 %v638_v12, %v510_v15 }
 0x121   :  { %v710_v16 = vld [vmem:[#allocation2 + $0x2e8] sm:$0xff]  ;;  %2287 = vmatpush1.msra.mxu0 %v1697_v23  ;;  %v1283_v29 = vadd.f32 %v1227_v59, %v979_v2  ;;  %v268_v13 = vadd.f32 %v267_v19, %v266_v44  ;;  %v782_v40 = vmul.f32 %v3313_v54, %v702_v55  ;;  %v568_v49 = vadd.f32 %v567_v52, %v3465_v34  ;;  %v1680_v59 = vld [vmem:[#allocation7 + $0xc38] sm:$0xff] }
 0x122   :  { %v718_v56 = vld [vmem:[#allocation2 + $0x628] sm:$0xff]  ;;  %v790_v21 = vmul.f32 %v3327_v17, %v710_v16  ;;  %2288 = vmatprep.subr.mxu0 %v1692_v24  ;;  %v340_v20 = vadd.f32 %v339_v61, %v338_v8  ;;  %v640_v48 = vadd.f32 %v639_v5, %v518_v11  ;;  %v870_v30 = vadd.f32 %v774_v46, %v766_v14  ;;  %v1944_v24 = vld [vmem:[#allocation7 + $0x1478] sm:$0xff]  ;;  %v1943_v5 = vld [vmem:[#allocation7 + $0x1470] sm:$0xff] }
 0x123   :  { %v726_v28 = vld [vmem:[#allocation2 + $0x668] sm:$0xff]  ;;  %v798_v1 = vmul.f32 %v3273_v32, %v718_v56  ;;  %2289 = vmatpush1.msra.mxu0 %v1691_v0  ;;  %v3478_v37 = vsel %vm2105_vm0, %v1283_v29, %v1275_v45  ;;  %v269_v2 = vrot.slane %v268_v13, 1  ;;  %v569_v6 = vrot.slane %v568_v49, 4 }
 0x124   :  { %v734_v51 = vld [vmem:[#allocation2 + $0x6a8] sm:$0xff]  ;;  %v806_v27 = vmul.f32 %v3271_v31, %v726_v28  ;;  %2258 = vmatmul.mubr.f32.vlgmr.msra.gmra.mxu1 %v3478_v37  ;;  %v341_v34 = vrot.slane %v340_v20, 1  ;;  %v641_v44 = vrot.slane %v640_v48, 4  ;;  %v871_v28 = vadd.f32 %v870_v30, %v782_v40  ;;  %v109_v30 = vld [vmem:[#allocation2 + $0x438] sm:$0xff] }
 0x125   :  { %v1686_v33 = vld [vmem:[#allocation7 + $0xc68] sm:$0xff]  ;;  %v1685_v35 = vld [vmem:[#allocation7 + $0xc60] sm:$0xff]  ;;  %v814_v7 = vmul.f32 %v3313_v54, %v734_v51  ;;  %2336 = vmatpush1.msra.mxu1 %v1955_v47  ;;  %v3484_v8 = vadd.f32 %v269_v2, %v268_v13  ;;  %v570_v56 = vadd.f32 %v569_v6, %v568_v49  ;;  %v93_v6 = vld [vmem:[#allocation2 + $0xb8] sm:$0xff] }
 0x126   :  { %v742_v39 = vld [vmem:[#allocation2 + $0x6e8] sm:$0xff]  ;;  %2290 = vmatprep.subr.mxu0 %v1686_v33  ;;  %v942_v12 = vadd.f32 %v806_v27, %v798_v1  ;;  %v3487_v19 = vadd.f32 %v341_v34, %v340_v20  ;;  %v642_v0 = vadd.f32 %v641_v44, %v640_v48  ;;  %v77_v33 = vld [vmem:[#allocation2 + $0x38] sm:$0xff]  ;;  %v872_v40 = vadd.f32 %v871_v28, %v790_v21 }
 0x127   :  { %v990_v22 = vld [vmem:[#allocation2 + $0x328] sm:$0xff]  ;;  %v822_v15 = vmul.f32 %v3327_v17, %v742_v39  ;;  %2291 = vmatpush1.msra.mxu0 %v1685_v35  ;;  %v571_v13 = vrot.slane %v570_v56, 2  ;;  %v85_v20 = vld [vmem:[#allocation2 + $0x78] sm:$0xff]  ;;  %v160_v21 = vmul.f32 %v3676_v57, %v77_v33 }
 0x128   :  { %v998_v50 = vld [vmem:[#allocation2 + $0x368] sm:$0xff]  ;;  %v1070_v16 = vmul.f32 %v3311_v53, %v990_v22  ;;  %v943_v51 = vadd.f32 %v942_v12, %v814_v7  ;;  %v643_v39 = vrot.slane %v642_v0, 2  ;;  %2292 = vmatprep.subr.mxu0 %v1680_v59  ;;  %v1679_v48 = vld [vmem:[#allocation7 + $0xc30] sm:$0xff]  ;;  %v1932_v27 = vld [vmem:[#allocation7 + $0x1418] sm:$0xff] }
 0x129   :  { %v1022_v36 = vld [vmem:[#allocation2 + $0x728] sm:$0xff]  ;;  %v1078_v52 = vmul.f32 %v3329_v18, %v998_v50  ;;  %v572_v50 = vadd.f32 %v571_v13, %v570_v56  ;;  %v101_v44 = vld [vmem:[#allocation2 + $0xf8] sm:$0xff]  ;;  %2293 = vmatpush1.msra.mxu0 %v1679_v48 }
 0x12a   :  { %v1950_v58 = vld [vmem:[#allocation7 + $0x14a8] sm:$0xff]  ;;  %v1949_v38 = vld [vmem:[#allocation7 + $0x14a0] sm:$0xff]  ;;  %v1102_v35 = vmul.f32 %v3311_v53, %v1022_v36  ;;  %v944_v1 = vadd.f32 %v943_v51, %v822_v15  ;;  %v168_v15 = vmul.f32 %v3237_v42, %v85_v20  ;;  %v3500_v28 = vmul.f32 %v3291_v10, %v101_v44  ;;  %v1920_v51 = vld [vmem:[#allocation7 + $0x13b8] sm:$0xff] }
 0x12b   :  { %v1006_v11 = vld [vmem:[#allocation2 + $0x3a8] sm:$0xff]  ;;  %2337 = vmatprep.subr.mxu1 %v1950_v58  ;;  %v644_v58 = vadd.f32 %v643_v39, %v642_v0  ;;  %v1174_v34 = vadd.f32 %v1078_v52, %v1070_v16  ;;  %v117_v16 = vld [vmem:[#allocation2 + $0x478] sm:$0xff] }
 0x12c   :  { %v1014_v23 = vld [vmem:[#allocation2 + $0x3e8] sm:$0xff]  ;;  %v1086_v14 = vmul.f32 %v3337_v25, %v1006_v11  ;;  %2338 = vmatpush1.msra.mxu1 %v1949_v38  ;;  %v1931_v11 = vld [vmem:[#allocation7 + $0x1410] sm:$0xff]  ;;  %v945_v38 = vrot.slane %v944_v1, 4  ;;  %v1860_v33 = vld [vmem:[#allocation7 + $0x11d8] sm:$0xff] }
 0x12d   :  { %v1030_v55 = vld [vmem:[#allocation2 + $0x768] sm:$0xff]  ;;  %v1094_v46 = vmul.f32 %v3339_v26, %v1014_v23  ;;  %2339 = vmatprep.subr.mxu1 %v1944_v24  ;;  %v873_v23 = vrot.slane %v872_v40, 4  ;;  %v645_v24 = vrot.slane %v644_v58, 1  ;;  %v1919_v20 = vld [vmem:[#allocation7 + $0x13b0] sm:$0xff] }
 0x12e   :  { %v1038_v45 = vld [vmem:[#allocation2 + $0x7a8] sm:$0xff]  ;;  %v1110_v47 = vmul.f32 %v3329_v18, %v1030_v55  ;;  %2340 = vmatpush1.msra.mxu1 %v1943_v5  ;;  %v573_v55 = vrot.slane %v572_v50, 1  ;;  %v1175_v59 = vadd.f32 %v1174_v34, %v1086_v14  ;;  %v946_v52 = vadd.f32 %v945_v38, %v944_v1  ;;  %v1908_v38 = vld [vmem:[#allocation7 + $0x1358] sm:$0xff] }
 0x12f   :  { %v1046_v61 = vld [vmem:[#allocation2 + $0x7e8] sm:$0xff]  ;;  %v1118_v22 = vmul.f32 %v3337_v25, %v1038_v45  ;;  %v176_v5 = vmul.f32 %v3261_v4, %v93_v6  ;;  %v646_v13 = vadd.f32 %v645_v24, %v644_v58  ;;  %v200_v1 = vmul.f32 %v3237_v42, %v117_v16  ;;  %v392_v58 = vld [vmem:[#allocation2 + $0x178] sm:$0xff] }
 0x130   :  { %v1938_v29 = vld [vmem:[#allocation7 + $0x1448] sm:$0xff]  ;;  %v1937_v49 = vld [vmem:[#allocation7 + $0x1440] sm:$0xff]  ;;  %v1126_v2 = vmul.f32 %v3339_v26, %v1046_v61  ;;  %v1246_v36 = vadd.f32 %v1110_v47, %v1102_v35  ;;  %v874_v61 = vadd.f32 %v873_v23, %v872_v40  ;;  %v1176_v39 = vadd.f32 %v1175_v59, %v1094_v46  ;;  %v125_v35 = vld [vmem:[#allocation2 + $0x4b8] sm:$0xff] }
 0x131   :  { %v1674_v7 = vld [vmem:[#allocation7 + $0xc08] sm:$0xff]  ;;  %2341 = vmatprep.subr.mxu1 %v1938_v29  ;;  %v1925_v0 = vld [vmem:[#allocation7 + $0x13e0] sm:$0xff]  ;;  %v574_v29 = vadd.f32 %v573_v55, %v572_v50  ;;  %v133_v47 = vld [vmem:[#allocation2 + $0x4f8] sm:$0xff]  ;;  %v947_v48 = vrot.slane %v946_v52, 2  ;;  %v192_v40 = vmul.f32 %v3676_v57, %v109_v30  ;;  %v678_v50 = vadd.f32 %v646_v13, %v3487_v19 }
 0x132   :  { %2342 = vmatpush1.msra.mxu1 %v1937_v49  ;;  %v1926_v12 = vld [vmem:[#allocation7 + $0x13e8] sm:$0xff]  ;;  %v1247_v56 = vadd.f32 %v1246_v36, %v1118_v22  ;;  %2294 = vmatprep.subr.mxu0 %v1674_v7  ;;  %v1673_v45 = vld [vmem:[#allocation7 + $0xc00] sm:$0xff]  ;;  %v875_v49 = vrot.slane %v874_v61, 2  ;;  %v384_v22 = vld [vmem:[#allocation2 + $0x138] sm:$0xff]  ;;  %v1177_v46 = vrot.slane %v1176_v39, 4  ;;  %v216_v23 = vmul.f32 %v3291_v10, %v133_v47 }
 0x133   :  { %2343 = vmatprep.subr.mxu1 %v1932_v27  ;;  %v1914_v27 = vld [vmem:[#allocation7 + $0x1388] sm:$0xff]  ;;  %2295 = vmatpush1.msra.mxu0 %v1673_v45  ;;  %v670_v7 = vadd.f32 %v574_v29, %v3484_v8  ;;  %v1913_v34 = vld [vmem:[#allocation7 + $0x1380] sm:$0xff]  ;;  %v1859_v36 = vld [vmem:[#allocation7 + $0x11d0] sm:$0xff]  ;;  %v948_v44 = vadd.f32 %v947_v48, %v946_v52  ;;  %v280_v55 = vadd.f32 %v168_v15, %v160_v21 }
 0x134   :  { %2344 = vmatpush1.msra.mxu1 %v1931_v11  ;;  %v1248_v14 = vadd.f32 %v1247_v56, %v1126_v2  ;;  %2296 = vmatprep.subr.mxu0 %v1860_v33  ;;  %v876_v6 = vadd.f32 %v875_v49, %v874_v61  ;;  %v208_v11 = vmul.f32 %v3261_v4, %v125_v35  ;;  %v1854_v30 = vld [vmem:[#allocation7 + $0x11a8] sm:$0xff]  ;;  %v400_v24 = vld [vmem:[#allocation2 + $0x1b8] sm:$0xff]  ;;  %v1901_v15 = vld [vmem:[#allocation7 + $0x1320] sm:$0xff] }
 0x135   :  { %2345 = vmatprep.subr.mxu1 %v1926_v12  ;;  %v1178_v12 = vadd.f32 %v1177_v46, %v1176_v39  ;;  %v352_v19 = vadd.f32 %v200_v1, %v192_v40  ;;  %v408_v59 = vld [vmem:[#allocation2 + $0x1f8] sm:$0xff]  ;;  %v464_v45 = vmul.f32 %v3677_v43, %v384_v22  ;;  %v472_v61 = vmul.f32 %v3235_v41, %v392_v58  ;;  %v1902_v52 = vld [vmem:[#allocation7 + $0x1328] sm:$0xff]  ;;  %v1853_v48 = vld [vmem:[#allocation7 + $0x11a0] sm:$0xff] }
 0x136   :  { %2346 = vmatpush1.msra.mxu1 %v1925_v0  ;;  %v1249_v2 = vrot.slane %v1248_v14, 4  ;;  %v1907_v56 = vld [vmem:[#allocation7 + $0x1350] sm:$0xff]  ;;  %v877_v16 = vrot.slane %v876_v6, 1  ;;  %v949_v0 = vrot.slane %v948_v44, 1  ;;  %2297 = vmatpush2.msra.mxu0 %v1859_v36  ;;  %v281_v29 = vadd.f32 %v280_v55, %v176_v5  ;;  %v1896_v49 = vld [vmem:[#allocation7 + $0x12f8] sm:$0xff] }
 0x137   :  { %2347 = vmatprep.subr.mxu1 %v1920_v51  ;;  %v1179_v51 = vrot.slane %v1178_v12, 2  ;;  %v353_v13 = vadd.f32 %v352_v19, %v208_v11  ;;  %v416_v39 = vld [vmem:[#allocation2 + $0x538] sm:$0xff]  ;;  %2298 = vmatprep.subr.mxu0 %v1854_v30  ;;  %v480_v47 = vmul.f32 %v3259_v3, %v400_v24  ;;  %v1890_v11 = vld [vmem:[#allocation7 + $0x12c8] sm:$0xff] }
 0x138   :  { %2348 = vmatpush1.msra.mxu1 %v1919_v20  ;;  %v1250_v8 = vadd.f32 %v1249_v2, %v1248_v14  ;;  %v424_v21 = vld [vmem:[#allocation2 + $0x578] sm:$0xff]  ;;  %v878_v14 = vadd.f32 %v877_v16, %v876_v6  ;;  %v950_v35 = vadd.f32 %v949_v0, %v948_v44  ;;  %v488_v20 = vmul.f32 %v3289_v9, %v408_v59 }
 0x139   :  { %2349 = vmatprep.subr.mxu1 %v1914_v27  ;;  %v1180_v40 = vadd.f32 %v1179_v51, %v1178_v12  ;;  %v282_v22 = vadd.f32 %v281_v29, %v3500_v28  ;;  %v354_v5 = vadd.f32 %v353_v13, %v216_v23  ;;  %v432_v27 = vld [vmem:[#allocation2 + $0x5b8] sm:$0xff]  ;;  %v496_v36 = vmul.f32 %v3677_v43, %v416_v39  ;;  %v1889_v28 = vld [vmem:[#allocation7 + $0x12c0] sm:$0xff] }
 0x13a   :  { %2350 = vmatpush1.msra.mxu1 %v1913_v34  ;;  %v1251_v33 = vrot.slane %v1250_v8, 2  ;;  %v440_v46 = vld [vmem:[#allocation2 + $0x5f8] sm:$0xff]  ;;  %v974_v58 = vadd.f32 %v878_v14, %v670_v7  ;;  %v982_v34 = vadd.f32 %v950_v35, %v678_v50  ;;  %v504_v6 = vmul.f32 %v3235_v41, %v424_v21  ;;  %2299 = vmatpush2.msra.mxu0 %v1853_v48 }
 0x13b   :  { %2351 = vmatprep.subr.mxu1 %v1908_v38  ;;  %v1895_v2 = vld [vmem:[#allocation7 + $0x12f0] sm:$0xff]  ;;  %v1181_v38 = vrot.slane %v1180_v40, 1  ;;  %v283_v12 = vrot.slane %v282_v22, 4  ;;  %v512_v23 = vmul.f32 %v3259_v3, %v432_v27  ;;  %v520_v7 = vmul.f32 %v3289_v9, %v440_v46  ;;  %v1884_v24 = vld [vmem:[#allocation7 + $0x1298] sm:$0xff] }
 0x13c   :  { %2352 = vmatpush1.msra.mxu1 %v1907_v56  ;;  %v1252_v1 = vadd.f32 %v1251_v33, %v1250_v8  ;;  %v688_v44 = vld [vmem:[#allocation2 + $0x238] sm:$0xff]  ;;  %v355_v8 = vrot.slane %v354_v5, 4  ;;  %v584_v50 = vadd.f32 %v472_v61, %v464_v45  ;;  %v656_v19 = vadd.f32 %v504_v6, %v496_v36  ;;  %v1878_v45 = vld [vmem:[#allocation7 + $0x1268] sm:$0xff] }
 0x13d   :  { %2353 = vmatprep.subr.mxu1 %v1902_v52  ;;  %v696_v55 = vld [vmem:[#allocation2 + $0x278] sm:$0xff]  ;;  %v1182_v56 = vadd.f32 %v1181_v38, %v1180_v40  ;;  %v284_v0 = vadd.f32 %v283_v12, %v282_v22  ;;  %v768_v21 = vmul.f32 %v3273_v32, %v688_v44 }
 0x13e   :  { %2354 = vmatpush1.msra.mxu1 %v1901_v15  ;;  %v1253_v30 = vrot.slane %v1252_v1, 1  ;;  %v1848_v59 = vld [vmem:[#allocation7 + $0x1178] sm:$0xff]  ;;  %v356_v52 = vadd.f32 %v355_v8, %v354_v5  ;;  %v1883_v33 = vld [vmem:[#allocation7 + $0x1290] sm:$0xff]  ;;  %v585_v29 = vadd.f32 %v584_v50, %v480_v47  ;;  %v657_v13 = vadd.f32 %v656_v19, %v512_v23  ;;  %v1866_v23 = vld [vmem:[#allocation7 + $0x1208] sm:$0xff] }
 0x13f   :  { %2355 = vmatprep.subr.mxu1 %v1896_v49  ;;  %v704_v51 = vld [vmem:[#allocation2 + $0x2b8] sm:$0xff]  ;;  %v776_v15 = vmul.f32 %v3271_v31, %v696_v55  ;;  %v1278_v61 = vadd.f32 %v1182_v56, %v974_v58  ;;  %v285_v35 = vrot.slane %v284_v0, 2  ;;  %2300 = vmatprep.subr.mxu0 %v1848_v59  ;;  %v1865_v59 = vld [vmem:[#allocation7 + $0x1200] sm:$0xff]  ;;  %v1842_v56 = vld [vmem:[#allocation7 + $0x1148] sm:$0xff] }
 0x140   :  { %2356 = vmatpush1.msra.mxu1 %v1895_v2  ;;  %v1254_v16 = vadd.f32 %v1253_v30, %v1252_v1  ;;  %v720_v39 = vld [vmem:[#allocation2 + $0x638] sm:$0xff]  ;;  %v357_v49 = vrot.slane %v356_v52, 2  ;;  %v1877_v1 = vld [vmem:[#allocation7 + $0x1260] sm:$0xff]  ;;  %v586_v22 = vadd.f32 %v585_v29, %v488_v20  ;;  %v658_v5 = vadd.f32 %v657_v13, %v520_v7 }
 0x141   :  { %2357 = vmatprep.subr.mxu1 %v1890_v11  ;;  %v728_v48 = vld [vmem:[#allocation2 + $0x678] sm:$0xff]  ;;  %v784_v27 = vmul.f32 %v3313_v54, %v704_v51  ;;  %v3523_v58 = vadd.f32 %v285_v35, %v284_v0  ;;  %v800_v44 = vmul.f32 %v3273_v32, %v720_v39  ;;  %v888_v19 = vadd.f32 %v776_v15, %v768_v21 }
 0x142   :  { %2358 = vmatpush1.msra.mxu1 %v1889_v28  ;;  %v1286_v14 = vadd.f32 %v1254_v16, %v982_v34  ;;  %v736_v40 = vld [vmem:[#allocation2 + $0x6b8] sm:$0xff]  ;;  %v3525_v34 = vadd.f32 %v357_v49, %v356_v52  ;;  %v587_v38 = vrot.slane %v586_v22, 4  ;;  %v659_v30 = vrot.slane %v658_v5, 4 }
 0x143   :  { %2359 = vmatprep.subr.mxu1 %v1884_v24  ;;  %v712_v47 = vld [vmem:[#allocation2 + $0x2f8] sm:$0xff]  ;;  %v808_v12 = vmul.f32 %v3271_v31, %v728_v48  ;;  %v816_v8 = vmul.f32 %v3313_v54, %v736_v40  ;;  %v287_v7 = vrot.slane %v3523_v58, 1 }
 0x144   :  { %2360 = vmatpush1.msra.mxu1 %v1883_v33  ;;  %v1872_v46 = vld [vmem:[#allocation7 + $0x1238] sm:$0xff]  ;;  %v1847_v2 = vld [vmem:[#allocation7 + $0x1170] sm:$0xff]  ;;  %v3521_v36 = vsel %vm2105_vm0, %v1286_v14, %v1278_v61  ;;  %v792_v50 = vmul.f32 %v3327_v17, %v712_v47  ;;  %v588_v16 = vadd.f32 %v587_v38, %v586_v22  ;;  %v660_v0 = vadd.f32 %v659_v30, %v658_v5  ;;  %v2046_v22 = vld [vmem:[#allocation7 + $0x17a8] sm:$0xff] }
 0x145   :  { %v744_v6 = vld [vmem:[#allocation2 + $0x6f8] sm:$0xff]  ;;  %2361 = vmatprep.subr.mxu1 %v1878_v45  ;;  %2328 = vmatprep.mubr.f32.mxu0 %v3521_v36  ;;  %v960_v51 = vadd.f32 %v808_v12, %v800_v44  ;;  %v359_v39 = vrot.slane %v3525_v34, 1  ;;  %v889_v45 = vadd.f32 %v888_v19, %v784_v27  ;;  %v1841_v5 = vld [vmem:[#allocation7 + $0x1140] sm:$0xff] }
 0x146   :  { %v992_v11 = vld [vmem:[#allocation2 + $0x338] sm:$0xff]  ;;  %2362 = vmatpush1.msra.mxu1 %v1877_v1  ;;  %2301 = vmatpush2.msra.mxu0 %v1847_v2  ;;  %v824_v52 = vmul.f32 %v3327_v17, %v744_v6  ;;  %v589_v35 = vrot.slane %v588_v16, 2  ;;  %v661_v49 = vrot.slane %v660_v0, 2  ;;  %v2045_v6 = vld [vmem:[#allocation7 + $0x17a0] sm:$0xff] }
 0x147   :  { %v1871_v20 = vld [vmem:[#allocation7 + $0x1230] sm:$0xff]  ;;  %2363 = vmatprep.subr.mxu1 %v1872_v46  ;;  %v2052_v13 = vld [vmem:[#allocation7 + $0x17d8] sm:$0xff]  ;;  %v1072_v21 = vmul.f32 %v3311_v53, %v992_v11  ;;  %v961_v48 = vadd.f32 %v960_v51, %v816_v8  ;;  %2302 = vmatprep.subr.mxu0 %v1842_v56  ;;  %v890_v47 = vadd.f32 %v889_v45, %v792_v50  ;;  %v2034_v51 = vld [vmem:[#allocation7 + $0x1748] sm:$0xff] }
 0x148   :  { %v1000_v55 = vld [vmem:[#allocation2 + $0x378] sm:$0xff]  ;;  %2364 = vmatpush1.msra.mxu1 %v1871_v20  ;;  %v590_v11 = vadd.f32 %v589_v35, %v588_v16  ;;  %v662_v20 = vadd.f32 %v661_v49, %v660_v0  ;;  %2303 = vmatpush2.msra.mxu0 %v1841_v5  ;;  %v3544_v56 = vadd.f32 %v287_v7, %v3523_v58  ;;  %v106_v35 = vld [vmem:[#allocation2 + $0x420] sm:$0xff] }
 0x149   :  { %v1024_v28 = vld [vmem:[#allocation2 + $0x738] sm:$0xff]  ;;  %v1080_v15 = vmul.f32 %v3329_v18, %v1000_v55  ;;  %2365 = vmatprep.subr.mxu1 %v1866_v23  ;;  %v962_v38 = vadd.f32 %v961_v48, %v824_v52  ;;  %v891_v55 = vrot.slane %v890_v47, 4  ;;  %v3547_v58 = vadd.f32 %v359_v39, %v3525_v34  ;;  %v2022_v39 = vld [vmem:[#allocation7 + $0x16e8] sm:$0xff] }
 0x14a   :  { %v1008_v24 = vld [vmem:[#allocation2 + $0x3b8] sm:$0xff]  ;;  %2366 = vmatpush1.msra.mxu1 %v1865_v59  ;;  %v1104_v46 = vmul.f32 %v3311_v53, %v1024_v28  ;;  %v74_v59 = vld [vmem:[#allocation2 + $0x20] sm:$0xff]  ;;  %v591_v16 = vrot.slane %v590_v11, 1  ;;  %v663_v0 = vrot.slane %v662_v20, 1 }
 0x14b   :  { %v1016_v33 = vld [vmem:[#allocation2 + $0x3f8] sm:$0xff]  ;;  %v1088_v1 = vmul.f32 %v3337_v25, %v1008_v24  ;;  %2367 = vmatprep.subr.mxu1 %v2052_v13  ;;  %v1192_v50 = vadd.f32 %v1080_v15, %v1072_v21  ;;  %v1830_v24 = vld [vmem:[#allocation7 + $0x10e8] sm:$0xff]  ;;  %v963_v52 = vrot.slane %v962_v38, 4  ;;  %v892_v13 = vadd.f32 %v891_v55, %v890_v47  ;;  %v2033_v21 = vld [vmem:[#allocation7 + $0x1740] sm:$0xff] }
 0x14c   :  { %v1032_v29 = vld [vmem:[#allocation2 + $0x778] sm:$0xff]  ;;  %v1096_v27 = vmul.f32 %v3339_v26, %v1016_v33  ;;  %v1829_v33 = vld [vmem:[#allocation7 + $0x10e0] sm:$0xff]  ;;  %v592_v5 = vadd.f32 %v591_v16, %v590_v11 }
 0x14d   :  { %v1040_v61 = vld [vmem:[#allocation2 + $0x7b8] sm:$0xff]  ;;  %v1112_v2 = vmul.f32 %v3329_v18, %v1032_v29  ;;  %v82_v29 = vld [vmem:[#allocation2 + $0x60] sm:$0xff]  ;;  %v1193_v45 = vadd.f32 %v1192_v50, %v1088_v1  ;;  %v964_v7 = vadd.f32 %v963_v52, %v962_v38  ;;  %v893_v1 = vrot.slane %v892_v13, 2 }
 0x14e   :  { %v2051_v14 = vld [vmem:[#allocation7 + $0x17d0] sm:$0xff]  ;;  %v1836_v44 = vld [vmem:[#allocation7 + $0x1118] sm:$0xff]  ;;  %v1120_v30 = vmul.f32 %v3337_v25, %v1040_v61  ;;  %v1817_v38 = vld [vmem:[#allocation7 + $0x1080] sm:$0xff] }
 0x14f   :  { %v1048_v40 = vld [vmem:[#allocation2 + $0x7f8] sm:$0xff]  ;;  %2368 = vmatpush2.msra.mxu1 %v2051_v14  ;;  %v1264_v19 = vadd.f32 %v1112_v2, %v1104_v46  ;;  %2304 = vmatprep.subr.mxu0 %v1836_v44  ;;  %v90_v14 = vld [vmem:[#allocation2 + $0xa0] sm:$0xff]  ;;  %v1194_v47 = vadd.f32 %v1193_v45, %v1096_v27  ;;  %v965_v34 = vrot.slane %v964_v7, 2  ;;  %v894_v11 = vadd.f32 %v893_v1, %v892_v13  ;;  %v1806_v45 = vld [vmem:[#allocation7 + $0x1028] sm:$0xff] }
 0x150   :  { %v2040_v12 = vld [vmem:[#allocation7 + $0x1778] sm:$0xff]  ;;  %v1835_v8 = vld [vmem:[#allocation7 + $0x1110] sm:$0xff]  ;;  %v1128_v23 = vmul.f32 %v3339_v26, %v1048_v40  ;;  %2369 = vmatprep.subr.mxu1 %v2046_v22  ;;  %v157_v22 = vmul.f32 %v3676_v57, %v74_v59  ;;  %v173_v55 = vmul.f32 %v3261_v4, %v90_v14  ;;  %v1805_v14 = vld [vmem:[#allocation7 + $0x1020] sm:$0xff] }
 0x151   :  { %v2039_v28 = vld [vmem:[#allocation7 + $0x1770] sm:$0xff]  ;;  %2370 = vmatpush2.msra.mxu1 %v2045_v6  ;;  %v1265_v61 = vadd.f32 %v1264_v19, %v1120_v30  ;;  %2305 = vmatpush2.msra.mxu0 %v1835_v8  ;;  %v1824_v15 = vld [vmem:[#allocation7 + $0x10b8] sm:$0xff]  ;;  %v1818_v6 = vld [vmem:[#allocation7 + $0x1088] sm:$0xff]  ;;  %v664_v30 = vadd.f32 %v663_v0, %v662_v20  ;;  %v165_v8 = vmul.f32 %v3237_v42, %v82_v29  ;;  %v1195_v50 = vrot.slane %v1194_v47, 4 }
 0x152   :  { %2371 = vmatprep.subr.mxu1 %v2040_v12  ;;  %v2028_v49 = vld [vmem:[#allocation7 + $0x1718] sm:$0xff]  ;;  %2306 = vmatprep.subr.mxu0 %v1830_v24  ;;  %v1823_v48 = vld [vmem:[#allocation7 + $0x10b0] sm:$0xff]  ;;  %v966_v24 = vadd.f32 %v965_v34, %v964_v7  ;;  %v189_v0 = vmul.f32 %v3676_v57, %v106_v35 }
 0x153   :  { %2372 = vmatpush2.msra.mxu1 %v2039_v28  ;;  %v98_v40 = vld [vmem:[#allocation2 + $0xe0] sm:$0xff]  ;;  %v1266_v46 = vadd.f32 %v1265_v61, %v1128_v23  ;;  %v2027_v2 = vld [vmem:[#allocation7 + $0x1710] sm:$0xff]  ;;  %2307 = vmatpush2.msra.mxu0 %v1829_v33  ;;  %v1196_v33 = vadd.f32 %v1195_v50, %v1194_v47 }
 0x154   :  { %2373 = vmatprep.subr.mxu1 %v2034_v51  ;;  %v114_v44 = vld [vmem:[#allocation2 + $0x460] sm:$0xff]  ;;  %2308 = vmatprep.subr.mxu0 %v1824_v15  ;;  %v181_v20 = vmul.f32 %v3291_v10, %v98_v40  ;;  %v1811_v16 = vld [vmem:[#allocation7 + $0x1050] sm:$0xff]  ;;  %v895_v51 = vrot.slane %v894_v11, 1  ;;  %v2010_v15 = vld [vmem:[#allocation7 + $0x1688] sm:$0xff] }
 0x155   :  { %2374 = vmatpush2.msra.mxu1 %v2033_v21  ;;  %v122_v12 = vld [vmem:[#allocation2 + $0x4a0] sm:$0xff]  ;;  %v1267_v27 = vrot.slane %v1266_v46, 4  ;;  %2309 = vmatpush2.msra.mxu0 %v1823_v48  ;;  %v197_v52 = vmul.f32 %v3237_v42, %v114_v44  ;;  %v2015_v13 = vld [vmem:[#allocation7 + $0x16b0] sm:$0xff]  ;;  %v967_v21 = vrot.slane %v966_v24, 1  ;;  %v672_v48 = vadd.f32 %v592_v5, %v3544_v56 }
 0x156   :  { %2375 = vmatprep.subr.mxu1 %v2028_v49  ;;  %v2021_v23 = vld [vmem:[#allocation7 + $0x16e0] sm:$0xff]  ;;  %v1812_v19 = vld [vmem:[#allocation7 + $0x1058] sm:$0xff]  ;;  %2310 = vmatprep.subr.mxu0 %v1818_v6  ;;  %v205_v61 = vmul.f32 %v3261_v4, %v122_v12  ;;  %v253_v49 = vadd.f32 %v165_v8, %v157_v22  ;;  %v896_v40 = vadd.f32 %v895_v51, %v894_v11  ;;  %v1197_v1 = vrot.slane %v1196_v33, 2  ;;  %v2003_v5 = vld [vmem:[#allocation7 + $0x1650] sm:$0xff] }
 0x157   :  { %v130_v28 = vld [vmem:[#allocation2 + $0x4e0] sm:$0xff]  ;;  %2376 = vmatpush2.msra.mxu1 %v2027_v2  ;;  %v1268_v29 = vadd.f32 %v1267_v27, %v1266_v46  ;;  %2311 = vmatpush2.msra.mxu0 %v1817_v38  ;;  %v325_v35 = vadd.f32 %v197_v52, %v189_v0  ;;  %v968_v44 = vadd.f32 %v967_v21, %v966_v24  ;;  %v1794_v11 = vld [vmem:[#allocation7 + $0xfc8] sm:$0xff] }
 0x158   :  { %v2016_v59 = vld [vmem:[#allocation7 + $0x16b8] sm:$0xff]  ;;  %2377 = vmatprep.subr.mxu1 %v2022_v39  ;;  %2312 = vmatprep.subr.mxu0 %v1812_v19  ;;  %v213_v7 = vmul.f32 %v3291_v10, %v130_v28  ;;  %v2009_v46 = vld [vmem:[#allocation7 + $0x1680] sm:$0xff]  ;;  %v1799_v39 = vld [vmem:[#allocation7 + $0xff0] sm:$0xff]  ;;  %v254_v38 = vadd.f32 %v253_v49, %v173_v55  ;;  %v680_v22 = vadd.f32 %v664_v30, %v3547_v58 }
 0x159   :  { %2378 = vmatpush2.msra.mxu1 %v2021_v23  ;;  %v1269_v47 = vrot.slane %v1268_v29, 2  ;;  %2313 = vmatpush2.msra.mxu0 %v1811_v16  ;;  %v1800_v2 = vld [vmem:[#allocation7 + $0xff8] sm:$0xff]  ;;  %v326_v12 = vadd.f32 %v325_v35, %v205_v61  ;;  %v1198_v8 = vadd.f32 %v1197_v1, %v1196_v33  ;;  %v1998_v23 = vld [vmem:[#allocation7 + $0x1628] sm:$0xff]  ;;  %v1793_v19 = vld [vmem:[#allocation7 + $0xfc0] sm:$0xff]  ;;  %v976_v16 = vadd.f32 %v896_v40, %v672_v48 }
 0x15a   :  { %2379 = vmatprep.subr.mxu1 %v2016_v59  ;;  %v381_v6 = vld [vmem:[#allocation2 + $0x120] sm:$0xff]  ;;  %2314 = vmatprep.subr.mxu0 %v1806_v45  ;;  %v255_v28 = vadd.f32 %v254_v38, %v181_v20  ;;  %v984_v0 = vadd.f32 %v968_v44, %v680_v22  ;;  %v1991_v49 = vld [vmem:[#allocation7 + $0x15f0] sm:$0xff]  ;;  %v1782_v35 = vld [vmem:[#allocation7 + $0xf68] sm:$0xff] }
 0x15b   :  { %2380 = vmatpush2.msra.mxu1 %v2015_v13  ;;  %v2004_v34 = vld [vmem:[#allocation7 + $0x1658] sm:$0xff]  ;;  %v1270_v56 = vadd.f32 %v1269_v47, %v1268_v29  ;;  %2315 = vmatpush2.msra.mxu0 %v1805_v14  ;;  %v327_v24 = vadd.f32 %v326_v12, %v213_v7  ;;  %v461_v55 = vmul.f32 %v3677_v43, %v381_v6  ;;  %v1199_v52 = vrot.slane %v1198_v8, 1  ;;  %v1997_v30 = vld [vmem:[#allocation7 + $0x1620] sm:$0xff]  ;;  %v1787_v13 = vld [vmem:[#allocation7 + $0xf90] sm:$0xff] }
 0x15c   :  { %v389_v50 = vld [vmem:[#allocation2 + $0x160] sm:$0xff]  ;;  %2381 = vmatprep.subr.mxu1 %v2010_v15  ;;  %2316 = vmatprep.subr.mxu0 %v1800_v2  ;;  %v256_v45 = vrot.slane %v255_v28, 4  ;;  %v1986_v1 = vld [vmem:[#allocation7 + $0x15c8] sm:$0xff] }
 0x15d   :  { %v397_v27 = vld [vmem:[#allocation2 + $0x1a0] sm:$0xff]  ;;  %2382 = vmatpush2.msra.mxu1 %v2009_v46  ;;  %v1271_v58 = vrot.slane %v1270_v56, 1  ;;  %2317 = vmatpush2.msra.mxu0 %v1799_v39  ;;  %v328_v61 = vrot.slane %v327_v24, 4  ;;  %v469_v21 = vmul.f32 %v3235_v41, %v389_v50  ;;  %v1200_v14 = vadd.f32 %v1199_v52, %v1198_v8  ;;  %v1979_v50 = vld [vmem:[#allocation7 + $0x1590] sm:$0xff]  ;;  %v1974_v8 = vld [vmem:[#allocation7 + $0x1568] sm:$0xff] }
 0x15e   :  { %v421_v59 = vld [vmem:[#allocation2 + $0x560] sm:$0xff]  ;;  %2383 = vmatprep.subr.mxu1 %v2004_v34  ;;  %2318 = vmatprep.subr.mxu0 %v1794_v11  ;;  %v477_v15 = vmul.f32 %v3259_v3, %v397_v27  ;;  %v257_v46 = vadd.f32 %v256_v45, %v255_v28 }
 0x15f   :  { %v1788_v51 = vld [vmem:[#allocation7 + $0xf98] sm:$0xff]  ;;  %2384 = vmatpush2.msra.mxu1 %v2003_v5  ;;  %v1272_v7 = vadd.f32 %v1271_v58, %v1270_v56  ;;  %2319 = vmatpush2.msra.mxu0 %v1793_v19  ;;  %v501_v40 = vmul.f32 %v3235_v41, %v421_v59  ;;  %v1781_v47 = vld [vmem:[#allocation7 + $0xf60] sm:$0xff]  ;;  %v329_v2 = vadd.f32 %v328_v61, %v327_v24 }
 0x160   :  { %v413_v33 = vld [vmem:[#allocation2 + $0x520] sm:$0xff]  ;;  %2385 = vmatprep.subr.mxu1 %v1998_v23  ;;  %2320 = vmatprep.subr.mxu0 %v1788_v51  ;;  %v1280_v34 = vadd.f32 %v1200_v14, %v976_v16  ;;  %v258_v5 = vrot.slane %v257_v46, 2  ;;  %v557_v23 = vadd.f32 %v469_v21, %v461_v55  ;;  %v1775_v16 = vld [vmem:[#allocation7 + $0xf30] sm:$0xff]  ;;  %v1770_v51 = vld [vmem:[#allocation7 + $0xf08] sm:$0xff] }
 0x161   :  { %v1992_v29 = vld [vmem:[#allocation7 + $0x15f8] sm:$0xff]  ;;  %2386 = vmatpush2.msra.mxu1 %v1997_v30  ;;  %v493_v44 = vmul.f32 %v3677_v43, %v413_v33  ;;  %v1288_v39 = vadd.f32 %v1272_v7, %v984_v0  ;;  %v1985_v38 = vld [vmem:[#allocation7 + $0x15c0] sm:$0xff]  ;;  %2321 = vmatpush2.msra.mxu0 %v1787_v13  ;;  %v330_v11 = vrot.slane %v329_v2, 2 }
 0x162   :  { %v429_v20 = vld [vmem:[#allocation2 + $0x5a0] sm:$0xff]  ;;  %2387 = vmatprep.subr.mxu1 %v1992_v29  ;;  %2322 = vmatprep.subr.mxu0 %v1782_v35  ;;  %v259_v33 = vadd.f32 %v258_v5, %v257_v46  ;;  %v558_v29 = vadd.f32 %v557_v23, %v477_v15  ;;  %v1967_v35 = vld [vmem:[#allocation7 + $0x1530] sm:$0xff]  ;;  %v1382_v46 = vld [vmem:[#allocation7 + $0x2e8] sm:$0xff] }
 0x163   :  { %v405_v48 = vld [vmem:[#allocation2 + $0x1e0] sm:$0xff]  ;;  %v509_v22 = vmul.f32 %v3259_v3, %v429_v20  ;;  %2388 = vmatpush2.msra.mxu1 %v1991_v49  ;;  %v3567_v24 = vsel %vm2105_vm0, %v1288_v39, %v1280_v34  ;;  %2323 = vmatpush2.msra.mxu0 %v1781_v47  ;;  %v629_v52 = vadd.f32 %v501_v40, %v493_v44 }
 0x164   :  { %v437_v6 = vld [vmem:[#allocation2 + $0x5e0] sm:$0xff]  ;;  %v485_v27 = vmul.f32 %v3289_v9, %v405_v48  ;;  %2389 = vmatprep.subr.mxu1 %v1986_v1  ;;  %2399 = vmatprep.mubr.f32.mxu1 %v3567_v24  ;;  %v3571_v55 = vadd.f32 %v330_v11, %v329_v2  ;;  %v260_v48 = vrot.slane %v259_v33, 1 }
 0x165   :  { %v1980_v12 = vld [vmem:[#allocation7 + $0x1598] sm:$0xff]  ;;  %v1973_v59 = vld [vmem:[#allocation7 + $0x1560] sm:$0xff]  ;;  %v517_v0 = vmul.f32 %v3289_v9, %v437_v6  ;;  %2390 = vmatpush2.msra.mxu1 %v1985_v38  ;;  %v630_v21 = vadd.f32 %v629_v52, %v509_v22 }
 0x166   :  { %v1776_v56 = vld [vmem:[#allocation7 + $0xf38] sm:$0xff]  ;;  %2391 = vmatprep.subr.mxu1 %v1980_v12  ;;  %v1769_v20 = vld [vmem:[#allocation7 + $0xf00] sm:$0xff]  ;;  %v559_v40 = vadd.f32 %v558_v29, %v485_v27  ;;  %v1962_v12 = vld [vmem:[#allocation7 + $0x1508] sm:$0xff]  ;;  %v3579_v22 = vadd.f32 %v260_v48, %v259_v33 }
 0x167   :  { %v685_v19 = vld [vmem:[#allocation2 + $0x220] sm:$0xff]  ;;  %2324 = vmatprep.subr.mxu0 %v1776_v56  ;;  %2392 = vmatpush2.msra.mxu1 %v1979_v50  ;;  %v631_v2 = vadd.f32 %v630_v21, %v517_v0  ;;  %v332_v56 = vrot.slane %v3571_v55, 1  ;;  %v1574_v33 = vld [vmem:[#allocation7 + $0x8e8] sm:$0xff] }
 0x168   :  { %v693_v28 = vld [vmem:[#allocation2 + $0x260] sm:$0xff]  ;;  %v765_v7 = vmul.f32 %v3273_v32, %v685_v19  ;;  %2325 = vmatpush2.msra.mxu0 %v1775_v16  ;;  %2393 = vmatprep.subr.mxu1 %v1974_v8  ;;  %v560_v5 = vrot.slane %v559_v40, 4 }
 0x169   :  { %v701_v58 = vld [vmem:[#allocation2 + $0x2a0] sm:$0xff]  ;;  %v773_v49 = vmul.f32 %v3271_v31, %v693_v28  ;;  %2326 = vmatprep.subr.mxu0 %v1770_v51  ;;  %2394 = vmatpush2.msra.mxu1 %v1973_v59  ;;  %v632_v27 = vrot.slane %v631_v2, 4 }
 0x16a   :  { %v717_v30 = vld [vmem:[#allocation2 + $0x620] sm:$0xff]  ;;  %v781_v15 = vmul.f32 %v3313_v54, %v701_v58  ;;  %2327 = vmatpush2.msra.mxu0 %v1769_v20  ;;  %v561_v52 = vadd.f32 %v560_v5, %v559_v40  ;;  %v116_v5 = vld [vmem:[#allocation2 + $0x470] sm:$0xff] }
 0x16b   :  { %v725_v13 = vld [vmem:[#allocation2 + $0x660] sm:$0xff]  ;;  %v797_v47 = vmul.f32 %v3273_v32, %v717_v30  ;;  %v861_v19 = vadd.f32 %v773_v49, %v765_v7  ;;  %2406 = vmatprep.subr.mxu0 %v1382_v46  ;;  %v633_v29 = vadd.f32 %v632_v27, %v631_v2  ;;  %v84_v46 = vld [vmem:[#allocation2 + $0x70] sm:$0xff] }
 0x16c   :  { %v733_v45 = vld [vmem:[#allocation2 + $0x6a0] sm:$0xff]  ;;  %v805_v6 = vmul.f32 %v3271_v31, %v725_v13  ;;  %v562_v21 = vrot.slane %v561_v52, 2 }
 0x16d   :  { %v1968_v61 = vld [vmem:[#allocation7 + $0x1538] sm:$0xff]  ;;  %v813_v44 = vmul.f32 %v3313_v54, %v733_v45  ;;  %v1961_v50 = vld [vmem:[#allocation7 + $0x1500] sm:$0xff]  ;;  %v862_v13 = vadd.f32 %v861_v19, %v781_v15  ;;  %v333_v15 = vadd.f32 %v332_v56, %v3571_v55  ;;  %v100_v56 = vld [vmem:[#allocation2 + $0xf0] sm:$0xff] }
 0x16e   :  { %v709_v14 = vld [vmem:[#allocation2 + $0x2e0] sm:$0xff]  ;;  %2395 = vmatprep.subr.mxu1 %v1968_v61  ;;  %v933_v28 = vadd.f32 %v805_v6, %v797_v47  ;;  %v76_v47 = vld [vmem:[#allocation2 + $0x30] sm:$0xff]  ;;  %v563_v2 = vadd.f32 %v562_v21, %v561_v52 }
 0x16f   :  { %v741_v1 = vld [vmem:[#allocation2 + $0x6e0] sm:$0xff]  ;;  %v789_v8 = vmul.f32 %v3327_v17, %v709_v14  ;;  %2396 = vmatpush2.msra.mxu1 %v1967_v35  ;;  %v634_v35 = vrot.slane %v633_v29, 2 }
 0x170   :  { %v989_v34 = vld [vmem:[#allocation2 + $0x320] sm:$0xff]  ;;  %v821_v23 = vmul.f32 %v3327_v17, %v741_v1  ;;  %2397 = vmatprep.subr.mxu1 %v1962_v12  ;;  %v934_v45 = vadd.f32 %v933_v28, %v813_v44 }
 0x171   :  { %v997_v39 = vld [vmem:[#allocation2 + $0x360] sm:$0xff]  ;;  %v1069_v58 = vmul.f32 %v3311_v53, %v989_v34  ;;  %2398 = vmatpush2.msra.mxu1 %v1961_v50  ;;  %v863_v48 = vadd.f32 %v862_v13, %v789_v8  ;;  %v635_v34 = vadd.f32 %v634_v35, %v633_v29  ;;  %v92_v50 = vld [vmem:[#allocation2 + $0xb0] sm:$0xff]  ;;  %v159_v8 = vmul.f32 %v3676_v57, %v76_v47 }
 0x172   :  { %v1005_v38 = vld [vmem:[#allocation2 + $0x3a0] sm:$0xff]  ;;  %v1077_v30 = vmul.f32 %v3329_v18, %v997_v39  ;;  %v935_v40 = vadd.f32 %v934_v45, %v821_v23  ;;  %2477 = vmatprep.subr.mxu1 %v1574_v33  ;;  %v167_v23 = vmul.f32 %v3237_v42, %v84_v46 }
 0x173   :  { %v1013_v11 = vld [vmem:[#allocation2 + $0x3e0] sm:$0xff]  ;;  %v1085_v51 = vmul.f32 %v3337_v25, %v1005_v38  ;;  %v864_v39 = vrot.slane %v863_v48, 4  ;;  %v636_v19 = vrot.slane %v635_v34, 1 }
 0x174   :  { %v1021_v16 = vld [vmem:[#allocation2 + $0x720] sm:$0xff]  ;;  %v1093_v20 = vmul.f32 %v3339_v26, %v1013_v11  ;;  %v1165_v1 = vadd.f32 %v1077_v30, %v1069_v58  ;;  %v936_v38 = vrot.slane %v935_v40, 4  ;;  %v564_v11 = vrot.slane %v563_v2, 1 }
 0x175   :  { %v1029_v0 = vld [vmem:[#allocation2 + $0x760] sm:$0xff]  ;;  %v1101_v14 = vmul.f32 %v3311_v53, %v1021_v16  ;;  %v865_v28 = vadd.f32 %v864_v39, %v863_v48  ;;  %v175_v30 = vmul.f32 %v3261_v4, %v92_v50  ;;  %v637_v33 = vadd.f32 %v636_v19, %v635_v34 }
 0x176   :  { %v1037_v59 = vld [vmem:[#allocation2 + $0x7a0] sm:$0xff]  ;;  %v1109_v7 = vmul.f32 %v3329_v18, %v1029_v0  ;;  %v1166_v12 = vadd.f32 %v1165_v1, %v1085_v51  ;;  %v937_v16 = vadd.f32 %v936_v38, %v935_v40  ;;  %v108_v0 = vld [vmem:[#allocation2 + $0x430] sm:$0xff]  ;;  %v565_v52 = vadd.f32 %v564_v11, %v563_v2 }
 0x177   :  { %v1045_v61 = vld [vmem:[#allocation2 + $0x7e0] sm:$0xff]  ;;  %v1117_v49 = vmul.f32 %v3337_v25, %v1037_v59  ;;  %v124_v59 = vld [vmem:[#allocation2 + $0x4b0] sm:$0xff]  ;;  %v199_v51 = vmul.f32 %v3237_v42, %v116_v5  ;;  %v866_v29 = vrot.slane %v865_v28, 2  ;;  %v271_v46 = vadd.f32 %v167_v23, %v159_v8 }
 0x178   :  { %v1125_v6 = vmul.f32 %v3339_v26, %v1045_v61  ;;  %v1237_v44 = vadd.f32 %v1109_v7, %v1101_v14  ;;  %v1167_v55 = vadd.f32 %v1166_v12, %v1093_v20  ;;  %v938_v13 = vrot.slane %v937_v16, 2  ;;  %v132_v61 = vld [vmem:[#allocation2 + $0x4f0] sm:$0xff] }
 0x179   :  { %v183_v14 = vmul.f32 %v3291_v10, %v100_v56  ;;  %v191_v7 = vmul.f32 %v3676_v57, %v108_v0  ;;  %v207_v20 = vmul.f32 %v3261_v4, %v124_v59  ;;  %v867_v35 = vadd.f32 %v866_v29, %v865_v28  ;;  %v383_v1 = vld [vmem:[#allocation2 + $0x130] sm:$0xff] }
 0x17a   :  { %v1238_v27 = vadd.f32 %v1237_v44, %v1117_v49  ;;  %v1168_v45 = vrot.slane %v1167_v55, 4  ;;  %v669_v49 = vadd.f32 %v565_v52, %v3579_v22  ;;  %v939_v48 = vadd.f32 %v938_v13, %v937_v16  ;;  %v399_v44 = vld [vmem:[#allocation2 + $0x1b0] sm:$0xff] }
 0x17b   :  { %v215_v42 = vmul.f32 %v3291_v10, %v132_v61  ;;  %v343_v2 = vadd.f32 %v199_v51, %v191_v7  ;;  %v677_v34 = vadd.f32 %v637_v33, %v333_v15  ;;  %v868_v39 = vrot.slane %v867_v35, 1  ;;  %v407_v5 = vld [vmem:[#allocation2 + $0x1f0] sm:$0xff] }
 0x17c   :  { %v1239_v58 = vadd.f32 %v1238_v27, %v1125_v6  ;;  %v1169_v40 = vadd.f32 %v1168_v45, %v1167_v55  ;;  %v391_v6 = vld [vmem:[#allocation2 + $0x170] sm:$0xff]  ;;  %v940_v38 = vrot.slane %v939_v48, 1  ;;  %v272_v50 = vadd.f32 %v271_v46, %v175_v30 }
 0x17d   :  { %v344_v4 = vadd.f32 %v343_v2, %v207_v20  ;;  %v415_v22 = vld [vmem:[#allocation2 + $0x530] sm:$0xff]  ;;  %v463_v27 = vmul.f32 %v3677_v43, %v383_v1  ;;  %v869_v19 = vadd.f32 %v868_v39, %v867_v35  ;;  %v471_v10 = vmul.f32 %v3235_v41, %v391_v6 }
 0x17e   :  { %v1240_v21 = vrot.slane %v1239_v58, 4  ;;  %v1170_v12 = vrot.slane %v1169_v40, 2  ;;  %v423_v11 = vld [vmem:[#allocation2 + $0x570] sm:$0xff]  ;;  %v479_v8 = vmul.f32 %v3259_v3, %v399_v44  ;;  %v941_v23 = vadd.f32 %v940_v38, %v939_v48 }
 0x17f   :  { %v431_v16 = vld [vmem:[#allocation2 + $0x5b0] sm:$0xff]  ;;  %v273_v55 = vadd.f32 %v272_v50, %v183_v14  ;;  %v345_v56 = vadd.f32 %v344_v4, %v215_v42  ;;  %v487_v52 = vmul.f32 %v3289_v9, %v407_v5  ;;  %v503_v30 = vmul.f32 %v3235_v41, %v423_v11  ;;  %v1376_v11 = vld [vmem:[#allocation7 + $0x2b8] sm:$0xff] }
 0x180   :  { %v1241_v47 = vadd.f32 %v1240_v21, %v1239_v58  ;;  %v1171_v28 = vadd.f32 %v1170_v12, %v1169_v40  ;;  %v439_v0 = vld [vmem:[#allocation2 + $0x5f0] sm:$0xff]  ;;  %v495_v58 = vmul.f32 %v3677_v43, %v415_v22  ;;  %v973_v51 = vadd.f32 %v869_v19, %v669_v49 }
 0x181   :  { %v274_v29 = vrot.slane %v273_v55, 4  ;;  %v511_v13 = vmul.f32 %v3259_v3, %v431_v16  ;;  %v519_v61 = vmul.f32 %v3289_v9, %v439_v0  ;;  %v575_v21 = vadd.f32 %v471_v10, %v463_v27  ;;  %v687_v14 = vld [vmem:[#allocation2 + $0x230] sm:$0xff] }
 0x182   :  { %v1242_v57 = vrot.slane %v1241_v47, 2  ;;  %v1172_v59 = vrot.slane %v1171_v28, 1  ;;  %v647_v7 = vadd.f32 %v503_v30, %v495_v58  ;;  %v695_v20 = vld [vmem:[#allocation2 + $0x270] sm:$0xff]  ;;  %v981_v35 = vadd.f32 %v941_v23, %v677_v34 }
 0x183   :  { %v346_v40 = vrot.slane %v345_v56, 4  ;;  %v719_v1 = vld [vmem:[#allocation2 + $0x630] sm:$0xff]  ;;  %v576_v43 = vadd.f32 %v575_v21, %v479_v8  ;;  %v767_v3 = vmul.f32 %v3273_v32, %v687_v14  ;;  %v775_v9 = vmul.f32 %v3271_v31, %v695_v20  ;;  %v1364_v21 = vld [vmem:[#allocation7 + $0x258] sm:$0xff] }
 0x184   :  { %v1243_v15 = vadd.f32 %v1242_v57, %v1241_v47  ;;  %v1173_v45 = vadd.f32 %v1172_v59, %v1171_v28  ;;  %v648_v42 = vadd.f32 %v647_v7, %v511_v13  ;;  %v703_v41 = vld [vmem:[#allocation2 + $0x2b0] sm:$0xff]  ;;  %v3612_v44 = vadd.f32 %v274_v29, %v273_v55  ;;  %v1381_v57 = vld [vmem:[#allocation7 + $0x2e0] sm:$0xff] }
 0x185   :  { %v727_v49 = vld [vmem:[#allocation2 + $0x670] sm:$0xff]  ;;  %v577_v39 = vadd.f32 %v576_v43, %v487_v52  ;;  %v799_v12 = vmul.f32 %v3273_v32, %v719_v1  ;;  %v347_v4 = vadd.f32 %v346_v40, %v345_v56  ;;  %v783_v5 = vmul.f32 %v3313_v54, %v703_v41 }
 0x186   :  { %v1244_v33 = vrot.slane %v1243_v15, 1  ;;  %v1277_v47 = vadd.f32 %v1173_v45, %v973_v51  ;;  %v711_v2 = vld [vmem:[#allocation2 + $0x2f0] sm:$0xff]  ;;  %v649_v38 = vadd.f32 %v648_v42, %v519_v61  ;;  %v807_v22 = vmul.f32 %v3271_v31, %v727_v49 }
 0x187   :  { %v735_v6 = vld [vmem:[#allocation2 + $0x6b0] sm:$0xff]  ;;  %v578_v27 = vrot.slane %v577_v39, 4  ;;  %v791_v28 = vmul.f32 %v3327_v17, %v711_v2  ;;  %v276_v59 = vrot.slane %v3612_v44, 2  ;;  %v1357_v2 = vld [vmem:[#allocation7 + $0x220] sm:$0xff] }
 0x188   :  { %v1245_v48 = vadd.f32 %v1244_v33, %v1243_v15  ;;  %v743_v34 = vld [vmem:[#allocation2 + $0x6f0] sm:$0xff]  ;;  %v650_v19 = vrot.slane %v649_v38, 4  ;;  %v815_v16 = vmul.f32 %v3313_v54, %v735_v6  ;;  %v879_v15 = vadd.f32 %v775_v9, %v767_v3  ;;  %v1369_v54 = vld [vmem:[#allocation7 + $0x280] sm:$0xff] }
 0x189   :  { %v991_v10 = vld [vmem:[#allocation2 + $0x330] sm:$0xff]  ;;  %v823_v23 = vmul.f32 %v3327_v17, %v743_v34  ;;  %v951_v55 = vadd.f32 %v807_v22, %v799_v12  ;;  %v579_v52 = vadd.f32 %v578_v27, %v577_v39  ;;  %v348_v33 = vrot.slane %v347_v4, 2  ;;  %v1345_v27 = vld [vmem:[#allocation7 + $0x1c0] sm:$0xff] }
 0x18a   :  { %v1285_v46 = vadd.f32 %v1245_v48, %v981_v35  ;;  %v999_v32 = vld [vmem:[#allocation2 + $0x370] sm:$0xff]  ;;  %v651_v58 = vadd.f32 %v650_v19, %v649_v38  ;;  %v880_v29 = vadd.f32 %v879_v15, %v783_v5  ;;  %v1071_v20 = vmul.f32 %v3311_v53, %v991_v10  ;;  %v1352_v38 = vld [vmem:[#allocation7 + $0x1f8] sm:$0xff] }
 0x18b   :  { %v1375_v8 = vld [vmem:[#allocation7 + $0x2b0] sm:$0xff]  ;;  %v1370_v31 = vld [vmem:[#allocation7 + $0x288] sm:$0xff]  ;;  %v952_v13 = vadd.f32 %v951_v55, %v815_v16  ;;  %v1079_v61 = vmul.f32 %v3329_v18, %v999_v32  ;;  %v580_v7 = vrot.slane %v579_v52, 2  ;;  %v349_v34 = vadd.f32 %v348_v33, %v347_v4  ;;  %v1340_v32 = vld [vmem:[#allocation7 + $0x198] sm:$0xff] }
 0x18c   :  { %v3616_v50 = vsel %vm2105_vm0, %v1285_v46, %v1277_v47  ;;  %v1007_v56 = vld [vmem:[#allocation2 + $0x3b0] sm:$0xff]  ;;  %v652_v14 = vrot.slane %v651_v58, 2  ;;  %v881_v40 = vadd.f32 %v880_v29, %v791_v28  ;;  %v1328_v33 = vld [vmem:[#allocation7 + $0x138] sm:$0xff] }
 0x18d   :  { %2329 = vmatmul.mubr.f32.vlgmr.msra.gmra.mxu0 %v3616_v50  ;;  %v1015_v0 = vld [vmem:[#allocation2 + $0x3f0] sm:$0xff]  ;;  %v1087_v35 = vmul.f32 %v3337_v25, %v1007_v56  ;;  %v953_v1 = vadd.f32 %v952_v13, %v823_v23  ;;  %v1183_v9 = vadd.f32 %v1079_v61, %v1071_v20  ;;  %v350_v4 = vrot.slane %v349_v34, 1  ;;  %v1321_v20 = vld [vmem:[#allocation7 + $0x100] sm:$0xff] }
 0x18e   :  { %2407 = vmatpush1.msra.mxu0 %v1381_v57  ;;  %2470 = vmatprep.mubr.f32.mxu0 %v3371_v62  ;;  %v1023_v30 = vld [vmem:[#allocation2 + $0x730] sm:$0xff]  ;;  %v1095_v41 = vmul.f32 %v3339_v26, %v1015_v0  ;;  %v882_v6 = vrot.slane %v881_v40, 4  ;;  %v653_v12 = vadd.f32 %v652_v14, %v651_v58 }
 0x18f   :  { %v1031_v51 = vld [vmem:[#allocation2 + $0x770] sm:$0xff]  ;;  %2408 = vmatprep.subr.mxu0 %v1376_v11  ;;  %v1103_v47 = vmul.f32 %v3311_v53, %v1023_v30  ;;  %v954_v3 = vrot.slane %v953_v1, 4  ;;  %v277_v53 = vadd.f32 %v276_v59, %v3612_v44  ;;  %v351_v13 = vadd.f32 %v350_v4, %v349_v34 }
 0x190   :  { %v1039_v17 = vld [vmem:[#allocation2 + $0x7b0] sm:$0xff]  ;;  %2409 = vmatpush1.msra.mxu0 %v1375_v8  ;;  %v1111_v43 = vmul.f32 %v3329_v18, %v1031_v51  ;;  %v581_v18 = vadd.f32 %v580_v7, %v579_v52  ;;  %v883_v5 = vadd.f32 %v882_v6, %v881_v40  ;;  %v654_v23 = vrot.slane %v653_v12, 1  ;;  %v1333_v52 = vld [vmem:[#allocation7 + $0x160] sm:$0xff] }
 0x191   :  { %v1047_v45 = vld [vmem:[#allocation2 + $0x7f0] sm:$0xff]  ;;  %2410 = vmatprep.subr.mxu0 %v1370_v31  ;;  %v1119_v49 = vmul.f32 %v3337_v25, %v1039_v17  ;;  %v955_v22 = vadd.f32 %v954_v3, %v953_v1  ;;  %v1184_v25 = vadd.f32 %v1183_v9, %v1087_v35  ;;  %v278_v44 = vrot.slane %v277_v53, 1  ;;  %v1309_v6 = vld [vmem:[#allocation7 + $0xa0] sm:$0xff] }
 0x192   :  { %v1363_v48 = vld [vmem:[#allocation7 + $0x250] sm:$0xff]  ;;  %2411 = vmatpush1.msra.mxu0 %v1369_v54  ;;  %v1358_v42 = vld [vmem:[#allocation7 + $0x228] sm:$0xff]  ;;  %v1127_v46 = vmul.f32 %v3339_v26, %v1047_v45  ;;  %v1255_v39 = vadd.f32 %v1111_v43, %v1103_v47  ;;  %v884_v19 = vrot.slane %v883_v5, 2  ;;  %v582_v8 = vrot.slane %v581_v18, 1  ;;  %v1316_v47 = vld [vmem:[#allocation7 + $0xd8] sm:$0xff] }
 0x193   :  { %2412 = vmatprep.subr.mxu0 %v1364_v21  ;;  %v1351_v57 = vld [vmem:[#allocation7 + $0x1f0] sm:$0xff]  ;;  %v1346_v26 = vld [vmem:[#allocation7 + $0x1c8] sm:$0xff]  ;;  %v956_v28 = vrot.slane %v955_v22, 2  ;;  %v1185_v16 = vadd.f32 %v1184_v25, %v1095_v41  ;;  %v279_v29 = vadd.f32 %v278_v44, %v277_v53  ;;  %v655_v61 = vadd.f32 %v654_v23, %v653_v12  ;;  %v1304_v53 = vld [vmem:[#allocation7 + $0x78] sm:$0xff] }
 0x194   :  { %2413 = vmatpush1.msra.mxu0 %v1363_v48  ;;  %v1256_v11 = vadd.f32 %v1255_v39, %v1119_v49  ;;  %v1339_v15 = vld [vmem:[#allocation7 + $0x190] sm:$0xff]  ;;  %v885_v55 = vadd.f32 %v884_v19, %v883_v5  ;;  %v1334_v59 = vld [vmem:[#allocation7 + $0x168] sm:$0xff]  ;;  %v583_v45 = vadd.f32 %v582_v8, %v581_v18  ;;  %v1573_v5 = vld [vmem:[#allocation7 + $0x8e0] sm:$0xff] }
 0x195   :  { %2414 = vmatprep.subr.mxu0 %v1358_v42  ;;  %v957_v56 = vadd.f32 %v956_v28, %v955_v22  ;;  %v1186_v0 = vrot.slane %v1185_v16, 4  ;;  %v1327_v17 = vld [vmem:[#allocation7 + $0x130] sm:$0xff]  ;;  %v1322_v14 = vld [vmem:[#allocation7 + $0x108] sm:$0xff]  ;;  %v679_v41 = vadd.f32 %v655_v61, %v351_v13  ;;  %v1568_v25 = vld [vmem:[#allocation7 + $0x8b8] sm:$0xff] }
 0x196   :  { %2415 = vmatpush1.msra.mxu0 %v1357_v2  ;;  %v1257_v10 = vadd.f32 %v1256_v11, %v1127_v46  ;;  %v886_v58 = vrot.slane %v885_v55, 1  ;;  %v1315_v43 = vld [vmem:[#allocation7 + $0xd0] sm:$0xff]  ;;  %v671_v42 = vadd.f32 %v583_v45, %v279_v29  ;;  %v1310_v2 = vld [vmem:[#allocation7 + $0xa8] sm:$0xff]  ;;  %v1297_v11 = vld [vmem:[#allocation7 + $0x40] sm:$0xff] }
 0x197   :  { %2416 = vmatprep.subr.mxu0 %v1352_v38  ;;  %v958_v30 = vrot.slane %v957_v56, 1  ;;  %v1187_v51 = vadd.f32 %v1186_v0, %v1185_v16  ;;  %v1303_v34 = vld [vmem:[#allocation7 + $0x70] sm:$0xff]  ;;  %v1562_v19 = vld [vmem:[#allocation7 + $0x888] sm:$0xff]  ;;  %v1561_v16 = vld [vmem:[#allocation7 + $0x880] sm:$0xff] }
 0x198   :  { %2417 = vmatpush1.msra.mxu0 %v1351_v57  ;;  %v1258_v31 = vrot.slane %v1257_v10, 4  ;;  %v887_v35 = vadd.f32 %v886_v58, %v885_v55  ;;  %v1298_v57 = vld [vmem:[#allocation7 + $0x48] sm:$0xff]  ;;  %v1291_v28 = vld [vmem:[#allocation7 + $0x10] sm:$0xff]  ;;  %v1477_v44 = vld [vmem:[#allocation7 + $0x5e0] sm:$0xff] }
 0x199   :  { %2418 = vmatprep.subr.mxu0 %v1346_v26  ;;  %v1188_v21 = vrot.slane %v1187_v51, 2  ;;  %v959_v48 = vadd.f32 %v958_v30, %v957_v56  ;;  %v1567_v26 = vld [vmem:[#allocation7 + $0x8b0] sm:$0xff]  ;;  %v1472_v8 = vld [vmem:[#allocation7 + $0x5b8] sm:$0xff]  ;;  %v1550_v23 = vld [vmem:[#allocation7 + $0x828] sm:$0xff] }
 0x19a   :  { %2419 = vmatpush1.msra.mxu0 %v1345_v27  ;;  %v1259_v54 = vadd.f32 %v1258_v31, %v1257_v10  ;;  %v975_v3 = vadd.f32 %v887_v35, %v671_v42  ;;  %v1292_v27 = vld [vmem:[#allocation7 + $0x18] sm:$0xff]  ;;  %v1478_v10 = vld [vmem:[#allocation7 + $0x5e8] sm:$0xff]  ;;  %v1555_v4 = vld [vmem:[#allocation7 + $0x850] sm:$0xff] }
 0x19b   :  { %2420 = vmatprep.subr.mxu0 %v1340_v32  ;;  %v1189_v40 = vadd.f32 %v1188_v21, %v1187_v51  ;;  %v983_v9 = vadd.f32 %v959_v48, %v679_v41  ;;  %v1556_v32 = vld [vmem:[#allocation7 + $0x858] sm:$0xff]  ;;  %v1549_v55 = vld [vmem:[#allocation7 + $0x820] sm:$0xff]  ;;  %v1466_v56 = vld [vmem:[#allocation7 + $0x588] sm:$0xff] }
 0x19c   :  { %2421 = vmatpush1.msra.mxu0 %v1339_v15  ;;  %v1260_v7 = vrot.slane %v1259_v54, 2  ;;  %v1471_v15 = vld [vmem:[#allocation7 + $0x5b0] sm:$0xff]  ;;  %v1544_v0 = vld [vmem:[#allocation7 + $0x7f8] sm:$0xff]  ;;  %v1465_v31 = vld [vmem:[#allocation7 + $0x580] sm:$0xff] }
 0x19d   :  { %2422 = vmatprep.subr.mxu0 %v1334_v59  ;;  %v1190_v49 = vrot.slane %v1189_v40, 1  ;;  %v1543_v59 = vld [vmem:[#allocation7 + $0x7f0] sm:$0xff]  ;;  %v1538_v58 = vld [vmem:[#allocation7 + $0x7c8] sm:$0xff]  ;;  %v1537_v51 = vld [vmem:[#allocation7 + $0x7c0] sm:$0xff] }
 0x19e   :  { %2423 = vmatpush1.msra.mxu0 %v1333_v52  ;;  %v1261_v1 = vadd.f32 %v1260_v7, %v1259_v54  ;;  %v1460_v52 = vld [vmem:[#allocation7 + $0x558] sm:$0xff]  ;;  %v1459_v30 = vld [vmem:[#allocation7 + $0x550] sm:$0xff]  ;;  %v1454_v54 = vld [vmem:[#allocation7 + $0x528] sm:$0xff] }
 0x19f   :  { %2424 = vmatprep.subr.mxu0 %v1328_v33  ;;  %v1191_v39 = vadd.f32 %v1190_v49, %v1189_v40  ;;  %v1532_v33 = vld [vmem:[#allocation7 + $0x798] sm:$0xff]  ;;  %v1453_v29 = vld [vmem:[#allocation7 + $0x520] sm:$0xff]  ;;  %v1531_v13 = vld [vmem:[#allocation7 + $0x790] sm:$0xff] }
 0x1a0   :  { %2425 = vmatpush1.msra.mxu0 %v1327_v17  ;;  %v1262_v46 = vrot.slane %v1261_v1, 1  ;;  %v1448_v17 = vld [vmem:[#allocation7 + $0x4f8] sm:$0xff]  ;;  %v1526_v45 = vld [vmem:[#allocation7 + $0x768] sm:$0xff]  ;;  %v1447_v61 = vld [vmem:[#allocation7 + $0x4f0] sm:$0xff] }
 0x1a1   :  { %2426 = vmatprep.subr.mxu0 %v1322_v14  ;;  %v1279_v18 = vadd.f32 %v1191_v39, %v975_v3  ;;  %v1525_v21 = vld [vmem:[#allocation7 + $0x760] sm:$0xff]  ;;  %v1442_v7 = vld [vmem:[#allocation7 + $0x4c8] sm:$0xff]  ;;  %v1520_v14 = vld [vmem:[#allocation7 + $0x738] sm:$0xff] }
 0x1a2   :  { %2427 = vmatpush1.msra.mxu0 %v1321_v20  ;;  %v1263_v38 = vadd.f32 %v1262_v46, %v1261_v1  ;;  %v1441_v20 = vld [vmem:[#allocation7 + $0x4c0] sm:$0xff]  ;;  %v1519_v35 = vld [vmem:[#allocation7 + $0x730] sm:$0xff]  ;;  %v1436_v48 = vld [vmem:[#allocation7 + $0x498] sm:$0xff] }
 0x1a3   :  { %2428 = vmatprep.subr.mxu0 %v1316_v47  ;;  %v1514_v40 = vld [vmem:[#allocation7 + $0x708] sm:$0xff]  ;;  %v1435_v1 = vld [vmem:[#allocation7 + $0x490] sm:$0xff]  ;;  %v1513_v47 = vld [vmem:[#allocation7 + $0x700] sm:$0xff] }
 0x1a4   :  { %2429 = vmatpush1.msra.mxu0 %v1315_v43  ;;  %v1287_v12 = vadd.f32 %v1263_v38, %v983_v9  ;;  %v1430_v43 = vld [vmem:[#allocation7 + $0x468] sm:$0xff]  ;;  %v1508_v42 = vld [vmem:[#allocation7 + $0x6d8] sm:$0xff]  ;;  %v1429_v41 = vld [vmem:[#allocation7 + $0x460] sm:$0xff] }
 0x1a5   :  { %2430 = vmatprep.subr.mxu0 %v1310_v2  ;;  %v1507_v49 = vld [vmem:[#allocation7 + $0x6d0] sm:$0xff]  ;;  %v1424_v46 = vld [vmem:[#allocation7 + $0x438] sm:$0xff]  ;;  %v1502_v2 = vld [vmem:[#allocation7 + $0x6a8] sm:$0xff] }
 0x1a6   :  { %2431 = vmatpush1.msra.mxu0 %v1309_v6  ;;  %v3636_v22 = vsel %vm2105_vm0, %v1287_v12, %v1279_v18  ;;  %v1423_v6 = vld [vmem:[#allocation7 + $0x430] sm:$0xff]  ;;  %v1501_v3 = vld [vmem:[#allocation7 + $0x6a0] sm:$0xff]  ;;  %v1418_v9 = vld [vmem:[#allocation7 + $0x408] sm:$0xff] }
 0x1a7   :  { %2432 = vmatprep.subr.mxu0 %v1304_v53  ;;  %2400 = vmatmul.mubr.f32.vlgmr.msra.gmra.mxu1 %v3636_v22  ;;  %v1496_v39 = vld [vmem:[#allocation7 + $0x678] sm:$0xff]  ;;  %v1417_v38 = vld [vmem:[#allocation7 + $0x400] sm:$0xff]  ;;  %v1495_v53 = vld [vmem:[#allocation7 + $0x670] sm:$0xff] }
 0x1a8   :  { %2433 = vmatpush1.msra.mxu0 %v1303_v34  ;;  %2478 = vmatpush1.msra.mxu1 %v1573_v5  ;;  %v1412_v34 = vld [vmem:[#allocation7 + $0x3d8] sm:$0xff]  ;;  %v1490_v18 = vld [vmem:[#allocation7 + $0x648] sm:$0xff]  ;;  %v1411_v12 = vld [vmem:[#allocation7 + $0x3d0] sm:$0xff] }
 0x1a9   :  { %2434 = vmatprep.subr.mxu0 %v1298_v57  ;;  %2541 = vmatprep.mubr.f32.mxu1 %v3400_v60  ;;  %v1489_v57 = vld [vmem:[#allocation7 + $0x640] sm:$0xff]  ;;  %v1406_v5 = vld [vmem:[#allocation7 + $0x3a8] sm:$0xff] }
 0x1aa   :  { %2479 = vmatprep.subr.mxu1 %v1568_v25  ;;  %2435 = vmatpush1.msra.mxu0 %v1297_v11  ;;  %v1484_v25 = vld [vmem:[#allocation7 + $0x618] sm:$0xff]  ;;  %v1405_v11 = vld [vmem:[#allocation7 + $0x3a0] sm:$0xff] }
 0x1ab   :  { %2480 = vmatpush1.msra.mxu1 %v1567_v26  ;;  %2436 = vmatprep.subr.mxu0 %v1292_v27  ;;  %v1483_v26 = vld [vmem:[#allocation7 + $0x610] sm:$0xff]  ;;  %v1400_v27 = vld [vmem:[#allocation7 + $0x378] sm:$0xff] }
 0x1ac   :  { %2481 = vmatprep.subr.mxu1 %v1562_v19  ;;  %2437 = vmatpush1.msra.mxu0 %v1291_v28  ;;  %v1670_v19 = vld [vmem:[#allocation7 + $0xbe8] sm:$0xff]  ;;  %v1399_v28 = vld [vmem:[#allocation7 + $0x370] sm:$0xff] }
 0x1ad   :  { %2482 = vmatpush1.msra.mxu1 %v1561_v16  ;;  %2438 = vmatprep.subr.mxu0 %v1478_v10  ;;  %v1669_v16 = vld [vmem:[#allocation7 + $0xbe0] sm:$0xff]  ;;  %v1394_v10 = vld [vmem:[#allocation7 + $0x348] sm:$0xff] }
 0x1ae   :  { %2483 = vmatprep.subr.mxu1 %v1556_v32  ;;  %2439 = vmatpush2.msra.mxu0 %v1477_v44  ;;  %v1664_v32 = vld [vmem:[#allocation7 + $0xbb8] sm:$0xff]  ;;  %v1393_v44 = vld [vmem:[#allocation7 + $0x340] sm:$0xff] }
 0x1af   :  { %2484 = vmatpush1.msra.mxu1 %v1555_v4  ;;  %2440 = vmatprep.subr.mxu0 %v1472_v8  ;;  %v1663_v4 = vld [vmem:[#allocation7 + $0xbb0] sm:$0xff]  ;;  %v1388_v8 = vld [vmem:[#allocation7 + $0x318] sm:$0xff] }
 0x1b0   :  { %2485 = vmatprep.subr.mxu1 %v1550_v23  ;;  %2441 = vmatpush2.msra.mxu0 %v1471_v15  ;;  %v1658_v23 = vld [vmem:[#allocation7 + $0xb88] sm:$0xff]  ;;  %v1387_v15 = vld [vmem:[#allocation7 + $0x310] sm:$0xff] }
 0x1b1   :  { %2486 = vmatpush1.msra.mxu1 %v1549_v55  ;;  %2442 = vmatprep.subr.mxu0 %v1466_v56  ;;  %v1657_v55 = vld [vmem:[#allocation7 + $0xb80] sm:$0xff]  ;;  %v1652_v56 = vld [vmem:[#allocation7 + $0xb58] sm:$0xff] }
 0x1b2   :  { %2487 = vmatprep.subr.mxu1 %v1544_v0  ;;  %2443 = vmatpush2.msra.mxu0 %v1465_v31  ;;  %v1766_v0 = vld [vmem:[#allocation7 + $0xee8] sm:$0xff]  ;;  %v1651_v31 = vld [vmem:[#allocation7 + $0xb50] sm:$0xff] }
 0x1b3   :  { %2488 = vmatpush1.msra.mxu1 %v1543_v59  ;;  %2444 = vmatprep.subr.mxu0 %v1460_v52  ;;  %v1765_v59 = vld [vmem:[#allocation7 + $0xee0] sm:$0xff]  ;;  %v1646_v52 = vld [vmem:[#allocation7 + $0xb28] sm:$0xff] }
 0x1b4   :  { %2489 = vmatprep.subr.mxu1 %v1538_v58  ;;  %2445 = vmatpush2.msra.mxu0 %v1459_v30  ;;  %v1645_v58 = vld [vmem:[#allocation7 + $0xb20] sm:$0xff]  ;;  %v1760_v30 = vld [vmem:[#allocation7 + $0xeb8] sm:$0xff] }
 0x1b5   :  { %2490 = vmatpush1.msra.mxu1 %v1537_v51  ;;  %2446 = vmatprep.subr.mxu0 %v1454_v54  ;;  %v1640_v51 = vld [vmem:[#allocation7 + $0xaf8] sm:$0xff]  ;;  %v1759_v54 = vld [vmem:[#allocation7 + $0xeb0] sm:$0xff] }
 0x1b6   :  { %2491 = vmatprep.subr.mxu1 %v1532_v33  ;;  %2447 = vmatpush2.msra.mxu0 %v1453_v29  ;;  %v1639_v33 = vld [vmem:[#allocation7 + $0xaf0] sm:$0xff]  ;;  %v1754_v29 = vld [vmem:[#allocation7 + $0xe88] sm:$0xff] }
 0x1b7   :  { %2492 = vmatpush1.msra.mxu1 %v1531_v13  ;;  %2448 = vmatprep.subr.mxu0 %v1448_v17  ;;  %v1634_v13 = vld [vmem:[#allocation7 + $0xac8] sm:$0xff]  ;;  %v1753_v17 = vld [vmem:[#allocation7 + $0xe80] sm:$0xff] }
 0x1b8   :  { %2493 = vmatprep.subr.mxu1 %v1526_v45  ;;  %2449 = vmatpush2.msra.mxu0 %v1447_v61  ;;  %v1633_v45 = vld [vmem:[#allocation7 + $0xac0] sm:$0xff]  ;;  %v1748_v61 = vld [vmem:[#allocation7 + $0xe58] sm:$0xff] }
 0x1b9   :  { %2494 = vmatpush1.msra.mxu1 %v1525_v21  ;;  %2450 = vmatprep.subr.mxu0 %v1442_v7  ;;  %v1628_v21 = vld [vmem:[#allocation7 + $0xa98] sm:$0xff]  ;;  %v1747_v7 = vld [vmem:[#allocation7 + $0xe50] sm:$0xff] }
 0x1ba   :  { %2495 = vmatprep.subr.mxu1 %v1520_v14  ;;  %2451 = vmatpush2.msra.mxu0 %v1441_v20  ;;  %v1627_v14 = vld [vmem:[#allocation7 + $0xa90] sm:$0xff]  ;;  %v1742_v20 = vld [vmem:[#allocation7 + $0xe28] sm:$0xff] }
 0x1bb   :  { %2496 = vmatpush1.msra.mxu1 %v1519_v35  ;;  %2452 = vmatprep.subr.mxu0 %v1436_v48  ;;  %v1622_v35 = vld [vmem:[#allocation7 + $0xa68] sm:$0xff]  ;;  %v1741_v48 = vld [vmem:[#allocation7 + $0xe20] sm:$0xff] }
 0x1bc   :  { %2497 = vmatprep.subr.mxu1 %v1514_v40  ;;  %2453 = vmatpush2.msra.mxu0 %v1435_v1  ;;  %v1621_v40 = vld [vmem:[#allocation7 + $0xa60] sm:$0xff]  ;;  %v1736_v1 = vld [vmem:[#allocation7 + $0xdf8] sm:$0xff] }
 0x1bd   :  { %2498 = vmatpush1.msra.mxu1 %v1513_v47  ;;  %2454 = vmatprep.subr.mxu0 %v1430_v43  ;;  %v1616_v47 = vld [vmem:[#allocation7 + $0xa38] sm:$0xff]  ;;  %v1735_v43 = vld [vmem:[#allocation7 + $0xdf0] sm:$0xff] }
 0x1be   :  { %2499 = vmatprep.subr.mxu1 %v1508_v42  ;;  %2455 = vmatpush2.msra.mxu0 %v1429_v41  ;;  %v1615_v42 = vld [vmem:[#allocation7 + $0xa30] sm:$0xff]  ;;  %v1730_v41 = vld [vmem:[#allocation7 + $0xdc8] sm:$0xff] }
 0x1bf   :  { %2500 = vmatpush1.msra.mxu1 %v1507_v49  ;;  %2456 = vmatprep.subr.mxu0 %v1424_v46  ;;  %v1610_v49 = vld [vmem:[#allocation7 + $0xa08] sm:$0xff]  ;;  %v1729_v46 = vld [vmem:[#allocation7 + $0xdc0] sm:$0xff] }
 0x1c0   :  { %2501 = vmatprep.subr.mxu1 %v1502_v2  ;;  %2457 = vmatpush2.msra.mxu0 %v1423_v6  ;;  %v1609_v2 = vld [vmem:[#allocation7 + $0xa00] sm:$0xff]  ;;  %v1724_v6 = vld [vmem:[#allocation7 + $0xd98] sm:$0xff] }
 0x1c1   :  { %2502 = vmatpush1.msra.mxu1 %v1501_v3  ;;  %2458 = vmatprep.subr.mxu0 %v1418_v9  ;;  %v1604_v3 = vld [vmem:[#allocation7 + $0x9d8] sm:$0xff]  ;;  %v1723_v9 = vld [vmem:[#allocation7 + $0xd90] sm:$0xff] }
 0x1c2   :  { %2503 = vmatprep.subr.mxu1 %v1496_v39  ;;  %2459 = vmatpush2.msra.mxu0 %v1417_v38  ;;  %v1603_v39 = vld [vmem:[#allocation7 + $0x9d0] sm:$0xff]  ;;  %v1718_v38 = vld [vmem:[#allocation7 + $0xd68] sm:$0xff] }
 0x1c3   :  { %2504 = vmatpush1.msra.mxu1 %v1495_v53  ;;  %2460 = vmatprep.subr.mxu0 %v1412_v34  ;;  %v1598_v53 = vld [vmem:[#allocation7 + $0x9a8] sm:$0xff]  ;;  %v1717_v34 = vld [vmem:[#allocation7 + $0xd60] sm:$0xff] }
 0x1c4   :  { %2505 = vmatprep.subr.mxu1 %v1490_v18  ;;  %2461 = vmatpush2.msra.mxu0 %v1411_v12  ;;  %v1597_v18 = vld [vmem:[#allocation7 + $0x9a0] sm:$0xff]  ;;  %v1712_v12 = vld [vmem:[#allocation7 + $0xd38] sm:$0xff] }
 0x1c5   :  { %2506 = vmatpush1.msra.mxu1 %v1489_v57  ;;  %2462 = vmatprep.subr.mxu0 %v1406_v5  ;;  %v1592_v57 = vld [vmem:[#allocation7 + $0x978] sm:$0xff]  ;;  %v1711_v5 = vld [vmem:[#allocation7 + $0xd30] sm:$0xff] }
 0x1c6   :  { %2507 = vmatprep.subr.mxu1 %v1484_v25  ;;  %2463 = vmatpush2.msra.mxu0 %v1405_v11  ;;  %v1591_v25 = vld [vmem:[#allocation7 + $0x970] sm:$0xff]  ;;  %v1706_v11 = vld [vmem:[#allocation7 + $0xd08] sm:$0xff] }
 0x1c7   :  { %2508 = vmatpush1.msra.mxu1 %v1483_v26  ;;  %2464 = vmatprep.subr.mxu0 %v1400_v27  ;;  %v1586_v26 = vld [vmem:[#allocation7 + $0x948] sm:$0xff]  ;;  %v1705_v27 = vld [vmem:[#allocation7 + $0xd00] sm:$0xff] }
 0x1c8   :  { %2509 = vmatprep.subr.mxu1 %v1670_v19  ;;  %2465 = vmatpush2.msra.mxu0 %v1399_v28  ;;  %v1585_v19 = vld [vmem:[#allocation7 + $0x940] sm:$0xff]  ;;  %v1700_v28 = vld [vmem:[#allocation7 + $0xcd8] sm:$0xff] }
 0x1c9   :  { %2510 = vmatpush2.msra.mxu1 %v1669_v16  ;;  %2466 = vmatprep.subr.mxu0 %v1394_v10  ;;  %v1580_v16 = vld [vmem:[#allocation7 + $0x918] sm:$0xff]  ;;  %v1699_v10 = vld [vmem:[#allocation7 + $0xcd0] sm:$0xff] }
 0x1ca   :  { %2511 = vmatprep.subr.mxu1 %v1664_v32  ;;  %2467 = vmatpush2.msra.mxu0 %v1393_v44  ;;  %v1579_v32 = vld [vmem:[#allocation7 + $0x910] sm:$0xff]  ;;  %v1694_v44 = vld [vmem:[#allocation7 + $0xca8] sm:$0xff] }
 0x1cb   :  { %2512 = vmatpush2.msra.mxu1 %v1663_v4  ;;  %2468 = vmatprep.subr.mxu0 %v1388_v8  ;;  %v1958_v4 = vld [vmem:[#allocation7 + $0x14e8] sm:$0xff]  ;;  %v1957_v8 = vld [vmem:[#allocation7 + $0x14e0] sm:$0xff] }
 0x1cc   :  { %2513 = vmatprep.subr.mxu1 %v1658_v23  ;;  %2469 = vmatpush2.msra.mxu0 %v1387_v15  ;;  %v1952_v23 = vld [vmem:[#allocation7 + $0x14b8] sm:$0xff]  ;;  %v1693_v15 = vld [vmem:[#allocation7 + $0xca0] sm:$0xff] }
 0x1cd   :  { %2514 = vmatpush2.msra.mxu1 %v1657_v55  ;;  %2471 = vmatmul.mubr.f32.vlgmr.msra.gmra.mxu0 %v3433_v63  ;;  %v1951_v55 = vld [vmem:[#allocation7 + $0x14b0] sm:$0xff] }
 0x1ce   :  { %2515 = vmatprep.subr.mxu1 %v1652_v56  ;;  %2548 = vmatprep.subr.mxu0 %v1766_v0  ;;  %v1688_v56 = vld [vmem:[#allocation7 + $0xc78] sm:$0xff]  ;;  %v1946_v0 = vld [vmem:[#allocation7 + $0x1488] sm:$0xff] }
 0x1cf   :  { %2516 = vmatpush2.msra.mxu1 %v1651_v31  ;;  %2549 = vmatpush1.msra.mxu0 %v1765_v59  ;;  %v1687_v31 = vld [vmem:[#allocation7 + $0xc70] sm:$0xff]  ;;  %v1945_v59 = vld [vmem:[#allocation7 + $0x1480] sm:$0xff] }
 0x1d0   :  { %2517 = vmatprep.subr.mxu1 %v1646_v52  ;;  %2612 = vmatprep.mubr.f32.mxu0 %v3521_v36  ;;  %v1682_v52 = vld [vmem:[#allocation7 + $0xc48] sm:$0xff] }
 0x1d1   :  { %2518 = vmatpush2.msra.mxu1 %v1645_v58  ;;  %2550 = vmatprep.subr.mxu0 %v1760_v30  ;;  %v1940_v58 = vld [vmem:[#allocation7 + $0x1458] sm:$0xff]  ;;  %v1681_v30 = vld [vmem:[#allocation7 + $0xc40] sm:$0xff] }
 0x1d2   :  { %2519 = vmatprep.subr.mxu1 %v1640_v51  ;;  %2551 = vmatpush1.msra.mxu0 %v1759_v54  ;;  %v1939_v51 = vld [vmem:[#allocation7 + $0x1450] sm:$0xff]  ;;  %v1676_v54 = vld [vmem:[#allocation7 + $0xc18] sm:$0xff] }
 0x1d3   :  { %2520 = vmatpush2.msra.mxu1 %v1639_v33  ;;  %2552 = vmatprep.subr.mxu0 %v1754_v29  ;;  %v1934_v33 = vld [vmem:[#allocation7 + $0x1428] sm:$0xff]  ;;  %v1675_v29 = vld [vmem:[#allocation7 + $0xc10] sm:$0xff] }
 0x1d4   :  { %2521 = vmatprep.subr.mxu1 %v1634_v13  ;;  %2553 = vmatpush1.msra.mxu0 %v1753_v17  ;;  %v1933_v13 = vld [vmem:[#allocation7 + $0x1420] sm:$0xff]  ;;  %v1862_v17 = vld [vmem:[#allocation7 + $0x11e8] sm:$0xff] }
 0x1d5   :  { %2522 = vmatpush2.msra.mxu1 %v1633_v45  ;;  %2554 = vmatprep.subr.mxu0 %v1748_v61  ;;  %v1928_v45 = vld [vmem:[#allocation7 + $0x13f8] sm:$0xff]  ;;  %v1861_v61 = vld [vmem:[#allocation7 + $0x11e0] sm:$0xff] }
 0x1d6   :  { %2523 = vmatprep.subr.mxu1 %v1628_v21  ;;  %2555 = vmatpush1.msra.mxu0 %v1747_v7  ;;  %v1927_v21 = vld [vmem:[#allocation7 + $0x13f0] sm:$0xff]  ;;  %v1856_v7 = vld [vmem:[#allocation7 + $0x11b8] sm:$0xff] }
 0x1d7   :  { %2524 = vmatpush2.msra.mxu1 %v1627_v14  ;;  %2556 = vmatprep.subr.mxu0 %v1742_v20  ;;  %v1922_v14 = vld [vmem:[#allocation7 + $0x13c8] sm:$0xff]  ;;  %v1855_v20 = vld [vmem:[#allocation7 + $0x11b0] sm:$0xff] }
 0x1d8   :  { %2525 = vmatprep.subr.mxu1 %v1622_v35  ;;  %2557 = vmatpush1.msra.mxu0 %v1741_v48  ;;  %v1921_v35 = vld [vmem:[#allocation7 + $0x13c0] sm:$0xff]  ;;  %v1850_v48 = vld [vmem:[#allocation7 + $0x1188] sm:$0xff] }
 0x1d9   :  { %2526 = vmatpush2.msra.mxu1 %v1621_v40  ;;  %2558 = vmatprep.subr.mxu0 %v1736_v1  ;;  %v1916_v40 = vld [vmem:[#allocation7 + $0x1398] sm:$0xff]  ;;  %v1849_v1 = vld [vmem:[#allocation7 + $0x1180] sm:$0xff] }
 0x1da   :  { %2527 = vmatprep.subr.mxu1 %v1616_v47  ;;  %2559 = vmatpush1.msra.mxu0 %v1735_v43  ;;  %v1915_v47 = vld [vmem:[#allocation7 + $0x1390] sm:$0xff]  ;;  %v1844_v43 = vld [vmem:[#allocation7 + $0x1158] sm:$0xff] }
 0x1db   :  { %2528 = vmatpush2.msra.mxu1 %v1615_v42  ;;  %2560 = vmatprep.subr.mxu0 %v1730_v41  ;;  %v1910_v42 = vld [vmem:[#allocation7 + $0x1368] sm:$0xff]  ;;  %v1843_v41 = vld [vmem:[#allocation7 + $0x1150] sm:$0xff] }
 0x1dc   :  { %2529 = vmatprep.subr.mxu1 %v1610_v49  ;;  %2561 = vmatpush1.msra.mxu0 %v1729_v46  ;;  %v1909_v49 = vld [vmem:[#allocation7 + $0x1360] sm:$0xff]  ;;  %v1838_v46 = vld [vmem:[#allocation7 + $0x1128] sm:$0xff] }
 0x1dd   :  { %2530 = vmatpush2.msra.mxu1 %v1609_v2  ;;  %2562 = vmatprep.subr.mxu0 %v1724_v6  ;;  %v1904_v2 = vld [vmem:[#allocation7 + $0x1338] sm:$0xff]  ;;  %v1837_v6 = vld [vmem:[#allocation7 + $0x1120] sm:$0xff] }
 0x1de   :  { %2531 = vmatprep.subr.mxu1 %v1604_v3  ;;  %2563 = vmatpush1.msra.mxu0 %v1723_v9  ;;  %v1903_v3 = vld [vmem:[#allocation7 + $0x1330] sm:$0xff]  ;;  %v1832_v9 = vld [vmem:[#allocation7 + $0x10f8] sm:$0xff] }
 0x1df   :  { %2532 = vmatpush2.msra.mxu1 %v1603_v39  ;;  %2564 = vmatprep.subr.mxu0 %v1718_v38  ;;  %v1898_v39 = vld [vmem:[#allocation7 + $0x1308] sm:$0xff]  ;;  %v1831_v38 = vld [vmem:[#allocation7 + $0x10f0] sm:$0xff] }
 0x1e0   :  { %2533 = vmatprep.subr.mxu1 %v1598_v53  ;;  %2565 = vmatpush1.msra.mxu0 %v1717_v34  ;;  %v1897_v53 = vld [vmem:[#allocation7 + $0x1300] sm:$0xff]  ;;  %v1826_v34 = vld [vmem:[#allocation7 + $0x10c8] sm:$0xff] }
 0x1e1   :  { %2534 = vmatpush2.msra.mxu1 %v1597_v18  ;;  %2566 = vmatprep.subr.mxu0 %v1712_v12  ;;  %v1892_v18 = vld [vmem:[#allocation7 + $0x12d8] sm:$0xff]  ;;  %v1825_v12 = vld [vmem:[#allocation7 + $0x10c0] sm:$0xff] }
 0x1e2   :  { %2535 = vmatprep.subr.mxu1 %v1592_v57  ;;  %2567 = vmatpush1.msra.mxu0 %v1711_v5  ;;  %v1891_v57 = vld [vmem:[#allocation7 + $0x12d0] sm:$0xff]  ;;  %v1820_v5 = vld [vmem:[#allocation7 + $0x1098] sm:$0xff] }
 0x1e3   :  { %2536 = vmatpush2.msra.mxu1 %v1591_v25  ;;  %2568 = vmatprep.subr.mxu0 %v1706_v11  ;;  %v1886_v25 = vld [vmem:[#allocation7 + $0x12a8] sm:$0xff]  ;;  %v1819_v11 = vld [vmem:[#allocation7 + $0x1090] sm:$0xff] }
 0x1e4   :  { %2537 = vmatprep.subr.mxu1 %v1586_v26  ;;  %2569 = vmatpush1.msra.mxu0 %v1705_v27  ;;  %v1885_v26 = vld [vmem:[#allocation7 + $0x12a0] sm:$0xff]  ;;  %v1814_v27 = vld [vmem:[#allocation7 + $0x1068] sm:$0xff] }
 0x1e5   :  { %2538 = vmatpush2.msra.mxu1 %v1585_v19  ;;  %2570 = vmatprep.subr.mxu0 %v1700_v28  ;;  %v1880_v19 = vld [vmem:[#allocation7 + $0x1278] sm:$0xff]  ;;  %v1813_v28 = vld [vmem:[#allocation7 + $0x1060] sm:$0xff] }
 0x1e6   :  { %2539 = vmatprep.subr.mxu1 %v1580_v16  ;;  %2571 = vmatpush1.msra.mxu0 %v1699_v10  ;;  %v1879_v16 = vld [vmem:[#allocation7 + $0x1270] sm:$0xff]  ;;  %v1808_v10 = vld [vmem:[#allocation7 + $0x1038] sm:$0xff] }
 0x1e7   :  { %2540 = vmatpush2.msra.mxu1 %v1579_v32  ;;  %2572 = vmatprep.subr.mxu0 %v1694_v44  ;;  %v1874_v32 = vld [vmem:[#allocation7 + $0x1248] sm:$0xff]  ;;  %v1807_v44 = vld [vmem:[#allocation7 + $0x1030] sm:$0xff] }
 0x1e8   :  { %2542 = vmatmul.mubr.f32.vlgmr.msra.gmra.mxu1 %v3478_v37  ;;  %2619 = vmatprep.subr.mxu1 %v1958_v4  ;;  %v1873_v4 = vld [vmem:[#allocation7 + $0x1240] sm:$0xff] }
 0x1e9   :  { %2620 = vmatpush1.msra.mxu1 %v1957_v8  ;;  %2683 = vmatprep.mubr.f32.mxu1 %v3567_v24  ;;  %v1802_v8 = vld [vmem:[#allocation7 + $0x1008] sm:$0xff] }
 0x1ea   :  { %2621 = vmatprep.subr.mxu1 %v1952_v23  ;;  %2573 = vmatpush1.msra.mxu0 %v1693_v15  ;;  %v1868_v23 = vld [vmem:[#allocation7 + $0x1218] sm:$0xff]  ;;  %v1801_v15 = vld [vmem:[#allocation7 + $0x1000] sm:$0xff] }
 0x1eb   :  { %2622 = vmatpush1.msra.mxu1 %v1951_v55  ;;  %2574 = vmatprep.subr.mxu0 %v1688_v56  ;;  %v1867_v55 = vld [vmem:[#allocation7 + $0x1210] sm:$0xff]  ;;  %v1796_v56 = vld [vmem:[#allocation7 + $0xfd8] sm:$0xff] }
 0x1ec   :  { %2623 = vmatprep.subr.mxu1 %v1946_v0  ;;  %2575 = vmatpush1.msra.mxu0 %v1687_v31  ;;  %v2054_v0 = vld [vmem:[#allocation7 + $0x17e8] sm:$0xff]  ;;  %v1795_v31 = vld [vmem:[#allocation7 + $0xfd0] sm:$0xff] }
 0x1ed   :  { %2624 = vmatpush1.msra.mxu1 %v1945_v59  ;;  %2576 = vmatprep.subr.mxu0 %v1682_v52  ;;  %v2053_v59 = vld [vmem:[#allocation7 + $0x17e0] sm:$0xff]  ;;  %v1790_v52 = vld [vmem:[#allocation7 + $0xfa8] sm:$0xff] }
 0x1ee   :  { %2625 = vmatprep.subr.mxu1 %v1940_v58  ;;  %2577 = vmatpush1.msra.mxu0 %v1681_v30  ;;  %v2048_v58 = vld [vmem:[#allocation7 + $0x17b8] sm:$0xff]  ;;  %v1789_v30 = vld [vmem:[#allocation7 + $0xfa0] sm:$0xff] }
 0x1ef   :  { %2626 = vmatpush1.msra.mxu1 %v1939_v51  ;;  %2578 = vmatprep.subr.mxu0 %v1676_v54  ;;  %v2047_v51 = vld [vmem:[#allocation7 + $0x17b0] sm:$0xff]  ;;  %v1784_v54 = vld [vmem:[#allocation7 + $0xf78] sm:$0xff] }
 0x1f0   :  { %2627 = vmatprep.subr.mxu1 %v1934_v33  ;;  %2579 = vmatpush1.msra.mxu0 %v1675_v29  ;;  %v2042_v33 = vld [vmem:[#allocation7 + $0x1788] sm:$0xff]  ;;  %v1783_v29 = vld [vmem:[#allocation7 + $0xf70] sm:$0xff] }
 0x1f1   :  { %2628 = vmatpush1.msra.mxu1 %v1933_v13  ;;  %2580 = vmatprep.subr.mxu0 %v1862_v17  ;;  %v2041_v13 = vld [vmem:[#allocation7 + $0x1780] sm:$0xff]  ;;  %v1778_v17 = vld [vmem:[#allocation7 + $0xf48] sm:$0xff] }
 0x1f2   :  { %2629 = vmatprep.subr.mxu1 %v1928_v45  ;;  %2581 = vmatpush2.msra.mxu0 %v1861_v61  ;;  %v2036_v45 = vld [vmem:[#allocation7 + $0x1758] sm:$0xff]  ;;  %v1777_v61 = vld [vmem:[#allocation7 + $0xf40] sm:$0xff] }
 0x1f3   :  { %2630 = vmatpush1.msra.mxu1 %v1927_v21  ;;  %2582 = vmatprep.subr.mxu0 %v1856_v7  ;;  %v2035_v21 = vld [vmem:[#allocation7 + $0x1750] sm:$0xff]  ;;  %v1772_v7 = vld [vmem:[#allocation7 + $0xf18] sm:$0xff] }
 0x1f4   :  { %2631 = vmatprep.subr.mxu1 %v1922_v14  ;;  %2583 = vmatpush2.msra.mxu0 %v1855_v20  ;;  %v2030_v14 = vld [vmem:[#allocation7 + $0x1728] sm:$0xff]  ;;  %v1771_v20 = vld [vmem:[#allocation7 + $0xf10] sm:$0xff] }
 0x1f5   :  { %2632 = vmatpush1.msra.mxu1 %v1921_v35  ;;  %2584 = vmatprep.subr.mxu0 %v1850_v48  ;;  %v2029_v35 = vld [vmem:[#allocation7 + $0x1720] sm:$0xff]  ;;  %v2024_v48 = vld [vmem:[#allocation7 + $0x16f8] sm:$0xff] }
 0x1f6   :  { %2633 = vmatprep.subr.mxu1 %v1916_v40  ;;  %2585 = vmatpush2.msra.mxu0 %v1849_v1  ;;  %v1384_v40 = vld [vmem:[#allocation7 + $0x2f8] sm:$0xff]  ;;  %v2023_v1 = vld [vmem:[#allocation7 + $0x16f0] sm:$0xff] }
 0x1f7   :  { %2634 = vmatpush1.msra.mxu1 %v1915_v47  ;;  %2586 = vmatprep.subr.mxu0 %v1844_v43  ;;  %v1383_v47 = vld [vmem:[#allocation7 + $0x2f0] sm:$0xff]  ;;  %v2018_v43 = vld [vmem:[#allocation7 + $0x16c8] sm:$0xff] }
 0x1f8   :  { %2635 = vmatprep.subr.mxu1 %v1910_v42  ;;  %2587 = vmatpush2.msra.mxu0 %v1843_v41  ;;  %v2017_v42 = vld [vmem:[#allocation7 + $0x16c0] sm:$0xff]  ;;  %v1378_v41 = vld [vmem:[#allocation7 + $0x2c8] sm:$0xff] }
 0x1f9   :  { %2636 = vmatpush1.msra.mxu1 %v1909_v49  ;;  %2588 = vmatprep.subr.mxu0 %v1838_v46  ;;  %v2012_v49 = vld [vmem:[#allocation7 + $0x1698] sm:$0xff]  ;;  %v1377_v46 = vld [vmem:[#allocation7 + $0x2c0] sm:$0xff] }
 0x1fa   :  { %2637 = vmatprep.subr.mxu1 %v1904_v2  ;;  %2589 = vmatpush2.msra.mxu0 %v1837_v6  ;;  %v2011_v2 = vld [vmem:[#allocation7 + $0x1690] sm:$0xff]  ;;  %v1372_v6 = vld [vmem:[#allocation7 + $0x298] sm:$0xff] }
 0x1fb   :  { %2638 = vmatpush1.msra.mxu1 %v1903_v3  ;;  %2590 = vmatprep.subr.mxu0 %v1832_v9  ;;  %v2006_v3 = vld [vmem:[#allocation7 + $0x1668] sm:$0xff]  ;;  %v1371_v9 = vld [vmem:[#allocation7 + $0x290] sm:$0xff] }
 0x1fc   :  { %2639 = vmatprep.subr.mxu1 %v1898_v39  ;;  %2591 = vmatpush2.msra.mxu0 %v1831_v38  ;;  %v2005_v39 = vld [vmem:[#allocation7 + $0x1660] sm:$0xff]  ;;  %v1366_v38 = vld [vmem:[#allocation7 + $0x268] sm:$0xff] }
 0x1fd   :  { %2640 = vmatpush1.msra.mxu1 %v1897_v53  ;;  %2592 = vmatprep.subr.mxu0 %v1826_v34  ;;  %v2000_v53 = vld [vmem:[#allocation7 + $0x1638] sm:$0xff]  ;;  %v1365_v34 = vld [vmem:[#allocation7 + $0x260] sm:$0xff] }
 0x1fe   :  { %2641 = vmatprep.subr.mxu1 %v1892_v18  ;;  %2593 = vmatpush2.msra.mxu0 %v1825_v12  ;;  %v1999_v18 = vld [vmem:[#allocation7 + $0x1630] sm:$0xff]  ;;  %v1360_v12 = vld [vmem:[#allocation7 + $0x238] sm:$0xff] }
 0x1ff   :  { %2642 = vmatpush1.msra.mxu1 %v1891_v57  ;;  %2594 = vmatprep.subr.mxu0 %v1820_v5  ;;  %v1994_v57 = vld [vmem:[#allocation7 + $0x1608] sm:$0xff]  ;;  %v1993_v5 = vld [vmem:[#allocation7 + $0x1600] sm:$0xff] }
 0x200   :  { %2643 = vmatprep.subr.mxu1 %v1886_v25  ;;  %2595 = vmatpush2.msra.mxu0 %v1819_v11  ;;  %v1354_v25 = vld [vmem:[#allocation7 + $0x208] sm:$0xff]  ;;  %v1988_v11 = vld [vmem:[#allocation7 + $0x15d8] sm:$0xff] }
 0x201   :  { %2644 = vmatpush1.msra.mxu1 %v1885_v26  ;;  %2596 = vmatprep.subr.mxu0 %v1814_v27  ;;  %v1353_v26 = vld [vmem:[#allocation7 + $0x200] sm:$0xff]  ;;  %v1987_v27 = vld [vmem:[#allocation7 + $0x15d0] sm:$0xff] }
 0x202   :  { %2645 = vmatprep.subr.mxu1 %v1880_v19  ;;  %2597 = vmatpush2.msra.mxu0 %v1813_v28  ;;  %v1348_v19 = vld [vmem:[#allocation7 + $0x1d8] sm:$0xff]  ;;  %v1982_v28 = vld [vmem:[#allocation7 + $0x15a8] sm:$0xff] }
 0x203   :  { %2646 = vmatpush1.msra.mxu1 %v1879_v16  ;;  %2598 = vmatprep.subr.mxu0 %v1808_v10  ;;  %v1347_v16 = vld [vmem:[#allocation7 + $0x1d0] sm:$0xff]  ;;  %v1981_v10 = vld [vmem:[#allocation7 + $0x15a0] sm:$0xff] }
 0x204   :  { %2647 = vmatprep.subr.mxu1 %v1874_v32  ;;  %2599 = vmatpush2.msra.mxu0 %v1807_v44  ;;  %v1342_v32 = vld [vmem:[#allocation7 + $0x1a8] sm:$0xff]  ;;  %v1976_v44 = vld [vmem:[#allocation7 + $0x1578] sm:$0xff] }
 0x205   :  { %2648 = vmatpush1.msra.mxu1 %v1873_v4  ;;  %2600 = vmatprep.subr.mxu0 %v1802_v8  ;;  %v1341_v4 = vld [vmem:[#allocation7 + $0x1a0] sm:$0xff]  ;;  %v1975_v8 = vld [vmem:[#allocation7 + $0x1570] sm:$0xff] }
 0x206   :  { %2649 = vmatprep.subr.mxu1 %v1868_v23  ;;  %2601 = vmatpush2.msra.mxu0 %v1801_v15  ;;  %v1336_v23 = vld [vmem:[#allocation7 + $0x178] sm:$0xff]  ;;  %v1970_v15 = vld [vmem:[#allocation7 + $0x1548] sm:$0xff] }
 0x207   :  { %2650 = vmatpush1.msra.mxu1 %v1867_v55  ;;  %2602 = vmatprep.subr.mxu0 %v1796_v56  ;;  %v1335_v55 = vld [vmem:[#allocation7 + $0x170] sm:$0xff]  ;;  %v1969_v56 = vld [vmem:[#allocation7 + $0x1540] sm:$0xff] }
 0x208   :  { %2651 = vmatprep.subr.mxu1 %v2054_v0  ;;  %2603 = vmatpush2.msra.mxu0 %v1795_v31  ;;  %v1330_v0 = vld [vmem:[#allocation7 + $0x148] sm:$0xff]  ;;  %v1964_v31 = vld [vmem:[#allocation7 + $0x1518] sm:$0xff] }
 0x209   :  { %2652 = vmatpush2.msra.mxu1 %v2053_v59  ;;  %2604 = vmatprep.subr.mxu0 %v1790_v52  ;;  %v1329_v59 = vld [vmem:[#allocation7 + $0x140] sm:$0xff]  ;;  %v1963_v52 = vld [vmem:[#allocation7 + $0x1510] sm:$0xff] }
 0x20a   :  { %2653 = vmatprep.subr.mxu1 %v2048_v58  ;;  %2605 = vmatpush2.msra.mxu0 %v1789_v30  ;;  %v1324_v58 = vld [vmem:[#allocation7 + $0x118] sm:$0xff] }
 0x20b   :  { %2654 = vmatpush2.msra.mxu1 %v2047_v51  ;;  %2606 = vmatprep.subr.mxu0 %v1784_v54  ;;  %v1576_v30 = vld [vmem:[#allocation7 + $0x8f8] sm:$0xff]  ;;  %v1575_v51 = vld [vmem:[#allocation7 + $0x8f0] sm:$0xff]  ;;  %v1570_v54 = vld [vmem:[#allocation7 + $0x8c8] sm:$0xff] }
 0x20c   :  { %2655 = vmatprep.subr.mxu1 %v2042_v33  ;;  %2607 = vmatpush2.msra.mxu0 %v1783_v29  ;;  %v1323_v33 = vld [vmem:[#allocation7 + $0x110] sm:$0xff]  ;;  %v1569_v29 = vld [vmem:[#allocation7 + $0x8c0] sm:$0xff] }
 0x20d   :  { %2656 = vmatpush2.msra.mxu1 %v2041_v13  ;;  %2608 = vmatprep.subr.mxu0 %v1778_v17  ;;  %v1318_v13 = vld [vmem:[#allocation7 + $0xe8] sm:$0xff]  ;;  %v1564_v17 = vld [vmem:[#allocation7 + $0x898] sm:$0xff] }
 0x20e   :  { %2657 = vmatprep.subr.mxu1 %v2036_v45  ;;  %2609 = vmatpush2.msra.mxu0 %v1777_v61  ;;  %v1317_v45 = vld [vmem:[#allocation7 + $0xe0] sm:$0xff]  ;;  %v1563_v61 = vld [vmem:[#allocation7 + $0x890] sm:$0xff] }
 0x20f   :  { %2658 = vmatpush2.msra.mxu1 %v2035_v21  ;;  %2610 = vmatprep.subr.mxu0 %v1772_v7  ;;  %v1312_v21 = vld [vmem:[#allocation7 + $0xb8] sm:$0xff]  ;;  %v1558_v7 = vld [vmem:[#allocation7 + $0x868] sm:$0xff] }
 0x210   :  { %2659 = vmatprep.subr.mxu1 %v2030_v14  ;;  %2611 = vmatpush2.msra.mxu0 %v1771_v20  ;;  %v1311_v14 = vld [vmem:[#allocation7 + $0xb0] sm:$0xff]  ;;  %v1557_v20 = vld [vmem:[#allocation7 + $0x860] sm:$0xff] }
 0x211   :  { %2660 = vmatpush2.msra.mxu1 %v2029_v35  ;;  %2613 = vmatmul.mubr.f32.vlgmr.msra.gmra.mxu0 %v3616_v50  ;;  %v1306_v35 = vld [vmem:[#allocation7 + $0x88] sm:$0xff] }
 0x212   :  { %2661 = vmatprep.subr.mxu1 %v2024_v48  ;;  %2690 = vmatprep.subr.mxu0 %v1384_v40  ;;  %v1552_v48 = vld [vmem:[#allocation7 + $0x838] sm:$0xff]  ;;  %v1305_v40 = vld [vmem:[#allocation7 + $0x80] sm:$0xff] }
 0x213   :  { %2662 = vmatpush2.msra.mxu1 %v2023_v1  ;;  %2691 = vmatpush1.msra.mxu0 %v1383_v47  ;;  %v1300_v1 = vld [vmem:[#allocation7 + $0x58] sm:$0xff]  ;;  %v1546_v47 = vld [vmem:[#allocation7 + $0x808] sm:$0xff] }
 0x214   :  { %2663 = vmatprep.subr.mxu1 %v2018_v43  ;;  %2754 = vmatprep.mubr.f32.mxu0 %v3371_v62  ;;  %v1359_v62 = vld [vmem:[#allocation7 + $0x230] sm:$0xff] }
 0x215   :  { %2664 = vmatpush2.msra.mxu1 %v2017_v42  ;;  %2692 = vmatprep.subr.mxu0 %v1378_v41  ;;  %v1299_v43 = vld [vmem:[#allocation7 + $0x50] sm:$0xff]  ;;  %v1545_v42 = vld [vmem:[#allocation7 + $0x800] sm:$0xff]  ;;  %v1294_v41 = vld [vmem:[#allocation7 + $0x28] sm:$0xff] }
 0x216   :  { %2665 = vmatprep.subr.mxu1 %v2012_v49  ;;  %2693 = vmatpush1.msra.mxu0 %v1377_v46  ;;  %v1540_v49 = vld [vmem:[#allocation7 + $0x7d8] sm:$0xff]  ;;  %v1293_v46 = vld [vmem:[#allocation7 + $0x20] sm:$0xff] }
 0x217   :  { %2666 = vmatpush2.msra.mxu1 %v2011_v2  ;;  %2694 = vmatprep.subr.mxu0 %v1372_v6  ;;  %v1539_v2 = vld [vmem:[#allocation7 + $0x7d0] sm:$0xff]  ;;  %v1480_v6 = vld [vmem:[#allocation7 + $0x5f8] sm:$0xff] }
 0x218   :  { %2667 = vmatprep.subr.mxu1 %v2006_v3  ;;  %2695 = vmatpush1.msra.mxu0 %v1371_v9  ;;  %v1534_v3 = vld [vmem:[#allocation7 + $0x7a8] sm:$0xff]  ;;  %v1479_v9 = vld [vmem:[#allocation7 + $0x5f0] sm:$0xff] }
 0x219   :  { %2668 = vmatpush2.msra.mxu1 %v2005_v39  ;;  %2696 = vmatprep.subr.mxu0 %v1366_v38  ;;  %v1533_v39 = vld [vmem:[#allocation7 + $0x7a0] sm:$0xff]  ;;  %v1474_v38 = vld [vmem:[#allocation7 + $0x5c8] sm:$0xff] }
 0x21a   :  { %2669 = vmatprep.subr.mxu1 %v2000_v53  ;;  %2697 = vmatpush1.msra.mxu0 %v1365_v34  ;;  %v1528_v53 = vld [vmem:[#allocation7 + $0x778] sm:$0xff]  ;;  %v1473_v34 = vld [vmem:[#allocation7 + $0x5c0] sm:$0xff] }
 0x21b   :  { %2670 = vmatpush2.msra.mxu1 %v1999_v18  ;;  %2698 = vmatprep.subr.mxu0 %v1360_v12  ;;  %v1527_v18 = vld [vmem:[#allocation7 + $0x770] sm:$0xff]  ;;  %v1468_v12 = vld [vmem:[#allocation7 + $0x598] sm:$0xff] }
 0x21c   :  { %2671 = vmatprep.subr.mxu1 %v1994_v57  ;;  %2699 = vmatpush1.msra.mxu0 %v1359_v62  ;;  %v1522_v57 = vld [vmem:[#allocation7 + $0x748] sm:$0xff]  ;;  %v1467_v62 = vld [vmem:[#allocation7 + $0x590] sm:$0xff] }
 0x21d   :  { %2672 = vmatpush2.msra.mxu1 %v1993_v5  ;;  %2700 = vmatprep.subr.mxu0 %v1354_v25  ;;  %v1521_v5 = vld [vmem:[#allocation7 + $0x740] sm:$0xff]  ;;  %v1462_v25 = vld [vmem:[#allocation7 + $0x568] sm:$0xff] }
 0x21e   :  { %2673 = vmatprep.subr.mxu1 %v1988_v11  ;;  %2701 = vmatpush1.msra.mxu0 %v1353_v26  ;;  %v1516_v11 = vld [vmem:[#allocation7 + $0x718] sm:$0xff]  ;;  %v1461_v26 = vld [vmem:[#allocation7 + $0x560] sm:$0xff] }
 0x21f   :  { %2674 = vmatpush2.msra.mxu1 %v1987_v27  ;;  %2702 = vmatprep.subr.mxu0 %v1348_v19  ;;  %v1515_v27 = vld [vmem:[#allocation7 + $0x710] sm:$0xff]  ;;  %v1456_v19 = vld [vmem:[#allocation7 + $0x538] sm:$0xff] }
 0x220   :  { %2675 = vmatprep.subr.mxu1 %v1982_v28  ;;  %2703 = vmatpush1.msra.mxu0 %v1347_v16  ;;  %v1510_v28 = vld [vmem:[#allocation7 + $0x6e8] sm:$0xff]  ;;  %v1455_v16 = vld [vmem:[#allocation7 + $0x530] sm:$0xff] }
 0x221   :  { %2676 = vmatpush2.msra.mxu1 %v1981_v10  ;;  %2704 = vmatprep.subr.mxu0 %v1342_v32  ;;  %v1509_v10 = vld [vmem:[#allocation7 + $0x6e0] sm:$0xff]  ;;  %v1450_v32 = vld [vmem:[#allocation7 + $0x508] sm:$0xff] }
 0x222   :  { %2677 = vmatprep.subr.mxu1 %v1976_v44  ;;  %2705 = vmatpush1.msra.mxu0 %v1341_v4  ;;  %v1504_v44 = vld [vmem:[#allocation7 + $0x6b8] sm:$0xff]  ;;  %v1449_v4 = vld [vmem:[#allocation7 + $0x500] sm:$0xff] }
 0x223   :  { %2678 = vmatpush2.msra.mxu1 %v1975_v8  ;;  %2706 = vmatprep.subr.mxu0 %v1336_v23  ;;  %v1503_v8 = vld [vmem:[#allocation7 + $0x6b0] sm:$0xff]  ;;  %v1444_v23 = vld [vmem:[#allocation7 + $0x4d8] sm:$0xff] }
 0x224   :  { %2679 = vmatprep.subr.mxu1 %v1970_v15  ;;  %2707 = vmatpush1.msra.mxu0 %v1335_v55  ;;  %v1498_v15 = vld [vmem:[#allocation7 + $0x688] sm:$0xff]  ;;  %v1443_v55 = vld [vmem:[#allocation7 + $0x4d0] sm:$0xff] }
 0x225   :  { %2680 = vmatpush2.msra.mxu1 %v1969_v56  ;;  %2708 = vmatprep.subr.mxu0 %v1330_v0  ;;  %v1497_v56 = vld [vmem:[#allocation7 + $0x680] sm:$0xff]  ;;  %v1438_v0 = vld [vmem:[#allocation7 + $0x4a8] sm:$0xff] }
 0x226   :  { %2681 = vmatprep.subr.mxu1 %v1964_v31  ;;  %2709 = vmatpush1.msra.mxu0 %v1329_v59  ;;  %v1492_v31 = vld [vmem:[#allocation7 + $0x658] sm:$0xff]  ;;  %v1437_v59 = vld [vmem:[#allocation7 + $0x4a0] sm:$0xff] }
 0x227   :  { %2682 = vmatpush2.msra.mxu1 %v1963_v52  ;;  %2710 = vmatprep.subr.mxu0 %v1324_v58  ;;  %v1491_v52 = vld [vmem:[#allocation7 + $0x650] sm:$0xff]  ;;  %v1432_v58 = vld [vmem:[#allocation7 + $0x478] sm:$0xff] }
 0x228   :  { %2684 = vmatmul.mubr.f32.vlgmr.msra.gmra.mxu1 %v3636_v22  ;;  %2761 = vmatprep.subr.mxu1 %v1576_v30  ;;  %v1486_v30 = vld [vmem:[#allocation7 + $0x628] sm:$0xff] }
 0x229   :  { %2762 = vmatpush1.msra.mxu1 %v1575_v51  ;;  %2825 = vmatprep.mubr.f32.mxu1 %v3400_v60  ;;  %v1551_v60 = vld [vmem:[#allocation7 + $0x830] sm:$0xff] }
 0x22a   :  { %2763 = vmatprep.subr.mxu1 %v1570_v54  ;;  %2711 = vmatpush1.msra.mxu0 %v1323_v33  ;;  %v1431_v51 = vld [vmem:[#allocation7 + $0x470] sm:$0xff]  ;;  %v1485_v54 = vld [vmem:[#allocation7 + $0x620] sm:$0xff]  ;;  %v1426_v33 = vld [vmem:[#allocation7 + $0x448] sm:$0xff] }
 0x22b   :  { %2764 = vmatpush1.msra.mxu1 %v1569_v29  ;;  %2712 = vmatprep.subr.mxu0 %v1318_v13  ;;  %v1672_v29 = vld [vmem:[#allocation7 + $0xbf8] sm:$0xff]  ;;  %v1425_v13 = vld [vmem:[#allocation7 + $0x440] sm:$0xff] }
 0x22c   :  { %2765 = vmatprep.subr.mxu1 %v1564_v17  ;;  %2713 = vmatpush1.msra.mxu0 %v1317_v45  ;;  %v1671_v17 = vld [vmem:[#allocation7 + $0xbf0] sm:$0xff]  ;;  %v1420_v45 = vld [vmem:[#allocation7 + $0x418] sm:$0xff] }
 0x22d   :  { %2766 = vmatpush1.msra.mxu1 %v1563_v61  ;;  %2714 = vmatprep.subr.mxu0 %v1312_v21  ;;  %v1666_v61 = vld [vmem:[#allocation7 + $0xbc8] sm:$0xff]  ;;  %v1419_v21 = vld [vmem:[#allocation7 + $0x410] sm:$0xff] }
 0x22e   :  { %2767 = vmatprep.subr.mxu1 %v1558_v7  ;;  %2715 = vmatpush1.msra.mxu0 %v1311_v14  ;;  %v1665_v7 = vld [vmem:[#allocation7 + $0xbc0] sm:$0xff]  ;;  %v1414_v14 = vld [vmem:[#allocation7 + $0x3e8] sm:$0xff] }
 0x22f   :  { %2768 = vmatpush1.msra.mxu1 %v1557_v20  ;;  %2716 = vmatprep.subr.mxu0 %v1306_v35  ;;  %v1660_v20 = vld [vmem:[#allocation7 + $0xb98] sm:$0xff]  ;;  %v1413_v35 = vld [vmem:[#allocation7 + $0x3e0] sm:$0xff] }
 0x230   :  { %2769 = vmatprep.subr.mxu1 %v1552_v48  ;;  %2717 = vmatpush1.msra.mxu0 %v1305_v40  ;;  %v1659_v48 = vld [vmem:[#allocation7 + $0xb90] sm:$0xff]  ;;  %v1408_v40 = vld [vmem:[#allocation7 + $0x3b8] sm:$0xff] }
 0x231   :  { %2770 = vmatpush1.msra.mxu1 %v1551_v60  ;;  %2718 = vmatprep.subr.mxu0 %v1300_v1  ;;  %v1654_v60 = vld [vmem:[#allocation7 + $0xb68] sm:$0xff]  ;;  %v1407_v1 = vld [vmem:[#allocation7 + $0x3b0] sm:$0xff] }
 0x232   :  { %2771 = vmatprep.subr.mxu1 %v1546_v47  ;;  %2719 = vmatpush1.msra.mxu0 %v1299_v43  ;;  %v1653_v47 = vld [vmem:[#allocation7 + $0xb60] sm:$0xff]  ;;  %v1402_v43 = vld [vmem:[#allocation7 + $0x388] sm:$0xff] }
 0x233   :  { %2772 = vmatpush1.msra.mxu1 %v1545_v42  ;;  %2720 = vmatprep.subr.mxu0 %v1294_v41  ;;  %v1648_v42 = vld [vmem:[#allocation7 + $0xb38] sm:$0xff]  ;;  %v1401_v41 = vld [vmem:[#allocation7 + $0x380] sm:$0xff] }
 0x234   :  { %2773 = vmatprep.subr.mxu1 %v1540_v49  ;;  %2721 = vmatpush1.msra.mxu0 %v1293_v46  ;;  %v1647_v49 = vld [vmem:[#allocation7 + $0xb30] sm:$0xff]  ;;  %v1396_v46 = vld [vmem:[#allocation7 + $0x358] sm:$0xff] }
 0x235   :  { %2774 = vmatpush1.msra.mxu1 %v1539_v2  ;;  %2722 = vmatprep.subr.mxu0 %v1480_v6  ;;  %v1642_v2 = vld [vmem:[#allocation7 + $0xb08] sm:$0xff]  ;;  %v1395_v6 = vld [vmem:[#allocation7 + $0x350] sm:$0xff] }
 0x236   :  { %2775 = vmatprep.subr.mxu1 %v1534_v3  ;;  %2723 = vmatpush2.msra.mxu0 %v1479_v9  ;;  %v1641_v3 = vld [vmem:[#allocation7 + $0xb00] sm:$0xff]  ;;  %v1390_v9 = vld [vmem:[#allocation7 + $0x328] sm:$0xff] }
 0x237   :  { %2776 = vmatpush1.msra.mxu1 %v1533_v39  ;;  %2724 = vmatprep.subr.mxu0 %v1474_v38  ;;  %v1636_v39 = vld [vmem:[#allocation7 + $0xad8] sm:$0xff]  ;;  %v1389_v38 = vld [vmem:[#allocation7 + $0x320] sm:$0xff] }
 0x238   :  { %2777 = vmatprep.subr.mxu1 %v1528_v53  ;;  %2725 = vmatpush2.msra.mxu0 %v1473_v34  ;;  %v1635_v53 = vld [vmem:[#allocation7 + $0xad0] sm:$0xff]  ;;  %v1630_v34 = vld [vmem:[#allocation7 + $0xaa8] sm:$0xff] }
 0x239   :  { %2778 = vmatpush1.msra.mxu1 %v1527_v18  ;;  %2726 = vmatprep.subr.mxu0 %v1468_v12  ;;  %v1768_v18 = vld [vmem:[#allocation7 + $0xef8] sm:$0xff]  ;;  %v1629_v12 = vld [vmem:[#allocation7 + $0xaa0] sm:$0xff] }
 0x23a   :  { %2779 = vmatprep.subr.mxu1 %v1522_v57  ;;  %2727 = vmatpush2.msra.mxu0 %v1467_v62  ;;  %v1767_v57 = vld [vmem:[#allocation7 + $0xef0] sm:$0xff]  ;;  %v1624_v62 = vld [vmem:[#allocation7 + $0xa78] sm:$0xff] }
 0x23b   :  { %2780 = vmatpush1.msra.mxu1 %v1521_v5  ;;  %2728 = vmatprep.subr.mxu0 %v1462_v25  ;;  %v1623_v5 = vld [vmem:[#allocation7 + $0xa70] sm:$0xff]  ;;  %v1762_v25 = vld [vmem:[#allocation7 + $0xec8] sm:$0xff] }
 0x23c   :  { %2781 = vmatprep.subr.mxu1 %v1516_v11  ;;  %2729 = vmatpush2.msra.mxu0 %v1461_v26  ;;  %v1618_v11 = vld [vmem:[#allocation7 + $0xa48] sm:$0xff]  ;;  %v1761_v26 = vld [vmem:[#allocation7 + $0xec0] sm:$0xff] }
 0x23d   :  { %2782 = vmatpush1.msra.mxu1 %v1515_v27  ;;  %2730 = vmatprep.subr.mxu0 %v1456_v19  ;;  %v1617_v27 = vld [vmem:[#allocation7 + $0xa40] sm:$0xff]  ;;  %v1756_v19 = vld [vmem:[#allocation7 + $0xe98] sm:$0xff] }
 0x23e   :  { %2783 = vmatprep.subr.mxu1 %v1510_v28  ;;  %2731 = vmatpush2.msra.mxu0 %v1455_v16  ;;  %v1612_v28 = vld [vmem:[#allocation7 + $0xa18] sm:$0xff]  ;;  %v1755_v16 = vld [vmem:[#allocation7 + $0xe90] sm:$0xff] }
 0x23f   :  { %2784 = vmatpush1.msra.mxu1 %v1509_v10  ;;  %2732 = vmatprep.subr.mxu0 %v1450_v32  ;;  %v1611_v10 = vld [vmem:[#allocation7 + $0xa10] sm:$0xff]  ;;  %v1606_v32 = vld [vmem:[#allocation7 + $0x9e8] sm:$0xff] }
 0x240   :  { %2785 = vmatprep.subr.mxu1 %v1504_v44  ;;  %2733 = vmatpush2.msra.mxu0 %v1449_v4  ;;  %v1749_v44 = vld [vmem:[#allocation7 + $0xe60] sm:$0xff] }
 0x241   :  { %2786 = vmatpush1.msra.mxu1 %v1503_v8  ;;  %2734 = vmatprep.subr.mxu0 %v1444_v23  ;;  %v1605_v4 = vld [vmem:[#allocation7 + $0x9e0] sm:$0xff]  ;;  %v1744_v8 = vld [vmem:[#allocation7 + $0xe38] sm:$0xff] }
 0x242   :  { %2787 = vmatprep.subr.mxu1 %v1498_v15  ;;  %2735 = vmatpush2.msra.mxu0 %v1443_v55  ;;  %v1600_v23 = vld [vmem:[#allocation7 + $0x9b8] sm:$0xff]  ;;  %v1599_v15 = vld [vmem:[#allocation7 + $0x9b0] sm:$0xff]  ;;  %v1738_v55 = vld [vmem:[#allocation7 + $0xe08] sm:$0xff] }
 0x243   :  { %2788 = vmatpush1.msra.mxu1 %v1497_v56  ;;  %2736 = vmatprep.subr.mxu0 %v1438_v0  ;;  %v1594_v56 = vld [vmem:[#allocation7 + $0x988] sm:$0xff]  ;;  %v1737_v0 = vld [vmem:[#allocation7 + $0xe00] sm:$0xff] }
 0x244   :  { %2789 = vmatprep.subr.mxu1 %v1492_v31  ;;  %2737 = vmatpush2.msra.mxu0 %v1437_v59  ;;  %v1593_v31 = vld [vmem:[#allocation7 + $0x980] sm:$0xff]  ;;  %v1732_v59 = vld [vmem:[#allocation7 + $0xdd8] sm:$0xff] }
 0x245   :  { %2790 = vmatpush1.msra.mxu1 %v1491_v52  ;;  %2738 = vmatprep.subr.mxu0 %v1432_v58  ;;  %v1588_v52 = vld [vmem:[#allocation7 + $0x958] sm:$0xff]  ;;  %v1731_v58 = vld [vmem:[#allocation7 + $0xdd0] sm:$0xff] }
 0x246   :  { %2791 = vmatprep.subr.mxu1 %v1486_v30  ;;  %2739 = vmatpush2.msra.mxu0 %v1431_v51  ;;  %v1587_v30 = vld [vmem:[#allocation7 + $0x950] sm:$0xff]  ;;  %v1726_v51 = vld [vmem:[#allocation7 + $0xda8] sm:$0xff] }
 0x247   :  { %2792 = vmatpush1.msra.mxu1 %v1485_v54  ;;  %2740 = vmatprep.subr.mxu0 %v1426_v33  ;;  %v1582_v54 = vld [vmem:[#allocation7 + $0x928] sm:$0xff]  ;;  %v1725_v33 = vld [vmem:[#allocation7 + $0xda0] sm:$0xff] }
 0x248   :  { %2793 = vmatprep.subr.mxu1 %v1672_v29  ;;  %2741 = vmatpush2.msra.mxu0 %v1425_v13  ;;  %v1581_v29 = vld [vmem:[#allocation7 + $0x920] sm:$0xff]  ;;  %v1720_v13 = vld [vmem:[#allocation7 + $0xd78] sm:$0xff] }
 0x249   :  { %2794 = vmatpush2.msra.mxu1 %v1671_v17  ;;  %2742 = vmatprep.subr.mxu0 %v1420_v45  ;;  %v1960_v17 = vld [vmem:[#allocation7 + $0x14f8] sm:$0xff]  ;;  %v1959_v45 = vld [vmem:[#allocation7 + $0x14f0] sm:$0xff] }
 0x24a   :  { %2795 = vmatprep.subr.mxu1 %v1666_v61  ;;  %2743 = vmatpush2.msra.mxu0 %v1419_v21  ;;  %v1954_v61 = vld [vmem:[#allocation7 + $0x14c8] sm:$0xff]  ;;  %v1719_v21 = vld [vmem:[#allocation7 + $0xd70] sm:$0xff] }
 0x24b   :  { %2796 = vmatpush2.msra.mxu1 %v1665_v7  ;;  %2744 = vmatprep.subr.mxu0 %v1414_v14  ;;  %v1953_v7 = vld [vmem:[#allocation7 + $0x14c0] sm:$0xff]  ;;  %v1714_v14 = vld [vmem:[#allocation7 + $0xd48] sm:$0xff] }
 0x24c   :  { %2797 = vmatprep.subr.mxu1 %v1660_v20  ;;  %2745 = vmatpush2.msra.mxu0 %v1413_v35  ;;  %v1948_v20 = vld [vmem:[#allocation7 + $0x1498] sm:$0xff]  ;;  %v1713_v35 = vld [vmem:[#allocation7 + $0xd40] sm:$0xff] }
 0x24d   :  { %2798 = vmatpush2.msra.mxu1 %v1659_v48  ;;  %2746 = vmatprep.subr.mxu0 %v1408_v40  ;;  %v1947_v48 = vld [vmem:[#allocation7 + $0x1490] sm:$0xff]  ;;  %v1708_v40 = vld [vmem:[#allocation7 + $0xd18] sm:$0xff] }
 0x24e   :  { %2799 = vmatprep.subr.mxu1 %v1654_v60  ;;  %2747 = vmatpush2.msra.mxu0 %v1407_v1  ;;  %v1942_v60 = vld [vmem:[#allocation7 + $0x1468] sm:$0xff]  ;;  %v1707_v1 = vld [vmem:[#allocation7 + $0xd10] sm:$0xff] }
 0x24f   :  { %2800 = vmatpush2.msra.mxu1 %v1653_v47  ;;  %2748 = vmatprep.subr.mxu0 %v1402_v43  ;;  %v1941_v47 = vld [vmem:[#allocation7 + $0x1460] sm:$0xff]  ;;  %v1936_v43 = vld [vmem:[#allocation7 + $0x1438] sm:$0xff] }
 0x250   :  { %2801 = vmatprep.subr.mxu1 %v1648_v42  ;;  %2749 = vmatpush2.msra.mxu0 %v1401_v41  ;;  %v1701_v42 = vld [vmem:[#allocation7 + $0xce0] sm:$0xff]  ;;  %v1696_v41 = vld [vmem:[#allocation7 + $0xcb8] sm:$0xff] }
 0x251   :  { %2802 = vmatpush2.msra.mxu1 %v1647_v49  ;;  %2750 = vmatprep.subr.mxu0 %v1396_v46  ;;  %v1930_v49 = vld [vmem:[#allocation7 + $0x1408] sm:$0xff]  ;;  %v1695_v46 = vld [vmem:[#allocation7 + $0xcb0] sm:$0xff] }
 0x252   :  { %2803 = vmatprep.subr.mxu1 %v1642_v2  ;;  %2751 = vmatpush2.msra.mxu0 %v1395_v6  ;;  %v1929_v2 = vld [vmem:[#allocation7 + $0x1400] sm:$0xff]  ;;  %v1690_v6 = vld [vmem:[#allocation7 + $0xc88] sm:$0xff] }
 0x253   :  { %2804 = vmatpush2.msra.mxu1 %v1641_v3  ;;  %2752 = vmatprep.subr.mxu0 %v1390_v9  ;;  %v1924_v3 = vld [vmem:[#allocation7 + $0x13d8] sm:$0xff]  ;;  %v1689_v9 = vld [vmem:[#allocation7 + $0xc80] sm:$0xff] }
 0x254   :  { %2805 = vmatprep.subr.mxu1 %v1636_v39  ;;  %2753 = vmatpush2.msra.mxu0 %v1389_v38  ;;  %v1923_v39 = vld [vmem:[#allocation7 + $0x13d0] sm:$0xff]  ;;  %v1684_v38 = vld [vmem:[#allocation7 + $0xc58] sm:$0xff] }
 0x255   :  { %2806 = vmatpush2.msra.mxu1 %v1635_v53  ;;  %2755 = vmatmul.mubr.f32.vlgmr.msra.gmra.mxu0 %v3433_v63  ;;  %v1750_v63 = vld [vmem:[#allocation7 + $0xe68] sm:$0xff] }
 0x256   :  { %2807 = vmatprep.subr.mxu1 %v1630_v34  ;;  %2832 = vmatprep.subr.mxu0 %v1768_v18  ;;  %v1918_v53 = vld [vmem:[#allocation7 + $0x13a8] sm:$0xff]  ;;  %v1683_v34 = vld [vmem:[#allocation7 + $0xc50] sm:$0xff]  ;;  %v1917_v18 = vld [vmem:[#allocation7 + $0x13a0] sm:$0xff] }
 0x257   :  { %2808 = vmatpush2.msra.mxu1 %v1629_v12  ;;  %2833 = vmatpush1.msra.mxu0 %v1767_v57  ;;  %v1678_v12 = vld [vmem:[#allocation7 + $0xc28] sm:$0xff]  ;;  %v1912_v57 = vld [vmem:[#allocation7 + $0x1378] sm:$0xff] }
 0x258   :  { %2809 = vmatprep.subr.mxu1 %v1624_v62  ;;  %2896 = vmatprep.mubr.f32.mxu0 %v3521_v36  ;;  %v1743_v36 = vld [vmem:[#allocation7 + $0xe30] sm:$0xff]  ;;  %v1677_v62 = vld [vmem:[#allocation7 + $0xc20] sm:$0xff] }
 0x259   :  { %2810 = vmatpush2.msra.mxu1 %v1623_v5  ;;  %2834 = vmatprep.subr.mxu0 %v1762_v25  ;;  %v1911_v5 = vld [vmem:[#allocation7 + $0x1370] sm:$0xff]  ;;  %v1864_v25 = vld [vmem:[#allocation7 + $0x11f8] sm:$0xff] }
 0x25a   :  { %2811 = vmatprep.subr.mxu1 %v1618_v11  ;;  %2835 = vmatpush1.msra.mxu0 %v1761_v26  ;;  %v1906_v11 = vld [vmem:[#allocation7 + $0x1348] sm:$0xff]  ;;  %v1863_v26 = vld [vmem:[#allocation7 + $0x11f0] sm:$0xff] }
 0x25b   :  { %2812 = vmatpush2.msra.mxu1 %v1617_v27  ;;  %2836 = vmatprep.subr.mxu0 %v1756_v19  ;;  %v1905_v27 = vld [vmem:[#allocation7 + $0x1340] sm:$0xff]  ;;  %v1858_v19 = vld [vmem:[#allocation7 + $0x11c8] sm:$0xff] }
 0x25c   :  { %2813 = vmatprep.subr.mxu1 %v1612_v28  ;;  %2837 = vmatpush1.msra.mxu0 %v1755_v16  ;;  %v1900_v28 = vld [vmem:[#allocation7 + $0x1318] sm:$0xff]  ;;  %v1857_v16 = vld [vmem:[#allocation7 + $0x11c0] sm:$0xff] }
 0x25d   :  { %2814 = vmatpush2.msra.mxu1 %v1611_v10  ;;  %2838 = vmatprep.subr.mxu0 %v1750_v63  ;;  %v1899_v10 = vld [vmem:[#allocation7 + $0x1310] sm:$0xff]  ;;  %v1852_v63 = vld [vmem:[#allocation7 + $0x1198] sm:$0xff] }
 0x25e   :  { %2815 = vmatprep.subr.mxu1 %v1606_v32  ;;  %2839 = vmatpush1.msra.mxu0 %v1749_v44  ;;  %v1894_v32 = vld [vmem:[#allocation7 + $0x12e8] sm:$0xff]  ;;  %v1851_v44 = vld [vmem:[#allocation7 + $0x1190] sm:$0xff] }
 0x25f   :  { %2816 = vmatpush2.msra.mxu1 %v1605_v4  ;;  %2840 = vmatprep.subr.mxu0 %v1744_v8  ;;  %v1893_v4 = vld [vmem:[#allocation7 + $0x12e0] sm:$0xff]  ;;  %v1846_v8 = vld [vmem:[#allocation7 + $0x1168] sm:$0xff] }
 0x260   :  { %2817 = vmatprep.subr.mxu1 %v1600_v23  ;;  %2841 = vmatpush1.msra.mxu0 %v1743_v36  ;;  %v1888_v23 = vld [vmem:[#allocation7 + $0x12b8] sm:$0xff]  ;;  %v1845_v36 = vld [vmem:[#allocation7 + $0x1160] sm:$0xff] }
 0x261   :  { %2818 = vmatpush2.msra.mxu1 %v1599_v15  ;;  %2842 = vmatprep.subr.mxu0 %v1738_v55  ;;  %v1887_v15 = vld [vmem:[#allocation7 + $0x12b0] sm:$0xff]  ;;  %v1840_v55 = vld [vmem:[#allocation7 + $0x1138] sm:$0xff] }
 0x262   :  { %2819 = vmatprep.subr.mxu1 %v1594_v56  ;;  %2843 = vmatpush1.msra.mxu0 %v1737_v0  ;;  %v1882_v56 = vld [vmem:[#allocation7 + $0x1288] sm:$0xff]  ;;  %v1839_v0 = vld [vmem:[#allocation7 + $0x1130] sm:$0xff] }
 0x263   :  { %2820 = vmatpush2.msra.mxu1 %v1593_v31  ;;  %2844 = vmatprep.subr.mxu0 %v1732_v59  ;;  %v1881_v31 = vld [vmem:[#allocation7 + $0x1280] sm:$0xff]  ;;  %v1834_v59 = vld [vmem:[#allocation7 + $0x1108] sm:$0xff] }
 0x264   :  { %2821 = vmatprep.subr.mxu1 %v1588_v52  ;;  %2845 = vmatpush1.msra.mxu0 %v1731_v58  ;;  %v1876_v52 = vld [vmem:[#allocation7 + $0x1258] sm:$0xff]  ;;  %v1833_v58 = vld [vmem:[#allocation7 + $0x1100] sm:$0xff] }
 0x265   :  { %2822 = vmatpush2.msra.mxu1 %v1587_v30  ;;  %2846 = vmatprep.subr.mxu0 %v1726_v51  ;;  %v1875_v30 = vld [vmem:[#allocation7 + $0x1250] sm:$0xff]  ;;  %v1828_v51 = vld [vmem:[#allocation7 + $0x10d8] sm:$0xff] }
 0x266   :  { %2823 = vmatprep.subr.mxu1 %v1582_v54  ;;  %2847 = vmatpush1.msra.mxu0 %v1725_v33  ;;  %v1870_v54 = vld [vmem:[#allocation7 + $0x1228] sm:$0xff]  ;;  %v1827_v33 = vld [vmem:[#allocation7 + $0x10d0] sm:$0xff] }
 0x267   :  { %2824 = vmatpush2.msra.mxu1 %v1581_v29  ;;  %2848 = vmatprep.subr.mxu0 %v1720_v13  ;;  %v1869_v29 = vld [vmem:[#allocation7 + $0x1220] sm:$0xff]  ;;  %v1822_v13 = vld [vmem:[#allocation7 + $0x10a8] sm:$0xff] }
 0x268   :  { %2826 = vmatmul.mubr.f32.vlgmr.msra.gmra.mxu1 %v3478_v37  ;;  %2903 = vmatprep.subr.mxu1 %v1960_v17  ;;  %v1702_v37 = vld [vmem:[#allocation7 + $0xce8] sm:$0xff]  ;;  %v2056_v17 = vld [vmem:[#allocation7 + $0x17f8] sm:$0xff] }
 0x269   :  { %2904 = vmatpush1.msra.mxu1 %v1959_v45  ;;  %2967 = vmatprep.mubr.f32.mxu1 %v3567_v24  ;;  %v1935_v24 = vld [vmem:[#allocation7 + $0x1430] sm:$0xff]  ;;  %v1821_v45 = vld [vmem:[#allocation7 + $0x10a0] sm:$0xff] }
 0x26a   :  { %2905 = vmatprep.subr.mxu1 %v1954_v61  ;;  %2849 = vmatpush1.msra.mxu0 %v1719_v21  ;;  %v2055_v61 = vld [vmem:[#allocation7 + $0x17f0] sm:$0xff]  ;;  %v1816_v21 = vld [vmem:[#allocation7 + $0x1078] sm:$0xff] }
 0x26b   :  { %2906 = vmatpush1.msra.mxu1 %v1953_v7  ;;  %2850 = vmatprep.subr.mxu0 %v1714_v14  ;;  %v2050_v7 = vld [vmem:[#allocation7 + $0x17c8] sm:$0xff]  ;;  %v1815_v14 = vld [vmem:[#allocation7 + $0x1070] sm:$0xff] }
 0x26c   :  { %2907 = vmatprep.subr.mxu1 %v1948_v20  ;;  %2851 = vmatpush1.msra.mxu0 %v1713_v35  ;;  %v2049_v20 = vld [vmem:[#allocation7 + $0x17c0] sm:$0xff]  ;;  %v1810_v35 = vld [vmem:[#allocation7 + $0x1048] sm:$0xff] }
 0x26d   :  { %2908 = vmatpush1.msra.mxu1 %v1947_v48  ;;  %2852 = vmatprep.subr.mxu0 %v1708_v40  ;;  %v2044_v48 = vld [vmem:[#allocation7 + $0x1798] sm:$0xff]  ;;  %v1809_v40 = vld [vmem:[#allocation7 + $0x1040] sm:$0xff] }
 0x26e   :  { %2909 = vmatprep.subr.mxu1 %v1942_v60  ;;  %2853 = vmatpush1.msra.mxu0 %v1707_v1  ;;  %v2043_v60 = vld [vmem:[#allocation7 + $0x1790] sm:$0xff]  ;;  %v1804_v1 = vld [vmem:[#allocation7 + $0x1018] sm:$0xff] }
 0x26f   :  { %2910 = vmatpush1.msra.mxu1 %v1941_v47  ;;  %2854 = vmatprep.subr.mxu0 %v1702_v37  ;;  %v2038_v47 = vld [vmem:[#allocation7 + $0x1768] sm:$0xff]  ;;  %v1803_v37 = vld [vmem:[#allocation7 + $0x1010] sm:$0xff] }
 0x270   :  { %2911 = vmatprep.subr.mxu1 %v1936_v43  ;;  %2855 = vmatpush1.msra.mxu0 %v1701_v42  ;;  %v2037_v43 = vld [vmem:[#allocation7 + $0x1760] sm:$0xff]  ;;  %v1798_v42 = vld [vmem:[#allocation7 + $0xfe8] sm:$0xff] }
 0x271   :  { %2912 = vmatpush1.msra.mxu1 %v1935_v24  ;;  %2856 = vmatprep.subr.mxu0 %v1696_v41  ;;  %v2032_v24 = vld [vmem:[#allocation7 + $0x1738] sm:$0xff]  ;;  %v1797_v41 = vld [vmem:[#allocation7 + $0xfe0] sm:$0xff] }
 0x272   :  { %2913 = vmatprep.subr.mxu1 %v1930_v49  ;;  %2857 = vmatpush1.msra.mxu0 %v1695_v46  ;;  %v2031_v49 = vld [vmem:[#allocation7 + $0x1730] sm:$0xff]  ;;  %v1792_v46 = vld [vmem:[#allocation7 + $0xfb8] sm:$0xff] }
 0x273   :  { %2914 = vmatpush1.msra.mxu1 %v1929_v2  ;;  %2858 = vmatprep.subr.mxu0 %v1690_v6  ;;  %v2026_v2 = vld [vmem:[#allocation7 + $0x1708] sm:$0xff]  ;;  %v1791_v6 = vld [vmem:[#allocation7 + $0xfb0] sm:$0xff] }
 0x274   :  { %2915 = vmatprep.subr.mxu1 %v1924_v3  ;;  %2859 = vmatpush1.msra.mxu0 %v1689_v9  ;;  %v2025_v3 = vld [vmem:[#allocation7 + $0x1700] sm:$0xff]  ;;  %v1786_v9 = vld [vmem:[#allocation7 + $0xf88] sm:$0xff] }
 0x275   :  { %2916 = vmatpush1.msra.mxu1 %v1923_v39  ;;  %2860 = vmatprep.subr.mxu0 %v1684_v38  ;;  %v2020_v39 = vld [vmem:[#allocation7 + $0x16d8] sm:$0xff]  ;;  %v1785_v38 = vld [vmem:[#allocation7 + $0xf80] sm:$0xff] }
 0x276   :  { %2917 = vmatprep.subr.mxu1 %v1918_v53  ;;  %2861 = vmatpush1.msra.mxu0 %v1683_v34  ;;  %v2019_v53 = vld [vmem:[#allocation7 + $0x16d0] sm:$0xff]  ;;  %v1780_v34 = vld [vmem:[#allocation7 + $0xf58] sm:$0xff] }
 0x277   :  { %2918 = vmatpush1.msra.mxu1 %v1917_v18  ;;  %2862 = vmatprep.subr.mxu0 %v1678_v12  ;;  %v2014_v18 = vld [vmem:[#allocation7 + $0x16a8] sm:$0xff]  ;;  %v1779_v12 = vld [vmem:[#allocation7 + $0xf50] sm:$0xff] }
 0x278   :  { %2919 = vmatprep.subr.mxu1 %v1912_v57  ;;  %2863 = vmatpush1.msra.mxu0 %v1677_v62  ;;  %v2013_v57 = vld [vmem:[#allocation7 + $0x16a0] sm:$0xff]  ;;  %v1774_v62 = vld [vmem:[#allocation7 + $0xf28] sm:$0xff] }
 0x279   :  { %2920 = vmatpush1.msra.mxu1 %v1911_v5  ;;  %2864 = vmatprep.subr.mxu0 %v1864_v25  ;;  %v2008_v5 = vld [vmem:[#allocation7 + $0x1678] sm:$0xff]  ;;  %v1773_v25 = vld [vmem:[#allocation7 + $0xf20] sm:$0xff] }
 0x27a   :  { %2921 = vmatprep.subr.mxu1 %v1906_v11  ;;  %2865 = vmatpush2.msra.mxu0 %v1863_v26  ;;  %v2007_v11 = vld [vmem:[#allocation7 + $0x1670] sm:$0xff]  ;;  %v2002_v26 = vld [vmem:[#allocation7 + $0x1648] sm:$0xff] }
 0x27b   :  { %2922 = vmatpush1.msra.mxu1 %v1905_v27  ;;  %2866 = vmatprep.subr.mxu0 %v1858_v19  ;;  %v2001_v27 = vld [vmem:[#allocation7 + $0x1640] sm:$0xff]  ;;  %v1996_v19 = vld [vmem:[#allocation7 + $0x1618] sm:$0xff] }
 0x27c   :  { %2923 = vmatprep.subr.mxu1 %v1900_v28  ;;  %2867 = vmatpush2.msra.mxu0 %v1857_v16  ;;  %v1995_v28 = vld [vmem:[#allocation7 + $0x1610] sm:$0xff]  ;;  %v1990_v16 = vld [vmem:[#allocation7 + $0x15e8] sm:$0xff] }
 0x27d   :  { %2924 = vmatpush1.msra.mxu1 %v1899_v10  ;;  %2868 = vmatprep.subr.mxu0 %v1852_v63  ;;  %v1989_v10 = vld [vmem:[#allocation7 + $0x15e0] sm:$0xff]  ;;  %v1984_v63 = vld [vmem:[#allocation7 + $0x15b8] sm:$0xff] }
 0x27e   :  { %2925 = vmatprep.subr.mxu1 %v1894_v32  ;;  %2869 = vmatpush2.msra.mxu0 %v1851_v44  ;;  %v1983_v32 = vld [vmem:[#allocation7 + $0x15b0] sm:$0xff]  ;;  %v1978_v44 = vld [vmem:[#allocation7 + $0x1588] sm:$0xff] }
 0x27f   :  { %2926 = vmatpush1.msra.mxu1 %v1893_v4  ;;  %2870 = vmatprep.subr.mxu0 %v1846_v8  ;;  %v1977_v4 = vld [vmem:[#allocation7 + $0x1580] sm:$0xff]  ;;  %v1972_v8 = vld [vmem:[#allocation7 + $0x1558] sm:$0xff] }
 0x280   :  { %2927 = vmatprep.subr.mxu1 %v1888_v23  ;;  %2871 = vmatpush2.msra.mxu0 %v1845_v36  ;;  %v1971_v23 = vld [vmem:[#allocation7 + $0x1550] sm:$0xff]  ;;  %v1965_v36 = vld [vmem:[#allocation7 + $0x1520] sm:$0xff] }
 0x281   :  { %2928 = vmatpush1.msra.mxu1 %v1887_v15  ;;  %2872 = vmatprep.subr.mxu0 %v1840_v55  ;;  %v2188_v15 = vpop.f32.mrf.mxu0  ;;  %v2059_v55 = vlaneseq }
 0x282   :  { %2929 = vmatprep.subr.mxu1 %v1882_v56  ;;  %2873 = vmatpush2.msra.mxu0 %v1839_v0 }
 0x283   :  { %2930 = vmatpush1.msra.mxu1 %v1881_v31  ;;  %2874 = vmatprep.subr.mxu0 %v1834_v59  ;;  %v2190_v56 = vpop.f32.mrf.mxu0  ;;  %v2060_v0 = vshrl.u32 %v2059_v55, 7  ;;  %v2259_v31 = vpop.f32.mrf.mxu1 }
 0x284   :  { %2931 = vmatprep.subr.mxu1 %v1876_v52  ;;  %2875 = vmatpush2.msra.mxu0 %v1833_v58 }
 0x285   :  { %2932 = vmatpush1.msra.mxu1 %v1875_v30  ;;  %2876 = vmatprep.subr.mxu0 %v1828_v51  ;;  %v2330_v59 = vpop.f32.mrf.mxu0  ;;  %v2065_v52 = vsub.s32 1, %v2060_v0  ;;  %v2061_v58 = vsub.s32 0, %v2060_v0  ;;  %v2057_v30 = vld [vmem:[#allocation8] sm:$0x3f]  ;;  %v2261_v51 = vpop.f32.mrf.mxu1 }
 0x286   :  { %2933 = vmatprep.subr.mxu1 %v1870_v54  ;;  %2877 = vmatpush2.msra.mxu0 %v1827_v33 }
 0x287   :  { %2934 = vmatpush1.msra.mxu1 %v1869_v29  ;;  %2878 = vmatprep.subr.mxu0 %v1822_v13  ;;  %v2332_v54 = vpop.f32.mrf.mxu0  ;;  %v2066_v33 = vrot.slane %v2057_v30, %v2065_v52  ;;  %v2069_v29 = vsub.s32 2, %v2060_v0  ;;  %v2073_v13 = vsub.s32 3, %v2060_v0 }
 0x288   :  { %2935 = vmatprep.subr.mxu1 %v2056_v17  ;;  %2879 = vmatpush2.msra.mxu0 %v1821_v45  ;;  %v2401_v17 = vpop.f32.mrf.mxu1 }
 0x289   :  { %2936 = vmatpush2.msra.mxu1 %v2055_v61  ;;  %2880 = vmatprep.subr.mxu0 %v1816_v21  ;;  %v2062_v61 = vrot.slane %v2057_v30, %v2061_v58  ;;  %v2191_v21 = vadd.f32 %v2190_v56, %v2066_v33 }
 0x28a   :  { %2937 = vmatprep.subr.mxu1 %v2050_v7  ;;  %2881 = vmatpush2.msra.mxu0 %v1815_v14  ;;  %v2070_v7 = vrot.slane %v2057_v30, %v2069_v29  ;;  %v2403_v14 = vpop.f32.mrf.mxu1 }
 0x28b   :  { %2938 = vmatpush2.msra.mxu1 %v2049_v20  ;;  %2882 = vmatprep.subr.mxu0 %v1810_v35  ;;  %v2189_v35 = vadd.f32 %v2188_v15, %v2062_v61 }
 0x28c   :  { %2939 = vmatprep.subr.mxu1 %v2044_v48  ;;  %2883 = vmatpush2.msra.mxu0 %v1809_v40 }
 0x28d   :  { %2940 = vmatpush2.msra.mxu1 %v2043_v60  ;;  %2884 = vmatprep.subr.mxu0 %v1804_v1  ;;  %v2472_v45 = vpop.f32.mrf.mxu0  ;;  %v2262_v60 = vadd.f32 %v2261_v51, %v2191_v21 }
 0x28e   :  { %2941 = vmatprep.subr.mxu1 %v2038_v47  ;;  %2885 = vmatpush2.msra.mxu0 %v1803_v37  ;;  %v2473_v1 = vadd.f32 %v2472_v45, %v2070_v7  ;;  %v2260_v37 = vadd.f32 %v2259_v31, %v2189_v35 }
 0x28f   :  { %2942 = vmatpush2.msra.mxu1 %v2037_v43  ;;  %2886 = vmatprep.subr.mxu0 %v1798_v42  ;;  %v2474_v20 = vpop.f32.mrf.mxu0  ;;  %v2333_v43 = vadd.f32 %v2332_v54, %v2262_v60  ;;  %v3154_v42 = vmov 1983009808  }
 0x290   :  { %2943 = vmatprep.subr.mxu1 %v2032_v24  ;;  %2887 = vmatpush2.msra.mxu0 %v1797_v41  ;;  %v2983_v24 = vunpack.c.l.s4 %v3154_v42 }
 0x291   :  { %2944 = vmatpush2.msra.mxu1 %v2031_v49  ;;  %2888 = vmatprep.subr.mxu0 %v1792_v46  ;;  %v2331_v46 = vadd.f32 %v2330_v59, %v2260_v37 }
 0x292   :  { %2945 = vmatprep.subr.mxu1 %v2026_v2  ;;  %2889 = vmatpush2.msra.mxu0 %v1791_v6 }
 0x293   :  { %2946 = vmatpush2.msra.mxu1 %v2025_v3  ;;  %2890 = vmatprep.subr.mxu0 %v1786_v9  ;;  %v2404_v3 = vadd.f32 %v2403_v14, %v2333_v43  ;;  %v2984_v9 = vunpack.c.0.s8 %v2983_v24 }
 0x294   :  { %2947 = vmatprep.subr.mxu1 %v2020_v39  ;;  %2891 = vmatpush2.msra.mxu0 %v1785_v38 }
 0x295   :  { %2948 = vmatpush2.msra.mxu1 %v2019_v53  ;;  %2892 = vmatprep.subr.mxu0 %v1780_v34  ;;  %v2402_v34 = vadd.f32 %v2401_v17, %v2331_v46 }
 0x296   :  { %2949 = vmatprep.subr.mxu1 %v2014_v18  ;;  %2893 = vmatpush2.msra.mxu0 %v1779_v12 }
 0x297   :  { %2950 = vmatpush2.msra.mxu1 %v2013_v57  ;;  %2894 = vmatprep.subr.mxu0 %v1774_v62  ;;  %v2980_v12 = vcombine.low %v2402_v34, %v2404_v3  ;;  %v2987_v57 = vsub.s32 %v2984_v9, %v2060_v0 }
 0x298   :  { %2951 = vmatprep.subr.mxu1 %v2008_v5  ;;  %2895 = vmatpush2.msra.mxu0 %v1773_v25 }
 0x299   :  { %2952 = vmatpush2.msra.mxu1 %v2007_v11  ;;  %2897 = vmatmul.mubr.f32.vlgmr.msra.gmra.mxu0 %v3616_v50  ;;  %v1966_v50 = vld [vmem:[#allocation7 + $0x1528] sm:$0xff]  ;;  %v2988_v11 = vrot.slane %v2980_v12, %v2987_v57 }
 0x29a   :  { %2953 = vmatprep.subr.mxu1 %v2002_v26 }
 0x29b   :  { %2954 = vmatpush2.msra.mxu1 %v2001_v27 }
 0x29c   :  { %2955 = vmatprep.subr.mxu1 %v1996_v19  ;;  %v2077_v19 = vsub.s32 4, %v2060_v0 }
 0x29d   :  { %2956 = vmatpush2.msra.mxu1 %v1995_v28  ;;  %v2081_v28 = vsub.s32 5, %v2060_v0 }
 0x29e   :  { %2957 = vmatprep.subr.mxu1 %v1990_v16 }
 0x29f   :  { %2958 = vmatpush2.msra.mxu1 %v1989_v10  ;;  %v2078_v10 = vrot.slane %v2057_v30, %v2077_v19 }
 0x2a0   :  { %2959 = vmatprep.subr.mxu1 %v1984_v63  ;;  %v2082_v63 = vrot.slane %v2057_v30, %v2081_v28 }
 0x2a1   :  { %2960 = vmatpush2.msra.mxu1 %v1983_v32 }
 0x2a2   :  { %2961 = vmatprep.subr.mxu1 %v1978_v44 }
 0x2a3   :  { %2962 = vmatpush2.msra.mxu1 %v1977_v4 }
 0x2a4   :  { %2963 = vmatprep.subr.mxu1 %v1972_v8 }
 0x2a5   :  { %2964 = vmatpush2.msra.mxu1 %v1971_v23 }
 0x2a6   :  { %2965 = vmatprep.subr.mxu1 %v1966_v50 }
 0x2a7   :  { %2966 = vmatpush2.msra.mxu1 %v1965_v36 }
 0x2a8   :  { %2968 = vmatmul.mubr.f32.vlgmr.msra.gmra.mxu1 %v3636_v22  ;;  %v2074_v22 = vrot.slane %v2057_v30, %v2073_v13  ;;  %v2543_v48 = vpop.f32.mrf.mxu1 }
 0x2a9   :  { %v2544_v2 = vadd.f32 %v2543_v48, %v2473_v1 }
 0x2aa   :  { %v2475_v47 = vadd.f32 %v2474_v20, %v2074_v22  ;;  %v2545_v41 = vpop.f32.mrf.mxu1 }
 0x2ac   :  { %v2546_v6 = vadd.f32 %v2545_v41, %v2475_v47 }
 0x2d1   :  { %v2614_v40 = vpop.f32.mrf.mxu0 }
 0x2d2   :  { %v2615_v39 = vadd.f32 %v2614_v40, %v2544_v2 }
 0x2d3   :  { %v2616_v49 = vpop.f32.mrf.mxu0 }
 0x2d4   :  { %v2617_v38 = vadd.f32 %v2616_v49, %v2546_v6 }
 0x2e8   :  { %v2685_v53 = vpop.f32.mrf.mxu1 }
 0x2e9   :  { %v2686_v62 = vadd.f32 %v2685_v53, %v2615_v39 }
 0x2ea   :  { %v2687_v18 = vpop.f32.mrf.mxu1 }
 0x2eb   :  { %v2688_v5 = vadd.f32 %v2687_v18, %v2617_v38 }
 0x2ed   :  { %v2981_v25 = vcombine.low %v2686_v62, %v2688_v5 }
 0x2ef   :  { %v2995_v26 = vrot.slane %v2981_v25, %v2987_v57 }
 0x2f1   :  { %v2996_v27 = vcombine.low %v2988_v11, %v2995_v26 }
 0x2f3   :  { %3007 = vst [vmem:[#allocation10] sm:$0xff] %v2996_v27 }
 0x315   :  { %v2756_v16 = vpop.f32.mrf.mxu0 }
 0x316   :  { %v2757_v8 = vadd.f32 %v2756_v16, %v2078_v10 }
 0x317   :  { %v2758_v32 = vpop.f32.mrf.mxu0 }
 0x318   :  { %v2759_v23 = vadd.f32 %v2758_v32, %v2082_v63 }
 0x328   :  { %v2827_v44 = vpop.f32.mrf.mxu1 }
 0x329   :  { %v2828_v15 = vadd.f32 %v2827_v44, %v2757_v8 }
 0x32a   :  { %v2829_v50 = vpop.f32.mrf.mxu1 }
 0x32b   :  { %v2830_v55 = vadd.f32 %v2829_v50, %v2759_v23 }
 0x359   :  { %v2898_v4 = vpop.f32.mrf.mxu0 }
 0x35a   :  { %v2899_v56 = vadd.f32 %v2898_v4, %v2828_v15 }
 0x35b   :  { %v2900_v36 = vpop.f32.mrf.mxu0 }
 0x35c   :  { %v2901_v31 = vadd.f32 %v2900_v36, %v2830_v55 }
 0x368   :  { %v2969_v59 = vpop.f32.mrf.mxu1 }
 0x369   :  { %v2970_v58 = vadd.f32 %v2969_v59, %v2899_v56 }
 0x36a   :  { %v2971_v52 = vpop.f32.mrf.mxu1 }
 0x36b   :  { %v2972_v0 = vadd.f32 %v2971_v52, %v2901_v31 }
 0x36d   :  { %v2997_v51 = vcombine.low %v2970_v58, %v2972_v0 }
 0x36f   :  { %3027 = vst.sshfl [vmem:[#allocation10 + $0x8] sm:$0x33 pattern:$0x76325410] %v2997_v51 }
 0x370   :  { %3129 = shalt.err (!%p3126_p10)
}
 0x371   :  { %3018 = dma.vmem_to_hbm [thread:$0]  %s3016_s3, 192, %s3661_s4, [#allocation4]  }
 0x372   :  { %3144 = dma.done.wait [#allocation4], 192  }
 0x373   :  { %3145 = vsyncadd [#allocation4], 4294967104 }
 0x374   :  { %3022 = vsyncpa [#allocation3], 1 }
 0x375   :  { %3023 = vsyncpa [#allocation6], 1 }
 0x376   :  { %3024 = vsyncpa [#allocation9], 1 }
 0x377   :  { %3025 = vsyncpa [#allocation4], 1 }

</bundles_post_ra>
